<compile_context>
chip_gen: v5e
topology: v5e:2x2
jax: 0.10.0
libtpu: 0.0.40
codegen_flags: <defaults>
</compile_context>

<pallas_src>
import jax
import jax.numpy as jnp
import numpy as np
from jax.experimental import pallas as pl
from jax.experimental.pallas import tpu as pltpu

_GN_EPS = 1e-5
_LANE = 128
# 3x3 tap offsets, ordered to match an HWIO weight reshaped to (9, Cin, Cout).
_OFFS = tuple((dy, dx) for dy in (-1, 0, 1) for dx in (-1, 0, 1))


def _round_up(n, m):
    return ((n + m - 1) // m) * m


def _group_norm_silu(h, gamma, beta, onehot, inv_n):
    """GroupNorm (biased var, PyTorch semantics) + affine + SiLU, all f32.

    h: (HW, Cpad) f32.  `onehot` is the shared (G, Cpad) group-membership map;
    padded channels belong to no group and stay exactly zero.  Variance is
    two-pass (subtract group mean) to avoid E[x^2]-E[x]^2 cancellation.
    """
    def group_broadcast(stat_c):                                  # (1,Cp)->(1,Cp)
        per_g = jnp.sum(stat_c * onehot, axis=1, keepdims=True)   # (G, 1)
        return jnp.sum(per_g * onehot, axis=0, keepdims=True)     # (1, Cp)

    mean_c = group_broadcast(jnp.sum(h, axis=0, keepdims=True)) * inv_n
    d = h - mean_c
    var_c = group_broadcast(jnp.sum(d * d, axis=0, keepdims=True)) * inv_n
    y = d * jax.lax.rsqrt(var_c + _GN_EPS)
    y = y * gamma + beta
    return y * jax.nn.sigmoid(y)                                  # SiLU


def _make_resblock_kernel(img_w, hw, padr, num_groups, cgrp, cin_pad, cout_pad,
                          has_proj):
    def kernel(*refs):
        if has_proj:
            (x_ref, w1_ref, b1_ref, g1_ref, be1_ref, t_ref,
             w2_ref, b2_ref, g2_ref, be2_ref, wx_ref, bx_ref,
             out_ref, xpad_ref, h1pad_ref) = refs
        else:
            (x_ref, w1_ref, b1_ref, g1_ref, be1_ref, t_ref,
             w2_ref, b2_ref, g2_ref, be2_ref,
             out_ref, xpad_ref, h1pad_ref) = refs

        # ---- per-step constants (iota + VPU compares; no HBM inputs) ---------
        pos = jax.lax.broadcasted_iota(jnp.int32, (hw, 1), 0).astype(jnp.float32)
        col = pos - jnp.floor(pos / float(img_w)) * float(img_w)   # exact int vals
        mask_l = (col != 0.0).astype(jnp.float32)                  # dx = -1 valid
        mask_r = (col != float(img_w - 1)).astype(jnp.float32)     # dx = +1 valid

        grp = jax.lax.broadcasted_iota(jnp.int32, (num_groups, cout_pad), 0)
        ch = jax.lax.broadcasted_iota(jnp.int32, (num_groups, cout_pad), 1)
        onehot = jnp.logical_and(ch >= grp * cgrp,
                                 ch < (grp + 1) * cgrp).astype(jnp.float32)
        inv_n = 1.0 / float(hw * cgrp)

        def conv3x3(src_ref, w_ref):
            """3x3 'SAME' conv: 9 shifted (HW,Ci)x(Ci,Co) bf16 matmuls, f32 acc.

            src_ref: (HW + 2*padr, Ci) f32 with zero row halo (covers dy=+-1);
            w_ref: (9, Ci, Co) bf16.  dx=+-1 row-wrap contributions are cancelled
            by one f32 mask multiply per dx-group (masks are dy-independent).
            """
            accs = [jnp.zeros((hw, cout_pad), jnp.float32) for _ in range(3)]
            for k, (dy, dx) in enumerate(_OFFS):
                start = padr + dy * img_w + dx                    # static offset
                v = src_ref[pl.ds(start, hw), :].astype(jnp.bfloat16)
                accs[dx + 1] = accs[dx + 1] + jnp.dot(
                    v, w_ref[k], preferred_element_type=jnp.float32)
            return mask_l * accs[0] + accs[1] + mask_r * accs[2]

        # ---- stage x (arrives bf16) into the zero row-padded slab ------------
        zci = jnp.zeros((padr, cin_pad), jnp.float32)
        xpad_ref[pl.ds(0, padr), :] = zci
        xpad_ref[pl.ds(padr + hw, padr), :] = zci
        xpad_ref[pl.ds(padr, hw), :] = x_ref[...].astype(jnp.float32)

        # ---- conv1 (3x3) + GroupNorm + SiLU + temb broadcast-add -------------
        h1 = conv3x3(xpad_ref, w1_ref) + b1_ref[...]
        h1 = _group_norm_silu(h1, g1_ref[...], be1_ref[...], onehot, inv_n)
        h1 = h1 + t_ref[...]                                      # (1,Cout) bcast

        # Stage row-padded h1 in VMEM for the second conv (never hits HBM).
        zco = jnp.zeros((padr, cout_pad), jnp.float32)
        h1pad_ref[pl.ds(0, padr), :] = zco
        h1pad_ref[pl.ds(padr + hw, padr), :] = zco
        h1pad_ref[pl.ds(padr, hw), :] = h1

        # ---- conv2 (3x3) + GroupNorm + SiLU ----------------------------------
        h2 = conv3x3(h1pad_ref, w2_ref) + b2_ref[...]
        h2 = _group_norm_silu(h2, g2_ref[...], be2_ref[...], onehot, inv_n)

        # ---- skip path (optional 1x1 conv) + residual add --------------------
        if has_proj:
            skip = jnp.dot(x_ref[...], wx_ref[...],
                           preferred_element_type=jnp.float32) + bx_ref[...]
        else:
            # Identity skip reads the already-upcast slab (bf16-rounded x).
            skip = xpad_ref[pl.ds(padr, hw), :]
        out_ref[...] = (skip + h2).astype(out_ref.dtype)

    return kernel


def residual_block_forward(x_nchw, temb, params, num_groups=8):
    """Equivalent of ResidualBlock.forward(x, temb).  x_nchw: (B, Cin, H, W) f32."""
    b, cin, img_h, img_w = x_nchw.shape
    cout = params["w1"].shape[-1]
    hw = img_h * img_w
    cin_pad = _round_up(cin, _LANE)       # lane-dense channels (no-op if C%128==0)
    cout_pad = _round_up(cout, _LANE)
    padr = _round_up(img_w + 1, 16)       # zero halo rows (>= W+1), 16-aligned
    rpad = hw + 2 * padr
    cgrp = cout // num_groups
    has_proj = cin != cout

    # NHWC rows in bf16, channel-padded; NO HBM row padding (halo is in-kernel).
    x = jnp.transpose(x_nchw, (0, 2, 3, 1)).reshape(b, hw, cin).astype(jnp.bfloat16)
    x = jnp.pad(x, ((0, 0), (0, 0), (0, cin_pad - cin)))

    # temb projection hoisted to one tiny batched XLA matmul, padded to Cout_pad.
    t_all = (temb.astype(jnp.float32) @ params["wt"].astype(jnp.float32)
             + params["bt"].astype(jnp.float32))
    t_all = jnp.pad(t_all, ((0, 0), (0, cout_pad - cout))).reshape(b, 1, cout_pad)

    def conv_w(w, ci_pad):                # (3,3,Ci,Co) HWIO -> (9,Ci_pad,Co_pad) bf16
        w = jnp.asarray(w, jnp.bfloat16)
        ci, co = int(w.shape[2]), int(w.shape[3])
        w = w.reshape(9, ci, co)
        return jnp.pad(w, ((0, 0), (0, ci_pad - ci), (0, cout_pad - co)))

    def row(v):                           # (Co,) -> (1, Co_pad) f32, zero-padded
        v = jnp.asarray(v, jnp.float32).reshape(1, -1)
        return jnp.pad(v, ((0, 0), (0, cout_pad - v.shape[1])))

    w1 = conv_w(params["w1"], cin_pad)
    w2 = conv_w(params["w2"], cout_pad)

    full = lambda shape: pl.BlockSpec(shape, lambda i: (0,) * len(shape))
    in_specs = [
        pl.BlockSpec((None, hw, cin_pad), lambda i: (i, 0, 0)),   # x (bf16)
        full((9, cin_pad, cout_pad)),                             # w1 (bf16)
        full((1, cout_pad)), full((1, cout_pad)), full((1, cout_pad)),  # b1,g1,be1
        pl.BlockSpec((None, 1, cout_pad), lambda i: (i, 0, 0)),   # temb row
        full((9, cout_pad, cout_pad)),                            # w2 (bf16)
        full((1, cout_pad)), full((1, cout_pad)), full((1, cout_pad)),  # b2,g2,be2
    ]
    args = [x, w1, row(params["b1"]), row(params["g1"]), row(params["be1"]),
            t_all, w2, row(params["b2"]), row(params["g2"]), row(params["be2"])]
    if has_proj:
        wx = jnp.pad(jnp.asarray(params["wx"], jnp.bfloat16),
                     ((0, cin_pad - cin), (0, cout_pad - cout)))
        in_specs += [full((cin_pad, cout_pad)), full((1, cout_pad))]
        args += [wx, row(params["bx"])]

    # Exact VMEM budget: 2x each (double-buffered) input block + 2x output block
    # + persistent scratch + ~2 MiB internal headroom, capped just under the
    # physical VMEM of the current chip (no artificial 48 MiB cap on v5e/v6e).
    in_blk = (hw * cin_pad * 2
              + 9 * cin_pad * cout_pad * 2 + 9 * cout_pad * cout_pad * 2
              + 7 * cout_pad * 4)
    if has_proj:
        in_blk += cin_pad * cout_pad * 2 + cout_pad * 4
    out_blk = hw * cout_pad * 4
    scratch_b = rpad * (cin_pad + cout_pad) * 4
    need = 2 * in_blk + 2 * out_blk + scratch_b + (2 << 20)
    try:
        phys = int(pltpu.get_tpu_info().vmem_capacity_bytes)
    except Exception:
        phys = 64 << 20                   # conservative fallback (v7x per-TC size)
    vmem_limit = int(min(max(need, 32 << 20), max(phys - (4 << 20), 16 << 20)))

    out = pl.pallas_call(
        _make_resblock_kernel(img_w, hw, padr, num_groups, cgrp,
                              cin_pad, cout_pad, has_proj),
        out_shape=jax.ShapeDtypeStruct((b, hw, cout_pad), jnp.float32),
        grid=(b,),
        in_specs=in_specs,
        out_specs=pl.BlockSpec((None, hw, cout_pad), lambda i: (i, 0, 0)),
        scratch_shapes=[pltpu.VMEM((rpad, cin_pad), jnp.float32),
                        pltpu.VMEM((rpad, cout_pad), jnp.float32)],
        compiler_params=pltpu.CompilerParams(
            dimension_semantics=("parallel",),        # batch steps independent
            vmem_limit_bytes=vmem_limit),
    )(*args)

    out = out[:, :, :cout].reshape(b, img_h, img_w, cout)
    return jnp.transpose(out, (0, 3, 1, 2))


def _ref_forward(x_nchw, temb, params, num_groups=8):
    """Pure-JAX (f32) reference mirroring the PyTorch module, for verification."""
    dn = ("NHWC", "HWIO", "NHWC")
    x = jnp.transpose(x_nchw, (0, 2, 3, 1)).astype(jnp.float32)

    def gn_silu(h, gamma, beta):
        bsz, hh, ww, c = h.shape
        hg = h.reshape(bsz, hh, ww, num_groups, c // num_groups)
        mean = hg.mean(axis=(1, 2, 4), keepdims=True)
        var = hg.var(axis=(1, 2, 4), keepdims=True)
        hn = ((hg - mean) / jnp.sqrt(var + _GN_EPS)).reshape(bsz, hh, ww, c)
        y = hn * gamma + beta
        return y * jax.nn.sigmoid(y)

    h = jax.lax.conv_general_dilated(x, params["w1"], (1, 1), "SAME",
                                     dimension_numbers=dn) + params["b1"]
    h = gn_silu(h, params["g1"], params["be1"])
    t = temb @ params["wt"] + params["bt"]
    h = h + t[:, None, None, :]
    h = jax.lax.conv_general_dilated(h, params["w2"], (1, 1), "SAME",
                                     dimension_numbers=dn) + params["b2"]
    h = gn_silu(h, params["g2"], params["be2"])
    cin, cout = x.shape[-1], params["w1"].shape[-1]
    if cin != cout:
        wx = params["wx"].reshape(1, 1, cin, cout)
        skip = jax.lax.conv_general_dilated(x, wx, (1, 1), "SAME",
                                            dimension_numbers=dn) + params["bx"]
    else:
        skip = x
    return jnp.transpose(skip + h, (0, 3, 1, 2))


if __name__ == "__main__":
    def make_params(key, cin, cout, tc, with_proj):
        ks = jax.random.split(key, 12)
        n = lambda k, shape, s=0.1: s * jax.random.normal(k, shape, jnp.float32)
        p = dict(
            w1=n(ks[0], (3, 3, cin, cout)),     # conv weights stored HWIO
            b1=n(ks[1], (cout,)),
            g1=1.0 + n(ks[2], (cout,), 0.05),
            be1=n(ks[3], (cout,), 0.05),
            wt=n(ks[4], (tc, cout)),            # Linear weight stored (in, out)
            bt=n(ks[5], (cout,)),
            w2=n(ks[6], (3, 3, cout, cout)),
            b2=n(ks[7], (cout,)),
            g2=1.0 + n(ks[8], (cout,), 0.05),
            be2=n(ks[9], (cout,), 0.05),
        )
        if with_proj:
            p["wx"] = n(ks[10], (cin, cout))    # 1x1 conv weight as (Cin, Cout)
            p["bx"] = n(ks[11], (cout,))
        return p

    B, TC, H, W = 2, 32, 16, 16
    key = jax.random.PRNGKey(0)
    k_p1, k_p2, k_x1, k_x2, k_t = jax.random.split(key, 5)
    temb = jax.random.normal(k_t, (B, TC), jnp.float32)

    # Case 1: in_channels != out_channels (1x1-conv skip projection).
    params1 = make_params(k_p1, 4, 8, TC, with_proj=True)
    x1 = jax.random.normal(k_x1, (B, 4, H, W), jnp.float32)
    out1 = jax.block_until_ready(residual_block_forward(x1, temb, params1))
    assert out1.shape == (B, 8, H, W), out1.shape
    ref1 = _ref_forward(x1, temb, params1)
    np.testing.assert_allclose(np.asarray(out1), np.asarray(ref1),
                               atol=3e-2, rtol=3e-2)

    # Case 2: in_channels == out_channels (identity skip, projection elided).
    params2 = make_params(k_p2, 8, 8, TC, with_proj=False)
    x2 = jax.random.normal(k_x2, (B, 8, H, W), jnp.float32)
    out2 = jax.block_until_ready(residual_block_forward(x2, temb, params2))
    ref2 = _ref_forward(x2, temb, params2)
    np.testing.assert_allclose(np.asarray(out2), np.asarray(ref2),
                               atol=3e-2, rtol=3e-2)

    print("KERNEL_OK")
</pallas_src>

<mosaic_0001>
module attributes {stable_mosaic.version = 11 : i64} {
  func.func @kernel(%arg0: i32, %arg1: memref<1x256x128xbf16, #tpu.memory_space<vmem>>, %arg2: memref<9x128x128xbf16, #tpu.memory_space<vmem>>, %arg3: memref<1x128xf32, #tpu.memory_space<vmem>>, %arg4: memref<1x128xf32, #tpu.memory_space<vmem>>, %arg5: memref<1x128xf32, #tpu.memory_space<vmem>>, %arg6: memref<1x1x128xf32, #tpu.memory_space<vmem>>, %arg7: memref<9x128x128xbf16, #tpu.memory_space<vmem>>, %arg8: memref<1x128xf32, #tpu.memory_space<vmem>>, %arg9: memref<1x128xf32, #tpu.memory_space<vmem>>, %arg10: memref<1x128xf32, #tpu.memory_space<vmem>>, %arg11: memref<128x128xbf16, #tpu.memory_space<vmem>>, %arg12: memref<1x128xf32, #tpu.memory_space<vmem>>, %arg13: memref<1x256x128xf32, #tpu.memory_space<vmem>>, %arg14: memref<320x128xf32, #tpu.memory_space<vmem>>, %arg15: memref<320x128xf32, #tpu.memory_space<vmem>>) attributes {dimension_semantics = [#tpu.dimension_semantics<parallel>], iteration_bounds = array<i64: 2>, scalar_prefetch = 0 : i64, scratch_operands = 2 : i64, tpu.core_type = #tpu.core_type<tc>, window_params = [{transform_indices = @transform_0, window_bounds = array<i64: 1, 256, 128>}, {pipeline_mode = #tpu.pipeline_mode<synchronous>, transform_indices = @transform_1, window_bounds = array<i64: 9, 128, 128>}, {pipeline_mode = #tpu.pipeline_mode<synchronous>, transform_indices = @transform_2, window_bounds = array<i64: 1, 128>}, {pipeline_mode = #tpu.pipeline_mode<synchronous>, transform_indices = @transform_3, window_bounds = array<i64: 1, 128>}, {pipeline_mode = #tpu.pipeline_mode<synchronous>, transform_indices = @transform_4, window_bounds = array<i64: 1, 128>}, {transform_indices = @transform_5, window_bounds = array<i64: 1, 1, 128>}, {pipeline_mode = #tpu.pipeline_mode<synchronous>, transform_indices = @transform_6, window_bounds = array<i64: 9, 128, 128>}, {pipeline_mode = #tpu.pipeline_mode<synchronous>, transform_indices = @transform_7, window_bounds = array<i64: 1, 128>}, {pipeline_mode = #tpu.pipeline_mode<synchronous>, transform_indices = @transform_8, window_bounds = array<i64: 1, 128>}, {pipeline_mode = #tpu.pipeline_mode<synchronous>, transform_indices = @transform_9, window_bounds = array<i64: 1, 128>}, {pipeline_mode = #tpu.pipeline_mode<synchronous>, transform_indices = @transform_10, window_bounds = array<i64: 128, 128>}, {pipeline_mode = #tpu.pipeline_mode<synchronous>, transform_indices = @transform_11, window_bounds = array<i64: 1, 128>}, {transform_indices = @transform_12, window_bounds = array<i64: 1, 256, 128>}]} {
    %0 = tpu.iota {dimensions = array<i32: 0>} : vector<256x1xi32>
    %1 = arith.sitofp %0 : vector<256x1xi32> to vector<256x1xf32>
    %cst = arith.constant 1.600000e+01 : f32
    %2 = vector.broadcast %cst : f32 to vector<256x1xf32>
    %3 = arith.divf %1, %2 : vector<256x1xf32>
    %4 = math.floor %3 : vector<256x1xf32>
    %cst_0 = arith.constant 1.600000e+01 : f32
    %5 = vector.broadcast %cst_0 : f32 to vector<256x1xf32>
    %6 = arith.mulf %4, %5 : vector<256x1xf32>
    %7 = arith.subf %1, %6 : vector<256x1xf32>
    %cst_1 = arith.constant 0.000000e+00 : f32
    %8 = vector.broadcast %cst_1 : f32 to vector<256x1xf32>
    %9 = arith.cmpf one, %7, %8 : vector<256x1xf32>
    %10 = arith.extui %9 : vector<256x1xi1> to vector<256x1xi32>
    %11 = arith.sitofp %10 : vector<256x1xi32> to vector<256x1xf32>
    %cst_2 = arith.constant 1.500000e+01 : f32
    %12 = vector.broadcast %cst_2 : f32 to vector<256x1xf32>
    %13 = arith.cmpf one, %7, %12 : vector<256x1xf32>
    %14 = arith.extui %13 : vector<256x1xi1> to vector<256x1xi32>
    %15 = arith.sitofp %14 : vector<256x1xi32> to vector<256x1xf32>
    %16 = tpu.iota {dimensions = array<i32: 0>} : vector<8x128xi32>
    %17 = tpu.iota {dimensions = array<i32: 1>} : vector<8x128xi32>
    %c1_i32 = arith.constant 1 : i32
    %18 = vector.broadcast %c1_i32 : i32 to vector<8x128xi32>
    %19 = arith.muli %16, %18 : vector<8x128xi32>
    %20 = arith.cmpi sge, %17, %19 : vector<8x128xi32>
    %c1_i32_3 = arith.constant 1 : i32
    %21 = vector.broadcast %c1_i32_3 : i32 to vector<8x128xi32>
    %22 = arith.addi %16, %21 : vector<8x128xi32>
    %c1_i32_4 = arith.constant 1 : i32
    %23 = vector.broadcast %c1_i32_4 : i32 to vector<8x128xi32>
    %24 = arith.muli %22, %23 : vector<8x128xi32>
    %25 = arith.cmpi slt, %17, %24 : vector<8x128xi32>
    %26 = arith.andi %20, %25 : vector<8x128xi1>
    %27 = arith.extui %26 : vector<8x128xi1> to vector<8x128xi32>
    %28 = arith.sitofp %27 : vector<8x128xi32> to vector<8x128xf32>
    %cst_5 = arith.constant 0.000000e+00 : f32
    %29 = vector.broadcast %cst_5 : f32 to vector<32x128xf32>
    %c0 = arith.constant 0 : index
    %c0_6 = arith.constant 0 : index
    %30 = vector.load %arg14[%c0, %c0_6] : memref<320x128xf32, #tpu.memory_space<vmem>>, vector<32x128xf32>
    tpu.vector_store %arg14[%c0, %c0_6], %29 {strides = array<i32>} : memref<320x128xf32, #tpu.memory_space<vmem>>, vector<32x128xf32>,
    %c288 = arith.constant 288 : index
    %c0_7 = arith.constant 0 : index
    %31 = vector.load %arg14[%c288, %c0_7] : memref<320x128xf32, #tpu.memory_space<vmem>>, vector<32x128xf32>
    tpu.vector_store %arg14[%c288, %c0_7], %29 {strides = array<i32>} : memref<320x128xf32, #tpu.memory_space<vmem>>, vector<32x128xf32>,
    %c0_8 = arith.constant 0 : index
    %c0_9 = arith.constant 0 : index
    %c0_10 = arith.constant 0 : index
    %32 = vector.load %arg1[%c0_8, %c0_9, %c0_10] : memref<1x256x128xbf16, #tpu.memory_space<vmem>>, vector<1x256x128xbf16>
    %33 = vector.shape_cast %32 : vector<1x256x128xbf16> to vector<256x128xbf16>
    %34 = arith.extf %33 : vector<256x128xbf16> to vector<256x128xf32>
    %c32 = arith.constant 32 : index
    %c0_11 = arith.constant 0 : index
    %35 = vector.load %arg14[%c32, %c0_11] : memref<320x128xf32, #tpu.memory_space<vmem>>, vector<256x128xf32>
    tpu.vector_store %arg14[%c32, %c0_11], %34 {strides = array<i32>} : memref<320x128xf32, #tpu.memory_space<vmem>>, vector<256x128xf32>,
    %cst_12 = arith.constant 0.000000e+00 : f32
    %36 = vector.broadcast %cst_12 : f32 to vector<256x128xf32>
    %cst_13 = arith.constant 0.000000e+00 : f32
    %37 = vector.broadcast %cst_13 : f32 to vector<256x128xf32>
    %cst_14 = arith.constant 0.000000e+00 : f32
    %38 = vector.broadcast %cst_14 : f32 to vector<256x128xf32>
    %c15 = arith.constant 15 : index
    %c0_15 = arith.constant 0 : index
    %39 = vector.load %arg14[%c15, %c0_15] : memref<320x128xf32, #tpu.memory_space<vmem>>, vector<256x128xf32>
    %40 = arith.truncf %39 : vector<256x128xf32> to vector<256x128xbf16>
    %c0_16 = arith.constant 0 : index
    %c0_17 = arith.constant 0 : index
    %c0_18 = arith.constant 0 : index
    %41 = vector.load %arg2[%c0_16, %c0_17, %c0_18] : memref<9x128x128xbf16, #tpu.memory_space<vmem>>, vector<1x128x128xbf16>
    %42 = vector.shape_cast %41 : vector<1x128x128xbf16> to vector<128x128xbf16>
    %cst_19 = arith.constant dense<0.000000e+00> : vector<256x128xf32>
    %43 = tpu.matmul %40, %42, %cst_19 {dimension_numbers = #tpu.dot_dimension_numbers<[1], [0], [0], [1], [0, 0, 1, 1], [], []>} : vector<256x128xbf16>, vector<128x128xbf16>, vector<256x128xf32> -> vector<256x128xf32>
    %44 = arith.addf %36, %43 : vector<256x128xf32>
    %c16 = arith.constant 16 : index
    %c0_20 = arith.constant 0 : index
    %45 = vector.load %arg14[%c16, %c0_20] : memref<320x128xf32, #tpu.memory_space<vmem>>, vector<256x128xf32>
    %46 = arith.truncf %45 : vector<256x128xf32> to vector<256x128xbf16>
    %c1 = arith.constant 1 : index
    %c0_21 = arith.constant 0 : index
    %c0_22 = arith.constant 0 : index
    %47 = vector.load %arg2[%c1, %c0_21, %c0_22] : memref<9x128x128xbf16, #tpu.memory_space<vmem>>, vector<1x128x128xbf16>
    %48 = vector.shape_cast %47 : vector<1x128x128xbf16> to vector<128x128xbf16>
    %cst_23 = arith.constant dense<0.000000e+00> : vector<256x128xf32>
    %49 = tpu.matmul %46, %48, %cst_23 {dimension_numbers = #tpu.dot_dimension_numbers<[1], [0], [0], [1], [0, 0, 1, 1], [], []>} : vector<256x128xbf16>, vector<128x128xbf16>, vector<256x128xf32> -> vector<256x128xf32>
    %50 = arith.addf %37, %49 : vector<256x128xf32>
    %c17 = arith.constant 17 : index
    %c0_24 = arith.constant 0 : index
    %51 = vector.load %arg14[%c17, %c0_24] : memref<320x128xf32, #tpu.memory_space<vmem>>, vector<256x128xf32>
    %52 = arith.truncf %51 : vector<256x128xf32> to vector<256x128xbf16>
    %c2 = arith.constant 2 : index
    %c0_25 = arith.constant 0 : index
    %c0_26 = arith.constant 0 : index
    %53 = vector.load %arg2[%c2, %c0_25, %c0_26] : memref<9x128x128xbf16, #tpu.memory_space<vmem>>, vector<1x128x128xbf16>
    %54 = vector.shape_cast %53 : vector<1x128x128xbf16> to vector<128x128xbf16>
    %cst_27 = arith.constant dense<0.000000e+00> : vector<256x128xf32>
    %55 = tpu.matmul %52, %54, %cst_27 {dimension_numbers = #tpu.dot_dimension_numbers<[1], [0], [0], [1], [0, 0, 1, 1], [], []>} : vector<256x128xbf16>, vector<128x128xbf16>, vector<256x128xf32> -> vector<256x128xf32>
    %56 = arith.addf %38, %55 : vector<256x128xf32>
    %c31 = arith.constant 31 : index
    %c0_28 = arith.constant 0 : index
    %57 = vector.load %arg14[%c31, %c0_28] : memref<320x128xf32, #tpu.memory_space<vmem>>, vector<256x128xf32>
    %58 = arith.truncf %57 : vector<256x128xf32> to vector<256x128xbf16>
    %c3 = arith.constant 3 : index
    %c0_29 = arith.constant 0 : index
    %c0_30 = arith.constant 0 : index
    %59 = vector.load %arg2[%c3, %c0_29, %c0_30] : memref<9x128x128xbf16, #tpu.memory_space<vmem>>, vector<1x128x128xbf16>
    %60 = vector.shape_cast %59 : vector<1x128x128xbf16> to vector<128x128xbf16>
    %cst_31 = arith.constant dense<0.000000e+00> : vector<256x128xf32>
    %61 = tpu.matmul %58, %60, %cst_31 {dimension_numbers = #tpu.dot_dimension_numbers<[1], [0], [0], [1], [0, 0, 1, 1], [], []>} : vector<256x128xbf16>, vector<128x128xbf16>, vector<256x128xf32> -> vector<256x128xf32>
    %62 = arith.addf %44, %61 : vector<256x128xf32>
    %c32_32 = arith.constant 32 : index
    %c0_33 = arith.constant 0 : index
    %63 = vector.load %arg14[%c32_32, %c0_33] : memref<320x128xf32, #tpu.memory_space<vmem>>, vector<256x128xf32>
    %64 = arith.truncf %63 : vector<256x128xf32> to vector<256x128xbf16>
    %c4 = arith.constant 4 : index
    %c0_34 = arith.constant 0 : index
    %c0_35 = arith.constant 0 : index
    %65 = vector.load %arg2[%c4, %c0_34, %c0_35] : memref<9x128x128xbf16, #tpu.memory_space<vmem>>, vector<1x128x128xbf16>
    %66 = vector.shape_cast %65 : vector<1x128x128xbf16> to vector<128x128xbf16>
    %cst_36 = arith.constant dense<0.000000e+00> : vector<256x128xf32>
    %67 = tpu.matmul %64, %66, %cst_36 {dimension_numbers = #tpu.dot_dimension_numbers<[1], [0], [0], [1], [0, 0, 1, 1], [], []>} : vector<256x128xbf16>, vector<128x128xbf16>, vector<256x128xf32> -> vector<256x128xf32>
    %68 = arith.addf %50, %67 : vector<256x128xf32>
    %c33 = arith.constant 33 : index
    %c0_37 = arith.constant 0 : index
    %69 = vector.load %arg14[%c33, %c0_37] : memref<320x128xf32, #tpu.memory_space<vmem>>, vector<256x128xf32>
    %70 = arith.truncf %69 : vector<256x128xf32> to vector<256x128xbf16>
    %c5 = arith.constant 5 : index
    %c0_38 = arith.constant 0 : index
    %c0_39 = arith.constant 0 : index
    %71 = vector.load %arg2[%c5, %c0_38, %c0_39] : memref<9x128x128xbf16, #tpu.memory_space<vmem>>, vector<1x128x128xbf16>
    %72 = vector.shape_cast %71 : vector<1x128x128xbf16> to vector<128x128xbf16>
    %cst_40 = arith.constant dense<0.000000e+00> : vector<256x128xf32>
    %73 = tpu.matmul %70, %72, %cst_40 {dimension_numbers = #tpu.dot_dimension_numbers<[1], [0], [0], [1], [0, 0, 1, 1], [], []>} : vector<256x128xbf16>, vector<128x128xbf16>, vector<256x128xf32> -> vector<256x128xf32>
    %74 = arith.addf %56, %73 : vector<256x128xf32>
    %c47 = arith.constant 47 : index
    %c0_41 = arith.constant 0 : index
    %75 = vector.load %arg14[%c47, %c0_41] : memref<320x128xf32, #tpu.memory_space<vmem>>, vector<256x128xf32>
    %76 = arith.truncf %75 : vector<256x128xf32> to vector<256x128xbf16>
    %c6 = arith.constant 6 : index
    %c0_42 = arith.constant 0 : index
    %c0_43 = arith.constant 0 : index
    %77 = vector.load %arg2[%c6, %c0_42, %c0_43] : memref<9x128x128xbf16, #tpu.memory_space<vmem>>, vector<1x128x128xbf16>
    %78 = vector.shape_cast %77 : vector<1x128x128xbf16> to vector<128x128xbf16>
    %cst_44 = arith.constant dense<0.000000e+00> : vector<256x128xf32>
    %79 = tpu.matmul %76, %78, %cst_44 {dimension_numbers = #tpu.dot_dimension_numbers<[1], [0], [0], [1], [0, 0, 1, 1], [], []>} : vector<256x128xbf16>, vector<128x128xbf16>, vector<256x128xf32> -> vector<256x128xf32>
    %80 = arith.addf %62, %79 : vector<256x128xf32>
    %c48 = arith.constant 48 : index
    %c0_45 = arith.constant 0 : index
    %81 = vector.load %arg14[%c48, %c0_45] : memref<320x128xf32, #tpu.memory_space<vmem>>, vector<256x128xf32>
    %82 = arith.truncf %81 : vector<256x128xf32> to vector<256x128xbf16>
    %c7 = arith.constant 7 : index
    %c0_46 = arith.constant 0 : index
    %c0_47 = arith.constant 0 : index
    %83 = vector.load %arg2[%c7, %c0_46, %c0_47] : memref<9x128x128xbf16, #tpu.memory_space<vmem>>, vector<1x128x128xbf16>
    %84 = vector.shape_cast %83 : vector<1x128x128xbf16> to vector<128x128xbf16>
    %cst_48 = arith.constant dense<0.000000e+00> : vector<256x128xf32>
    %85 = tpu.matmul %82, %84, %cst_48 {dimension_numbers = #tpu.dot_dimension_numbers<[1], [0], [0], [1], [0, 0, 1, 1], [], []>} : vector<256x128xbf16>, vector<128x128xbf16>, vector<256x128xf32> -> vector<256x128xf32>
    %86 = arith.addf %68, %85 : vector<256x128xf32>
    %c49 = arith.constant 49 : index
    %c0_49 = arith.constant 0 : index
    %87 = vector.load %arg14[%c49, %c0_49] : memref<320x128xf32, #tpu.memory_space<vmem>>, vector<256x128xf32>
    %88 = arith.truncf %87 : vector<256x128xf32> to vector<256x128xbf16>
    %c8 = arith.constant 8 : index
    %c0_50 = arith.constant 0 : index
    %c0_51 = arith.constant 0 : index
    %89 = vector.load %arg2[%c8, %c0_50, %c0_51] : memref<9x128x128xbf16, #tpu.memory_space<vmem>>, vector<1x128x128xbf16>
    %90 = vector.shape_cast %89 : vector<1x128x128xbf16> to vector<128x128xbf16>
    %cst_52 = arith.constant dense<0.000000e+00> : vector<256x128xf32>
    %91 = tpu.matmul %88, %90, %cst_52 {dimension_numbers = #tpu.dot_dimension_numbers<[1], [0], [0], [1], [0, 0, 1, 1], [], []>} : vector<256x128xbf16>, vector<128x128xbf16>, vector<256x128xf32> -> vector<256x128xf32>
    %92 = arith.addf %74, %91 : vector<256x128xf32>
    %93 = vector.broadcast %11 : vector<256x1xf32> to vector<256x128xf32>
    %94 = arith.mulf %93, %80 : vector<256x128xf32>
    %95 = arith.addf %94, %86 : vector<256x128xf32>
    %96 = vector.broadcast %15 : vector<256x1xf32> to vector<256x128xf32>
    %97 = arith.mulf %96, %92 : vector<256x128xf32>
    %98 = arith.addf %95, %97 : vector<256x128xf32>
    %c0_53 = arith.constant 0 : index
    %c0_54 = arith.constant 0 : index
    %99 = vector.load %arg3[%c0_53, %c0_54] : memref<1x128xf32, #tpu.memory_space<vmem>>, vector<1x128xf32>
    %100 = vector.broadcast %99 : vector<1x128xf32> to vector<256x128xf32>
    %101 = arith.addf %98, %100 : vector<256x128xf32>
    %c0_55 = arith.constant 0 : index
    %c0_56 = arith.constant 0 : index
    %102 = vector.load %arg4[%c0_55, %c0_56] : memref<1x128xf32, #tpu.memory_space<vmem>>, vector<1x128xf32>
    %c0_57 = arith.constant 0 : index
    %c0_58 = arith.constant 0 : index
    %103 = vector.load %arg5[%c0_57, %c0_58] : memref<1x128xf32, #tpu.memory_space<vmem>>, vector<1x128xf32>
    %cst_59 = arith.constant dense<0.000000e+00> : vector<128xf32>
    %104 = vector.multi_reduction <add>, %101, %cst_59 [0] : vector<256x128xf32> to vector<128xf32>
    %105 = vector.shape_cast %104 : vector<128xf32> to vector<1x128xf32>
    %106 = vector.broadcast %105 : vector<1x128xf32> to vector<8x128xf32>
    %107 = arith.mulf %106, %28 : vector<8x128xf32>
    %cst_60 = arith.constant dense<0.000000e+00> : vector<8xf32>
    %108 = vector.multi_reduction <add>, %107, %cst_60 [1] : vector<8x128xf32> to vector<8xf32>
    %109 = vector.shape_cast %108 : vector<8xf32> to vector<8x1xf32>
    %110 = vector.broadcast %109 : vector<8x1xf32> to vector<8x128xf32>
    %111 = arith.mulf %110, %28 : vector<8x128xf32>
    %cst_61 = arith.constant dense<0.000000e+00> : vector<128xf32>
    %112 = vector.multi_reduction <add>, %111, %cst_61 [0] : vector<8x128xf32> to vector<128xf32>
    %113 = vector.shape_cast %112 : vector<128xf32> to vector<1x128xf32>
    %cst_62 = arith.constant 3.906250e-03 : f32
    %114 = vector.broadcast %cst_62 : f32 to vector<1x128xf32>
    %115 = arith.mulf %113, %114 : vector<1x128xf32>
    %116 = vector.broadcast %115 : vector<1x128xf32> to vector<256x128xf32>
    %117 = arith.subf %101, %116 : vector<256x128xf32>
    %118 = arith.mulf %117, %117 : vector<256x128xf32>
    %cst_63 = arith.constant dense<0.000000e+00> : vector<128xf32>
    %119 = vector.multi_reduction <add>, %118, %cst_63 [0] : vector<256x128xf32> to vector<128xf32>
    %120 = vector.shape_cast %119 : vector<128xf32> to vector<1x128xf32>
    %121 = vector.broadcast %120 : vector<1x128xf32> to vector<8x128xf32>
    %122 = arith.mulf %121, %28 : vector<8x128xf32>
    %cst_64 = arith.constant dense<0.000000e+00> : vector<8xf32>
    %123 = vector.multi_reduction <add>, %122, %cst_64 [1] : vector<8x128xf32> to vector<8xf32>
    %124 = vector.shape_cast %123 : vector<8xf32> to vector<8x1xf32>
    %125 = vector.broadcast %124 : vector<8x1xf32> to vector<8x128xf32>
    %126 = arith.mulf %125, %28 : vector<8x128xf32>
    %cst_65 = arith.constant dense<0.000000e+00> : vector<128xf32>
    %127 = vector.multi_reduction <add>, %126, %cst_65 [0] : vector<8x128xf32> to vector<128xf32>
    %128 = vector.shape_cast %127 : vector<128xf32> to vector<1x128xf32>
    %cst_66 = arith.constant 3.906250e-03 : f32
    %129 = vector.broadcast %cst_66 : f32 to vector<1x128xf32>
    %130 = arith.mulf %128, %129 : vector<1x128xf32>
    %cst_67 = arith.constant 9.99999974E-6 : f32
    %131 = vector.broadcast %cst_67 : f32 to vector<1x128xf32>
    %132 = arith.addf %130, %131 : vector<1x128xf32>
    %133 = math.rsqrt %132 : vector<1x128xf32>
    %134 = vector.broadcast %133 : vector<1x128xf32> to vector<256x128xf32>
    %135 = arith.mulf %117, %134 : vector<256x128xf32>
    %136 = vector.broadcast %102 : vector<1x128xf32> to vector<256x128xf32>
    %137 = arith.mulf %135, %136 : vector<256x128xf32>
    %138 = vector.broadcast %103 : vector<1x128xf32> to vector<256x128xf32>
    %139 = arith.addf %137, %138 : vector<256x128xf32>
    %140 = arith.negf %139 : vector<256x128xf32>
    %141 = math.exp %140 : vector<256x128xf32>
    %cst_68 = arith.constant 1.000000e+00 : f32
    %142 = vector.broadcast %cst_68 : f32 to vector<256x128xf32>
    %143 = arith.addf %142, %141 : vector<256x128xf32>
    %144 = arith.divf %142, %143 : vector<256x128xf32>
    %145 = arith.mulf %139, %144 : vector<256x128xf32>
    %c0_69 = arith.constant 0 : index
    %c0_70 = arith.constant 0 : index
    %c0_71 = arith.constant 0 : index
    %146 = vector.load %arg6[%c0_69, %c0_70, %c0_71] : memref<1x1x128xf32, #tpu.memory_space<vmem>>, vector<1x1x128xf32>
    %147 = vector.shape_cast %146 : vector<1x1x128xf32> to vector<1x128xf32>
    %148 = vector.broadcast %147 : vector<1x128xf32> to vector<256x128xf32>
    %149 = arith.addf %145, %148 : vector<256x128xf32>
    %cst_72 = arith.constant 0.000000e+00 : f32
    %150 = vector.broadcast %cst_72 : f32 to vector<32x128xf32>
    %c0_73 = arith.constant 0 : index
    %c0_74 = arith.constant 0 : index
    %151 = vector.load %arg15[%c0_73, %c0_74] : memref<320x128xf32, #tpu.memory_space<vmem>>, vector<32x128xf32>
    tpu.vector_store %arg15[%c0_73, %c0_74], %150 {strides = array<i32>} : memref<320x128xf32, #tpu.memory_space<vmem>>, vector<32x128xf32>,
    %c288_75 = arith.constant 288 : index
    %c0_76 = arith.constant 0 : index
    %152 = vector.load %arg15[%c288_75, %c0_76] : memref<320x128xf32, #tpu.memory_space<vmem>>, vector<32x128xf32>
    tpu.vector_store %arg15[%c288_75, %c0_76], %150 {strides = array<i32>} : memref<320x128xf32, #tpu.memory_space<vmem>>, vector<32x128xf32>,
    %c32_77 = arith.constant 32 : index
    %c0_78 = arith.constant 0 : index
    %153 = vector.load %arg15[%c32_77, %c0_78] : memref<320x128xf32, #tpu.memory_space<vmem>>, vector<256x128xf32>
    tpu.vector_store %arg15[%c32_77, %c0_78], %149 {strides = array<i32>} : memref<320x128xf32, #tpu.memory_space<vmem>>, vector<256x128xf32>,
    %cst_79 = arith.constant 0.000000e+00 : f32
    %154 = vector.broadcast %cst_79 : f32 to vector<256x128xf32>
    %cst_80 = arith.constant 0.000000e+00 : f32
    %155 = vector.broadcast %cst_80 : f32 to vector<256x128xf32>
    %cst_81 = arith.constant 0.000000e+00 : f32
    %156 = vector.broadcast %cst_81 : f32 to vector<256x128xf32>
    %c15_82 = arith.constant 15 : index
    %c0_83 = arith.constant 0 : index
    %157 = vector.load %arg15[%c15_82, %c0_83] : memref<320x128xf32, #tpu.memory_space<vmem>>, vector<256x128xf32>
    %158 = arith.truncf %157 : vector<256x128xf32> to vector<256x128xbf16>
    %c0_84 = arith.constant 0 : index
    %c0_85 = arith.constant 0 : index
    %c0_86 = arith.constant 0 : index
    %159 = vector.load %arg7[%c0_84, %c0_85, %c0_86] : memref<9x128x128xbf16, #tpu.memory_space<vmem>>, vector<1x128x128xbf16>
    %160 = vector.shape_cast %159 : vector<1x128x128xbf16> to vector<128x128xbf16>
    %cst_87 = arith.constant dense<0.000000e+00> : vector<256x128xf32>
    %161 = tpu.matmul %158, %160, %cst_87 {dimension_numbers = #tpu.dot_dimension_numbers<[1], [0], [0], [1], [0, 0, 1, 1], [], []>} : vector<256x128xbf16>, vector<128x128xbf16>, vector<256x128xf32> -> vector<256x128xf32>
    %162 = arith.addf %154, %161 : vector<256x128xf32>
    %c16_88 = arith.constant 16 : index
    %c0_89 = arith.constant 0 : index
    %163 = vector.load %arg15[%c16_88, %c0_89] : memref<320x128xf32, #tpu.memory_space<vmem>>, vector<256x128xf32>
    %164 = arith.truncf %163 : vector<256x128xf32> to vector<256x128xbf16>
    %c1_90 = arith.constant 1 : index
    %c0_91 = arith.constant 0 : index
    %c0_92 = arith.constant 0 : index
    %165 = vector.load %arg7[%c1_90, %c0_91, %c0_92] : memref<9x128x128xbf16, #tpu.memory_space<vmem>>, vector<1x128x128xbf16>
    %166 = vector.shape_cast %165 : vector<1x128x128xbf16> to vector<128x128xbf16>
    %cst_93 = arith.constant dense<0.000000e+00> : vector<256x128xf32>
    %167 = tpu.matmul %164, %166, %cst_93 {dimension_numbers = #tpu.dot_dimension_numbers<[1], [0], [0], [1], [0, 0, 1, 1], [], []>} : vector<256x128xbf16>, vector<128x128xbf16>, vector<256x128xf32> -> vector<256x128xf32>
    %168 = arith.addf %155, %167 : vector<256x128xf32>
    %c17_94 = arith.constant 17 : index
    %c0_95 = arith.constant 0 : index
    %169 = vector.load %arg15[%c17_94, %c0_95] : memref<320x128xf32, #tpu.memory_space<vmem>>, vector<256x128xf32>
    %170 = arith.truncf %169 : vector<256x128xf32> to vector<256x128xbf16>
    %c2_96 = arith.constant 2 : index
    %c0_97 = arith.constant 0 : index
    %c0_98 = arith.constant 0 : index
    %171 = vector.load %arg7[%c2_96, %c0_97, %c0_98] : memref<9x128x128xbf16, #tpu.memory_space<vmem>>, vector<1x128x128xbf16>
    %172 = vector.shape_cast %171 : vector<1x128x128xbf16> to vector<128x128xbf16>
    %cst_99 = arith.constant dense<0.000000e+00> : vector<256x128xf32>
    %173 = tpu.matmul %170, %172, %cst_99 {dimension_numbers = #tpu.dot_dimension_numbers<[1], [0], [0], [1], [0, 0, 1, 1], [], []>} : vector<256x128xbf16>, vector<128x128xbf16>, vector<256x128xf32> -> vector<256x128xf32>
    %174 = arith.addf %156, %173 : vector<256x128xf32>
    %c31_100 = arith.constant 31 : index
    %c0_101 = arith.constant 0 : index
    %175 = vector.load %arg15[%c31_100, %c0_101] : memref<320x128xf32, #tpu.memory_space<vmem>>, vector<256x128xf32>
    %176 = arith.truncf %175 : vector<256x128xf32> to vector<256x128xbf16>
    %c3_102 = arith.constant 3 : index
    %c0_103 = arith.constant 0 : index
    %c0_104 = arith.constant 0 : index
    %177 = vector.load %arg7[%c3_102, %c0_103, %c0_104] : memref<9x128x128xbf16, #tpu.memory_space<vmem>>, vector<1x128x128xbf16>
    %178 = vector.shape_cast %177 : vector<1x128x128xbf16> to vector<128x128xbf16>
    %cst_105 = arith.constant dense<0.000000e+00> : vector<256x128xf32>
    %179 = tpu.matmul %176, %178, %cst_105 {dimension_numbers = #tpu.dot_dimension_numbers<[1], [0], [0], [1], [0, 0, 1, 1], [], []>} : vector<256x128xbf16>, vector<128x128xbf16>, vector<256x128xf32> -> vector<256x128xf32>
    %180 = arith.addf %162, %179 : vector<256x128xf32>
    %c32_106 = arith.constant 32 : index
    %c0_107 = arith.constant 0 : index
    %181 = vector.load %arg15[%c32_106, %c0_107] : memref<320x128xf32, #tpu.memory_space<vmem>>, vector<256x128xf32>
    %182 = arith.truncf %181 : vector<256x128xf32> to vector<256x128xbf16>
    %c4_108 = arith.constant 4 : index
    %c0_109 = arith.constant 0 : index
    %c0_110 = arith.constant 0 : index
    %183 = vector.load %arg7[%c4_108, %c0_109, %c0_110] : memref<9x128x128xbf16, #tpu.memory_space<vmem>>, vector<1x128x128xbf16>
    %184 = vector.shape_cast %183 : vector<1x128x128xbf16> to vector<128x128xbf16>
    %cst_111 = arith.constant dense<0.000000e+00> : vector<256x128xf32>
    %185 = tpu.matmul %182, %184, %cst_111 {dimension_numbers = #tpu.dot_dimension_numbers<[1], [0], [0], [1], [0, 0, 1, 1], [], []>} : vector<256x128xbf16>, vector<128x128xbf16>, vector<256x128xf32> -> vector<256x128xf32>
    %186 = arith.addf %168, %185 : vector<256x128xf32>
    %c33_112 = arith.constant 33 : index
    %c0_113 = arith.constant 0 : index
    %187 = vector.load %arg15[%c33_112, %c0_113] : memref<320x128xf32, #tpu.memory_space<vmem>>, vector<256x128xf32>
    %188 = arith.truncf %187 : vector<256x128xf32> to vector<256x128xbf16>
    %c5_114 = arith.constant 5 : index
    %c0_115 = arith.constant 0 : index
    %c0_116 = arith.constant 0 : index
    %189 = vector.load %arg7[%c5_114, %c0_115, %c0_116] : memref<9x128x128xbf16, #tpu.memory_space<vmem>>, vector<1x128x128xbf16>
    %190 = vector.shape_cast %189 : vector<1x128x128xbf16> to vector<128x128xbf16>
    %cst_117 = arith.constant dense<0.000000e+00> : vector<256x128xf32>
    %191 = tpu.matmul %188, %190, %cst_117 {dimension_numbers = #tpu.dot_dimension_numbers<[1], [0], [0], [1], [0, 0, 1, 1], [], []>} : vector<256x128xbf16>, vector<128x128xbf16>, vector<256x128xf32> -> vector<256x128xf32>
    %192 = arith.addf %174, %191 : vector<256x128xf32>
    %c47_118 = arith.constant 47 : index
    %c0_119 = arith.constant 0 : index
    %193 = vector.load %arg15[%c47_118, %c0_119] : memref<320x128xf32, #tpu.memory_space<vmem>>, vector<256x128xf32>
    %194 = arith.truncf %193 : vector<256x128xf32> to vector<256x128xbf16>
    %c6_120 = arith.constant 6 : index
    %c0_121 = arith.constant 0 : index
    %c0_122 = arith.constant 0 : index
    %195 = vector.load %arg7[%c6_120, %c0_121, %c0_122] : memref<9x128x128xbf16, #tpu.memory_space<vmem>>, vector<1x128x128xbf16>
    %196 = vector.shape_cast %195 : vector<1x128x128xbf16> to vector<128x128xbf16>
    %cst_123 = arith.constant dense<0.000000e+00> : vector<256x128xf32>
    %197 = tpu.matmul %194, %196, %cst_123 {dimension_numbers = #tpu.dot_dimension_numbers<[1], [0], [0], [1], [0, 0, 1, 1], [], []>} : vector<256x128xbf16>, vector<128x128xbf16>, vector<256x128xf32> -> vector<256x128xf32>
    %198 = arith.addf %180, %197 : vector<256x128xf32>
    %c48_124 = arith.constant 48 : index
    %c0_125 = arith.constant 0 : index
    %199 = vector.load %arg15[%c48_124, %c0_125] : memref<320x128xf32, #tpu.memory_space<vmem>>, vector<256x128xf32>
    %200 = arith.truncf %199 : vector<256x128xf32> to vector<256x128xbf16>
    %c7_126 = arith.constant 7 : index
    %c0_127 = arith.constant 0 : index
    %c0_128 = arith.constant 0 : index
    %201 = vector.load %arg7[%c7_126, %c0_127, %c0_128] : memref<9x128x128xbf16, #tpu.memory_space<vmem>>, vector<1x128x128xbf16>
    %202 = vector.shape_cast %201 : vector<1x128x128xbf16> to vector<128x128xbf16>
    %cst_129 = arith.constant dense<0.000000e+00> : vector<256x128xf32>
    %203 = tpu.matmul %200, %202, %cst_129 {dimension_numbers = #tpu.dot_dimension_numbers<[1], [0], [0], [1], [0, 0, 1, 1], [], []>} : vector<256x128xbf16>, vector<128x128xbf16>, vector<256x128xf32> -> vector<256x128xf32>
    %204 = arith.addf %186, %203 : vector<256x128xf32>
    %c49_130 = arith.constant 49 : index
    %c0_131 = arith.constant 0 : index
    %205 = vector.load %arg15[%c49_130, %c0_131] : memref<320x128xf32, #tpu.memory_space<vmem>>, vector<256x128xf32>
    %206 = arith.truncf %205 : vector<256x128xf32> to vector<256x128xbf16>
    %c8_132 = arith.constant 8 : index
    %c0_133 = arith.constant 0 : index
    %c0_134 = arith.constant 0 : index
    %207 = vector.load %arg7[%c8_132, %c0_133, %c0_134] : memref<9x128x128xbf16, #tpu.memory_space<vmem>>, vector<1x128x128xbf16>
    %208 = vector.shape_cast %207 : vector<1x128x128xbf16> to vector<128x128xbf16>
    %cst_135 = arith.constant dense<0.000000e+00> : vector<256x128xf32>
    %209 = tpu.matmul %206, %208, %cst_135 {dimension_numbers = #tpu.dot_dimension_numbers<[1], [0], [0], [1], [0, 0, 1, 1], [], []>} : vector<256x128xbf16>, vector<128x128xbf16>, vector<256x128xf32> -> vector<256x128xf32>
    %210 = arith.addf %192, %209 : vector<256x128xf32>
    %211 = vector.broadcast %11 : vector<256x1xf32> to vector<256x128xf32>
    %212 = arith.mulf %211, %198 : vector<256x128xf32>
    %213 = arith.addf %212, %204 : vector<256x128xf32>
    %214 = vector.broadcast %15 : vector<256x1xf32> to vector<256x128xf32>
    %215 = arith.mulf %214, %210 : vector<256x128xf32>
    %216 = arith.addf %213, %215 : vector<256x128xf32>
    %c0_136 = arith.constant 0 : index
    %c0_137 = arith.constant 0 : index
    %217 = vector.load %arg8[%c0_136, %c0_137] : memref<1x128xf32, #tpu.memory_space<vmem>>, vector<1x128xf32>
    %218 = vector.broadcast %217 : vector<1x128xf32> to vector<256x128xf32>
    %219 = arith.addf %216, %218 : vector<256x128xf32>
    %c0_138 = arith.constant 0 : index
    %c0_139 = arith.constant 0 : index
    %220 = vector.load %arg9[%c0_138, %c0_139] : memref<1x128xf32, #tpu.memory_space<vmem>>, vector<1x128xf32>
    %c0_140 = arith.constant 0 : index
    %c0_141 = arith.constant 0 : index
    %221 = vector.load %arg10[%c0_140, %c0_141] : memref<1x128xf32, #tpu.memory_space<vmem>>, vector<1x128xf32>
    %cst_142 = arith.constant dense<0.000000e+00> : vector<128xf32>
    %222 = vector.multi_reduction <add>, %219, %cst_142 [0] : vector<256x128xf32> to vector<128xf32>
    %223 = vector.shape_cast %222 : vector<128xf32> to vector<1x128xf32>
    %224 = vector.broadcast %223 : vector<1x128xf32> to vector<8x128xf32>
    %225 = arith.mulf %224, %28 : vector<8x128xf32>
    %cst_143 = arith.constant dense<0.000000e+00> : vector<8xf32>
    %226 = vector.multi_reduction <add>, %225, %cst_143 [1] : vector<8x128xf32> to vector<8xf32>
    %227 = vector.shape_cast %226 : vector<8xf32> to vector<8x1xf32>
    %228 = vector.broadcast %227 : vector<8x1xf32> to vector<8x128xf32>
    %229 = arith.mulf %228, %28 : vector<8x128xf32>
    %cst_144 = arith.constant dense<0.000000e+00> : vector<128xf32>
    %230 = vector.multi_reduction <add>, %229, %cst_144 [0] : vector<8x128xf32> to vector<128xf32>
    %231 = vector.shape_cast %230 : vector<128xf32> to vector<1x128xf32>
    %cst_145 = arith.constant 3.906250e-03 : f32
    %232 = vector.broadcast %cst_145 : f32 to vector<1x128xf32>
    %233 = arith.mulf %231, %232 : vector<1x128xf32>
    %234 = vector.broadcast %233 : vector<1x128xf32> to vector<256x128xf32>
    %235 = arith.subf %219, %234 : vector<256x128xf32>
    %236 = arith.mulf %235, %235 : vector<256x128xf32>
    %cst_146 = arith.constant dense<0.000000e+00> : vector<128xf32>
    %237 = vector.multi_reduction <add>, %236, %cst_146 [0] : vector<256x128xf32> to vector<128xf32>
    %238 = vector.shape_cast %237 : vector<128xf32> to vector<1x128xf32>
    %239 = vector.broadcast %238 : vector<1x128xf32> to vector<8x128xf32>
    %240 = arith.mulf %239, %28 : vector<8x128xf32>
    %cst_147 = arith.constant dense<0.000000e+00> : vector<8xf32>
    %241 = vector.multi_reduction <add>, %240, %cst_147 [1] : vector<8x128xf32> to vector<8xf32>
    %242 = vector.shape_cast %241 : vector<8xf32> to vector<8x1xf32>
    %243 = vector.broadcast %242 : vector<8x1xf32> to vector<8x128xf32>
    %244 = arith.mulf %243, %28 : vector<8x128xf32>
    %cst_148 = arith.constant dense<0.000000e+00> : vector<128xf32>
    %245 = vector.multi_reduction <add>, %244, %cst_148 [0] : vector<8x128xf32> to vector<128xf32>
    %246 = vector.shape_cast %245 : vector<128xf32> to vector<1x128xf32>
    %cst_149 = arith.constant 3.906250e-03 : f32
    %247 = vector.broadcast %cst_149 : f32 to vector<1x128xf32>
    %248 = arith.mulf %246, %247 : vector<1x128xf32>
    %cst_150 = arith.constant 9.99999974E-6 : f32
    %249 = vector.broadcast %cst_150 : f32 to vector<1x128xf32>
    %250 = arith.addf %248, %249 : vector<1x128xf32>
    %251 = math.rsqrt %250 : vector<1x128xf32>
    %252 = vector.broadcast %251 : vector<1x128xf32> to vector<256x128xf32>
    %253 = arith.mulf %235, %252 : vector<256x128xf32>
    %254 = vector.broadcast %220 : vector<1x128xf32> to vector<256x128xf32>
    %255 = arith.mulf %253, %254 : vector<256x128xf32>
    %256 = vector.broadcast %221 : vector<1x128xf32> to vector<256x128xf32>
    %257 = arith.addf %255, %256 : vector<256x128xf32>
    %258 = arith.negf %257 : vector<256x128xf32>
    %259 = math.exp %258 : vector<256x128xf32>
    %cst_151 = arith.constant 1.000000e+00 : f32
    %260 = vector.broadcast %cst_151 : f32 to vector<256x128xf32>
    %261 = arith.addf %260, %259 : vector<256x128xf32>
    %262 = arith.divf %260, %261 : vector<256x128xf32>
    %263 = arith.mulf %257, %262 : vector<256x128xf32>
    %c0_152 = arith.constant 0 : index
    %c0_153 = arith.constant 0 : index
    %c0_154 = arith.constant 0 : index
    %264 = vector.load %arg1[%c0_152, %c0_153, %c0_154] : memref<1x256x128xbf16, #tpu.memory_space<vmem>>, vector<1x256x128xbf16>
    %265 = vector.shape_cast %264 : vector<1x256x128xbf16> to vector<256x128xbf16>
    %c0_155 = arith.constant 0 : index
    %c0_156 = arith.constant 0 : index
    %266 = vector.load %arg11[%c0_155, %c0_156] : memref<128x128xbf16, #tpu.memory_space<vmem>>, vector<128x128xbf16>
    %cst_157 = arith.constant dense<0.000000e+00> : vector<256x128xf32>
    %267 = tpu.matmul %265, %266, %cst_157 {dimension_numbers = #tpu.dot_dimension_numbers<[1], [0], [0], [1], [0, 0, 1, 1], [], []>} : vector<256x128xbf16>, vector<128x128xbf16>, vector<256x128xf32> -> vector<256x128xf32>
    %c0_158 = arith.constant 0 : index
    %c0_159 = arith.constant 0 : index
    %268 = vector.load %arg12[%c0_158, %c0_159] : memref<1x128xf32, #tpu.memory_space<vmem>>, vector<1x128xf32>
    %269 = vector.broadcast %268 : vector<1x128xf32> to vector<256x128xf32>
    %270 = arith.addf %267, %269 : vector<256x128xf32>
    %271 = arith.addf %270, %263 : vector<256x128xf32>
    %c0_160 = arith.constant 0 : index
    %c0_161 = arith.constant 0 : index
    %c0_162 = arith.constant 0 : index
    %272 = vector.load %arg13[%c0_160, %c0_161, %c0_162] : memref<1x256x128xf32, #tpu.memory_space<vmem>>, vector<1x256x128xf32>
    %273 = vector.shape_cast %272 : vector<1x256x128xf32> to vector<256x128xf32>
    %274 = vector.shape_cast %271 : vector<256x128xf32> to vector<1x256x128xf32>
    tpu.vector_store %arg13[%c0_160, %c0_161, %c0_162], %274 {strides = array<i32>} : memref<1x256x128xf32, #tpu.memory_space<vmem>>, vector<1x256x128xf32>,
    return
  }
  func.func @transform_0(%arg0: i32) -> (i32, i32, i32) {
    %c0_i32 = arith.constant 0 : i32
    %c0_i32_0 = arith.constant 0 : i32
    %c0_i32_1 = arith.constant 0 : i32
    return %arg0, %c0_i32, %c0_i32_0 : i32, i32, i32
  }
  func.func @transform_1(%arg0: i32) -> (i32, i32, i32) {
    %c0_i32 = arith.constant 0 : i32
    %c0_i32_0 = arith.constant 0 : i32
    %c0_i32_1 = arith.constant 0 : i32
    %c0_i32_2 = arith.constant 0 : i32
    return %c0_i32, %c0_i32_0, %c0_i32_1 : i32, i32, i32
  }
  func.func @transform_2(%arg0: i32) -> (i32, i32) {
    %c0_i32 = arith.constant 0 : i32
    %c0_i32_0 = arith.constant 0 : i32
    %c0_i32_1 = arith.constant 0 : i32
    return %c0_i32, %c0_i32_0 : i32, i32
  }
  func.func @transform_3(%arg0: i32) -> (i32, i32) {
    %c0_i32 = arith.constant 0 : i32
    %c0_i32_0 = arith.constant 0 : i32
    %c0_i32_1 = arith.constant 0 : i32
    return %c0_i32, %c0_i32_0 : i32, i32
  }
  func.func @transform_4(%arg0: i32) -> (i32, i32) {
    %c0_i32 = arith.constant 0 : i32
    %c0_i32_0 = arith.constant 0 : i32
    %c0_i32_1 = arith.constant 0 : i32
    return %c0_i32, %c0_i32_0 : i32, i32
  }
  func.func @transform_5(%arg0: i32) -> (i32, i32, i32) {
    %c0_i32 = arith.constant 0 : i32
    %c0_i32_0 = arith.constant 0 : i32
    %c0_i32_1 = arith.constant 0 : i32
    return %arg0, %c0_i32, %c0_i32_0 : i32, i32, i32
  }
  func.func @transform_6(%arg0: i32) -> (i32, i32, i32) {
    %c0_i32 = arith.constant 0 : i32
    %c0_i32_0 = arith.constant 0 : i32
    %c0_i32_1 = arith.constant 0 : i32
    %c0_i32_2 = arith.constant 0 : i32
    return %c0_i32, %c0_i32_0, %c0_i32_1 : i32, i32, i32
  }
  func.func @transform_7(%arg0: i32) -> (i32, i32) {
    %c0_i32 = arith.constant 0 : i32
    %c0_i32_0 = arith.constant 0 : i32
    %c0_i32_1 = arith.constant 0 : i32
    return %c0_i32, %c0_i32_0 : i32, i32
  }
  func.func @transform_8(%arg0: i32) -> (i32, i32) {
    %c0_i32 = arith.constant 0 : i32
    %c0_i32_0 = arith.constant 0 : i32
    %c0_i32_1 = arith.constant 0 : i32
    return %c0_i32, %c0_i32_0 : i32, i32
  }
  func.func @transform_9(%arg0: i32) -> (i32, i32) {
    %c0_i32 = arith.constant 0 : i32
    %c0_i32_0 = arith.constant 0 : i32
    %c0_i32_1 = arith.constant 0 : i32
    return %c0_i32, %c0_i32_0 : i32, i32
  }
  func.func @transform_10(%arg0: i32) -> (i32, i32) {
    %c0_i32 = arith.constant 0 : i32
    %c0_i32_0 = arith.constant 0 : i32
    %c0_i32_1 = arith.constant 0 : i32
    return %c0_i32, %c0_i32_0 : i32, i32
  }
  func.func @transform_11(%arg0: i32) -> (i32, i32) {
    %c0_i32 = arith.constant 0 : i32
    %c0_i32_0 = arith.constant 0 : i32
    %c0_i32_1 = arith.constant 0 : i32
    return %c0_i32, %c0_i32_0 : i32, i32
  }
  func.func @transform_12(%arg0: i32) -> (i32, i32, i32) {
    %c0_i32 = arith.constant 0 : i32
    %c0_i32_0 = arith.constant 0 : i32
    %c0_i32_1 = arith.constant 0 : i32
    return %arg0, %c0_i32, %c0_i32_0 : i32, i32, i32
  }
}

</mosaic_0001>

<bundles_post_ra>
// kernel: tpu_custom_call.1
= control target key start
LH: loop header
LB: loop body
LE: loop exit
PB: predicated region body
PF: predicated region fallthrough
CT: control target
= control target key end

     0   :  { %s14959_s0 = inlined_call_operand.hbm [shape: bf16[2,256,128], index: 0, kind: input, shape index: {}]   ;;  %s14960_s1 = inlined_call_operand.hbm [shape: bf16[9,128,128], index: 1, kind: input, shape index: {}]   ;;  %s14961_s2 = inlined_call_operand.vmem [shape: f32[1,128], index: 2, kind: input, shape index: {}]   ;;  %s14962_s3 = inlined_call_operand.hbm [shape: f32[1,128], index: 3, kind: input, shape index: {}]   ;;  %s14963_s4 = inlined_call_operand.hbm [shape: f32[1,128], index: 4, kind: input, shape index: {}]   ;;  %s14964_s5 = inlined_call_operand.vmem [shape: f32[2,1,128], index: 5, kind: input, shape index: {}]   ;;  %s14965_s6 = inlined_call_operand.hbm [shape: bf16[9,128,128], index: 6, kind: input, shape index: {}]   ;;  %s14966_s7 = inlined_call_operand.vmem [shape: f32[1,128], index: 7, kind: input, shape index: {}]   ;;  %s14967_s8 = inlined_call_operand.vmem [shape: f32[1,128], index: 8, kind: input, shape index: {}]   ;;  %s14968_s9 = inlined_call_operand.vmem [shape: f32[1,128], index: 9, kind: input, shape index: {}]   ;;  %s14969_s10 = inlined_call_operand.hbm [shape: bf16[128,128], index: 10, kind: input, shape index: {}]   ;;  %s14970_s11 = inlined_call_operand.vmem [shape: f32[1,128], index: 11, kind: input, shape index: {}]   ;;  %s14971_s12 = inlined_call_operand.hbm [shape: f32[2,256,128], index: 12, kind: output, shape index: {}]  }
   0x1   :  { %15126 = sst [smem:[#allocation140_spill]] %s14960_s1 }
   0x2   :  { %15127 = sst [smem:[#allocation141_spill]] %s14962_s3 }
   0x3   :  { %15128 = sst [smem:[#allocation142_spill]] %s14963_s4 }
   0x4   :  { %15129 = sst [smem:[#allocation143_spill]] %s14965_s6 }
   0x5   :  { %15130 = sst [smem:[#allocation144_spill]] %s14969_s10 }
   0x6   :  { %17 = vsyncpa [#allocation5], 0 }
   0x7   :  { %19 = vsyncpa [#allocation5 + $0x1], 0 }
   0x8   :  { %20 = vsyncpa [#allocation8], 0 }
   0x9   :  { %21 = vsyncpa [#allocation11], 0 }
   0xa   :  { %22 = vsyncpa [#allocation14], 0 }
   0xb   :  { %23 = vsyncpa [#allocation6], 0 }
   0xc   :  { %25 = vsyncpa [#allocation6 + $0x1], 0  ;;  %s9327_s21 = smov 0   ;;  %s9329_s22 = smov 0  }
   0xd   :  { %s9331_s23 = smov 0   ;;  %s9333_s24 = smov 0  }
   0xe LB: > { %s15131_s1 = sld [smem:[#allocation140_spill]]  ;;  %s9351_s28 = sadd.s32 4294967295, %s9248_s24   ;;  %s9248_s24 = sphi %s9333_s24, %s16049_s24   ;;  %s9244_s23 = sphi %s9331_s23, %s16048_s23   ;;  %s9240_s22 = sphi %s9329_s22, %s16047_s22   ;;  %s9236_s21 = sphi %s9327_s21, %s16046_s21  }
   0xf   : > { %p7497_p0 = scmp.ge.s32.totalorder %s9248_s24, 1  ;;  %p52_p1 = scmp.eq.s32.totalorder %s9351_s28, 0 }
  0x10   : > { %p324_p2 = scmp.lt.s32.totalorder %s9248_s24, 3  ;;  %s9250_s30 = smov [#allocation7]  }
  0x11   : > { %s337_s13 = sshll.u32 %s9250_s30, 4  ;;  %s15133_s4 = sld [smem:[#allocation142_spill]]  ;;  %s338_s13 = int_to_ptr.vmem [resolvable:$true] %s337_s13 }
  0x12   : > { %p9356_p3 = pnand %p7497_p0, %p324_p2  ;;  %s15135_s3 = sld [smem:[#allocation141_spill]] }
  0x13   : > { %s9251_s25 = smov [#allocation10]   ;;  %s14972_s30 = smov 64  }
  0x14   : > { %s335_s27 = sshll.u32 %s15131_s1, 4  ;;  %p8618_p4 = pneg %p9356_p3  ;;  %s336_s27 = int_to_ptr.hbm [resolvable:$true] %s335_s27 }
  0x15   : > { %s367_s26 = sshll.u32 %s9251_s25, 4  ;;  %s14973_s1 = smov 4   ;;  %s368_s26 = int_to_ptr.vmem [resolvable:$true] %s367_s26 }
  0x16   : > { %p9368_p6 = pnand %p8618_p4, %p52_p1  ;;  %s15136_s6 = sld [smem:[#allocation143_spill]] }
  0x17   : > { %s365_s16 = sshll.u32 %s15133_s4, 4  ;;  %s9254_s19 = smov [#allocation9]   ;;  %s366_s16 = int_to_ptr.hbm [resolvable:$true] %s365_s16 }
  0x18   : > { %s353_s20 = sshll.u32 %s15135_s3, 4  ;;  %s355_s25 = sshll.u32 %s9254_s19, 4  ;;  %s354_s20 = int_to_ptr.hbm [resolvable:$true] %s353_s20  ;;  %s356_s25 = int_to_ptr.vmem [resolvable:$true] %s355_s25 }
  0x19   : > { %8621 = dma.hbm_to_vmem [thread:$0]  (!%p9368_p6), %s336_s27, 9216, %s338_s13, [#allocation8], %s14972_s30, %s14972_s30, %s14973_s1  }
  0x1a   : > { %8627 = dma.hbm_to_vmem [thread:$0]  (!%p9368_p6), %s366_s16, 16, %s368_s26, [#allocation11]  }
  0x1b   : > { %8624 = dma.hbm_to_vmem [thread:$0]  (!%p9368_p6), %s354_s20, 16, %s356_s25, [#allocation8]  }
  0x1c   : > { %s376_s18 = sshll.u32 %s15136_s6, 4  ;;  %s9255_s27 = smov [#allocation12]   ;;  %s377_s18 = int_to_ptr.hbm [resolvable:$true] %s376_s18 }
  0x1d   : > { %s378_s13 = sshll.u32 %s9255_s27, 4  ;;  %s15137_s10 = sld [smem:[#allocation144_spill]]  ;;  %s379_s13 = int_to_ptr.vmem [resolvable:$true] %s378_s13 }
  0x1e   : > { %8630 = dma.hbm_to_vmem [thread:$0]  (!%p9368_p6), %s377_s18, 9216, %s379_s13, [#allocation11], %s14972_s30, %s14972_s30, %s14973_s1  }
  0x1f   : > { %s9256_s20 = smov [#allocation13]   ;;  %s7496_s19 = sadd.s32 4294967294, %s9248_s24  }
  0x20   : > { %s401_s15 = sshll.u32 %s9256_s20, 4  ;;  %s9402_s25 = sadd.s32 1, %s9248_s24   ;;  %s402_s15 = int_to_ptr.vmem [resolvable:$true] %s401_s15 }
  0x21   : > { %s38_s27 = sadd.s32 1, %s9244_s23  ;;  %s35_s16 = ssub.s32 %s9248_s24, %s9402_s25 }
  0x22   : > { %p45_p7 = scmp.ne.s32.totalorder %s9244_s23, %s9240_s22  ;;  %p36_p8 = scmp.eq.s32.totalorder %s35_s16, 0 }
  0x23   : > { %s399_s14 = sshll.u32 %s15137_s10, 4  ;;  %p46_p9 = scmp.eq.s32.totalorder %s9248_s24, 0  ;;  %s400_s14 = int_to_ptr.hbm [resolvable:$true] %s399_s14 }
  0x24   : > { %8633 = dma.hbm_to_vmem [thread:$0]  (!%p9368_p6), %s400_s14, 1024, %s402_s15, [#allocation14], %s14972_s30, %s14972_s30, %s14973_s1  }
  0x25   : > { %p51_p10 = scmp.ne.s32.totalorder %s9240_s22, %s9236_s21  ;;  %p311_p11 = scmp.eq.s32.totalorder %s9351_s28, 1 }
  0x26   : > { %s9414_s18 = scalar_select %p36_p8, %s9244_s23, %s38_s27  }
  0x27   : > { %p9418_p12 = por %p52_p1, %p51_p10  ;;  %p9422_p13 = por %p311_p11, %p45_p7 }
  0x28   : > { %15138 = sst [smem:[#allocation21_spill]] %s9414_s18  ;;  %p317_p0 = scmp.eq.s32.totalorder %s7496_s19, 1 }
  0x29   : > { %p47_p2 = por %p46_p9, %p45_p7  ;;  %s418_s26 = sand.u32 1, %s9244_s23  }
  0x2a   : > { %p9427_p4 = por %p317_p0, %p51_p10  ;;  %p8647_p6 = scmp.lt.s32.totalorder %s9248_s24, 2 }
  0x2b   : > { %s7504_s20 = sshll.u32 %s418_s26, 7  ;;  %s8321_s15 = sshll.u32 %s9248_s24, 7 }
  0x2c   : > { %s427_s30 = scalar_lea.hbm %s14959_s0, %s8321_s15  ;;  %s422_s3 = scalar_lea.vmem [#allocation4], %s7504_s20 }
  0x2d   : > { %s428_s1 = sshll.u32 %s427_s30, 4  ;;  %s430_s4 = sshll.u32 %s422_s3, 4  ;;  %s429_s1 = int_to_ptr.hbm [resolvable:$true] %s428_s1  ;;  %s431_s4 = int_to_ptr.vmem [resolvable:$true] %s430_s4 }
  0x2e   : > { %p9436_p8 = pnand %p8647_p6, %p47_p2  ;;  %s419_s6 = scalar_lea.sflag [#allocation5], %s418_s26 }
  0x2f   : > { %s9140_s10 = sshra.s32 %s429_s1, 4  ;;  %s9147_s3 = scalar_lea.hbm %s14959_s0, 256  ;;  %s9141_s10 = int_to_ptr.hbm [resolvable:$true] %s9140_s10 }
  0x30   : > { %s9142_s18 = scalar_lea.hbm %s9141_s10, 128  ;;  %p9144_p9 = pneg %p9436_p8 }
  0x31   : > { %p9143_p7 = scmp.ne.s32.totalorder %s9141_s10, %s9142_s18  ;;  %p9148_p0 = scmp.lt.s32.totalorder %s9141_s10, %s14959_s0 }
  0x32   : > { %p9149_p2 = scmp.lt.s32.totalorder %s9147_s3, %s9142_s18 }
  0x33   : > { %p9145_p10 = pnand %p9144_p9, %p9143_p7 }
  0x34   : > { %p9150_p6 = por %p9149_p2, %p9148_p0 }
  0x35   : > { %p9146_p11 = pneg %p9145_p10 }
  0x37   : > { %p9151_p5 = pnand %p9150_p6, %p9146_p11 }
  0x39   : > { %9154 = shalt.err (!%p9151_p5)
}
  0x3a   : > { %s15143_s26 = smov 4   ;;  %s15144_s16 = smov 64  }
  0x3b   : > { %8637 = dma.hbm_to_vmem [thread:$0]  (!%p9436_p8), %s429_s1, 2048, %s431_s4, %s419_s6, %s15144_s16, %s15144_s16, %s15143_s26  }
  0x3c   : > { %448 = sbr.rel (%p9356_p3) target bundleno = 2953 (0xb89), region = 68 }
  0x41   : > { %s9456_s15 = sand.u32 1, %s9240_s22  }
  0x42   : > { %s7508_s10 = sshll.u32 %s9456_s15, 7  ;;  %s451_s18 = scalar_lea.sflag [#allocation5], %s9456_s15 }
  0x43   : > { %s9460_s30 = scalar_lea.vmem [#allocation4], %s7508_s10 }
  0x44   : > { %9215 = dma.done.wait (%p9418_p12), %s451_s18, 2048  }
  0x45   : > { %9217 = vsyncadd (%p9418_p12), %s451_s18, 4294965248 }
  0x46   : > { %9219 = dma.done.wait (%p52_p1), [#allocation8], 9232  }
  0x47   : > { %9221 = vsyncadd (%p52_p1), [#allocation8], 4294958064 }
  0x48   : > { %9223 = dma.done.wait (%p52_p1), [#allocation11], 9232  }
  0x49   : > { %9225 = vsyncadd (%p52_p1), [#allocation11], 4294958064 }
  0x4a   : > { %9227 = dma.done.wait (%p52_p1), [#allocation14], 1024  }
  0x4b   : > { %9229 = vsyncadd (%p52_p1), [#allocation14], 4294966272  ;;  %v9257_v0 = vmov 0.0   ;;  %v8353_v1 = vld [vmem:[#allocation7 + $0xf8] sm:$0xff]  ;;  %v8352_v4 = vld [vmem:[#allocation7 + $0xf0] sm:$0xff]  ;;  %p524_p1 = scmp.lt.s32.totalorder %s9351_s28, 1 }
  0x4c   : > { %927 = vst [vmem:[#allocation2] sm:$0xff] %v9257_v0  ;;  %v9478_v2 = vld [vmem:[#allocation7 + $0x38] sm:$0xff]  ;;  %1293 = vmatpush.bf16.msra.mxu0 %v8353_v1  ;;  %8570 = vmatpush.bf16.msra.mxu3 %v8353_v1  ;;  %v9484_v5 = vld [vmem:[#allocation7 + $0x30] sm:$0xff]  ;;  %v8351_v7 = vld [vmem:[#allocation7 + $0xe8] sm:$0xff]  ;;  %s7514_s6 = sshll.u32 %s9456_s15, 8  ;;  %s8490_s16 = sshll.u32 %s9351_s28, 8 }
  0x4d   : > { %928 = vst [vmem:[#allocation2 + $0x8] sm:$0xff] %v9257_v0  ;;  %v9480_v3 = vld [vmem:[#allocation7 + $0x138] sm:$0xff]  ;;  %1430 = vmatpush.bf16.msra.mxu1 %v9478_v2  ;;  %v9486_v6 = vld [vmem:[#allocation7 + $0x130] sm:$0xff]  ;;  %v9490_v8 = vld [vmem:[#allocation7 + $0x28] sm:$0xff]  ;;  %s9948_s1 = scalar_select %p524_p1, %s9351_s28, 1 }
  0x4e   : > { %929 = vst [vmem:[#allocation2 + $0x10] sm:$0xff] %v9257_v0  ;;  %1632 = vmatpush.bf16.msra.mxu2 %v9480_v3  ;;  %v9492_v9 = vld [vmem:[#allocation7 + $0x128] sm:$0xff]  ;;  %v8492_v10 = vld [vmem:[%s9460_s30] sm:$0xff]   ;;  %v8565_v11 = vld [vmem:[%s9460_s30 + $0x58] sm:$0xff]   ;;  %s14673_s19 = scalar_lea.vmem [#allocation15], %s7514_s6  ;;  %s7351_s4 = scalar_lea.sflag [#allocation6], %s9456_s15 }
  0x4f   : > { %930 = vst [vmem:[#allocation2 + $0x18] sm:$0xff] %v9257_v0  ;;  %v8566_v12 = vld [vmem:[%s9460_s30 + $0x60] sm:$0xff]   ;;  %v8493_v13 = vunpack.c.l.bf16 %v8492_v10  ;;  %v8494_v14 = vunpack.c.h.bf16 %v8492_v10  ;;  %v8538_v15 = vunpack.c.h.bf16 %v8565_v11  ;;  %v8555_v19 = vld [vmem:[%s9460_s30 + $0x8] sm:$0xff]   ;;  %v8537_v22 = vunpack.c.l.bf16 %v8565_v11  ;;  %v8349_v25 = vld [vmem:[#allocation7 + $0xd8] sm:$0xff]  ;;  %s526_s29 = scalar_lea.vmem %s14964_s5, %s9948_s1  ;;  %s7363_s28 = sshll.u32 %s14673_s19, 4  ;;  %s7364_s28 = int_to_ptr.vmem [resolvable:$true] %s7363_s28 }
  0x50   : > { %931 = vst [vmem:[#allocation2 + $0x120] sm:$0xff] %v9257_v0  ;;  %1294 = vmatpush.bf16.msra.mxu0 %v8352_v4  ;;  %8571 = vmatpush.bf16.msra.mxu3 %v8352_v4  ;;  %v8350_v16 = vld [vmem:[#allocation7 + $0xe0] sm:$0xff]  ;;  %v8541_v18 = vunpack.c.l.bf16 %v8566_v12  ;;  %v8542_v21 = vunpack.c.h.bf16 %v8566_v12  ;;  %v8567_v23 = vld [vmem:[%s9460_s30 + $0x68] sm:$0xff]   ;;  %v8497_v24 = vunpack.c.l.bf16 %v8555_v19  ;;  %v8498_v26 = vunpack.c.h.bf16 %v8555_v19  ;;  %v9507_v27 = vld [vmem:[#allocation7 + $0x18] sm:$0xff]  ;;  %s9190_s20 = scalar_lea.hbm %s14971_s12, 512 }
  0x51   : > { %932 = vst [vmem:[#allocation2 + $0x128] sm:$0xff] %v9257_v0  ;;  %1431 = vmatpush.bf16.msra.mxu1 %v9484_v5  ;;  %v9497_v17 = vld [vmem:[#allocation7 + $0x20] sm:$0xff]  ;;  %v9509_v28 = vld [vmem:[#allocation7 + $0x118] sm:$0xff]  ;;  %v8545_v29 = vunpack.c.l.bf16 %v8567_v23  ;;  %v8546_v30 = vunpack.c.h.bf16 %v8567_v23  ;;  %v8348_v31 = vld [vmem:[#allocation7 + $0xd0] sm:$0xff] }
  0x52   : > { %933 = vst [vmem:[#allocation2 + $0x130] sm:$0xff] %v9257_v0  ;;  %1633 = vmatpush.bf16.msra.mxu2 %v9486_v6  ;;  %v9502_v20 = vld [vmem:[#allocation7 + $0x120] sm:$0xff]  ;;  %v8556_v32 = vld [vmem:[%s9460_s30 + $0x10] sm:$0xff]   ;;  %v8347_v38 = vld [vmem:[#allocation7 + $0xc8] sm:$0xff] }
  0x53   : > { %4015 = vst [vmem:[#allocation3 + $0x8] sm:$0xff] %v9257_v0  ;;  %v9514_v33 = vld [vmem:[#allocation7 + $0x10] sm:$0xff]  ;;  %v8501_v35 = vunpack.c.l.bf16 %v8556_v32  ;;  %v8502_v36 = vunpack.c.h.bf16 %v8556_v32  ;;  %v9521_v41 = vld [vmem:[#allocation7 + $0x8] sm:$0xff]  ;;  %v8346_v43 = vld [vmem:[#allocation7 + $0xc0] sm:$0xff] }
  0x54   : > { %4016 = vst [vmem:[#allocation3 + $0x10] sm:$0xff] %v9257_v0  ;;  %1295 = vmatpush.bf16.msra.mxu0 %v8351_v7  ;;  %8572 = vmatpush.bf16.msra.mxu3 %v8351_v7  ;;  %v9516_v34 = vld [vmem:[#allocation7 + $0x110] sm:$0xff]  ;;  %v9523_v42 = vld [vmem:[#allocation7 + $0x108] sm:$0xff]  ;;  %v9525_v44 = vld [vmem:[#allocation7] sm:$0xff] }
  0x55   : > { %4017 = vst [vmem:[#allocation3 + $0x18] sm:$0xff] %v9257_v0  ;;  %1432 = vmatpush.bf16.msra.mxu1 %v9490_v8  ;;  %v8568_v37 = vld [vmem:[%s9460_s30 + $0x70] sm:$0xff]   ;;  %v9529_v49 = vld [vmem:[#allocation7 + $0x100] sm:$0xff]  ;;  %v8369_v52 = vld [vmem:[#allocation7 + $0x178] sm:$0xff] }
  0x56   : > { %4018 = vst [vmem:[#allocation3 + $0x120] sm:$0xff] %v9257_v0  ;;  %1634 = vmatpush.bf16.msra.mxu2 %v9492_v9  ;;  %v8549_v39 = vunpack.c.l.bf16 %v8568_v37  ;;  %v8550_v40 = vunpack.c.h.bf16 %v8568_v37  ;;  %v1031_v50 = vld [vmem:[#allocation2 + $0xf] sm:$0xff]  ;;  %v1032_v51 = vld [vmem:[#allocation2 + $0x17] sm:$0xff]  ;;  %v9534_v56 = vld [vmem:[%s9460_s30] sm:$0xff] }
  0x57   : > { %4019 = vst [vmem:[#allocation3 + $0x128] sm:$0xff] %v9257_v0  ;;  %v1063_v55 = vpack.c.bf16 %v1032_v51, %v1031_v50  ;;  %v8368_v57 = vld [vmem:[#allocation7 + $0x170] sm:$0xff]  ;;  %v8557_v58 = vld [vmem:[%s9460_s30 + $0x18] sm:$0xff]   ;;  %v9551_v10 = vld [vmem:[%s9460_s30 + $0x8] sm:$0xff] }
  0x58   : > { %4020 = vst [vmem:[#allocation3 + $0x130] sm:$0xff] %v9257_v0  ;;  %1296 = vmatpush.bf16.msra.mxu0 %v8350_v16  ;;  %8573 = vmatpush.bf16.msra.mxu3 %v8350_v16  ;;  %v8505_v59 = vunpack.c.l.bf16 %v8557_v58  ;;  %v8506_v60 = vunpack.c.h.bf16 %v8557_v58  ;;  %v8569_v61 = vld [vmem:[%s9460_s30 + $0x78] sm:$0xff]   ;;  %v8558_v11 = vld [vmem:[%s9460_s30 + $0x20] sm:$0xff]   ;;  %v9571_v23 = vld [vmem:[%s9460_s30 + $0x10] sm:$0xff] }
  0x59   : > { %999 = vst [vmem:[#allocation2 + $0x20] sm:$0xff] %v8493_v13  ;;  %1433 = vmatpush.bf16.msra.mxu1 %v9497_v17  ;;  %v8553_v62 = vunpack.c.l.bf16 %v8569_v61  ;;  %v8554_v63 = vunpack.c.h.bf16 %v8569_v61  ;;  %v8509_v12 = vunpack.c.l.bf16 %v8558_v11  ;;  %v8510_v13 = vunpack.c.h.bf16 %v8558_v11  ;;  %v8364_v58 = vld [vmem:[#allocation7 + $0x150] sm:$0xff]  ;;  %v8334_v11 = vld [vmem:[#allocation7 + $0x60] sm:$0xff] }
  0x5a   : > { %1000 = vst [vmem:[#allocation2 + $0x28] sm:$0xff] %v8494_v14  ;;  %1635 = vmatpush.bf16.msra.mxu2 %v9502_v20  ;;  %v9560_v14 = vld [vmem:[%s9460_s30 + $0x50] sm:$0xff]  }
  0x5b   : > { %1022 = vst [vmem:[#allocation2 + $0xd8] sm:$0xff] %v8538_v15  ;;  %v8534_v15 = vunpack.c.h.bf16 %v9560_v14 }
  0x5c   : > { %1023 = vst [vmem:[#allocation2 + $0xe0] sm:$0xff] %v8541_v18  ;;  %1297 = vmatpush.bf16.msra.mxu0 %v8349_v25  ;;  %8574 = vmatpush.bf16.msra.mxu3 %v8349_v25  ;;  %v8559_v25 = vld [vmem:[%s9460_s30 + $0x28] sm:$0xff]  }
  0x5d   : > { %1024 = vst [vmem:[#allocation2 + $0xe8] sm:$0xff] %v8542_v21  ;;  %1434 = vmatpush.bf16.msra.mxu1 %v9507_v27 }
  0x5e   : > { %1021 = vst [vmem:[#allocation2 + $0xd0] sm:$0xff] %v8537_v22  ;;  %1636 = vmatpush.bf16.msra.mxu2 %v9509_v28 }
  0x5f   : > { %1001 = vst [vmem:[#allocation2 + $0x30] sm:$0xff] %v8497_v24  ;;  %v8366_v24 = vld [vmem:[#allocation7 + $0x160] sm:$0xff] }
  0x60   : > { %1002 = vst [vmem:[#allocation2 + $0x38] sm:$0xff] %v8498_v26  ;;  %1298 = vmatpush.bf16.msra.mxu0 %v8348_v31  ;;  %8575 = vmatpush.bf16.msra.mxu3 %v8348_v31  ;;  %v1033_v45 = vld [vmem:[#allocation2 + $0x1f] sm:$0xff]  ;;  %v8513_v26 = vunpack.c.l.bf16 %v8559_v25 }
  0x61   : > { %1025 = vst [vmem:[#allocation2 + $0xf0] sm:$0xff] %v8545_v29  ;;  %1435 = vmatpush.bf16.msra.mxu1 %v9514_v33  ;;  %v1034_v46 = vld [vmem:[#allocation2 + $0x27] sm:$0xff] }
  0x62   : > { %1026 = vst [vmem:[#allocation2 + $0xf8] sm:$0xff] %v8546_v30  ;;  %1637 = vmatpush.bf16.msra.mxu2 %v9516_v34  ;;  %v1064_v53 = vpack.c.bf16 %v1034_v46, %v1033_v45 }
  0x63   : > { %1003 = vst [vmem:[#allocation2 + $0x40] sm:$0xff] %v8501_v35  ;;  %v1057_v47 = vld [vmem:[#allocation2 + $0xdf] sm:$0xff] }
  0x64   : > { %1004 = vst [vmem:[#allocation2 + $0x48] sm:$0xff] %v8502_v36  ;;  %1299 = vmatpush.bf16.msra.mxu0 %v8347_v38  ;;  %8576 = vmatpush.bf16.msra.mxu3 %v8347_v38  ;;  %v1058_v48 = vld [vmem:[#allocation2 + $0xe7] sm:$0xff]  ;;  %v9584_v35 = vld [vmem:[%s9460_s30 + $0x18] sm:$0xff] }
  0x65   : > { %1027 = vst [vmem:[#allocation2 + $0x100] sm:$0xff] %v8549_v39  ;;  %1436 = vmatpush.bf16.msra.mxu1 %v9521_v41  ;;  %v9531_v54 = vpack.c.bf16 %v1058_v48, %v1057_v47  ;;  %v1056_v38 = vld [vmem:[#allocation2 + $0xd7] sm:$0xff]  ;;  %v9609_v48 = vld [vmem:[%s9460_s30 + $0x28] sm:$0xff] }
  0x66   : > { %1028 = vst [vmem:[#allocation2 + $0x108] sm:$0xff] %v8550_v40  ;;  %1638 = vmatpush.bf16.msra.mxu2 %v9523_v42  ;;  %v1035_v0 = vld [vmem:[#allocation2 + $0x2f] sm:$0xff] }
  0x67   : > { %1005 = vst [vmem:[#allocation2 + $0x50] sm:$0xff] %v8505_v59  ;;  %v1036_v1 = vld [vmem:[#allocation2 + $0x37] sm:$0xff]  ;;  %v8563_v59 = vld [vmem:[%s9460_s30 + $0x48] sm:$0xff]  }
  0x68   : > { %1300 = vmatpush.bf16.msra.mxu0 %v8346_v43  ;;  %8577 = vmatpush.bf16.msra.mxu3 %v8346_v43  ;;  %1006 = vst [vmem:[#allocation2 + $0x58] sm:$0xff] %v8506_v60  ;;  %v8529_v60 = vunpack.c.l.bf16 %v8563_v59  ;;  %v8530_v61 = vunpack.c.h.bf16 %v8563_v59 }
  0x69   : > { %1437 = vmatpush.bf16.msra.mxu1 %v9525_v44  ;;  %1029 = vst [vmem:[#allocation2 + $0x110] sm:$0xff] %v8553_v62  ;;  %v1060_v4 = vld [vmem:[#allocation2 + $0xf7] sm:$0xff] }
  0x6a   : > { %1639 = vmatpush.bf16.msra.mxu2 %v9529_v49  ;;  %1030 = vst [vmem:[#allocation2 + $0x118] sm:$0xff] %v8554_v63  ;;  %v1037_v16 = vld [vmem:[#allocation2 + $0x3f] sm:$0xff]  ;;  %v8336_v62 = vld [vmem:[#allocation7 + $0x70] sm:$0xff] }
  0x6b   : > { %1301 = vmatmul.bf16.vlgmr.msra.gmra.mxu0 %v1064_v53  ;;  %1361 = vmatmul.bf16.vlgmr.msra.gmra.mxu3 %v9531_v54  ;;  %1007 = vst [vmem:[#allocation2 + $0x60] sm:$0xff] %v8509_v12 }
  0x6c   : > { %8578 = vmatpush.bf16.msrb.mxu3 %v9478_v2  ;;  %1971 = vmatpush.bf16.msrb.mxu0 %v8369_v52  ;;  %v1059_v2 = vld [vmem:[#allocation2 + $0xef] sm:$0xff]  ;;  %1008 = vst [vmem:[#allocation2 + $0x68] sm:$0xff] %v8510_v13  ;;  %v1061_v18 = vld [vmem:[#allocation2 + $0xff] sm:$0xff] }
  0x6d   : > { %1438 = vmatmul.bf16.vlgmr.msra.gmra.mxu1 %v1063_v55  ;;  %1640 = vmatmul.bf16.vlgmr.msra.gmra.mxu2 %v9534_v56  ;;  %v9548_v7 = vpack.c.bf16 %v1060_v4, %v1059_v2  ;;  %1020 = vst [vmem:[#allocation2 + $0xc8] sm:$0xff] %v8534_v15  ;;  %v1062_v19 = vld [vmem:[#allocation2 + $0x107] sm:$0xff]  ;;  %v9629_v2 = vld [vmem:[%s9460_s30 + $0x38] sm:$0xff] }
  0x6e   : > { %v9567_v22 = vpack.c.bf16 %v1062_v19, %v1061_v18  ;;  %1009 = vst [vmem:[#allocation2 + $0x70] sm:$0xff] %v8513_v26  ;;  %v8335_v4 = vld [vmem:[#allocation7 + $0x68] sm:$0xff]  ;;  %v8705_v18 = vld [vmem:[%s9460_s30 + $0x40] sm:$0xff] }
  0x6f   : > { %v1040_v29 = vld [vmem:[#allocation2 + $0x57] sm:$0xff]  ;;  %1017 = vst [vmem:[#allocation2 + $0xb0] sm:$0xff] %v8529_v60 }
  0x70   : > { %8579 = vmatpush.bf16.msrb.mxu3 %v9484_v5  ;;  %1972 = vmatpush.bf16.msrb.mxu0 %v8368_v57  ;;  %v9546_v5 = vpack.c.bf16 %v1036_v1, %v1035_v0  ;;  %v1225_v30 = vld [vmem:[#allocation2 + $0x10f] sm:$0xff]  ;;  %1018 = vst [vmem:[#allocation2 + $0xb8] sm:$0xff] %v8530_v61 }
  0x71   : > { %v1226_v31 = vld [vmem:[#allocation2 + $0x117] sm:$0xff] }
  0x72   : > { %v9619_v57 = vld [vmem:[%s9460_s30 + $0x30] sm:$0xff] }
  0x73   : > { %v8340_v60 = vld [vmem:[#allocation7 + $0x90] sm:$0xff] }
  0x74   : > { %8580 = vmatpush.bf16.msrb.mxu3 %v9490_v8  ;;  %v8367_v8 = vld [vmem:[#allocation7 + $0x168] sm:$0xff]  ;;  %v8372_v61 = vld [vmem:[#allocation7 + $0x190] sm:$0xff] }
  0x75   : > { %1973 = vmatpush.bf16.msrb.mxu0 %v8367_v8  ;;  %v1055_v37 = vld [vmem:[#allocation2 + $0xcf] sm:$0xff] }
  0x76   : > { %v9596_v40 = vpack.c.bf16 %v1056_v38, %v1055_v37  ;;  %v1043_v45 = vld [vmem:[#allocation2 + $0x6f] sm:$0xff] }
  0x77   : > { %v8363_v8 = vld [vmem:[#allocation7 + $0x148] sm:$0xff] }
  0x78   : > { %8581 = vmatpush.bf16.msrb.mxu3 %v9497_v17  ;;  %v1038_v17 = vld [vmem:[#allocation2 + $0x47] sm:$0xff] }
  0x79   : > { %v9565_v21 = vpack.c.bf16 %v1038_v17, %v1037_v16  ;;  %1974 = vmatpush.bf16.msrb.mxu0 %v8366_v24  ;;  %v8706_v16 = vld [vmem:[%s9460_s30 + $0x60] sm:$0xff]  ;;  %v8345_v24 = vld [vmem:[#allocation7 + $0xb8] sm:$0xff] }
  0x7a   : > { %2108 = vmatpush.bf16.msrb.mxu1 %v8345_v24  ;;  %v8370_v24 = vld [vmem:[#allocation7 + $0x180] sm:$0xff] }
  0x7b   : > { %1306 = vmatmul.bf16.gmra.mxu0 %v9546_v5  ;;  %1366 = vmatmul.bf16.gmra.mxu3 %v9548_v7 }
  0x7c   : > { %8582 = vmatpush.bf16.msrb.mxu3 %v9507_v27  ;;  %v8514_v27 = vunpack.c.h.bf16 %v8559_v25  ;;  %v8333_v25 = vld [vmem:[#allocation7 + $0x58] sm:$0xff] }
  0x7d   : > { %1443 = vmatmul.bf16.gmra.mxu1 %v1064_v53  ;;  %1645 = vmatmul.bf16.gmra.mxu2 %v9551_v10 }
  0x7e   : > { %1010 = vst [vmem:[#allocation2 + $0x78] sm:$0xff] %v8514_v27 }
  0x80   : > { %8583 = vmatpush.bf16.msrb.mxu3 %v9514_v33  ;;  %v1227_v33 = vpack.c.bf16 %v1226_v31, %v1225_v30 }
  0x84   : > { %8584 = vmatpush.bf16.msrb.mxu3 %v9521_v41  ;;  %v9599_v41 = vld [vmem:[%s9460_s30 + $0x20] sm:$0xff] }
  0x85   : > { %v1044_v46 = vld [vmem:[#allocation2 + $0x77] sm:$0xff] }
  0x86   : > { %v9606_v47 = vpack.c.bf16 %v1044_v46, %v1043_v45  ;;  %v8707_v46 = vld [vmem:[%s9460_s30 + $0x48] sm:$0xff] }
  0x88   : > { %8585 = vmatpush.bf16.msrb.mxu3 %v9525_v44 }
  0x8b   : > { %1311 = vmatmul.bf16.gmra.mxu0 %v9565_v21  ;;  %1371 = vmatmul.bf16.gmra.mxu3 %v9567_v22 }
  0x8c   : > { %8586 = vmatpush.bf16.msra.mxu3 %v9480_v3  ;;  %v1039_v3 = vld [vmem:[#allocation2 + $0x4f] sm:$0xff] }
  0x8d   : > { %1448 = vmatmul.bf16.gmra.mxu1 %v9546_v5  ;;  %1650 = vmatmul.bf16.gmra.mxu2 %v9571_v23  ;;  %v9581_v32 = vpack.c.bf16 %v1040_v29, %v1039_v3  ;;  %v8344_v3 = vld [vmem:[#allocation7 + $0xb0] sm:$0xff] }
  0x8e   : > { %v8376_v29 = vld [vmem:[#allocation7 + $0x1b0] sm:$0xff]  ;;  %2109 = vmatpush.bf16.msrb.mxu1 %v8344_v3 }
  0x90   : > { %8587 = vmatpush.bf16.msra.mxu3 %v9486_v6  ;;  %v8560_v6 = vld [vmem:[%s9460_s30 + $0x30] sm:$0xff]  }
  0x91   : > { %v8518_v36 = vunpack.c.h.bf16 %v8560_v6 }
  0x93   : > { %1012 = vst [vmem:[#allocation2 + $0x88] sm:$0xff] %v8518_v36  ;;  %v8375_v36 = vld [vmem:[#allocation7 + $0x1a8] sm:$0xff] }
  0x94   : > { %8588 = vmatpush.bf16.msra.mxu3 %v9492_v9  ;;  %v8517_v9 = vunpack.c.l.bf16 %v8560_v6  ;;  %v8332_v6 = vld [vmem:[#allocation7 + $0x50] sm:$0xff] }
  0x96   : > { %1011 = vst [vmem:[#allocation2 + $0x80] sm:$0xff] %v8517_v9  ;;  %v8343_v9 = vld [vmem:[#allocation7 + $0xa8] sm:$0xff] }
  0x97   : > { %2110 = vmatpush.bf16.msrb.mxu1 %v8343_v9 }
  0x98   : > { %8589 = vmatpush.bf16.msra.mxu3 %v9502_v20  ;;  %v1041_v20 = vld [vmem:[#allocation2 + $0x5f] sm:$0xff] }
  0x9b   : > { %1316 = vmatmul.bf16.gmra.mxu0 %v9581_v32  ;;  %1376 = vmatmul.bf16.gmra.mxu3 %v1227_v33 }
  0x9c   : > { %8590 = vmatpush.bf16.msra.mxu3 %v9509_v28  ;;  %v1042_v28 = vld [vmem:[#allocation2 + $0x67] sm:$0xff] }
  0x9d   : > { %1453 = vmatmul.bf16.gmra.mxu1 %v9565_v21  ;;  %1655 = vmatmul.bf16.gmra.mxu2 %v9584_v35  ;;  %v9594_v39 = vpack.c.bf16 %v1042_v28, %v1041_v20  ;;  %v1045_v52 = vld [vmem:[#allocation2 + $0x7f] sm:$0xff]  ;;  %v1046_v53 = vld [vmem:[#allocation2 + $0x87] sm:$0xff]  ;;  %v1052_v28 = vld [vmem:[#allocation2 + $0xb7] sm:$0xff] }
  0x9e   : > { %v9616_v55 = vpack.c.bf16 %v1046_v53, %v1045_v52  ;;  %v8341_v52 = vld [vmem:[#allocation7 + $0x98] sm:$0xff] }
  0x9f   : > { %v8373_v53 = vld [vmem:[#allocation7 + $0x198] sm:$0xff] }
  0xa0   : > { %8591 = vmatpush.bf16.msra.mxu3 %v9516_v34  ;;  %v8365_v34 = vld [vmem:[#allocation7 + $0x158] sm:$0xff] }
  0xa1   : > { %1975 = vmatpush.bf16.msrb.mxu0 %v8365_v34 }
  0xa4   : > { %8592 = vmatpush.bf16.msra.mxu3 %v9523_v42  ;;  %v8561_v42 = vld [vmem:[%s9460_s30 + $0x38] sm:$0xff]  }
  0xa5   : > { %v8521_v43 = vunpack.c.l.bf16 %v8561_v42  ;;  %v8522_v44 = vunpack.c.h.bf16 %v8561_v42  ;;  %1976 = vmatpush.bf16.msrb.mxu0 %v8364_v58  ;;  %v8708_v42 = vld [vmem:[%s9460_s30 + $0x68] sm:$0xff] }
  0xa6   : > { %v8331_v58 = vld [vmem:[#allocation7 + $0x48] sm:$0xff] }
  0xa7   : > { %1013 = vst [vmem:[#allocation2 + $0x90] sm:$0xff] %v8521_v43  ;;  %v8342_v43 = vld [vmem:[#allocation7 + $0xa0] sm:$0xff] }
  0xa8   : > { %8593 = vmatpush.bf16.msra.mxu3 %v9529_v49  ;;  %1014 = vst [vmem:[#allocation2 + $0x98] sm:$0xff] %v8522_v44  ;;  %v8562_v49 = vld [vmem:[%s9460_s30 + $0x40] sm:$0xff]   ;;  %2111 = vmatpush.bf16.msrb.mxu1 %v8342_v43 }
  0xa9   : > { %v8525_v50 = vunpack.c.l.bf16 %v8562_v49  ;;  %v8526_v51 = vunpack.c.h.bf16 %v8562_v49  ;;  %1977 = vmatpush.bf16.msrb.mxu0 %v8363_v8  ;;  %v8374_v44 = vld [vmem:[#allocation7 + $0x1a0] sm:$0xff]  ;;  %v8371_v8 = vld [vmem:[#allocation7 + $0x188] sm:$0xff] }
  0xab   : > { %1321 = vmatmul.bf16.gmra.mxu0 %v9594_v39  ;;  %1498 = vmatmul.bf16.vlgmr.msrb.gmra.mxu3 %v9596_v40  ;;  %1015 = vst [vmem:[#allocation2 + $0xa0] sm:$0xff] %v8525_v50 }
  0xac   : > { %1016 = vst [vmem:[#allocation2 + $0xa8] sm:$0xff] %v8526_v51  ;;  %v8362_v51 = vld [vmem:[#allocation7 + $0x140] sm:$0xff]  ;;  %2112 = vmatpush.bf16.msrb.mxu1 %v8341_v52 }
  0xad   : > { %1458 = vmatmul.bf16.gmra.mxu1 %v9581_v32  ;;  %1660 = vmatmul.bf16.gmra.mxu2 %v9599_v41 }
  0xae   : > { %v1047_v63 = vld [vmem:[#allocation2 + $0x8f] sm:$0xff]  ;;  %1978 = vmatpush.bf16.msrb.mxu0 %v8362_v51 }
  0xaf   : > { %v1048_v0 = vld [vmem:[#allocation2 + $0x97] sm:$0xff] }
  0xb0   : > { %v9626_v1 = vpack.c.bf16 %v1048_v0, %v1047_v63  ;;  %2113 = vmatpush.bf16.msrb.mxu1 %v8340_v60 }
  0xb2   : > { %v1049_v12 = vld [vmem:[#allocation2 + $0x9f] sm:$0xff] }
  0xb3   : > { %v1050_v13 = vld [vmem:[#allocation2 + $0xa7] sm:$0xff]  ;;  %v1051_v20 = vld [vmem:[#allocation2 + $0xaf] sm:$0xff] }
  0xb4   : > { %v9636_v15 = vpack.c.bf16 %v1050_v13, %v1049_v12  ;;  %v9654_v34 = vpack.c.bf16 %v1052_v28, %v1051_v20  ;;  %v8393_v28 = vld [vmem:[#allocation7 + $0x238] sm:$0xff] }
  0xb5   : > { %2778 = vmatpush.bf16.msra.mxu0 %v8393_v28 }
  0xbb   : > { %1326 = vmatmul.bf16.gmra.mxu0 %v9606_v47  ;;  %1503 = vmatmul.bf16.gmra.mxu3 %v9531_v54  ;;  %v8337_v54 = vld [vmem:[#allocation7 + $0x78] sm:$0xff] }
  0xbc   : > { %1769 = vmatpush.bf16.msrb.mxu3 %v8337_v54 }
  0xbd   : > { %1463 = vmatmul.bf16.gmra.mxu1 %v9594_v39  ;;  %1665 = vmatmul.bf16.gmra.mxu2 %v9609_v48 }
  0xc0   : > { %1770 = vmatpush.bf16.msrb.mxu3 %v8336_v62 }
  0xc4   : > { %1771 = vmatpush.bf16.msrb.mxu3 %v8335_v4  ;;  %v8330_v4 = vld [vmem:[#allocation7 + $0x40] sm:$0xff] }
  0xc8   : > { %1772 = vmatpush.bf16.msrb.mxu3 %v8334_v11 }
  0xcb   : > { %1331 = vmatmul.bf16.gmra.mxu0 %v9616_v55  ;;  %1508 = vmatmul.bf16.gmra.mxu3 %v9548_v7  ;;  %v8533_v7 = vunpack.c.l.bf16 %v9560_v14  ;;  %v8377_v14 = vld [vmem:[#allocation7 + $0x1b8] sm:$0xff] }
  0xcc   : > { %2310 = vmatpush.bf16.msrb.mxu2 %v8377_v14  ;;  %1773 = vmatpush.bf16.msrb.mxu3 %v8333_v25  ;;  %v8709_v25 = vld [vmem:[%s9460_s30 + $0x50] sm:$0xff] }
  0xcd   : > { %1468 = vmatmul.bf16.gmra.mxu1 %v9606_v47  ;;  %1670 = vmatmul.bf16.gmra.mxu2 %v9619_v57  ;;  %1019 = vst [vmem:[#allocation2 + $0xc0] sm:$0xff] %v8533_v7  ;;  %v8339_v7 = vld [vmem:[#allocation7 + $0x88] sm:$0xff] }
  0xce   : > { %2114 = vmatpush.bf16.msrb.mxu1 %v8339_v7  ;;  %v1161_v7 = vld [vmem:[#allocation2 + $0x19] sm:$0xff] }
  0xd0   : > { %2311 = vmatpush.bf16.msrb.mxu2 %v8376_v29  ;;  %1774 = vmatpush.bf16.msrb.mxu3 %v8332_v6 }
  0xd4   : > { %2312 = vmatpush.bf16.msrb.mxu2 %v8375_v36  ;;  %1775 = vmatpush.bf16.msrb.mxu3 %v8331_v58  ;;  %v1053_v11 = vld [vmem:[#allocation2 + $0xbf] sm:$0xff]  ;;  %v1054_v12 = vld [vmem:[#allocation2 + $0xc7] sm:$0xff] }
  0xd8   : > { %2313 = vmatpush.bf16.msrb.mxu2 %v8374_v44  ;;  %1776 = vmatpush.bf16.msrb.mxu3 %v8330_v4  ;;  %v8712_v44 = vld [vmem:[%s9460_s30 + $0x78] sm:$0xff] }
  0xd9   : > { %v1160_v4 = vld [vmem:[#allocation2 + $0x11] sm:$0xff] }
  0xdb   : > { %1336 = vmatmul.bf16.gmra.mxu0 %v9626_v1  ;;  %1513 = vmatmul.bf16.gmra.mxu3 %v9567_v22 }
  0xdc   : > { %2314 = vmatpush.bf16.msrb.mxu2 %v8373_v53 }
  0xdd   : > { %1473 = vmatmul.bf16.gmra.mxu1 %v9616_v55  ;;  %1675 = vmatmul.bf16.gmra.mxu2 %v9629_v2 }
  0xe0   : > { %2315 = vmatpush.bf16.msrb.mxu2 %v8372_v61 }
  0xe4   : > { %2316 = vmatpush.bf16.msrb.mxu2 %v8371_v8 }
  0xe8   : > { %v1302_v17 = vpop.f32.mrf.mxu0  ;;  %2317 = vmatpush.bf16.msrb.mxu2 %v8370_v24 }
  0xea   : > { %v1439_v19 = vpop.f32.mrf.mxu1 }
  0xeb   : > { %v9640_v22 = vadd.f32 %v1439_v19, %v1302_v17  ;;  %1341 = vmatmul.bf16.gmra.mxu0 %v9636_v15  ;;  %1700 = vmatmul.bf16.vlgmr.msra.gmra.mxu3 %v8706_v16  ;;  %v9672_v17 = vpack.c.bf16 %v1054_v12, %v1053_v11  ;;  %v8338_v19 = vld [vmem:[#allocation7 + $0x80] sm:$0xff] }
  0xec   : > { %2115 = vmatpush.bf16.msrb.mxu1 %v8338_v19 }
  0xed   : > { %1478 = vmatmul.bf16.gmra.mxu1 %v9626_v1  ;;  %1680 = vmatmul.bf16.gmra.mxu2 %v8705_v18  ;;  %v8710_v18 = vld [vmem:[%s9460_s30 + $0x70] sm:$0xff] }
  0xee   : > { %v9644_v26 = vpop.f32.mrf.mxu3 }
  0xf0   : > { %v9646_v27 = vpop.f32.mrf.mxu2  ;;  %v1304_v30 = vpop.f32.mrf.mxu0 }
  0xf2   : > { %v1441_v31 = vpop.f32.mrf.mxu1 }
  0xf3   : > { %v9648_v33 = vadd.f32 %v1441_v31, %v1304_v30  ;;  %v8385_v30 = vld [vmem:[#allocation7 + $0x1f8] sm:$0xff] }
  0xf4   : > { %2544 = vmatpush.bf16.msra.mxu3 %v8385_v30 }
  0xf6   : > { %v9650_v37 = vpop.f32.mrf.mxu3 }
  0xf8   : > { %v9652_v38 = vpop.f32.mrf.mxu2  ;;  %v1307_v45 = vpop.f32.mrf.mxu0 }
  0xfa   : > { %v1444_v49 = vpop.f32.mrf.mxu1 }
  0xfb   : > { %v9658_v50 = vadd.f32 %v1444_v49, %v1307_v45  ;;  %1346 = vmatmul.bf16.gmra.mxu0 %v9654_v34  ;;  %1705 = vmatmul.bf16.gmra.mxu3 %v8708_v42 }
  0xfd   : > { %1483 = vmatmul.bf16.gmra.mxu1 %v9636_v15  ;;  %1685 = vmatmul.bf16.gmra.mxu2 %v8707_v46  ;;  %v8711_v46 = vld [vmem:[%s9460_s30 + $0x58] sm:$0xff] }
  0xfe   : > { %v9662_v54 = vpop.f32.mrf.mxu3 }
 0x100   : > { %v9664_v59 = vpop.f32.mrf.mxu2  ;;  %v1309_v62 = vpop.f32.mrf.mxu0 }
 0x102   : > { %v1446_v63 = vpop.f32.mrf.mxu1 }
 0x103   : > { %v9666_v0 = vadd.f32 %v1446_v63, %v1309_v62  ;;  %v1858_v62 = vld [vmem:[#allocation2 + $0x21] sm:$0xff]  ;;  %v1859_v63 = vld [vmem:[#allocation2 + $0x29] sm:$0xff] }
 0x106   : > { %v9668_v13 = vpop.f32.mrf.mxu3 }
 0x108   : > { %v9670_v16 = vpop.f32.mrf.mxu2  ;;  %v1312_v14 = vpop.f32.mrf.mxu0 }
 0x10a   : > { %v1449_v3 = vpop.f32.mrf.mxu1 }
 0x10b   : > { %v9676_v29 = vadd.f32 %v1449_v3, %v1312_v14  ;;  %1351 = vmatmul.bf16.gmra.mxu0 %v9672_v17  ;;  %1710 = vmatmul.bf16.gmra.mxu3 %v8710_v18  ;;  %v1192_v18 = vpack.c.bf16 %v1161_v7, %v1160_v4  ;;  %v9258_v14 = vmov 0.0|0.0  }
 0x10d   : > { %1488 = vmatmul.bf16.gmra.mxu1 %v9654_v34  ;;  %1690 = vmatmul.bf16.gmra.mxu2 %v8709_v25  ;;  %v8384_v25 = vld [vmem:[#allocation7 + $0x1f0] sm:$0xff] }
 0x10e   : > { %v9680_v31 = vpop.f32.mrf.mxu3  ;;  %2545 = vmatpush.bf16.msra.mxu3 %v8384_v25  ;;  %v1862_v25 = vld [vmem:[#allocation2 + $0x41] sm:$0xff] }
 0x110   : > { %v9682_v6 = vpop.f32.mrf.mxu2  ;;  %v1314_v9 = vpop.f32.mrf.mxu0 }
 0x112   : > { %v1451_v36 = vpop.f32.mrf.mxu1 }
 0x113   : > { %v9684_v20 = vadd.f32 %v1451_v36, %v1314_v9 }
 0x116   : > { %v9686_v42 = vpop.f32.mrf.mxu3 }
 0x118   : > { %v9688_v43 = vpop.f32.mrf.mxu2  ;;  %v1317_v45 = vpop.f32.mrf.mxu0 }
 0x11a   : > { %v1454_v49 = vpop.f32.mrf.mxu1 }
 0x11b   : > { %v9692_v51 = vadd.f32 %v1454_v49, %v1317_v45  ;;  %1356 = vmatmul.bf16.gmra.mxu0 %v9596_v40  ;;  %1715 = vmatmul.bf16.gmra.mxu3 %v8712_v44  ;;  %v1890_v40 = vpack.c.bf16 %v1859_v63, %v1858_v62  ;;  %v8392_v45 = vld [vmem:[#allocation7 + $0x230] sm:$0xff]  ;;  %v1861_v49 = vld [vmem:[#allocation2 + $0x39] sm:$0xff] }
 0x11c   : > { %2779 = vmatpush.bf16.msra.mxu0 %v8392_v45 }
 0x11d   : > { %1493 = vmatmul.bf16.gmra.mxu1 %v9672_v17  ;;  %1695 = vmatmul.bf16.gmra.mxu2 %v8711_v46  ;;  %v1860_v46 = vld [vmem:[#allocation2 + $0x31] sm:$0xff] }
 0x11e   : > { %v9696_v52 = vpop.f32.mrf.mxu3  ;;  %v1891_v62 = vpack.c.bf16 %v1861_v49, %v1860_v46 }
 0x120   : > { %v9698_v53 = vpop.f32.mrf.mxu2  ;;  %v1319_v58 = vpop.f32.mrf.mxu0 }
 0x122   : > { %v1456_v60 = vpop.f32.mrf.mxu1 }
 0x123   : > { %v9700_v61 = vadd.f32 %v1456_v60, %v1319_v58 }
 0x126   : > { %v9702_v8 = vpop.f32.mrf.mxu3 }
 0x128   : > { %v9704_v11 = vpop.f32.mrf.mxu2  ;;  %v1322_v12 = vpop.f32.mrf.mxu0 }
 0x12a   : > { %v1459_v19 = vpop.f32.mrf.mxu1 }
 0x12b   : > { %v9706_v24 = vadd.f32 %v1459_v19, %v1322_v12  ;;  %1777 = vmatmul.bf16.vlgmr.msrb.gmra.mxu3 %v9258_v14  ;;  %1979 = vmatmul.bf16.vlgmr.msrb.gmra.mxu0 %v1890_v40 }
 0x12d   : > { %2116 = vmatmul.bf16.vlgmr.msrb.gmra.mxu1 %v1192_v18  ;;  %2318 = vmatmul.bf16.vlgmr.msrb.gmra.mxu2 %v9546_v5 }
 0x12e   : > { %v1499_v3 = vpop.f32.mrf.mxu3 }
 0x12f   : > { %v9710_v30 = vadd.f32 %v1499_v3, %v9644_v26  ;;  %v1863_v3 = vld [vmem:[#allocation2 + $0x49] sm:$0xff] }
 0x130   : > { %v9712_v9 = vpop.f32.mrf.mxu2  ;;  %v1324_v36 = vpop.f32.mrf.mxu0 }
 0x131   : > { %15145 = vst [vmem:[#allocation22_spill] sm:$0xff] %v9710_v30  ;;  %v1114_v30 = vld [vmem:[#allocation2 + $0xa8] sm:$0xff] }
 0x132   : > { %v1461_v28 = vpop.f32.mrf.mxu1 }
 0x133   : > { %v9714_v44 = vadd.f32 %v1461_v28, %v1324_v36 }
 0x136   : > { %v1501_v58 = vpop.f32.mrf.mxu3 }
 0x137   : > { %v9717_v60 = vadd.f32 %v1501_v58, %v9650_v37 }
 0x138   : > { %v9719_v5 = vpop.f32.mrf.mxu2  ;;  %v1327_v63 = vpop.f32.mrf.mxu0 }
 0x139   : > { %15146 = vst [vmem:[#allocation23_spill] sm:$0xff] %v9717_v60 }
 0x13a   : > { %15147 = vst [vmem:[#allocation24_spill] sm:$0xff] %v9719_v5  ;;  %v1464_v26 = vpop.f32.mrf.mxu1 }
 0x13b   : > { %v9721_v4 = vadd.f32 %v1464_v26, %v1327_v63  ;;  %1782 = vmatmul.bf16.gmra.mxu3 %v9534_v56  ;;  %1984 = vmatmul.bf16.gmra.mxu0 %v1891_v62 }
 0x13d   : > { %2121 = vmatmul.bf16.gmra.mxu1 %v1890_v40  ;;  %2323 = vmatmul.bf16.gmra.mxu2 %v9565_v21  ;;  %v1892_v40 = vpack.c.bf16 %v1863_v3, %v1862_v25  ;;  %v1865_v25 = vld [vmem:[#allocation2 + $0x59] sm:$0xff] }
 0x13e   : > { %v1504_v7 = vpop.f32.mrf.mxu3 }
 0x13f   : > { %v9726_v12 = vadd.f32 %v1504_v7, %v9662_v54  ;;  %v8383_v54 = vld [vmem:[#allocation7 + $0x1e8] sm:$0xff] }
 0x140   : > { %v9728_v18 = vpop.f32.mrf.mxu2  ;;  %v1329_v37 = vpop.f32.mrf.mxu0  ;;  %2546 = vmatpush.bf16.msra.mxu3 %v8383_v54 }
 0x141   : > { %15148 = vst [vmem:[#allocation25_spill] sm:$0xff] %v9726_v12 }
 0x142   : > { %15149 = vst [vmem:[#allocation26_spill] sm:$0xff] %v9728_v18  ;;  %v1466_v19 = vpop.f32.mrf.mxu1 }
 0x143   : > { %v9730_v14 = vadd.f32 %v1466_v19, %v1329_v37  ;;  %v8391_v37 = vld [vmem:[#allocation7 + $0x228] sm:$0xff]  ;;  %v1864_v19 = vld [vmem:[#allocation2 + $0x51] sm:$0xff] }
 0x144   : > { %2780 = vmatpush.bf16.msra.mxu0 %v8391_v37  ;;  %v1893_v3 = vpack.c.bf16 %v1865_v25, %v1864_v19  ;;  %v1866_v37 = vld [vmem:[#allocation2 + $0x61] sm:$0xff]  ;;  %v1867_v19 = vld [vmem:[#allocation2 + $0x69] sm:$0xff] }
 0x145   : > { %15150 = vst [vmem:[#allocation27_spill] sm:$0xff] %v9730_v14 }
 0x146   : > { %v1506_v36 = vpop.f32.mrf.mxu3 }
 0x147   : > { %v9733_v28 = vadd.f32 %v1506_v36, %v9668_v13 }
 0x148   : > { %v9735_v56 = vpop.f32.mrf.mxu2  ;;  %v1332_v21 = vpop.f32.mrf.mxu0 }
 0x149   : > { %15151 = vst [vmem:[#allocation28_spill] sm:$0xff] %v9733_v28 }
 0x14a   : > { %15152 = vst [vmem:[#allocation29_spill] sm:$0xff] %v9735_v56  ;;  %v1469_v45 = vpop.f32.mrf.mxu1 }
 0x14b   : > { %v9737_v46 = vadd.f32 %v1469_v45, %v1332_v21  ;;  %1787 = vmatmul.bf16.gmra.mxu3 %v9551_v10  ;;  %1989 = vmatmul.bf16.gmra.mxu0 %v1892_v40 }
 0x14d   : > { %2126 = vmatmul.bf16.gmra.mxu1 %v1891_v62  ;;  %2328 = vmatmul.bf16.gmra.mxu2 %v9581_v32 }
 0x14e   : > { %v1509_v49 = vpop.f32.mrf.mxu3 }
 0x14f   : > { %v9742_v58 = vadd.f32 %v1509_v49, %v9680_v31 }
 0x150   : > { %v9744_v13 = vpop.f32.mrf.mxu2  ;;  %v1334_v63 = vpop.f32.mrf.mxu0 }
 0x151   : > { %15153 = vst [vmem:[#allocation30_spill] sm:$0xff] %v9742_v58  ;;  %v1870_v58 = vld [vmem:[#allocation2 + $0x81] sm:$0xff] }
 0x152   : > { %15154 = vst [vmem:[#allocation31_spill] sm:$0xff] %v9744_v13  ;;  %v1471_v26 = vpop.f32.mrf.mxu1 }
 0x153   : > { %v9746_v7 = vadd.f32 %v1471_v26, %v1334_v63 }
 0x155   : > { %15155 = vst [vmem:[#allocation32_spill] sm:$0xff] %v9746_v7 }
 0x156   : > { %v1511_v10 = vpop.f32.mrf.mxu3 }
 0x157   : > { %v9749_v62 = vadd.f32 %v1511_v10, %v9686_v42 }
 0x158   : > { %v9751_v32 = vpop.f32.mrf.mxu2  ;;  %v1337_v36 = vpop.f32.mrf.mxu0 }
 0x159   : > { %15156 = vst [vmem:[#allocation33_spill] sm:$0xff] %v9749_v62 }
 0x15a   : > { %15157 = vst [vmem:[#allocation34_spill] sm:$0xff] %v9751_v32  ;;  %v1474_v31 = vpop.f32.mrf.mxu1 }
 0x15b   : > { %v9753_v21 = vadd.f32 %v1474_v31, %v1337_v36  ;;  %1792 = vmatmul.bf16.gmra.mxu3 %v9571_v23  ;;  %1994 = vmatmul.bf16.gmra.mxu0 %v1893_v3 }
 0x15d   : > { %2131 = vmatmul.bf16.gmra.mxu1 %v1892_v40  ;;  %2333 = vmatmul.bf16.gmra.mxu2 %v9594_v39  ;;  %v1894_v40 = vpack.c.bf16 %v1867_v19, %v1866_v37  ;;  %v8390_v37 = vld [vmem:[#allocation7 + $0x220] sm:$0xff]  ;;  %v1868_v19 = vld [vmem:[#allocation2 + $0x71] sm:$0xff] }
 0x15e   : > { %v1514_v45 = vpop.f32.mrf.mxu3  ;;  %2781 = vmatpush.bf16.msra.mxu0 %v8390_v37 }
 0x15f   : > { %v9758_v54 = vadd.f32 %v1514_v45, %v9696_v52  ;;  %v8382_v52 = vld [vmem:[#allocation7 + $0x1e0] sm:$0xff] }
 0x160   : > { %v9760_v49 = vpop.f32.mrf.mxu2  ;;  %v1339_v42 = vpop.f32.mrf.mxu0  ;;  %2547 = vmatpush.bf16.msra.mxu3 %v8382_v52 }
 0x161   : > { %15158 = vst [vmem:[#allocation35_spill] sm:$0xff] %v9758_v54 }
 0x162   : > { %15159 = vst [vmem:[#allocation36_spill] sm:$0xff] %v9760_v49  ;;  %v1476_v63 = vpop.f32.mrf.mxu1 }
 0x163   : > { %v9762_v26 = vadd.f32 %v1476_v63, %v1339_v42 }
 0x165   : > { %15160 = vst [vmem:[#allocation37_spill] sm:$0xff] %v9762_v26 }
 0x166   : > { %v1516_v25 = vpop.f32.mrf.mxu3 }
 0x167   : > { %v9765_v10 = vadd.f32 %v1516_v25, %v9702_v8 }
 0x168   : > { %v9767_v23 = vpop.f32.mrf.mxu2  ;;  %v1342_v39 = vpop.f32.mrf.mxu0 }
 0x169   : > { %15161 = vst [vmem:[#allocation38_spill] sm:$0xff] %v9765_v10 }
 0x16a   : > { %15162 = vst [vmem:[#allocation39_spill] sm:$0xff] %v9767_v23  ;;  %v1479_v36 = vpop.f32.mrf.mxu1 }
 0x16b   : > { %v9769_v31 = vadd.f32 %v1479_v36, %v1342_v39  ;;  %1797 = vmatmul.bf16.gmra.mxu3 %v9584_v35  ;;  %1999 = vmatmul.bf16.gmra.mxu0 %v1894_v40  ;;  %v1869_v39 = vld [vmem:[#allocation2 + $0x79] sm:$0xff] }
 0x16d   : > { %2136 = vmatmul.bf16.gmra.mxu1 %v1893_v3  ;;  %2338 = vmatmul.bf16.gmra.mxu2 %v9606_v47  ;;  %v1895_v3 = vpack.c.bf16 %v1869_v39, %v1868_v19  ;;  %v1871_v19 = vld [vmem:[#allocation2 + $0x89] sm:$0xff] }
 0x16e   : > { %v9773_v45 = vpop.f32.mrf.mxu3 }
 0x16f   : > { %15163 = vst [vmem:[#allocation40_spill] sm:$0xff] %v9773_v45 }
 0x170   : > { %v9775_v42 = vpop.f32.mrf.mxu2  ;;  %v1344_v8 = vpop.f32.mrf.mxu0 }
 0x171   : > { %15164 = vst [vmem:[#allocation41_spill] sm:$0xff] %v9775_v42 }
 0x172   : > { %v1481_v63 = vpop.f32.mrf.mxu1 }
 0x173   : > { %v9777_v25 = vadd.f32 %v1481_v63, %v1344_v8 }
 0x175   : > { %15165 = vst [vmem:[#allocation42_spill] sm:$0xff] %v9777_v25 }
 0x176   : > { %v9779_v36 = vpop.f32.mrf.mxu3 }
 0x177   : > { %15166 = vst [vmem:[#allocation43_spill] sm:$0xff] %v9779_v36 }
 0x178   : > { %v9781_v35 = vpop.f32.mrf.mxu2  ;;  %v1347_v47 = vpop.f32.mrf.mxu0 }
 0x179   : > { %15167 = vst [vmem:[#allocation44_spill] sm:$0xff] %v9781_v35 }
 0x17a   : > { %v1484_v10 = vpop.f32.mrf.mxu1 }
 0x17b   : > { %v9783_v54 = vadd.f32 %v1484_v10, %v1347_v47  ;;  %1802 = vmatmul.bf16.gmra.mxu3 %v9599_v41  ;;  %2004 = vmatmul.bf16.gmra.mxu0 %v1895_v3  ;;  %v1896_v47 = vpack.c.bf16 %v1871_v19, %v1870_v58  ;;  %v8389_v58 = vld [vmem:[#allocation7 + $0x218] sm:$0xff] }
 0x17c   : > { %v1872_v19 = vld [vmem:[#allocation2 + $0x91] sm:$0xff]  ;;  %2782 = vmatpush.bf16.msra.mxu0 %v8389_v58 }
 0x17d   : > { %2141 = vmatmul.bf16.gmra.mxu1 %v1894_v40  ;;  %2343 = vmatmul.bf16.gmra.mxu2 %v9616_v55  ;;  %v8381_v55 = vld [vmem:[#allocation7 + $0x1d8] sm:$0xff] }
 0x17e   : > { %v9787_v52 = vpop.f32.mrf.mxu3  ;;  %2548 = vmatpush.bf16.msra.mxu3 %v8381_v55 }
 0x17f   : > { %15168 = vst [vmem:[#allocation45_spill] sm:$0xff] %v9787_v52 }
 0x180   : > { %v9789_v8 = vpop.f32.mrf.mxu2  ;;  %v1349_v63 = vpop.f32.mrf.mxu0 }
 0x181   : > { %15169 = vst [vmem:[#allocation46_spill] sm:$0xff] %v9789_v8 }
 0x182   : > { %v1486_v37 = vpop.f32.mrf.mxu1 }
 0x183   : > { %v9791_v62 = vadd.f32 %v1486_v37, %v1349_v63 }
 0x185   : > { %15170 = vst [vmem:[#allocation47_spill] sm:$0xff] %v9791_v62 }
 0x186   : > { %v9793_v39 = vpop.f32.mrf.mxu3 }
 0x187   : > { %15171 = vst [vmem:[#allocation48_spill] sm:$0xff] %v9793_v39 }
 0x188   : > { %v9795_v10 = vpop.f32.mrf.mxu2  ;;  %v1352_v41 = vpop.f32.mrf.mxu0 }
 0x189   : > { %15172 = vst [vmem:[#allocation49_spill] sm:$0xff] %v9795_v10 }
 0x18a   : > { %v1489_v28 = vpop.f32.mrf.mxu1 }
 0x18b   : > { %v9797_v40 = vadd.f32 %v1489_v28, %v1352_v41  ;;  %1807 = vmatmul.bf16.gmra.mxu3 %v9609_v48  ;;  %2009 = vmatmul.bf16.gmra.mxu0 %v1896_v47  ;;  %v1873_v28 = vld [vmem:[#allocation2 + $0x99] sm:$0xff] }
 0x18d   : > { %2146 = vmatmul.bf16.gmra.mxu1 %v1895_v3  ;;  %2348 = vmatmul.bf16.gmra.mxu2 %v9626_v1  ;;  %v1897_v3 = vpack.c.bf16 %v1873_v28, %v1872_v19  ;;  %v1875_v19 = vld [vmem:[#allocation2 + $0xa9] sm:$0xff] }
 0x18e   : > { %v9801_v63 = vpop.f32.mrf.mxu3 }
 0x18f   : > { %15173 = vst [vmem:[#allocation50_spill] sm:$0xff] %v9801_v63  ;;  %v1874_v63 = vld [vmem:[#allocation2 + $0xa1] sm:$0xff] }
 0x190   : > { %v9803_v37 = vpop.f32.mrf.mxu2  ;;  %v1354_v39 = vpop.f32.mrf.mxu0 }
 0x191   : > { %15174 = vst [vmem:[#allocation51_spill] sm:$0xff] %v9803_v37 }
 0x192   : > { %v1491_v52 = vpop.f32.mrf.mxu1 }
 0x193   : > { %v9805_v12 = vadd.f32 %v1491_v52, %v1354_v39 }
 0x195   : > { %15175 = vst [vmem:[#allocation52_spill] sm:$0xff] %v9805_v12 }
 0x196   : > { %v9807_v41 = vpop.f32.mrf.mxu3 }
 0x197   : > { %15176 = vst [vmem:[#allocation53_spill] sm:$0xff] %v9807_v41 }
 0x198   : > { %v9809_v48 = vpop.f32.mrf.mxu2  ;;  %v1357_v1 = vpop.f32.mrf.mxu0 }
 0x199   : > { %15177 = vst [vmem:[#allocation54_spill] sm:$0xff] %v9809_v48 }
 0x19a   : > { %v1494_v36 = vpop.f32.mrf.mxu1 }
 0x19b   : > { %v9811_v60 = vadd.f32 %v1494_v36, %v1357_v1  ;;  %1812 = vmatmul.bf16.gmra.mxu3 %v9619_v57  ;;  %2014 = vmatmul.bf16.gmra.mxu0 %v1897_v3  ;;  %v1898_v1 = vpack.c.bf16 %v1875_v19, %v1874_v63 }
 0x19d   : > { %15178 = vst [vmem:[#allocation55_spill] sm:$0xff] %v9811_v60  ;;  %2151 = vmatmul.bf16.gmra.mxu1 %v1896_v47  ;;  %2353 = vmatmul.bf16.gmra.mxu2 %v9636_v15  ;;  %v8380_v15 = vld [vmem:[#allocation7 + $0x1d0] sm:$0xff] }
 0x19e   : > { %v9815_v52 = vpop.f32.mrf.mxu3  ;;  %2549 = vmatpush.bf16.msra.mxu3 %v8380_v15 }
 0x19f   : > { %15179 = vst [vmem:[#allocation56_spill] sm:$0xff] %v9815_v52 }
 0x1a0   : > { %v9817_v39 = vpop.f32.mrf.mxu2  ;;  %v1359_v55 = vpop.f32.mrf.mxu0 }
 0x1a1   : > { %15180 = vst [vmem:[#allocation57_spill] sm:$0xff] %v9817_v39 }
 0x1a2   : > { %v1496_v58 = vpop.f32.mrf.mxu1 }
 0x1a3   : > { %v9819_v41 = vadd.f32 %v1496_v58, %v1359_v55 }
 0x1a5   : > { %15181 = vst [vmem:[#allocation58_spill] sm:$0xff] %v9819_v41 }
 0x1a6   : > { %v9821_v28 = vpop.f32.mrf.mxu3 }
 0x1a7   : > { %15182 = vst [vmem:[#allocation59_spill] sm:$0xff] %v9821_v28 }
 0x1a8   : > { %v9823_v36 = vpop.f32.mrf.mxu2  ;;  %v1980_v57 = vpop.f32.mrf.mxu0 }
 0x1a9   : > { %15183 = vst [vmem:[#allocation60_spill] sm:$0xff] %v9823_v36  ;;  %v1877_v36 = vld [vmem:[#allocation2 + $0xb9] sm:$0xff] }
 0x1aa   : > { %v2117_v45 = vpop.f32.mrf.mxu1 }
 0x1ab   : > { %v9825_v47 = vadd.f32 %v2117_v45, %v1980_v57  ;;  %1817 = vmatmul.bf16.gmra.mxu3 %v9629_v2  ;;  %2019 = vmatmul.bf16.gmra.mxu0 %v1898_v1  ;;  %v8388_v45 = vld [vmem:[#allocation7 + $0x210] sm:$0xff]  ;;  %v1113_v57 = vld [vmem:[#allocation2 + $0xa0] sm:$0xff] }
 0x1ac   : > { %v1876_v2 = vld [vmem:[#allocation2 + $0xb1] sm:$0xff]  ;;  %2783 = vmatpush.bf16.msra.mxu0 %v8388_v45  ;;  %v1136_v41 = vpack.c.bf16 %v1114_v30, %v1113_v57 }
 0x1ad   : > { %2156 = vmatmul.bf16.gmra.mxu1 %v1897_v3  ;;  %2358 = vmatmul.bf16.gmra.mxu2 %v9654_v34  ;;  %v1899_v39 = vpack.c.bf16 %v1877_v36, %v1876_v2  ;;  %v1116_v2 = vld [vmem:[#allocation2 + $0xb8] sm:$0xff] }
 0x1ae   : > { %v9829_v55 = vpop.f32.mrf.mxu3 }
 0x1b0   : > { %v2319_v58 = vpop.f32.mrf.mxu2  ;;  %v1982_v52 = vpop.f32.mrf.mxu0 }
 0x1b1   : > { %v9832_v28 = vadd.f32 %v2319_v58, %v9640_v22 }
 0x1b2   : > { %v2119_v63 = vpop.f32.mrf.mxu1 }
 0x1b3   : > { %v9834_v19 = vadd.f32 %v2119_v63, %v1982_v52 }
 0x1b6   : > { %v9836_v3 = vpop.f32.mrf.mxu3 }
 0x1b8   : > { %v2321_v34 = vpop.f32.mrf.mxu2  ;;  %v1985_v22 = vpop.f32.mrf.mxu0 }
 0x1b9   : > { %v9839_v15 = vadd.f32 %v2321_v34, %v9648_v33  ;;  %v1115_v33 = vld [vmem:[#allocation2 + $0xb0] sm:$0xff]  ;;  %v1878_v34 = vld [vmem:[#allocation2 + $0xc1] sm:$0xff] }
 0x1ba   : > { %v2122_v58 = vpop.f32.mrf.mxu1 }
 0x1bb   : > { %v9841_v60 = vadd.f32 %v2122_v58, %v1985_v22  ;;  %1822 = vmatmul.bf16.gmra.mxu3 %v1136_v41  ;;  %2024 = vmatmul.bf16.gmra.mxu0 %v1899_v39  ;;  %v1879_v22 = vld [vmem:[#allocation2 + $0xc9] sm:$0xff]  ;;  %v2218_v41 = vld [vmem:[#allocation2 + $0xd7] sm:$0xff] }
 0x1bc   : > { %v2217_v58 = vld [vmem:[#allocation2 + $0xcf] sm:$0xff]  ;;  %v1900_v12 = vpack.c.bf16 %v1879_v22, %v1878_v34 }
 0x1bd   : > { %2161 = vmatmul.bf16.gmra.mxu1 %v1898_v1  ;;  %2363 = vmatmul.bf16.gmra.mxu2 %v9672_v17  ;;  %v1137_v17 = vpack.c.bf16 %v1116_v2, %v1115_v33  ;;  %v8387_v22 = vld [vmem:[#allocation7 + $0x208] sm:$0xff] }
 0x1be   : > { %v9844_v52 = vpop.f32.mrf.mxu3  ;;  %2784 = vmatpush.bf16.msra.mxu0 %v8387_v22 }
 0x1c0   : > { %v2324_v63 = vpop.f32.mrf.mxu2  ;;  %v1987_v30 = vpop.f32.mrf.mxu0 }
 0x1c1   : > { %v9847_v45 = vadd.f32 %v2324_v63, %v9658_v50  ;;  %v2239_v63 = vpack.c.bf16 %v2218_v41, %v2217_v58  ;;  %v1117_v58 = vld [vmem:[#allocation2 + $0xc0] sm:$0xff]  ;;  %v1880_v41 = vld [vmem:[#allocation2 + $0xd1] sm:$0xff] }
 0x1c2   : > { %v2124_v36 = vpop.f32.mrf.mxu1 }
 0x1c3   : > { %v9849_v57 = vadd.f32 %v2124_v36, %v1987_v30  ;;  %v8379_v30 = vld [vmem:[#allocation7 + $0x1c8] sm:$0xff] }
 0x1c4   : > { %2550 = vmatpush.bf16.msra.mxu3 %v8379_v30 }
 0x1c6   : > { %v9851_v48 = vpop.f32.mrf.mxu3 }
 0x1c8   : > { %v2326_v1 = vpop.f32.mrf.mxu2  ;;  %v1990_v50 = vpop.f32.mrf.mxu0 }
 0x1c9   : > { %v9854_v37 = vadd.f32 %v2326_v1, %v9666_v0  ;;  %v1881_v1 = vld [vmem:[#allocation2 + $0xd9] sm:$0xff] }
 0x1ca   : > { %v2127_v10 = vpop.f32.mrf.mxu1  ;;  %v1901_v35 = vpack.c.bf16 %v1881_v1, %v1880_v41  ;;  %v1120_v1 = vld [vmem:[#allocation2 + $0xd8] sm:$0xff] }
 0x1cb   : > { %v9856_v62 = vadd.f32 %v2127_v10, %v1990_v50  ;;  %1827 = vmatmul.bf16.gmra.mxu3 %v1137_v17  ;;  %2029 = vmatmul.bf16.gmra.mxu0 %v1900_v12  ;;  %v1118_v10 = vld [vmem:[#allocation2 + $0xc8] sm:$0xff] }
 0x1cc   : > { %v2220_v17 = vld [vmem:[#allocation2 + $0xe7] sm:$0xff]  ;;  %v1138_v30 = vpack.c.bf16 %v1118_v10, %v1117_v58 }
 0x1cd   : > { %2166 = vmatmul.bf16.gmra.mxu1 %v1899_v39  ;;  %2368 = vmatmul.bf16.gmra.mxu2 %v2239_v63  ;;  %v2219_v39 = vld [vmem:[#allocation2 + $0xdf] sm:$0xff] }
 0x1ce   : > { %v9858_v36 = vpop.f32.mrf.mxu3  ;;  %v2240_v25 = vpack.c.bf16 %v2220_v17, %v2219_v39  ;;  %v1882_v39 = vld [vmem:[#allocation2 + $0xe1] sm:$0xff]  ;;  %v1883_v17 = vld [vmem:[#allocation2 + $0xe9] sm:$0xff] }
 0x1d0   : > { %v2329_v8 = vpop.f32.mrf.mxu2  ;;  %v1992_v2 = vpop.f32.mrf.mxu0 }
 0x1d1   : > { %v9861_v33 = vadd.f32 %v2329_v8, %v9676_v29 }
 0x1d2   : > { %v2129_v0 = vpop.f32.mrf.mxu1 }
 0x1d3   : > { %v9863_v34 = vadd.f32 %v2129_v0, %v1992_v2 }
 0x1d6   : > { %v9865_v50 = vpop.f32.mrf.mxu3 }
 0x1d8   : > { %v2331_v63 = vpop.f32.mrf.mxu2  ;;  %v1995_v8 = vpop.f32.mrf.mxu0 }
 0x1d9   : > { %v9868_v29 = vadd.f32 %v2331_v63, %v9684_v20  ;;  %v1119_v20 = vld [vmem:[#allocation2 + $0xd0] sm:$0xff] }
 0x1da   : > { %v2132_v2 = vpop.f32.mrf.mxu1  ;;  %v2221_v63 = vld [vmem:[#allocation2 + $0xef] sm:$0xff] }
 0x1db   : > { %v9870_v0 = vadd.f32 %v2132_v2, %v1995_v8  ;;  %1832 = vmatmul.bf16.gmra.mxu3 %v1138_v30  ;;  %2034 = vmatmul.bf16.gmra.mxu0 %v1901_v35  ;;  %v2222_v8 = vld [vmem:[#allocation2 + $0xf7] sm:$0xff]  ;;  %v1902_v2 = vpack.c.bf16 %v1883_v17, %v1882_v39  ;;  %v8386_v39 = vld [vmem:[#allocation7 + $0x200] sm:$0xff] }
 0x1dc   : > { %v1121_v17 = vld [vmem:[#allocation2 + $0xe0] sm:$0xff]  ;;  %2785 = vmatpush.bf16.msra.mxu0 %v8386_v39 }
 0x1dd   : > { %2171 = vmatmul.bf16.gmra.mxu1 %v1900_v12  ;;  %2373 = vmatmul.bf16.gmra.mxu2 %v2240_v25  ;;  %v1139_v25 = vpack.c.bf16 %v1120_v1, %v1119_v20 }
 0x1de   : > { %v9872_v22 = vpop.f32.mrf.mxu3 }
 0x1e0   : > { %v2334_v42 = vpop.f32.mrf.mxu2  ;;  %v1997_v58 = vpop.f32.mrf.mxu0 }
 0x1e1   : > { %v9875_v23 = vadd.f32 %v2334_v42, %v9692_v51  ;;  %v2241_v42 = vpack.c.bf16 %v2222_v8, %v2221_v63  ;;  %v1884_v63 = vld [vmem:[#allocation2 + $0xf1] sm:$0xff]  ;;  %v1885_v8 = vld [vmem:[#allocation2 + $0xf9] sm:$0xff] }
 0x1e2   : > { %v2134_v10 = vpop.f32.mrf.mxu1 }
 0x1e3   : > { %v9877_v41 = vadd.f32 %v2134_v10, %v1997_v58  ;;  %v8378_v58 = vld [vmem:[#allocation7 + $0x1c0] sm:$0xff] }
 0x1e4   : > { %2551 = vmatpush.bf16.msra.mxu3 %v8378_v58  ;;  %v1903_v58 = vpack.c.bf16 %v1885_v8, %v1884_v63  ;;  %v1886_v63 = vld [vmem:[#allocation2 + $0x101] sm:$0xff]  ;;  %v1887_v8 = vld [vmem:[#allocation2 + $0x109] sm:$0xff] }
 0x1e6   : > { %v9879_v30 = vpop.f32.mrf.mxu3 }
 0x1e8   : > { %v2336_v12 = vpop.f32.mrf.mxu2  ;;  %v2000_v51 = vpop.f32.mrf.mxu0 }
 0x1e9   : > { %v9882_v26 = vadd.f32 %v2336_v12, %v9700_v61  ;;  %v2224_v12 = vld [vmem:[#allocation2 + $0x107] sm:$0xff] }
 0x1ea   : > { %v2137_v49 = vpop.f32.mrf.mxu1 }
 0x1eb   : > { %v9884_v32 = vadd.f32 %v2137_v49, %v2000_v51  ;;  %1837 = vmatmul.bf16.gmra.mxu3 %v1139_v25  ;;  %2039 = vmatmul.bf16.gmra.mxu0 %v1902_v2  ;;  %v1122_v49 = vld [vmem:[#allocation2 + $0xe8] sm:$0xff] }
 0x1ed   : > { %2176 = vmatmul.bf16.gmra.mxu1 %v1901_v35  ;;  %2378 = vmatmul.bf16.gmra.mxu2 %v2241_v42  ;;  %v2223_v35 = vld [vmem:[#allocation2 + $0xff] sm:$0xff]  ;;  %v1140_v42 = vpack.c.bf16 %v1122_v49, %v1121_v17  ;;  %v1123_v17 = vld [vmem:[#allocation2 + $0xf0] sm:$0xff] }
 0x1ee   : > { %v9886_v10 = vpop.f32.mrf.mxu3  ;;  %v1124_v49 = vld [vmem:[#allocation2 + $0xf8] sm:$0xff] }
 0x1f0   : > { %v2339_v7 = vpop.f32.mrf.mxu2  ;;  %v9891_v1 = vpop.f32.mrf.mxu0 }
 0x1f1   : > { %v9889_v20 = vadd.f32 %v2339_v7, %v9706_v24  ;;  %v2242_v7 = vpack.c.bf16 %v2224_v12, %v2223_v35  ;;  %v2226_v35 = vld [vmem:[#allocation2 + $0x117] sm:$0xff] }
 0x1f2   : > { %v9893_v61 = vpop.f32.mrf.mxu1 }
 0x1f6   : > { %v9895_v25 = vpop.f32.mrf.mxu3 }
 0x1f7   : > { %15184 = vst [vmem:[#allocation61_spill] sm:$0xff] %v9895_v25 }
 0x1f8   : > { %v9897_v51 = vpop.f32.mrf.mxu2  ;;  %v2005_v24 = vpop.f32.mrf.mxu0 }
 0x1fa   : > { %v2142_v13 = vpop.f32.mrf.mxu1 }
 0x1fb   : > { %v9899_v56 = vadd.f32 %v2142_v13, %v2005_v24  ;;  %1842 = vmatmul.bf16.gmra.mxu3 %v1140_v42  ;;  %2044 = vmatmul.bf16.gmra.mxu0 %v1903_v58  ;;  %v2225_v13 = vld [vmem:[#allocation2 + $0x10f] sm:$0xff]  ;;  %v1141_v42 = vpack.c.bf16 %v1124_v49, %v1123_v17  ;;  %v1904_v24 = vpack.c.bf16 %v1887_v8, %v1886_v63  ;;  %v1125_v17 = vld [vmem:[#allocation2 + $0x100] sm:$0xff] }
 0x1fc   : > { %v1126_v49 = vld [vmem:[#allocation2 + $0x108] sm:$0xff]  ;;  %v1888_v63 = vld [vmem:[#allocation2 + $0x111] sm:$0xff]  ;;  %v1889_v8 = vld [vmem:[#allocation2 + $0x119] sm:$0xff] }
 0x1fd   : > { %2181 = vmatmul.bf16.gmra.mxu1 %v1902_v2  ;;  %2383 = vmatmul.bf16.gmra.mxu2 %v2242_v7 }
 0x1fe   : > { %v9901_v14 = vpop.f32.mrf.mxu3 }
 0x1ff   : > { %15185 = vst [vmem:[#allocation62_spill] sm:$0xff] %v9901_v14  ;;  %v2243_v14 = vpack.c.bf16 %v2226_v35, %v2225_v13  ;;  %v2227_v13 = vld [vmem:[#allocation2 + $0x11f] sm:$0xff]  ;;  %v2228_v35 = vld [vmem:[#allocation2 + $0x127] sm:$0xff] }
 0x200   : > { %v2344_v39 = vpop.f32.mrf.mxu2  ;;  %v9906_v25 = vpop.f32.mrf.mxu0 }
 0x201   : > { %v9904_v18 = vadd.f32 %v2344_v39, %v9721_v4  ;;  %15187 = vst [vmem:[#allocation64_spill] sm:$0xff] %v9906_v25 }
 0x202   : > { %v9908_v5 = vpop.f32.mrf.mxu1 }
 0x203   : > { %15186 = vst [vmem:[#allocation63_spill] sm:$0xff] %v9904_v18 }
 0x204   : > { %15188 = vst [vmem:[#allocation65_spill] sm:$0xff] %v9908_v5 }
 0x206   : > { %v9910_v12 = vpop.f32.mrf.mxu3 }
 0x207   : > { %15189 = vst [vmem:[#allocation66_spill] sm:$0xff] %v9910_v12 }
 0x208   : > { %v9912_v2 = vpop.f32.mrf.mxu2  ;;  %v2010_v7 = vpop.f32.mrf.mxu0 }
 0x209   : > { %15190 = vst [vmem:[#allocation67_spill] sm:$0xff] %v9912_v2 }
 0x20a   : > { %v2147_v4 = vpop.f32.mrf.mxu1 }
 0x20b   : > { %v9914_v39 = vadd.f32 %v2147_v4, %v2010_v7  ;;  %1847 = vmatmul.bf16.gmra.mxu3 %v1141_v42  ;;  %2049 = vmatmul.bf16.gmra.mxu0 %v1904_v24  ;;  %v1905_v7 = vpack.c.bf16 %v1889_v8, %v1888_v63  ;;  %v2432_v63 = vld [vmem:[#allocation2 + $0x38] sm:$0xff] }
 0x20c   : > { %v2665_v8 = vld [vmem:[#allocation2 + $0x31] sm:$0xff] }
 0x20d   : > { %15191 = vst [vmem:[#allocation68_spill] sm:$0xff] %v9914_v39  ;;  %2186 = vmatmul.bf16.gmra.mxu1 %v1903_v58  ;;  %2388 = vmatmul.bf16.gmra.mxu2 %v2243_v14  ;;  %v1142_v14 = vpack.c.bf16 %v1126_v49, %v1125_v17  ;;  %v2431_v49 = vld [vmem:[#allocation2 + $0x30] sm:$0xff] }
 0x20e   : > { %v9916_v5 = vpop.f32.mrf.mxu3 }
 0x20f   : > { %15192 = vst [vmem:[#allocation69_spill] sm:$0xff] %v9916_v5  ;;  %v2244_v5 = vpack.c.bf16 %v2228_v35, %v2227_v13  ;;  %v2666_v13 = vld [vmem:[#allocation2 + $0x39] sm:$0xff] }
 0x210   : > { %v2349_v25 = vpop.f32.mrf.mxu2  ;;  %v9921_v12 = vpop.f32.mrf.mxu0 }
 0x211   : > { %v9919_v18 = vadd.f32 %v2349_v25, %v9737_v46  ;;  %15194 = vst [vmem:[#allocation71_spill] sm:$0xff] %v9921_v12 }
 0x212   : > { %v9923_v2 = vpop.f32.mrf.mxu1 }
 0x213   : > { %15193 = vst [vmem:[#allocation70_spill] sm:$0xff] %v9919_v18 }
 0x214   : > { %15195 = vst [vmem:[#allocation72_spill] sm:$0xff] %v9923_v2 }
 0x216   : > { %v9925_v42 = vpop.f32.mrf.mxu3 }
 0x217   : > { %15196 = vst [vmem:[#allocation73_spill] sm:$0xff] %v9925_v42 }
 0x218   : > { %v9927_v58 = vpop.f32.mrf.mxu2  ;;  %v2015_v4 = vpop.f32.mrf.mxu0 }
 0x219   : > { %15197 = vst [vmem:[#allocation74_spill] sm:$0xff] %v9927_v58 }
 0x21a   : > { %v2152_v46 = vpop.f32.mrf.mxu1 }
 0x21b   : > { %v9929_v25 = vadd.f32 %v2152_v46, %v2015_v4  ;;  %1852 = vmatmul.bf16.gmra.mxu3 %v1142_v14  ;;  %2054 = vmatmul.bf16.gmra.mxu0 %v1905_v7  ;;  %v2697_v14 = vpack.c.bf16 %v2666_v13, %v2665_v8  ;;  %v2433_v13 = vld [vmem:[#allocation2 + $0x40] sm:$0xff] }
 0x21d   : > { %15198 = vst [vmem:[#allocation75_spill] sm:$0xff] %v9929_v25  ;;  %2191 = vmatmul.bf16.gmra.mxu1 %v1904_v24  ;;  %2393 = vmatmul.bf16.gmra.mxu2 %v2244_v5  ;;  %v2463_v5 = vpack.c.bf16 %v2432_v63, %v2431_v49 }
 0x21e   : > { %v9931_v2 = vpop.f32.mrf.mxu3 }
 0x21f   : > { %15199 = vst [vmem:[#allocation76_spill] sm:$0xff] %v9931_v2  ;;  %v2682_v2 = vld [vmem:[#allocation2 + $0xb9] sm:$0xff] }
 0x220   : > { %v2354_v12 = vpop.f32.mrf.mxu2  ;;  %v9936_v42 = vpop.f32.mrf.mxu0 }
 0x221   : > { %v9934_v18 = vadd.f32 %v2354_v12, %v9753_v21  ;;  %15201 = vst [vmem:[#allocation78_spill] sm:$0xff] %v9936_v42 }
 0x222   : > { %v9938_v17 = vpop.f32.mrf.mxu1 }
 0x223   : > { %15200 = vst [vmem:[#allocation77_spill] sm:$0xff] %v9934_v18 }
 0x224   : > { %15202 = vst [vmem:[#allocation79_spill] sm:$0xff] %v9938_v17 }
 0x226   : > { %v9940_v35 = vpop.f32.mrf.mxu3 }
 0x227   : > { %15203 = vst [vmem:[#allocation80_spill] sm:$0xff] %v9940_v35 }
 0x228   : > { %v9942_v24 = vpop.f32.mrf.mxu2  ;;  %v2020_v7 = vpop.f32.mrf.mxu0 }
 0x229   : > { %15204 = vst [vmem:[#allocation81_spill] sm:$0xff] %v9942_v24 }
 0x22a   : > { %v2157_v4 = vpop.f32.mrf.mxu1 }
 0x22b   : > { %v9944_v21 = vadd.f32 %v2157_v4, %v2020_v7  ;;  %2552 = vmatmul.bf16.vlgmr.msra.gmra.mxu3 %v2463_v5  ;;  %2786 = vmatmul.bf16.vlgmr.msra.gmra.mxu0 %v2697_v14  ;;  %v2434_v5 = vld [vmem:[#allocation2 + $0x48] sm:$0xff] }
 0x22c   : > { %v2667_v14 = vld [vmem:[#allocation2 + $0x41] sm:$0xff]  ;;  %v2668_v7 = vld [vmem:[#allocation2 + $0x49] sm:$0xff] }
 0x22d   : > { %15205 = vst [vmem:[#allocation82_spill] sm:$0xff] %v9944_v21  ;;  %v2698_v35 = vpack.c.bf16 %v2668_v7, %v2667_v14 }
 0x22e   : > { %v9950_v12 = vpop.f32.mrf.mxu3 }
 0x22f   : > { %15206 = vst [vmem:[#allocation83_spill] sm:$0xff] %v9950_v12  ;;  %v2464_v12 = vpack.c.bf16 %v2434_v5, %v2433_v13  ;;  %v2669_v13 = vld [vmem:[#allocation2 + $0x51] sm:$0xff]  ;;  %v2670_v5 = vld [vmem:[#allocation2 + $0x59] sm:$0xff] }
 0x230   : > { %v2359_v46 = vpop.f32.mrf.mxu2  ;;  %v9959_v63 = vpop.f32.mrf.mxu0 }
 0x231   : > { %v9957_v49 = vadd.f32 %v2359_v46, %v9769_v31  ;;  %15208 = vst [vmem:[#allocation85_spill] sm:$0xff] %v9959_v63 }
 0x232   : > { %v9961_v8 = vpop.f32.mrf.mxu1 }
 0x233   : > { %15207 = vst [vmem:[#allocation84_spill] sm:$0xff] %v9957_v49 }
 0x234   : > { %15209 = vst [vmem:[#allocation86_spill] sm:$0xff] %v9961_v8 }
 0x236   : > { %v9963_v4 = vpop.f32.mrf.mxu3 }
 0x237   : > { %15210 = vst [vmem:[#allocation87_spill] sm:$0xff] %v9963_v4  ;;  %v2435_v4 = vld [vmem:[#allocation2 + $0x50] sm:$0xff] }
 0x238   : > { %v9965_v21 = vpop.f32.mrf.mxu2  ;;  %v2025_v24 = vpop.f32.mrf.mxu0 }
 0x239   : > { %15211 = vst [vmem:[#allocation88_spill] sm:$0xff] %v9965_v21  ;;  %v2436_v21 = vld [vmem:[#allocation2 + $0x58] sm:$0xff] }
 0x23a   : > { %v2162_v17 = vpop.f32.mrf.mxu1 }
 0x23b   : > { %v9967_v42 = vadd.f32 %v2162_v17, %v2025_v24  ;;  %2557 = vmatmul.bf16.gmra.mxu3 %v2464_v12  ;;  %2791 = vmatmul.bf16.gmra.mxu0 %v2698_v35  ;;  %v2465_v24 = vpack.c.bf16 %v2436_v21, %v2435_v4  ;;  %v2699_v35 = vpack.c.bf16 %v2670_v5, %v2669_v13 }
 0x23d   : > { %15212 = vst [vmem:[#allocation89_spill] sm:$0xff] %v9967_v42  ;;  %v2671_v42 = vld [vmem:[#allocation2 + $0x61] sm:$0xff] }
 0x23e   : > { %v9969_v31 = vpop.f32.mrf.mxu3 }
 0x23f   : > { %15213 = vst [vmem:[#allocation90_spill] sm:$0xff] %v9969_v31 }
 0x240   : > { %v2364_v46 = vpop.f32.mrf.mxu2  ;;  %v9974_v63 = vpop.f32.mrf.mxu0 }
 0x241   : > { %v9972_v8 = vadd.f32 %v2364_v46, %v9783_v54  ;;  %15215 = vst [vmem:[#allocation92_spill] sm:$0xff] %v9974_v63 }
 0x242   : > { %v9976_v49 = vpop.f32.mrf.mxu1 }
 0x243   : > { %15214 = vst [vmem:[#allocation91_spill] sm:$0xff] %v9972_v8  ;;  %v2437_v8 = vld [vmem:[#allocation2 + $0x60] sm:$0xff] }
 0x244   : > { %15216 = vst [vmem:[#allocation93_spill] sm:$0xff] %v9976_v49 }
 0x246   : > { %v9978_v14 = vpop.f32.mrf.mxu3 }
 0x247   : > { %15217 = vst [vmem:[#allocation94_spill] sm:$0xff] %v9978_v14  ;;  %v2438_v14 = vld [vmem:[#allocation2 + $0x68] sm:$0xff] }
 0x248   : > { %v9980_v17 = vpop.f32.mrf.mxu2  ;;  %v2030_v12 = vpop.f32.mrf.mxu0  ;;  %v2466_v4 = vpack.c.bf16 %v2438_v14, %v2437_v8  ;;  %v2441_v14 = vld [vmem:[#allocation2 + $0x80] sm:$0xff] }
 0x249   : > { %15218 = vst [vmem:[#allocation95_spill] sm:$0xff] %v9980_v17  ;;  %v2672_v17 = vld [vmem:[#allocation2 + $0x69] sm:$0xff] }
 0x24a   : > { %v2167_v7 = vpop.f32.mrf.mxu1  ;;  %v2700_v13 = vpack.c.bf16 %v2672_v17, %v2671_v42  ;;  %v2442_v17 = vld [vmem:[#allocation2 + $0x88] sm:$0xff] }
 0x24b   : > { %v9982_v31 = vadd.f32 %v2167_v7, %v2030_v12  ;;  %2562 = vmatmul.bf16.gmra.mxu3 %v2465_v24  ;;  %2796 = vmatmul.bf16.gmra.mxu0 %v2699_v35  ;;  %v2440_v12 = vld [vmem:[#allocation2 + $0x78] sm:$0xff] }
 0x24c   : > { %v2673_v7 = vld [vmem:[#allocation2 + $0x71] sm:$0xff] }
 0x24d   : > { %15219 = vst [vmem:[#allocation96_spill] sm:$0xff] %v9982_v31 }
 0x24e   : > { %v9984_v54 = vpop.f32.mrf.mxu3 }
 0x24f   : > { %15220 = vst [vmem:[#allocation97_spill] sm:$0xff] %v9984_v54 }
 0x250   : > { %v2369_v46 = vpop.f32.mrf.mxu2  ;;  %v9989_v63 = vpop.f32.mrf.mxu0 }
 0x251   : > { %v9987_v49 = vadd.f32 %v2369_v46, %v9797_v40  ;;  %15222 = vst [vmem:[#allocation99_spill] sm:$0xff] %v9989_v63  ;;  %v2439_v40 = vld [vmem:[#allocation2 + $0x70] sm:$0xff]  ;;  %v2674_v46 = vld [vmem:[#allocation2 + $0x79] sm:$0xff] }
 0x252   : > { %v2701_v54 = vpack.c.bf16 %v2674_v46, %v2673_v7  ;;  %v2443_v7 = vld [vmem:[#allocation2 + $0x90] sm:$0xff]  ;;  %v2444_v46 = vld [vmem:[#allocation2 + $0x98] sm:$0xff] }
 0x253   : > { %15221 = vst [vmem:[#allocation98_spill] sm:$0xff] %v9987_v49  ;;  %v2467_v49 = vpack.c.bf16 %v2440_v12, %v2439_v40  ;;  %v9259_v40 = vmov 16.0  }
 0x254   : > { %8721 = vrcp.f32 %v9259_v40 }
 0x256   : > { %v9991_v21 = vpop.f32.mrf.mxu3 }
 0x257   : > { %15223 = vst [vmem:[#allocation100_spill] sm:$0xff] %v9991_v21 }
 0x258   : > { %v9993_v5 = vpop.f32.mrf.mxu0 }
 0x259   : > { %15224 = vst [vmem:[#allocation101_spill] sm:$0xff] %v9993_v5 }
 0x25a   : > { %v8722_v12 = vpop.eup %8721 }
 0x25b   : > { %2567 = vmatmul.bf16.gmra.mxu3 %v2466_v4  ;;  %2801 = vmatmul.bf16.gmra.mxu0 %v2700_v13  ;;  %v2675_v4 = vld [vmem:[#allocation2 + $0x81] sm:$0xff]  ;;  %v2676_v13 = vld [vmem:[#allocation2 + $0x89] sm:$0xff]  ;;  %vm597_vm0 = vweird.f32 %v8722_v12 }
 0x25c   : > { %v2702_v5 = vpack.c.bf16 %v2676_v13, %v2675_v4 }
 0x25e   : > { %v9995_v24 = vpop.f32.mrf.mxu3 }
 0x25f   : > { %15225 = vst [vmem:[#allocation102_spill] sm:$0xff] %v9995_v24  ;;  %v2468_v24 = vpack.c.bf16 %v2442_v17, %v2441_v14  ;;  %v2469_v14 = vpack.c.bf16 %v2444_v46, %v2443_v7  ;;  %v2679_v7 = vld [vmem:[#allocation2 + $0xa1] sm:$0xff] }
 0x260   : > { %v9997_v35 = vpop.f32.mrf.mxu0 }
 0x261   : > { %15226 = vst [vmem:[#allocation103_spill] sm:$0xff] %v9997_v35 }
 0x266   : > { %v9999_v63 = vpop.f32.mrf.mxu3 }
 0x267   : > { %15227 = vst [vmem:[#allocation104_spill] sm:$0xff] %v9999_v63 }
 0x268   : > { %v10001_v31 = vpop.f32.mrf.mxu0 }
 0x269   : > { %15228 = vst [vmem:[#allocation105_spill] sm:$0xff] %v10001_v31  ;;  %v593_v31 = vmul.f32 16.0, %v8722_v12 }
 0x26b   : > { %2572 = vmatmul.bf16.gmra.mxu3 %v2467_v49  ;;  %2806 = vmatmul.bf16.gmra.mxu0 %v2701_v54 }
 0x26e   : > { %v10003_v42 = vpop.f32.mrf.mxu3 }
 0x26f   : > { %15229 = vst [vmem:[#allocation106_spill] sm:$0xff] %v10003_v42  ;;  %v2678_v42 = vld [vmem:[#allocation2 + $0x99] sm:$0xff] }
 0x270   : > { %v10005_v8 = vpop.f32.mrf.mxu0 }
 0x271   : > { %15230 = vst [vmem:[#allocation107_spill] sm:$0xff] %v10005_v8  ;;  %v2677_v8 = vld [vmem:[#allocation2 + $0x91] sm:$0xff] }
 0x272   : > { %v2703_v17 = vpack.c.bf16 %v2678_v42, %v2677_v8  ;;  %v2680_v42 = vld [vmem:[#allocation2 + $0xa9] sm:$0xff] }
 0x276   : > { %v10007_v35 = vpop.f32.mrf.mxu3 }
 0x277   : > { %15231 = vst [vmem:[#allocation108_spill] sm:$0xff] %v10007_v35  ;;  %v2445_v35 = vld [vmem:[#allocation2 + $0xa0] sm:$0xff] }
 0x278   : > { %v10009_v21 = vpop.f32.mrf.mxu0 }
 0x279   : > { %15232 = vst [vmem:[#allocation109_spill] sm:$0xff] %v10009_v21 }
 0x27b   : > { %2577 = vmatmul.bf16.gmra.mxu3 %v2468_v24  ;;  %2811 = vmatmul.bf16.gmra.mxu0 %v2702_v5  ;;  %v594_v24 = vsub.f32 1.0, %v593_v31  ;;  %v14974_v5 = vlaneseq }
 0x27d   : > { %v595_v13 = vmul.f32 %v8722_v12, %v594_v24 }
 0x27e   : > { %v10011_v49 = vpop.f32.mrf.mxu3 }
 0x27f   : > { %15233 = vst [vmem:[#allocation110_spill] sm:$0xff] %v10011_v49  ;;  %v10024_v49 = vshrl.u32 %v14974_v5, 7  ;;  %v596_v21 = vadd.f32 %v8722_v12, %v595_v13 }
 0x280   : > { %v10013_v54 = vpop.f32.mrf.mxu0 }
 0x281   : > { %15234 = vst [vmem:[#allocation111_spill] sm:$0xff] %v10013_v54  ;;  %v560_v8 = vcvt.s32.f32 %v10024_v49  ;;  %v10027_v31 = vsel %vm597_vm0, %v8722_v12, %v596_v21  ;;  %v529_v24 = vadd.s32 8, %v10024_v49  ;;  %v530_v21 = vadd.s32 16, %v10024_v49 }
 0x282   : > { %v531_v39 = vadd.s32 24, %v10024_v49 }
 0x283   : > { %v599_v5 = vmul.f32 %v10027_v31, %v560_v8  ;;  %v561_v13 = vcvt.s32.f32 %v529_v24 }
 0x285   : > { %v600_v18 = vmul.f32 %v10027_v31, %v561_v13 }
 0x286   : > { %v10015_v63 = vpop.f32.mrf.mxu3 }
 0x287   : > { %15235 = vst [vmem:[#allocation112_spill] sm:$0xff] %v10015_v63  ;;  %v2446_v63 = vld [vmem:[#allocation2 + $0xa8] sm:$0xff] }
 0x288   : > { %v10017_v4 = vpop.f32.mrf.mxu0 }
 0x289   : > { %15236 = vst [vmem:[#allocation113_spill] sm:$0xff] %v10017_v4 }
 0x28b   : > { %2582 = vmatmul.bf16.gmra.mxu3 %v2469_v14  ;;  %2816 = vmatmul.bf16.gmra.mxu0 %v2703_v17  ;;  %v2470_v14 = vpack.c.bf16 %v2446_v63, %v2445_v35  ;;  %v2704_v17 = vpack.c.bf16 %v2680_v42, %v2679_v7  ;;  %v2447_v35 = vld [vmem:[#allocation2 + $0xb0] sm:$0xff]  ;;  %v632_v7 = vfloor.f32 %v600_v18  ;;  %v562_v42 = vcvt.s32.f32 %v530_v21  ;;  %v10046_v18 = vld [vmem:[#allocation2] sm:$0xff] }
 0x28d   : > { %v664_v24 = vmul.f32 16.0, %v632_v7  ;;  %v532_v7 = vadd.s32 32, %v10024_v49 }
 0x28e   : > { %v10019_v40 = vpop.f32.mrf.mxu3 }
 0x28f   : > { %15237 = vst [vmem:[#allocation114_spill] sm:$0xff] %v10019_v40  ;;  %v631_v40 = vfloor.f32 %v599_v5  ;;  %v696_v21 = vsub.f32 %v561_v13, %v664_v24 }
 0x290   : > { %v10021_v54 = vpop.f32.mrf.mxu0 }
 0x291   : > { %15238 = vst [vmem:[#allocation115_spill] sm:$0xff] %v10021_v54  ;;  %v663_v63 = vmul.f32 16.0, %v631_v40  ;;  %vm728_vm3 = vcmp.ne.f32.partialorder %v696_v21, 0.0  ;;  %vm824_vm4 = vcmp.ne.f32.partialorder %v696_v21, 15.0 }
 0x292   : > { %v10065_v24 = vsel %vm728_vm3, 1.0, %v10046_v18 }
 0x293   : > { %v695_v25 = vsub.f32 %v560_v8, %v663_v63  ;;  %15246 = vst [vmem:[#allocation123_spill] sm:$0xff] %v10065_v24  ;;  %v2900_v21 = vmul.f32 %v10065_v24, %v9839_v15 }
 0x295   : > { %vm727_vm1 = vcmp.ne.f32.partialorder %v695_v25, 0.0  ;;  %vm823_vm2 = vcmp.ne.f32.partialorder %v695_v25, 15.0 }
 0x296   : > { %v10029_v46 = vpop.f32.mrf.mxu3  ;;  %v10049_v8 = vsel %vm727_vm1, 1.0, %v10046_v18  ;;  %v10054_v63 = vsel %vm823_vm2, 1.0, %v10046_v18 }
 0x297   : > { %15239 = vst [vmem:[#allocation116_spill] sm:$0xff] %v10029_v46  ;;  %v2448_v46 = vld [vmem:[#allocation2 + $0xb8] sm:$0xff] }
 0x298   : > { %v10032_v54 = vpop.f32.mrf.mxu0  ;;  %15244 = vst [vmem:[#allocation121_spill] sm:$0xff] %v10049_v8 }
 0x299   : > { %15240 = vst [vmem:[#allocation117_spill] sm:$0xff] %v10032_v54  ;;  %v2681_v54 = vld [vmem:[#allocation2 + $0xb1] sm:$0xff] }
 0x29a   : > { %v2705_v5 = vpack.c.bf16 %v2682_v2, %v2681_v54  ;;  %v1779_v2 = vadd.f32 %v9829_v55, %v9646_v27  ;;  %v563_v54 = vcvt.s32.f32 %v531_v39  ;;  %15245 = vst [vmem:[#allocation122_spill] sm:$0xff] %v10054_v63  ;;  %v2449_v39 = vld [vmem:[#allocation2 + $0xc0] sm:$0xff] }
 0x29b   : > { %2587 = vmatmul.bf16.gmra.mxu3 %v2470_v14  ;;  %2821 = vmatmul.bf16.gmra.mxu0 %v2704_v17  ;;  %v2471_v17 = vpack.c.bf16 %v2448_v46, %v2447_v35 }
 0x29c   : > { %v602_v13 = vmul.f32 %v10027_v31, %v563_v54 }
 0x29e   : > { %v10035_v4 = vpop.f32.mrf.mxu3 }
 0x29f   : > { %15241 = vst [vmem:[#allocation118_spill] sm:$0xff] %v10035_v4  ;;  %v601_v4 = vmul.f32 %v10027_v31, %v562_v42 }
 0x2a0   : > { %v10039_v12 = vpop.f32.mrf.mxu0 }
 0x2a1   : > { %15242 = vst [vmem:[#allocation119_spill] sm:$0xff] %v10039_v12  ;;  %v633_v46 = vfloor.f32 %v601_v4  ;;  %v634_v12 = vfloor.f32 %v602_v13 }
 0x2a3   : > { %v665_v25 = vmul.f32 16.0, %v633_v46  ;;  %v2450_v46 = vld [vmem:[#allocation2 + $0xc8] sm:$0xff] }
 0x2a6   : > { %v10041_v14 = vpop.f32.mrf.mxu3 }
 0x2a7   : > { %15243 = vst [vmem:[#allocation120_spill] sm:$0xff] %v10041_v14  ;;  %v1781_v14 = vadd.f32 %v9836_v3, %v9652_v38 }
 0x2a8   : > { %v2787_v58 = vpop.f32.mrf.mxu0 }
 0x2a9   : > { %v2867_v40 = vadd.f32 %v2787_v58, %v9825_v47  ;;  %v2899_v47 = vmul.f32 %v10049_v8, %v9832_v28  ;;  %v697_v28 = vsub.f32 %v562_v42, %v665_v25  ;;  %v2684_v8 = vld [vmem:[#allocation2 + $0xc9] sm:$0xff]  ;;  %v533_v25 = vadd.s32 40, %v10024_v49 }
 0x2ab   : > { %2592 = vmatmul.bf16.gmra.mxu3 %v2471_v17  ;;  %2826 = vmatmul.bf16.gmra.mxu0 %v2705_v5  ;;  %v2963_v4 = vmul.f32 %v10054_v63, %v2867_v40  ;;  %v10070_v40 = vsel %vm824_vm4, 1.0, %v10046_v18  ;;  %vm729_vm5 = vcmp.ne.f32.partialorder %v697_v28, 0.0  ;;  %vm825_vm6 = vcmp.ne.f32.partialorder %v697_v28, 15.0 }
 0x2ac   : > { %15247 = vst [vmem:[#allocation124_spill] sm:$0xff] %v10070_v40  ;;  %v10081_v15 = vsel %vm729_vm5, 1.0, %v10046_v18 }
 0x2ad   : > { %15248 = vst [vmem:[#allocation125_spill] sm:$0xff] %v10081_v15 }
 0x2ae   : > { %v2553_v35 = vpop.f32.mrf.mxu3 }
 0x2af   : > { %v2633_v58 = vadd.f32 %v2553_v35, %v1779_v2  ;;  %v564_v2 = vcvt.s32.f32 %v532_v7  ;;  %v2683_v35 = vld [vmem:[#allocation2 + $0xc1] sm:$0xff] }
 0x2b0   : > { %v2789_v17 = vpop.f32.mrf.mxu0 }
 0x2b1   : > { %v2931_v5 = vadd.f32 %v2899_v47, %v2633_v58  ;;  %v2868_v27 = vadd.f32 %v2789_v17, %v9834_v19  ;;  %v2472_v58 = vpack.c.bf16 %v2450_v46, %v2449_v39  ;;  %v2706_v17 = vpack.c.bf16 %v2684_v8, %v2683_v35 }
 0x2b2   : > { %v603_v42 = vmul.f32 %v10027_v31, %v564_v2  ;;  %v565_v8 = vcvt.s32.f32 %v533_v25  ;;  %v1784_v39 = vadd.f32 %v9844_v52, %v9664_v59 }
 0x2b3   : > { %v10062_v55 = vadd.f32 %v2963_v4, %v2931_v5  ;;  %v666_v4 = vmul.f32 16.0, %v634_v12  ;;  %v2964_v38 = vmul.f32 %v10070_v40, %v2868_v27  ;;  %v10086_v12 = vsel %vm825_vm6, 1.0, %v10046_v18  ;;  %v15330_v40 = vld [vmem:[#allocation95_spill] sm:$0xff] }
 0x2b4   : > { %15249 = vst [vmem:[#allocation126_spill] sm:$0xff] %v10086_v12 }
 0x2b5   : > { %v698_v46 = vsub.f32 %v563_v54, %v666_v4  ;;  %v2451_v54 = vld [vmem:[#allocation2 + $0xd0] sm:$0xff]  ;;  %v2452_v4 = vld [vmem:[#allocation2 + $0xd8] sm:$0xff] }
 0x2b6   : > { %v2555_v19 = vpop.f32.mrf.mxu3 }
 0x2b7   : > { %v2634_v47 = vadd.f32 %v2555_v19, %v1781_v14  ;;  %v635_v14 = vfloor.f32 %v603_v42  ;;  %v604_v19 = vmul.f32 %v10027_v31, %v565_v8  ;;  %vm730_vm7 = vcmp.ne.f32.partialorder %v698_v46, 0.0 }
 0x2b8   : > { %v2792_v7 = vpop.f32.mrf.mxu0  ;;  %vm826_vm8 = vcmp.ne.f32.partialorder %v698_v46, 15.0  ;;  %v10097_v42 = vsel %vm730_vm7, 1.0, %v10046_v18 }
 0x2b9   : > { %v2932_v3 = vadd.f32 %v2900_v21, %v2634_v47  ;;  %v2869_v13 = vadd.f32 %v2792_v7, %v9841_v60  ;;  %v2901_v60 = vmul.f32 %v10081_v15, %v9847_v45  ;;  %v667_v28 = vmul.f32 16.0, %v635_v14  ;;  %15250 = vst [vmem:[#allocation127_spill] sm:$0xff] %v10097_v42 }
 0x2ba   : > { %v534_v21 = vadd.s32 48, %v10024_v49  ;;  %v636_v25 = vfloor.f32 %v604_v19  ;;  %v1786_v14 = vadd.f32 %v9851_v48, %v9670_v16  ;;  %v535_v19 = vadd.s32 56, %v10024_v49 }
 0x2bb   : > { %v10078_v5 = vadd.f32 %v2964_v38, %v2932_v3  ;;  %2597 = vmatmul.bf16.gmra.mxu3 %v2472_v58  ;;  %2831 = vmatmul.bf16.gmra.mxu0 %v2706_v17  ;;  %v2965_v58 = vmul.f32 %v10086_v12, %v2869_v13  ;;  %v699_v45 = vsub.f32 %v564_v2, %v667_v28  ;;  %v2685_v38 = vld [vmem:[#allocation2 + $0xd1] sm:$0xff]  ;;  %v2686_v3 = vld [vmem:[#allocation2 + $0xd9] sm:$0xff]  ;;  %v10102_v13 = vsel %vm826_vm8, 1.0, %v10046_v18 }
 0x2bc   : > { %v566_v7 = vcvt.s32.f32 %v534_v21  ;;  %15251 = vst [vmem:[#allocation128_spill] sm:$0xff] %v10102_v13  ;;  %v668_v2 = vmul.f32 16.0, %v636_v25  ;;  %v567_v25 = vcvt.s32.f32 %v535_v19  ;;  %v1791_v19 = vadd.f32 %v9865_v50, %v9688_v43 }
 0x2bd   : > { %vm731_vm9 = vcmp.ne.f32.partialorder %v699_v45, 0.0  ;;  %vm827_vm10 = vcmp.ne.f32.partialorder %v699_v45, 15.0 }
 0x2be   : > { %v2558_v27 = vpop.f32.mrf.mxu3 }
 0x2bf   : > { %v2635_v35 = vadd.f32 %v2558_v27, %v1784_v39  ;;  %v2902_v39 = vmul.f32 %v10097_v42, %v9854_v37  ;;  %v2473_v27 = vpack.c.bf16 %v2452_v4, %v2451_v54  ;;  %v10113_v37 = vsel %vm731_vm9, 1.0, %v10046_v18 }
 0x2c0   : > { %v2794_v47 = vpop.f32.mrf.mxu0  ;;  %15252 = vst [vmem:[#allocation129_spill] sm:$0xff] %v10113_v37  ;;  %v1789_v54 = vadd.f32 %v9858_v36, %v9682_v6  ;;  %v10118_v4 = vsel %vm827_vm10, 1.0, %v10046_v18 }
 0x2c1   : > { %v2933_v17 = vadd.f32 %v2901_v60, %v2635_v35  ;;  %v2870_v59 = vadd.f32 %v2794_v47, %v9849_v57  ;;  %v2707_v60 = vpack.c.bf16 %v2686_v3, %v2685_v38  ;;  %v605_v35 = vmul.f32 %v10027_v31, %v566_v7  ;;  %15253 = vst [vmem:[#allocation130_spill] sm:$0xff] %v10118_v4 }
 0x2c2   : > { %v536_v3 = vadd.s32 64, %v10024_v49 }
 0x2c3   : > { %v10094_v52 = vadd.f32 %v2965_v58, %v2933_v17  ;;  %v2966_v21 = vmul.f32 %v10102_v13, %v2870_v59  ;;  %v700_v58 = vsub.f32 %v565_v8, %v668_v2  ;;  %v637_v17 = vfloor.f32 %v605_v35  ;;  %v2454_v2 = vld [vmem:[#allocation2 + $0xe8] sm:$0xff] }
 0x2c4   : > { %v606_v8 = vmul.f32 %v10027_v31, %v567_v25  ;;  %v2687_v35 = vld [vmem:[#allocation2 + $0xe1] sm:$0xff] }
 0x2c5   : > { %vm732_vm11 = vcmp.ne.f32.partialorder %v700_v58, 0.0  ;;  %v669_v45 = vmul.f32 16.0, %v637_v17  ;;  %vm828_vm12 = vcmp.ne.f32.partialorder %v700_v58, 15.0 }
 0x2c6   : > { %v2560_v57 = vpop.f32.mrf.mxu3 }
 0x2c7   : > { %v2636_v46 = vadd.f32 %v2560_v57, %v1786_v14 }
 0x2c8   : > { %v2797_v28 = vpop.f32.mrf.mxu0 }
 0x2c9   : > { %v2934_v16 = vadd.f32 %v2902_v39, %v2636_v46  ;;  %v2871_v48 = vadd.f32 %v2797_v28, %v9856_v62  ;;  %v2903_v62 = vmul.f32 %v10113_v37, %v9861_v33  ;;  %v2453_v46 = vld [vmem:[#allocation2 + $0xe0] sm:$0xff]  ;;  %v701_v33 = vsub.f32 %v566_v7, %v669_v45  ;;  %v2688_v28 = vld [vmem:[#allocation2 + $0xe9] sm:$0xff] }
 0x2ca   : > { %v2474_v17 = vpack.c.bf16 %v2454_v2, %v2453_v46 }
 0x2cb   : > { %v10110_v47 = vadd.f32 %v2966_v21, %v2934_v16  ;;  %2602 = vmatmul.bf16.gmra.mxu3 %v2473_v27  ;;  %2836 = vmatmul.bf16.gmra.mxu0 %v2707_v60  ;;  %v2967_v57 = vmul.f32 %v10118_v4, %v2871_v48  ;;  %v10129_v27 = vsel %vm732_vm11, 1.0, %v10046_v18  ;;  %v568_v60 = vcvt.s32.f32 %v536_v3  ;;  %v15319_v4 = vld [vmem:[#allocation87_spill] sm:$0xff] }
 0x2cc   : > { %15254 = vst [vmem:[#allocation131_spill] sm:$0xff] %v10129_v27  ;;  %v638_v21 = vfloor.f32 %v606_v8  ;;  %v10134_v16 = vsel %vm828_vm12, 1.0, %v10046_v18  ;;  %v2904_v48 = vmul.f32 %v10129_v27, %v9868_v29  ;;  %vm733_vm13 = vcmp.ne.f32.partialorder %v701_v33, 0.0 }
 0x2cd   : > { %15255 = vst [vmem:[#allocation132_spill] sm:$0xff] %v10134_v16  ;;  %v607_v7 = vmul.f32 %v10027_v31, %v568_v60  ;;  %vm829_vm14 = vcmp.ne.f32.partialorder %v701_v33, 15.0  ;;  %v10145_v29 = vsel %vm733_vm13, 1.0, %v10046_v18 }
 0x2ce   : > { %v2563_v59 = vpop.f32.mrf.mxu3  ;;  %15256 = vst [vmem:[#allocation133_spill] sm:$0xff] %v10145_v29  ;;  %v10150_v46 = vsel %vm829_vm14, 1.0, %v10046_v18 }
 0x2cf   : > { %v2637_v38 = vadd.f32 %v2563_v59, %v1789_v54  ;;  %v2708_v54 = vpack.c.bf16 %v2688_v28, %v2687_v35  ;;  %v537_v59 = vadd.s32 72, %v10024_v49  ;;  %15257 = vst [vmem:[#allocation134_spill] sm:$0xff] %v10150_v46  ;;  %v538_v28 = vadd.s32 80, %v10024_v49 }
 0x2d0   : > { %v2799_v14 = vpop.f32.mrf.mxu0 }
 0x2d1   : > { %v2935_v39 = vadd.f32 %v2903_v62, %v2637_v38  ;;  %v2872_v6 = vadd.f32 %v2799_v14, %v9863_v34  ;;  %v670_v38 = vmul.f32 16.0, %v638_v21  ;;  %v639_v14 = vfloor.f32 %v607_v7  ;;  %v2689_v7 = vld [vmem:[#allocation2 + $0xf1] sm:$0xff] }
 0x2d2   : > { %v569_v8 = vcvt.s32.f32 %v537_v59  ;;  %v2690_v59 = vld [vmem:[#allocation2 + $0xf9] sm:$0xff] }
 0x2d3   : > { %v10126_v36 = vadd.f32 %v2967_v57, %v2935_v39  ;;  %v2968_v43 = vmul.f32 %v10134_v16, %v2872_v6  ;;  %v1794_v57 = vadd.f32 %v9872_v22, %v9698_v53  ;;  %v702_v39 = vsub.f32 %v567_v25, %v670_v38  ;;  %v2455_v25 = vld [vmem:[#allocation2 + $0xf0] sm:$0xff] }
 0x2d4   : > { %v671_v33 = vmul.f32 16.0, %v639_v14  ;;  %v608_v35 = vmul.f32 %v10027_v31, %v569_v8  ;;  %v2709_v14 = vpack.c.bf16 %v2690_v59, %v2689_v7 }
 0x2d5   : > { %vm734_vm15 = vcmp.ne.f32.partialorder %v702_v39, 0.0  ;;  %vm830_vm0 = vcmp.ne.f32.partialorder %v702_v39, 15.0 }
 0x2d6   : > { %v2565_v34 = vpop.f32.mrf.mxu3  ;;  %v10166_v38 = vsel %vm830_vm0, 1.0, %v10046_v18 }
 0x2d7   : > { %v2638_v58 = vadd.f32 %v2565_v34, %v1791_v19  ;;  %15259 = vst [vmem:[#allocation136_spill] sm:$0xff] %v10166_v38 }
 0x2d8   : > { %v2802_v62 = vpop.f32.mrf.mxu0 }
 0x2d9   : > { %v2936_v50 = vadd.f32 %v2904_v48, %v2638_v58  ;;  %v2873_v45 = vadd.f32 %v2802_v62, %v9870_v0  ;;  %v2905_v0 = vmul.f32 %v10145_v29, %v9875_v23  ;;  %v10161_v48 = vsel %vm734_vm15, 1.0, %v10046_v18 }
 0x2da   : > { %15258 = vst [vmem:[#allocation135_spill] sm:$0xff] %v10161_v48  ;;  %v703_v23 = vsub.f32 %v568_v60, %v671_v33  ;;  %v640_v58 = vfloor.f32 %v608_v35  ;;  %v1796_v62 = vadd.f32 %v9879_v30, %v9704_v11  ;;  %v1799_v35 = vadd.f32 %v9886_v10, %v9712_v9 }
 0x2db   : > { %v10142_v3 = vadd.f32 %v2968_v43, %v2936_v50  ;;  %2607 = vmatmul.bf16.gmra.mxu3 %v2474_v17  ;;  %2841 = vmatmul.bf16.gmra.mxu0 %v2708_v54  ;;  %v2969_v21 = vmul.f32 %v10150_v46, %v2873_v45  ;;  %v570_v17 = vcvt.s32.f32 %v538_v28  ;;  %v2456_v54 = vld [vmem:[#allocation2 + $0xf8] sm:$0xff]  ;;  %v2906_v43 = vmul.f32 %v10161_v48, %v9882_v26 }
 0x2dc   : > { %v2475_v45 = vpack.c.bf16 %v2456_v54, %v2455_v25  ;;  %vm735_vm1 = vcmp.ne.f32.partialorder %v703_v23, 0.0  ;;  %v672_v60 = vmul.f32 16.0, %v640_v58  ;;  %vm831_vm2 = vcmp.ne.f32.partialorder %v703_v23, 15.0 }
 0x2dd   : > { %v10177_v26 = vsel %vm735_vm1, 1.0, %v10046_v18  ;;  %v540_v23 = vadd.s32 96, %v10024_v49  ;;  %v2140_v10 = vadd.f32 %v9893_v61, %v9891_v1 }
 0x2de   : > { %v2568_v6 = vpop.f32.mrf.mxu3  ;;  %15260 = vst [vmem:[#allocation137_spill] sm:$0xff] %v10177_v26  ;;  %v704_v28 = vsub.f32 %v569_v8, %v672_v60  ;;  %v2408_v8 = vadd.f32 %v9897_v51, %v9714_v44  ;;  %v15263_v60 = vld [vmem:[#allocation24_spill] sm:$0xff] }
 0x2df   : > { %v2639_v2 = vadd.f32 %v2568_v6, %v1794_v57  ;;  %v609_v57 = vmul.f32 %v10027_v31, %v570_v17  ;;  %v539_v6 = vadd.s32 88, %v10024_v49 }
 0x2e0   : > { %v2804_v19 = vpop.f32.mrf.mxu0  ;;  %vm736_vm3 = vcmp.ne.f32.partialorder %v704_v28, 0.0  ;;  %vm832_vm4 = vcmp.ne.f32.partialorder %v704_v28, 15.0 }
 0x2e1   : > { %v2937_v34 = vadd.f32 %v2905_v0, %v2639_v2  ;;  %v2874_v53 = vadd.f32 %v2804_v19, %v9877_v41  ;;  %v641_v33 = vfloor.f32 %v609_v57  ;;  %v571_v19 = vcvt.s32.f32 %v539_v6  ;;  %v15264_v57 = vld [vmem:[#allocation61_spill] sm:$0xff] }
 0x2e2   : > { %v10201_v61 = vsel %vm832_vm4, 1.0, %v10046_v18 }
 0x2e3   : > { %v10158_v22 = vadd.f32 %v2969_v21, %v2937_v34  ;;  %v2970_v0 = vmul.f32 %v10166_v38, %v2874_v53  ;;  %v10182_v21 = vsel %vm831_vm2, 1.0, %v10046_v18  ;;  %v673_v25 = vmul.f32 16.0, %v641_v33  ;;  %15265 = vst [vmem:[#allocation24_spill] sm:$0xff] %v10201_v61  ;;  %v15305_v38 = vld [vmem:[#allocation80_spill] sm:$0xff] }
 0x2e4   : > { %15261 = vst [vmem:[#allocation138_spill] sm:$0xff] %v10182_v21  ;;  %v610_v54 = vmul.f32 %v10027_v31, %v571_v19  ;;  %v541_v33 = vadd.s32 104, %v10024_v49 }
 0x2e6   : > { %v2570_v41 = vpop.f32.mrf.mxu3  ;;  %v642_v6 = vfloor.f32 %v610_v54  ;;  %v573_v54 = vcvt.s32.f32 %v541_v33  ;;  %v2459_v33 = vld [vmem:[#allocation2 + $0x110] sm:$0xff] }
 0x2e7   : > { %v2640_v50 = vadd.f32 %v2570_v41, %v1796_v62  ;;  %v10196_v62 = vsel %vm736_vm3, 1.0, %v10046_v18  ;;  %v705_v41 = vsub.f32 %v570_v17, %v673_v25 }
 0x2e8   : > { %v2807_v39 = vpop.f32.mrf.mxu0  ;;  %15262 = vst [vmem:[#allocation139_spill] sm:$0xff] %v10196_v62  ;;  %v2908_v51 = vmul.f32 %v10196_v62, %v2408_v8  ;;  %v674_v28 = vmul.f32 16.0, %v642_v6 }
 0x2e9   : > { %v2938_v11 = vadd.f32 %v2906_v43, %v2640_v50  ;;  %v2875_v30 = vadd.f32 %v2807_v39, %v9884_v32  ;;  %v2907_v32 = vmul.f32 %v10177_v26, %v9889_v20  ;;  %v2457_v20 = vld [vmem:[#allocation2 + $0x100] sm:$0xff]  ;;  %v572_v43 = vcvt.s32.f32 %v540_v23  ;;  %v2458_v50 = vld [vmem:[#allocation2 + $0x108] sm:$0xff] }
 0x2ea   : > { %v1801_v39 = vadd.f32 %v15264_v57, %v15263_v60  ;;  %vm737_vm5 = vcmp.ne.f32.partialorder %v705_v41, 0.0  ;;  %vm833_vm6 = vcmp.ne.f32.partialorder %v705_v41, 15.0  ;;  %v706_v8 = vsub.f32 %v571_v19, %v674_v28  ;;  %v15272_v19 = vld [vmem:[#allocation65_spill] sm:$0xff] }
 0x2eb   : > { %v10174_v2 = vadd.f32 %v2970_v0, %v2938_v11  ;;  %2612 = vmatmul.bf16.gmra.mxu3 %v2475_v45  ;;  %2846 = vmatmul.bf16.gmra.mxu0 %v2709_v14  ;;  %v2971_v7 = vmul.f32 %v10182_v21, %v2875_v30  ;;  %v2691_v45 = vld [vmem:[#allocation2 + $0x101] sm:$0xff]  ;;  %v2692_v14 = vld [vmem:[#allocation2 + $0x109] sm:$0xff]  ;;  %v2476_v11 = vpack.c.bf16 %v2458_v50, %v2457_v20  ;;  %v10211_v23 = vsel %vm737_vm5, 1.0, %v10046_v18 }
 0x2ec   : > { %v2710_v30 = vpack.c.bf16 %v2692_v14, %v2691_v45  ;;  %v611_v17 = vmul.f32 %v10027_v31, %v572_v43  ;;  %15266 = vst [vmem:[#allocation61_spill] sm:$0xff] %v10211_v23  ;;  %v10216_v20 = vsel %vm833_vm6, 1.0, %v10046_v18  ;;  %v15270_v45 = vld [vmem:[#allocation63_spill] sm:$0xff]  ;;  %v612_v60 = vmul.f32 %v10027_v31, %v573_v54 }
 0x2ed   : > { %v542_v57 = vadd.s32 112, %v10024_v49  ;;  %vm738_vm7 = vcmp.ne.f32.partialorder %v706_v8, 0.0  ;;  %vm834_vm8 = vcmp.ne.f32.partialorder %v706_v8, 15.0  ;;  %v15304_v21 = vld [vmem:[#allocation39_spill] sm:$0xff] }
 0x2ee   : > { %v2573_v34 = vpop.f32.mrf.mxu3  ;;  %v1816_v46 = vadd.f32 %v15305_v38, %v15304_v21 }
 0x2ef   : > { %v2641_v53 = vadd.f32 %v2573_v34, %v1799_v35 }
 0x2f0   : > { %v2809_v58 = vpop.f32.mrf.mxu0 }
 0x2f1   : > { %v2939_v9 = vadd.f32 %v2907_v32, %v2641_v53  ;;  %v2876_v1 = vadd.f32 %v2809_v58, %v2140_v10  ;;  %v643_v58 = vfloor.f32 %v611_v17 }
 0x2f3   : > { %v10193_v59 = vadd.f32 %v2971_v7, %v2939_v9  ;;  %v2972_v34 = vmul.f32 %v10201_v61, %v2876_v1  ;;  %v15267_v7 = vld [vmem:[#allocation26_spill] sm:$0xff]  ;;  %v675_v41 = vmul.f32 16.0, %v643_v58  ;;  %v2460_v58 = vld [vmem:[#allocation2 + $0x118] sm:$0xff] }
 0x2f4   : > { %v15268_v9 = vld [vmem:[#allocation62_spill] sm:$0xff]  ;;  %15269 = vst [vmem:[#allocation26_spill] sm:$0xff] %v10216_v20 }
 0x2f5   : > { %v1804_v10 = vadd.f32 %v15268_v9, %v15267_v7  ;;  %v707_v28 = vsub.f32 %v572_v43, %v675_v41  ;;  %v2693_v7 = vld [vmem:[#allocation2 + $0x111] sm:$0xff]  ;;  %v15276_v9 = vld [vmem:[#allocation29_spill] sm:$0xff] }
 0x2f6   : > { %v2575_v44 = vpop.f32.mrf.mxu3 }
 0x2f7   : > { %v2642_v0 = vadd.f32 %v2575_v44, %v1801_v39  ;;  %v15271_v44 = vld [vmem:[#allocation64_spill] sm:$0xff]  ;;  %vm739_vm9 = vcmp.ne.f32.partialorder %v707_v28, 0.0  ;;  %vm835_vm10 = vcmp.ne.f32.partialorder %v707_v28, 15.0 }
 0x2f8   : > { %v2812_v35 = vpop.f32.mrf.mxu0 }
 0x2f9   : > { %v2940_v32 = vadd.f32 %v2908_v51, %v2642_v0  ;;  %v2877_v53 = vadd.f32 %v2812_v35, %v9899_v56  ;;  %v2909_v56 = vmul.f32 %v10211_v23, %v15270_v45  ;;  %v2145_v51 = vadd.f32 %v15272_v19, %v15271_v44  ;;  %v15273_v0 = vld [vmem:[#allocation27_spill] sm:$0xff] }
 0x2fa   : > { %v10230_v35 = vsel %vm738_vm7, 1.0, %v10046_v18 }
 0x2fb   : > { %v10208_v25 = vadd.f32 %v2972_v34, %v2940_v32  ;;  %2617 = vmatmul.bf16.gmra.mxu3 %v2476_v11  ;;  %2851 = vmatmul.bf16.gmra.mxu0 %v2710_v30  ;;  %v2973_v6 = vmul.f32 %v10216_v20, %v2877_v53  ;;  %v15274_v11 = vld [vmem:[#allocation67_spill] sm:$0xff]  ;;  %15275 = vst [vmem:[#allocation62_spill] sm:$0xff] %v10230_v35  ;;  %v644_v34 = vfloor.f32 %v612_v60  ;;  %v574_v32 = vcvt.s32.f32 %v542_v57  ;;  %v2694_v53 = vld [vmem:[#allocation2 + $0x119] sm:$0xff] }
 0x2fc   : > { %v2410_v30 = vadd.f32 %v15274_v11, %v15273_v0  ;;  %v2711_v44 = vpack.c.bf16 %v2694_v53, %v2693_v7  ;;  %v543_v57 = vadd.s32 120, %v10024_v49  ;;  %v15291_v20 = vld [vmem:[#allocation73_spill] sm:$0xff] }
 0x2fd   : > { %v676_v43 = vmul.f32 16.0, %v644_v34  ;;  %v613_v41 = vmul.f32 %v10027_v31, %v574_v32  ;;  %v15281_v34 = vld [vmem:[#allocation31_spill] sm:$0xff] }
 0x2fe   : > { %v2578_v50 = vpop.f32.mrf.mxu3  ;;  %v2910_v8 = vmul.f32 %v10230_v35, %v2410_v30  ;;  %v10245_v30 = vsel %vm739_vm9, 1.0, %v10046_v18 }
 0x2ff   : > { %v2643_v14 = vadd.f32 %v2578_v50, %v1804_v10  ;;  %v15277_v10 = vld [vmem:[#allocation66_spill] sm:$0xff]  ;;  %15280 = vst [vmem:[#allocation64_spill] sm:$0xff] %v10245_v30  ;;  %v708_v53 = vsub.f32 %v573_v54, %v676_v43  ;;  %v15285_v54 = vld [vmem:[#allocation71_spill] sm:$0xff]  ;;  %v15286_v43 = vld [vmem:[#allocation72_spill] sm:$0xff] }
 0x300   : > { %v2814_v39 = vpop.f32.mrf.mxu0  ;;  %v1806_v50 = vadd.f32 %v15277_v10, %v15276_v9  ;;  %v575_v9 = vcvt.s32.f32 %v543_v57  ;;  %v10250_v10 = vsel %vm835_vm10, 1.0, %v10046_v18  ;;  %v2150_v57 = vadd.f32 %v15286_v43, %v15285_v54 }
 0x301   : > { %v2941_v1 = vadd.f32 %v2909_v56, %v2643_v14  ;;  %v2878_v45 = vadd.f32 %v2814_v39, %v2145_v51  ;;  %v10235_v56 = vsel %vm834_vm8, 1.0, %v10046_v18  ;;  %v15279_v39 = vld [vmem:[#allocation68_spill] sm:$0xff]  ;;  %15283 = vst [vmem:[#allocation65_spill] sm:$0xff] %v10250_v10  ;;  %vm740_vm11 = vcmp.ne.f32.partialorder %v708_v53, 0.0 }
 0x302   : > { %15278 = vst [vmem:[#allocation63_spill] sm:$0xff] %v10235_v56  ;;  %vm836_vm12 = vcmp.ne.f32.partialorder %v708_v53, 15.0  ;;  %v2478_v53 = vpack.c.bf16 %v10046_v18, %v10046_v18 }
 0x303   : > { %v10227_v17 = vadd.f32 %v2973_v6, %v2941_v1  ;;  %v2477_v1 = vpack.c.bf16 %v2460_v58, %v2459_v33  ;;  %v2974_v19 = vmul.f32 %v10235_v56, %v2878_v45  ;;  %v645_v33 = vfloor.f32 %v613_v41  ;;  %v15282_v58 = vld [vmem:[#allocation69_spill] sm:$0xff]  ;;  %v15284_v45 = vld [vmem:[#allocation70_spill] sm:$0xff] }
 0x304   : > { %v1809_v7 = vadd.f32 %v15282_v58, %v15281_v34  ;;  %v15290_v56 = vld [vmem:[#allocation34_spill] sm:$0xff]  ;;  %v10269_v54 = vsel %vm836_vm12, 1.0, %v10046_v18 }
 0x305   : > { %v677_v28 = vmul.f32 16.0, %v645_v33  ;;  %v10264_v33 = vsel %vm740_vm11, 1.0, %v10046_v18  ;;  %15292 = vst [vmem:[#allocation67_spill] sm:$0xff] %v10269_v54 }
 0x306   : > { %v2580_v14 = vpop.f32.mrf.mxu3  ;;  %15289 = vst [vmem:[#allocation27_spill] sm:$0xff] %v10264_v33 }
 0x307   : > { %v2644_v6 = vadd.f32 %v2580_v14, %v1806_v50  ;;  %v2911_v14 = vmul.f32 %v10245_v30, %v15284_v45  ;;  %v709_v58 = vsub.f32 %v574_v32, %v677_v28  ;;  %v2696_v45 = vld [vmem:[#allocation2 + $0x129] sm:$0xff]  ;;  %v545_v28 = vadd.s32 136, %v10024_v49 }
 0x308   : > { %v2817_v60 = vpop.f32.mrf.mxu0 }
 0x309   : > { %v2942_v0 = vadd.f32 %v2910_v8, %v2644_v6  ;;  %v2879_v51 = vadd.f32 %v2817_v60, %v15279_v39  ;;  %v544_v6 = vadd.s32 128, %v10024_v49  ;;  %vm741_vm13 = vcmp.ne.f32.partialorder %v709_v58, 0.0 }
 0x30a   : > { %vm837_vm14 = vcmp.ne.f32.partialorder %v709_v58, 15.0 }
 0x30b   : > { %v10242_v11 = vadd.f32 %v2974_v19, %v2942_v0  ;;  %2622 = vmatmul.bf16.gmra.mxu3 %v2477_v1  ;;  %2856 = vmatmul.bf16.gmra.mxu0 %v2711_v44  ;;  %v614_v44 = vmul.f32 %v10027_v31, %v575_v9  ;;  %v2975_v41 = vmul.f32 %v10250_v10, %v2879_v51  ;;  %v15287_v19 = vld [vmem:[#allocation32_spill] sm:$0xff]  ;;  %v15288_v0 = vld [vmem:[#allocation74_spill] sm:$0xff] }
 0x30c   : > { %v2412_v39 = vadd.f32 %v15288_v0, %v15287_v19  ;;  %v1811_v51 = vadd.f32 %v15291_v20, %v15290_v56 }
 0x30e   : > { %v2583_v50 = vpop.f32.mrf.mxu3 }
 0x30f   : > { %v2645_v8 = vadd.f32 %v2583_v50, %v1809_v7  ;;  %v576_v7 = vcvt.s32.f32 %v544_v6  ;;  %v2695_v50 = vld [vmem:[#allocation2 + $0x121] sm:$0xff] }
 0x310   : > { %v2819_v1 = vpop.f32.mrf.mxu0  ;;  %v2712_v19 = vpack.c.bf16 %v2696_v45, %v2695_v50  ;;  %v577_v45 = vcvt.s32.f32 %v545_v28 }
 0x311   : > { %v2943_v60 = vadd.f32 %v2911_v14, %v2645_v8  ;;  %v646_v14 = vfloor.f32 %v614_v44  ;;  %v2880_v8 = vadd.f32 %v2819_v1, %v2150_v57  ;;  %v615_v32 = vmul.f32 %v10027_v31, %v576_v7  ;;  %v15293_v44 = vld [vmem:[#allocation75_spill] sm:$0xff] }
 0x313   : > { %v10261_v34 = vadd.f32 %v2975_v41, %v2943_v60  ;;  %v2912_v41 = vmul.f32 %v10264_v33, %v2412_v39  ;;  %v678_v20 = vmul.f32 16.0, %v646_v14  ;;  %v2976_v56 = vmul.f32 %v10269_v54, %v2880_v8 }
 0x314   : > { %v10281_v39 = vsel %vm741_vm13, 1.0, %v10046_v18  ;;  %v647_v50 = vfloor.f32 %v615_v32  ;;  %v10286_v14 = vsel %vm837_vm14, 1.0, %v10046_v18 }
 0x315   : > { %15294 = vst [vmem:[#allocation29_spill] sm:$0xff] %v10281_v39  ;;  %v710_v61 = vsub.f32 %v575_v9, %v678_v20  ;;  %v15300_v9 = vld [vmem:[#allocation79_spill] sm:$0xff] }
 0x316   : > { %v2585_v43 = vpop.f32.mrf.mxu3  ;;  %15297 = vst [vmem:[#allocation66_spill] sm:$0xff] %v10286_v14  ;;  %v679_v58 = vmul.f32 16.0, %v647_v50 }
 0x317   : > { %v2646_v60 = vadd.f32 %v2585_v43, %v1811_v51  ;;  %v15295_v51 = vld [vmem:[#allocation36_spill] sm:$0xff]  ;;  %vm742_vm15 = vcmp.ne.f32.partialorder %v710_v61, 0.0  ;;  %vm838_vm0 = vcmp.ne.f32.partialorder %v710_v61, 15.0 }
 0x318   : > { %v2822_v6 = vpop.f32.mrf.mxu0  ;;  %v15296_v43 = vld [vmem:[#allocation76_spill] sm:$0xff]  ;;  %v711_v50 = vsub.f32 %v576_v7, %v679_v58  ;;  %v547_v7 = vadd.s32 152, %v10024_v49 }
 0x319   : > { %v2944_v1 = vadd.f32 %v2912_v41, %v2646_v60  ;;  %v2881_v57 = vadd.f32 %v2822_v6, %v15293_v44  ;;  %v1814_v10 = vadd.f32 %v15296_v43, %v15295_v51  ;;  %v15298_v41 = vld [vmem:[#allocation77_spill] sm:$0xff] }
 0x31a   : > { %v2913_v60 = vmul.f32 %v10281_v39, %v15298_v41  ;;  %v15301_v44 = vld [vmem:[#allocation37_spill] sm:$0xff]  ;;  %vm743_vm1 = vcmp.ne.f32.partialorder %v711_v50, 0.0  ;;  %vm839_vm2 = vcmp.ne.f32.partialorder %v711_v50, 15.0  ;;  %v548_v50 = vadd.s32 160, %v10024_v49 }
 0x31b   : > { %v10278_v0 = vadd.f32 %v2976_v56, %v2944_v1  ;;  %2627 = vmatmul.bf16.gmra.mxu3 %v2478_v53  ;;  %2861 = vmatmul.bf16.gmra.mxu0 %v2712_v19  ;;  %v616_v53 = vmul.f32 %v10027_v31, %v577_v45  ;;  %v546_v19 = vadd.s32 144, %v10024_v49  ;;  %v2977_v32 = vmul.f32 %v10286_v14, %v2881_v57  ;;  %v15299_v1 = vld [vmem:[#allocation78_spill] sm:$0xff]  ;;  %v15302_v51 = vld [vmem:[#allocation81_spill] sm:$0xff] }
 0x31c   : > { %v2155_v20 = vadd.f32 %v15300_v9, %v15299_v1  ;;  %v2414_v43 = vadd.f32 %v15302_v51, %v15301_v44  ;;  %v15310_v44 = vld [vmem:[#allocation83_spill] sm:$0xff] }
 0x31d   : > { %v578_v41 = vcvt.s32.f32 %v546_v19  ;;  %v15307_v19 = vld [vmem:[#allocation82_spill] sm:$0xff] }
 0x31e   : > { %v2588_v8 = vpop.f32.mrf.mxu3 }
 0x31f   : > { %v2647_v6 = vadd.f32 %v2588_v8, %v1814_v10  ;;  %v10300_v10 = vsel %vm742_vm15, 1.0, %v10046_v18  ;;  %v648_v8 = vfloor.f32 %v616_v53  ;;  %v617_v61 = vmul.f32 %v10027_v31, %v578_v41 }
 0x320   : > { %v2824_v56 = vpop.f32.mrf.mxu0  ;;  %15303 = vst [vmem:[#allocation68_spill] sm:$0xff] %v10300_v10  ;;  %v2914_v1 = vmul.f32 %v10300_v10, %v2414_v43 }
 0x321   : > { %v2945_v28 = vadd.f32 %v2913_v60, %v2647_v6  ;;  %v2882_v57 = vadd.f32 %v2824_v56, %v2155_v20  ;;  %v10305_v60 = vsel %vm838_vm0, 1.0, %v10046_v18  ;;  %v10315_v56 = vsel %vm743_vm1, 1.0, %v10046_v18 }
 0x322   : > { %15306 = vst [vmem:[#allocation31_spill] sm:$0xff] %v10305_v60  ;;  %v649_v20 = vfloor.f32 %v617_v61 }
 0x323   : > { %v10297_v54 = vadd.f32 %v2977_v32, %v2945_v28  ;;  %v680_v32 = vmul.f32 16.0, %v648_v8  ;;  %v2978_v58 = vmul.f32 %v10305_v60, %v2882_v57  ;;  %15308 = vst [vmem:[#allocation69_spill] sm:$0xff] %v10315_v56  ;;  %v579_v8 = vcvt.s32.f32 %v547_v7  ;;  %v15312_v57 = vld [vmem:[#allocation84_spill] sm:$0xff] }
 0x325   : > { %v712_v43 = vsub.f32 %v577_v45, %v680_v32  ;;  %v618_v61 = vmul.f32 %v10027_v31, %v579_v8  ;;  %v15313_v45 = vld [vmem:[#allocation85_spill] sm:$0xff]  ;;  %v15314_v32 = vld [vmem:[#allocation86_spill] sm:$0xff] }
 0x326   : > { %v2590_v6 = vpop.f32.mrf.mxu3  ;;  %v2160_v7 = vadd.f32 %v15314_v32, %v15313_v45 }
 0x327   : > { %v2648_v9 = vadd.f32 %v2590_v6, %v1816_v46  ;;  %v15309_v46 = vld [vmem:[#allocation41_spill] sm:$0xff]  ;;  %v10320_v6 = vsel %vm839_vm2, 1.0, %v10046_v18  ;;  %vm744_vm3 = vcmp.ne.f32.partialorder %v712_v43, 0.0  ;;  %vm840_vm4 = vcmp.ne.f32.partialorder %v712_v43, 15.0 }
 0x328   : > { %v2827_v28 = vpop.f32.mrf.mxu0  ;;  %v1819_v51 = vadd.f32 %v15310_v44, %v15309_v46  ;;  %15311 = vst [vmem:[#allocation70_spill] sm:$0xff] %v10320_v6  ;;  %v15315_v46 = vld [vmem:[#allocation42_spill] sm:$0xff]  ;;  %v15316_v44 = vld [vmem:[#allocation88_spill] sm:$0xff]  ;;  %v650_v12 = vfloor.f32 %v618_v61 }
 0x329   : > { %v2946_v53 = vadd.f32 %v2914_v1, %v2648_v9  ;;  %v2883_v38 = vadd.f32 %v2827_v28, %v15307_v19  ;;  %v2915_v1 = vmul.f32 %v10315_v56, %v15312_v57  ;;  %v681_v28 = vmul.f32 16.0, %v649_v20  ;;  %v15318_v57 = vld [vmem:[#allocation44_spill] sm:$0xff]  ;;  %v15333_v56 = vld [vmem:[#allocation94_spill] sm:$0xff] }
 0x32a   : > { %v2416_v60 = vadd.f32 %v15316_v44, %v15315_v46  ;;  %v1821_v13 = vadd.f32 %v15319_v4, %v15318_v57  ;;  %v15321_v4 = vld [vmem:[#allocation89_spill] sm:$0xff]  ;;  %v15323_v57 = vld [vmem:[#allocation46_spill] sm:$0xff] }
 0x32b   : > { %v10312_v21 = vadd.f32 %v2978_v58, %v2946_v53  ;;  %v2979_v53 = vmul.f32 %v10320_v6, %v2883_v38  ;;  %v713_v20 = vsub.f32 %v578_v41, %v681_v28  ;;  %v682_v41 = vmul.f32 16.0, %v650_v12 }
 0x32d   : > { %vm745_vm5 = vcmp.ne.f32.partialorder %v713_v20, 0.0  ;;  %vm841_vm6 = vcmp.ne.f32.partialorder %v713_v20, 15.0  ;;  %v714_v6 = vsub.f32 %v579_v8, %v682_v41  ;;  %v15328_v8 = vld [vmem:[#allocation93_spill] sm:$0xff] }
 0x32e   : > { %v2593_v14 = vpop.f32.mrf.mxu3 }
 0x32f   : > { %v2649_v9 = vadd.f32 %v2593_v14, %v1819_v51  ;;  %v10334_v14 = vsel %vm744_vm3, 1.0, %v10046_v18  ;;  %v580_v51 = vcvt.s32.f32 %v548_v50  ;;  %vm746_vm7 = vcmp.ne.f32.partialorder %v714_v6, 0.0 }
 0x330   : > { %v2829_v58 = vpop.f32.mrf.mxu0  ;;  %15317 = vst [vmem:[#allocation71_spill] sm:$0xff] %v10334_v14  ;;  %v2916_v45 = vmul.f32 %v10334_v14, %v2416_v60  ;;  %vm842_vm8 = vcmp.ne.f32.partialorder %v714_v6, 15.0 }
 0x331   : > { %v2947_v19 = vadd.f32 %v2915_v1, %v2649_v9  ;;  %v2884_v38 = vadd.f32 %v2829_v58, %v2160_v7  ;;  %v10339_v1 = vsel %vm840_vm4, 1.0, %v10046_v18  ;;  %v619_v43 = vmul.f32 %v10027_v31, %v580_v51  ;;  %v10346_v58 = vpop.f32.mrf.mxu1  ;;  %v10348_v7 = vpop.f32.mrf.mxu2 }
 0x332   : > { %15320 = vst [vmem:[#allocation72_spill] sm:$0xff] %v10339_v1 }
 0x333   : > { %v10331_v16 = vadd.f32 %v2979_v53, %v2947_v19  ;;  %v549_v53 = vadd.s32 168, %v10024_v49  ;;  %v2980_v28 = vmul.f32 %v10339_v1, %v2884_v38  ;;  %v651_v60 = vfloor.f32 %v619_v43 }
 0x334   : > { %v10358_v38 = vsel %vm841_vm6, 1.0, %v10046_v18 }
 0x335   : > { %v581_v44 = vcvt.s32.f32 %v549_v53  ;;  %15325 = vst [vmem:[#allocation74_spill] sm:$0xff] %v10358_v38 }
 0x336   : > { %v2595_v9 = vpop.f32.mrf.mxu3 }
 0x337   : > { %v2650_v32 = vadd.f32 %v2595_v9, %v1821_v13  ;;  %v10353_v13 = vsel %vm745_vm5, 1.0, %v10046_v18  ;;  %v15324_v9 = vld [vmem:[#allocation90_spill] sm:$0xff]  ;;  %v620_v20 = vmul.f32 %v10027_v31, %v581_v44 }
 0x338   : > { %v2832_v19 = vpop.f32.mrf.mxu0  ;;  %15322 = vst [vmem:[#allocation32_spill] sm:$0xff] %v10353_v13  ;;  %v1824_v12 = vadd.f32 %v15324_v9, %v15323_v57  ;;  %v15327_v57 = vld [vmem:[#allocation92_spill] sm:$0xff]  ;;  %v15329_v9 = vld [vmem:[#allocation47_spill] sm:$0xff] }
 0x339   : > { %v2948_v50 = vadd.f32 %v2916_v45, %v2650_v32  ;;  %v2885_v61 = vadd.f32 %v2832_v19, %v15321_v4  ;;  %v15326_v32 = vld [vmem:[#allocation91_spill] sm:$0xff]  ;;  %v2165_v41 = vadd.f32 %v15328_v8, %v15327_v57  ;;  %v2418_v63 = vadd.f32 %v15330_v40, %v15329_v9 }
 0x33a   : > { %v2917_v19 = vmul.f32 %v10353_v13, %v15326_v32  ;;  %v15332_v13 = vld [vmem:[#allocation49_spill] sm:$0xff]  ;;  %v10377_v57 = vsel %vm842_vm8, 1.0, %v10046_v18  ;;  %v15337_v9 = vld [vmem:[#allocation51_spill] sm:$0xff] }
 0x33b   : > { %v10350_v46 = vadd.f32 %v2980_v28, %v2948_v50  ;;  %v683_v28 = vmul.f32 16.0, %v651_v60  ;;  %v550_v50 = vadd.s32 176, %v10024_v49  ;;  %v2981_v43 = vmul.f32 %v10358_v38, %v2885_v61  ;;  %v2172_v61 = vpop.f32.mrf.mxu1  ;;  %15334 = vst [vmem:[#allocation73_spill] sm:$0xff] %v10377_v57 }
 0x33c   : > { %v10372_v60 = vsel %vm746_vm7, 1.0, %v10046_v18  ;;  %v1826_v10 = vadd.f32 %v15333_v56, %v15332_v13  ;;  %v15335_v13 = vld [vmem:[#allocation96_spill] sm:$0xff] }
 0x33d   : > { %15331 = vst [vmem:[#allocation34_spill] sm:$0xff] %v10372_v60  ;;  %v582_v32 = vcvt.s32.f32 %v550_v50  ;;  %v2918_v40 = vmul.f32 %v10372_v60, %v2418_v63 }
 0x33e   : > { %v2598_v45 = vpop.f32.mrf.mxu3 }
 0x33f   : > { %v2651_v4 = vadd.f32 %v2598_v45, %v1824_v12  ;;  %v715_v12 = vsub.f32 %v580_v51, %v683_v28  ;;  %v652_v45 = vfloor.f32 %v620_v20  ;;  %v551_v28 = vadd.s32 184, %v10024_v49 }
 0x340   : > { %v2834_v1 = vpop.f32.mrf.mxu0 }
 0x341   : > { %v2949_v53 = vadd.f32 %v2917_v19, %v2651_v4  ;;  %v2374_v19 = vpop.f32.mrf.mxu2  ;;  %v2886_v4 = vadd.f32 %v2834_v1, %v2165_v41  ;;  %vm747_vm9 = vcmp.ne.f32.partialorder %v715_v12, 0.0  ;;  %v684_v6 = vmul.f32 16.0, %v652_v45  ;;  %v15338_v45 = vld [vmem:[#allocation97_spill] sm:$0xff] }
 0x342   : > { %vm843_vm10 = vcmp.ne.f32.partialorder %v715_v12, 15.0  ;;  %v10387_v41 = vsel %vm747_vm9, 1.0, %v10046_v18  ;;  %v583_v38 = vcvt.s32.f32 %v551_v28 }
 0x343   : > { %v10369_v14 = vadd.f32 %v2981_v43, %v2949_v53  ;;  %v621_v53 = vmul.f32 %v10027_v31, %v582_v32  ;;  %v2982_v20 = vmul.f32 %v10377_v57, %v2886_v4  ;;  %15336 = vst [vmem:[#allocation75_spill] sm:$0xff] %v10387_v41  ;;  %v716_v63 = vsub.f32 %v581_v44, %v684_v6  ;;  %v15340_v4 = vld [vmem:[#allocation98_spill] sm:$0xff] }
 0x344   : > { %v10392_v60 = vsel %vm843_vm10, 1.0, %v10046_v18  ;;  %v622_v44 = vmul.f32 %v10027_v31, %v583_v38  ;;  %v552_v6 = vadd.s32 192, %v10024_v49 }
 0x345   : > { %15339 = vst [vmem:[#allocation36_spill] sm:$0xff] %v10392_v60  ;;  %vm748_vm11 = vcmp.ne.f32.partialorder %v716_v63, 0.0  ;;  %vm844_vm12 = vcmp.ne.f32.partialorder %v716_v63, 15.0  ;;  %v553_v63 = vadd.s32 200, %v10024_v49 }
 0x346   : > { %v2600_v8 = vpop.f32.mrf.mxu3  ;;  %v654_v30 = vfloor.f32 %v622_v44  ;;  %v584_v35 = vcvt.s32.f32 %v552_v6 }
 0x347   : > { %v2652_v43 = vadd.f32 %v2600_v8, %v1826_v10  ;;  %v653_v10 = vfloor.f32 %v621_v53  ;;  %v1829_v8 = vadd.f32 %v15338_v45, %v15337_v9  ;;  %v15342_v45 = vld [vmem:[#allocation52_spill] sm:$0xff] }
 0x348   : > { %v2837_v51 = vpop.f32.mrf.mxu0  ;;  %v2420_v57 = vadd.f32 %v10348_v7, %v15342_v45 }
 0x349   : > { %v2950_v56 = vadd.f32 %v2918_v40, %v2652_v43  ;;  %v2887_v50 = vadd.f32 %v2837_v51, %v15335_v13  ;;  %v2919_v40 = vmul.f32 %v10387_v41, %v15340_v4  ;;  %v2174_v43 = vpop.f32.mrf.mxu1  ;;  %v2376_v51 = vpop.f32.mrf.mxu2  ;;  %v685_v12 = vmul.f32 16.0, %v653_v10  ;;  %v15341_v13 = vld [vmem:[#allocation99_spill] sm:$0xff]  ;;  %v15345_v41 = vld [vmem:[#allocation100_spill] sm:$0xff] }
 0x34a   : > { %v2170_v9 = vadd.f32 %v10346_v58, %v15341_v13 }
 0x34b   : > { %v10384_v1 = vadd.f32 %v2982_v20, %v2950_v56  ;;  %v2983_v53 = vmul.f32 %v10392_v60, %v2887_v50  ;;  %v717_v10 = vsub.f32 %v582_v32, %v685_v12  ;;  %v623_v32 = vmul.f32 %v10027_v31, %v584_v35 }
 0x34d   : > { %vm749_vm13 = vcmp.ne.f32.partialorder %v717_v10, 0.0  ;;  %vm845_vm14 = vcmp.ne.f32.partialorder %v717_v10, 15.0  ;;  %v655_v23 = vfloor.f32 %v623_v32  ;;  %v10432_v10 = vadd.s32 208, %v10024_v49  ;;  %v15354_v32 = vld [vmem:[#allocation58_spill] sm:$0xff] }
 0x34e   : > { %v2603_v39 = vpop.f32.mrf.mxu3 }
 0x34f   : > { %v2653_v20 = vadd.f32 %v2603_v39, %v1829_v8  ;;  %v10406_v39 = vsel %vm748_vm11, 1.0, %v10046_v18  ;;  %v15344_v8 = vld [vmem:[#allocation54_spill] sm:$0xff] }
 0x350   : > { %v2839_v56 = vpop.f32.mrf.mxu0  ;;  %15343 = vst [vmem:[#allocation76_spill] sm:$0xff] %v10406_v39  ;;  %v1831_v33 = vadd.f32 %v15345_v41, %v15344_v8 }
 0x351   : > { %v2951_v28 = vadd.f32 %v2919_v40, %v2653_v20  ;;  %v2888_v50 = vadd.f32 %v2839_v56, %v2170_v9  ;;  %v10411_v40 = vsel %vm844_vm12, 1.0, %v10046_v18  ;;  %v2920_v20 = vmul.f32 %v10406_v39, %v2420_v57  ;;  %v2177_v13 = vpop.f32.mrf.mxu1  ;;  %v2379_v12 = vpop.f32.mrf.mxu2  ;;  %v15347_v56 = vld [vmem:[#allocation101_spill] sm:$0xff]  ;;  %v15348_v9 = vld [vmem:[#allocation55_spill] sm:$0xff] }
 0x352   : > { %15346 = vst [vmem:[#allocation77_spill] sm:$0xff] %v10411_v40  ;;  %v2173_v6 = vadd.f32 %v2172_v61, %v15347_v56  ;;  %v2421_v45 = vadd.f32 %v2374_v19, %v15348_v9  ;;  %v585_v57 = vcvt.s32.f32 %v553_v63  ;;  %v687_v63 = vmul.f32 16.0, %v655_v23 }
 0x353   : > { %v10403_v4 = vadd.f32 %v2983_v53, %v2951_v28  ;;  %v686_v28 = vmul.f32 16.0, %v654_v30  ;;  %v2984_v41 = vmul.f32 %v10411_v40, %v2888_v50  ;;  %v15351_v30 = vld [vmem:[#allocation102_spill] sm:$0xff]  ;;  %v10427_v50 = vsel %vm845_vm14, 1.0, %v10046_v18 }
 0x354   : > { %15352 = vst [vmem:[#allocation79_spill] sm:$0xff] %v10427_v50  ;;  %v586_v23 = vcvt.s32.f32 %v10432_v10  ;;  %v15363_v40 = vld [vmem:[#allocation106_spill] sm:$0xff] }
 0x355   : > { %v718_v39 = vsub.f32 %v583_v38, %v686_v28  ;;  %v15353_v28 = vld [vmem:[#allocation103_spill] sm:$0xff] }
 0x356   : > { %v2605_v58 = vpop.f32.mrf.mxu3 }
 0x357   : > { %v2654_v7 = vadd.f32 %v2605_v58, %v1831_v33  ;;  %v10422_v33 = vsel %vm749_vm13, 1.0, %v10046_v18  ;;  %v15350_v58 = vld [vmem:[#allocation57_spill] sm:$0xff]  ;;  %vm750_vm15 = vcmp.ne.f32.partialorder %v718_v39, 0.0  ;;  %v2422_v18 = vadd.f32 %v2376_v51, %v15354_v32 }
 0x358   : > { %v2842_v53 = vpop.f32.mrf.mxu0  ;;  %15349 = vst [vmem:[#allocation78_spill] sm:$0xff] %v10422_v33  ;;  %v1834_v60 = vadd.f32 %v15351_v30, %v15350_v58  ;;  %v2921_v61 = vmul.f32 %v10422_v33, %v2421_v45  ;;  %vm846_vm0 = vcmp.ne.f32.partialorder %v718_v39, 15.0  ;;  %v15356_v30 = vld [vmem:[#allocation60_spill] sm:$0xff]  ;;  %v10453_v32 = vadd.s32 216, %v10024_v49 }
 0x359   : > { %v2952_v44 = vadd.f32 %v2920_v20, %v2654_v7  ;;  %v2889_v62 = vadd.f32 %v2842_v53, %v2173_v6  ;;  %v624_v7 = vmul.f32 %v10027_v31, %v585_v57  ;;  %v2175_v53 = vadd.f32 %v2174_v43, %v15353_v28  ;;  %v2179_v56 = vpop.f32.mrf.mxu1  ;;  %v2381_v6 = vpop.f32.mrf.mxu2 }
 0x35a   : > { %v625_v28 = vmul.f32 %v10027_v31, %v586_v23 }
 0x35b   : > { %v10419_v8 = vadd.f32 %v2984_v41, %v2952_v44  ;;  %v2985_v44 = vmul.f32 %v10427_v50, %v2889_v62  ;;  %v656_v58 = vfloor.f32 %v624_v7  ;;  %v15357_v62 = vld [vmem:[#allocation104_spill] sm:$0xff] }
 0x35c   : > { %v15362_v50 = vld [vmem:[#allocation40_spill] sm:$0xff] }
 0x35e   : > { %v2608_v20 = vpop.f32.mrf.mxu3 }
 0x35f   : > { %v2655_v19 = vadd.f32 %v2608_v20, %v1834_v60  ;;  %v10439_v60 = vld [vmem:[#allocation2] sm:$0xff]  ;;  %v1836_v20 = vadd.f32 %v15357_v62, %v15356_v30 }
 0x360   : > { %v2844_v41 = vpop.f32.mrf.mxu0  ;;  %v10442_v45 = vsel %vm750_vm15, 1.0, %v10439_v60  ;;  %v10448_v51 = vsel %vm846_vm0, 1.0, %v10439_v60 }
 0x361   : > { %v2953_v38 = vadd.f32 %v2921_v61, %v2655_v19  ;;  %15355 = vst [vmem:[#allocation37_spill] sm:$0xff] %v10442_v45  ;;  %v719_v61 = vsub.f32 %v584_v35, %v687_v63  ;;  %v2890_v43 = vadd.f32 %v2844_v41, %v2175_v53  ;;  %v15359_v35 = vld [vmem:[#allocation105_spill] sm:$0xff]  ;;  %v15360_v63 = vld [vmem:[#allocation22_spill] sm:$0xff]  ;;  %v2182_v33 = vpop.f32.mrf.mxu1 }
 0x362   : > { %15358 = vst [vmem:[#allocation81_spill] sm:$0xff] %v10448_v51  ;;  %v2178_v41 = vadd.f32 %v2177_v13, %v15359_v35  ;;  %v2423_v53 = vadd.f32 %v2379_v12, %v15360_v63  ;;  %v10469_v13 = vld [vmem:[%s14961_s2] ss:$0 sm:$0xff] }
 0x363   : > { %v10437_v9 = vadd.f32 %v2985_v44, %v2953_v38  ;;  %v2922_v44 = vmul.f32 %v10442_v45, %v2422_v18  ;;  %v688_v38 = vmul.f32 16.0, %v656_v58  ;;  %vm751_vm1 = vcmp.ne.f32.partialorder %v719_v61, 0.0 }
 0x364   : > { %v2986_v10 = vmul.f32 %v10448_v51, %v2890_v43  ;;  %vm847_vm2 = vcmp.ne.f32.partialorder %v719_v61, 15.0  ;;  %v10461_v18 = vsel %vm751_vm1, 1.0, %v10439_v60  ;;  %v1839_v45 = vadd.f32 %v15363_v40, %v15362_v50  ;;  %v2384_v43 = vpop.f32.mrf.mxu2 }
 0x365   : > { %15361 = vst [vmem:[#allocation39_spill] sm:$0xff] %v10461_v18  ;;  %v720_v58 = vsub.f32 %v585_v57, %v688_v38  ;;  %v10472_v61 = vsel %vm847_vm2, 1.0, %v10439_v60  ;;  %v2923_v57 = vmul.f32 %v10461_v18, %v2423_v53 }
 0x366   : > { %v2610_v19 = vpop.f32.mrf.mxu3  ;;  %15364 = vst [vmem:[#allocation80_spill] sm:$0xff] %v10472_v61 }
 0x367   : > { %v2656_v39 = vadd.f32 %v2610_v19, %v1836_v20  ;;  %v657_v20 = vfloor.f32 %v625_v28  ;;  %v587_v19 = vcvt.s32.f32 %v10453_v32  ;;  %vm752_vm3 = vcmp.ne.f32.partialorder %v720_v58, 0.0 }
 0x368   : > { %v2847_v7 = vpop.f32.mrf.mxu0  ;;  %v10481_v28 = vadd.s32 224, %v10024_v49  ;;  %vm848_vm4 = vcmp.ne.f32.partialorder %v720_v58, 15.0 }
 0x369   : > { %v2954_v30 = vadd.f32 %v2922_v44, %v2656_v39  ;;  %v2891_v12 = vadd.f32 %v2847_v7, %v2178_v41  ;;  %v10477_v39 = vadd.f32 %v10469_v13, %v10078_v5  ;;  %v689_v40 = vmul.f32 16.0, %v657_v20  ;;  %v15366_v41 = vld [vmem:[#allocation23_spill] sm:$0xff] }
 0x36a   : > { %v626_v50 = vmul.f32 %v10027_v31, %v587_v19  ;;  %v10485_v7 = vadd.f32 %v10469_v13, %v10062_v55  ;;  %v2424_v63 = vadd.f32 %v2381_v6, %v15366_v41  ;;  %v10498_v20 = vadd.f32 %v10469_v13, %v10110_v47 }
 0x36b   : > { %v10458_v62 = vadd.f32 %v2986_v10, %v2954_v30  ;;  %v10489_v10 = vadd.f32 %v10469_v13, %v10094_v52  ;;  %v2987_v5 = vmul.f32 %v10472_v61, %v2891_v12  ;;  %v10503_v52 = vsel %vm752_vm3, 1.0, %v10439_v60 }
 0x36c   : > { %v3065_v53 = vadd.f32 %v10477_v39, %v10485_v7  ;;  %15367 = vst [vmem:[#allocation82_spill] sm:$0xff] %v10503_v52  ;;  %v658_v12 = vfloor.f32 %v626_v50  ;;  %v10511_v41 = vadd.f32 %v10469_v13, %v10126_v36 }
 0x36e   : > { %v2613_v44 = vpop.f32.mrf.mxu3 }
 0x36f   : > { %v2657_v38 = vadd.f32 %v2613_v44, %v1839_v45  ;;  %v15365_v45 = vld [vmem:[#allocation107_spill] sm:$0xff]  ;;  %v721_v44 = vsub.f32 %v586_v23, %v689_v40  ;;  %v2184_v23 = vpop.f32.mrf.mxu1  ;;  %v2386_v40 = vpop.f32.mrf.mxu2 }
 0x370   : > { %v2849_v32 = vpop.f32.mrf.mxu0  ;;  %v2180_v35 = vadd.f32 %v2179_v56, %v15365_v45  ;;  %v15368_v56 = vld [vmem:[#allocation43_spill] sm:$0xff]  ;;  %v3066_v45 = vadd.f32 %v3065_v53, %v10489_v10 }
 0x371   : > { %v2955_v30 = vadd.f32 %v2923_v57, %v2657_v38  ;;  %v588_v57 = vcvt.s32.f32 %v10481_v28  ;;  %v15369_v38 = vld [vmem:[#allocation108_spill] sm:$0xff]  ;;  %v10520_v28 = vadd.f32 %v10469_v13, %v10142_v3  ;;  %vm753_vm5 = vcmp.ne.f32.partialorder %v721_v44, 0.0  ;;  %v15371_v3 = vld [vmem:[#allocation109_spill] sm:$0xff] }
 0x372   : > { %v1841_v6 = vadd.f32 %v15369_v38, %v15368_v56  ;;  %v2892_v47 = vadd.f32 %v2849_v32, %v2180_v35  ;;  %v3067_v50 = vadd.f32 %v3066_v45, %v10498_v20  ;;  %v690_v56 = vmul.f32 16.0, %v658_v12 }
 0x373   : > { %v10500_v55 = vadd.f32 %v2987_v5, %v2955_v30  ;;  %v10514_v5 = vsel %vm848_vm4, 1.0, %v10439_v60  ;;  %v2924_v30 = vmul.f32 %v10503_v52, %v2424_v63  ;;  %v627_v36 = vmul.f32 %v10027_v31, %v588_v57 }
 0x374   : > { %15370 = vst [vmem:[#allocation41_spill] sm:$0xff] %v10514_v5  ;;  %v10524_v32 = vadd.s32 232, %v10024_v49  ;;  %v3068_v38 = vadd.f32 %v3067_v50, %v10511_v41  ;;  %v10529_v63 = vadd.f32 %v10469_v13, %v10158_v22  ;;  %v2988_v45 = vmul.f32 %v10514_v5, %v2892_v47 }
 0x375   : > { %v2183_v51 = vadd.f32 %v2182_v33, %v15371_v3  ;;  %v10537_v52 = vadd.f32 %v10469_v13, %v10174_v2  ;;  %vm849_vm6 = vcmp.ne.f32.partialorder %v721_v44, 15.0  ;;  %v10542_v50 = vsel %vm753_vm5, 1.0, %v10439_v60  ;;  %v15375_v33 = vld [vmem:[#allocation110_spill] sm:$0xff] }
 0x376   : > { %v2615_v58 = vpop.f32.mrf.mxu3  ;;  %v3069_v12 = vadd.f32 %v3068_v38, %v10520_v28  ;;  %15373 = vst [vmem:[#allocation83_spill] sm:$0xff] %v10542_v50  ;;  %v722_v22 = vsub.f32 %v587_v19, %v690_v56  ;;  %v659_v26 = vfloor.f32 %v627_v36  ;;  %v589_v47 = vcvt.s32.f32 %v10524_v32 }
 0x377   : > { %v2658_v53 = vadd.f32 %v2615_v58, %v1841_v6  ;;  %v15372_v6 = vld [vmem:[#allocation25_spill] sm:$0xff]  ;;  %v10550_v38 = vadd.f32 %v10469_v13, %v10193_v59  ;;  %v10559_v56 = vadd.f32 %v10469_v13, %v10208_v25  ;;  %v10563_v59 = vadd.s32 240, %v10024_v49 }
 0x378   : > { %v2852_v35 = vpop.f32.mrf.mxu0  ;;  %v2425_v58 = vadd.f32 %v2384_v43, %v15372_v6  ;;  %v3070_v43 = vadd.f32 %v3069_v12, %v10529_v63  ;;  %vm754_vm7 = vcmp.ne.f32.partialorder %v722_v22, 0.0  ;;  %v691_v32 = vmul.f32 16.0, %v659_v26  ;;  %v2389_v6 = vpop.f32.mrf.mxu2  ;;  %v15378_v26 = vld [vmem:[#allocation28_spill] sm:$0xff] }
 0x379   : > { %v2956_v61 = vadd.f32 %v2924_v30, %v2658_v53  ;;  %v15374_v30 = vld [vmem:[#allocation45_spill] sm:$0xff]  ;;  %v2893_v2 = vadd.f32 %v2852_v35, %v2183_v51  ;;  %v628_v3 = vmul.f32 %v10027_v31, %v589_v47  ;;  %v2187_v35 = vpop.f32.mrf.mxu1  ;;  %v10576_v5 = vadd.f32 %v10469_v13, %v10242_v11 }
 0x37a   : > { %v1844_v53 = vadd.f32 %v15375_v33, %v15374_v30  ;;  %v3071_v19 = vadd.f32 %v3070_v43, %v10537_v52  ;;  %v15377_v33 = vld [vmem:[#allocation111_spill] sm:$0xff]  ;;  %v2426_v43 = vadd.f32 %v2386_v40, %v15378_v26  ;;  %vm850_vm8 = vcmp.ne.f32.partialorder %v722_v22, 15.0 }
 0x37b   : > { %v10539_v18 = vadd.f32 %v2988_v45, %v2956_v61  ;;  %v10553_v61 = vsel %vm849_vm6, 1.0, %v10439_v60  ;;  %v2925_v45 = vmul.f32 %v10542_v50, %v2425_v58  ;;  %v10568_v58 = vadd.f32 %v10469_v13, %v10227_v17 }
 0x37c   : > { %15376 = vst [vmem:[#allocation84_spill] sm:$0xff] %v10553_v61  ;;  %v3072_v12 = vadd.f32 %v3071_v19, %v10550_v38  ;;  %v2989_v25 = vmul.f32 %v10553_v61, %v2893_v2  ;;  %v10582_v17 = vsel %vm754_vm7, 1.0, %v10439_v60  ;;  %v723_v19 = vsub.f32 %v588_v57, %v691_v32 }
 0x37d   : > { %15379 = vst [vmem:[#allocation85_spill] sm:$0xff] %v10582_v17  ;;  %v660_v2 = vfloor.f32 %v628_v3  ;;  %v10590_v11 = vadd.f32 %v10469_v13, %v10261_v34  ;;  %v10599_v32 = vadd.f32 %v10469_v13, %v10278_v0  ;;  %v10603_v34 = vadd.s32 248, %v10024_v49  ;;  %v15383_v0 = vld [vmem:[#allocation113_spill] sm:$0xff] }
 0x37e   : > { %v2618_v44 = vpop.f32.mrf.mxu3  ;;  %vm755_vm9 = vcmp.ne.f32.partialorder %v723_v19, 0.0  ;;  %vm851_vm10 = vcmp.ne.f32.partialorder %v723_v19, 15.0 }
 0x37f   : > { %v2659_v36 = vadd.f32 %v2618_v44, %v1844_v53  ;;  %v2185_v53 = vadd.f32 %v2184_v23, %v15377_v33  ;;  %v3073_v44 = vadd.f32 %v3072_v12, %v10559_v56  ;;  %v15380_v23 = vld [vmem:[#allocation48_spill] sm:$0xff]  ;;  %v2926_v33 = vmul.f32 %v10582_v17, %v2426_v43 }
 0x380   : > { %v2854_v51 = vpop.f32.mrf.mxu0  ;;  %v10608_v43 = vadd.f32 %v10469_v13, %v10297_v54  ;;  %v10616_v17 = vadd.f32 %v10469_v13, %v10312_v21  ;;  %v10622_v54 = vsel %vm755_vm9, 1.0, %v10439_v60  ;;  %v10630_v21 = vadd.f32 %v10469_v13, %v10331_v16 }
 0x381   : > { %v2957_v30 = vadd.f32 %v2925_v45, %v2659_v36  ;;  %v590_v45 = vcvt.s32.f32 %v10563_v59  ;;  %v15381_v36 = vld [vmem:[#allocation112_spill] sm:$0xff]  ;;  %v3074_v12 = vadd.f32 %v3073_v44, %v10568_v58  ;;  %v692_v59 = vmul.f32 16.0, %v660_v2  ;;  %v2189_v2 = vpop.f32.mrf.mxu1  ;;  %15385 = vst [vmem:[#allocation42_spill] sm:$0xff] %v10622_v54 }
 0x382   : > { %v1846_v40 = vadd.f32 %v15381_v36, %v15380_v23  ;;  %v2188_v36 = vadd.f32 %v2187_v35, %v15383_v0  ;;  %v591_v35 = vcvt.s32.f32 %v10603_v34 }
 0x383   : > { %v10578_v50 = vadd.f32 %v2989_v25, %v2957_v30  ;;  %v2894_v25 = vadd.f32 %v2854_v51, %v2185_v53  ;;  %v10593_v30 = vsel %vm850_vm8, 1.0, %v10439_v60  ;;  %v3075_v57 = vadd.f32 %v3074_v12, %v10576_v5 }
 0x384   : > { %15382 = vst [vmem:[#allocation86_spill] sm:$0xff] %v10593_v30  ;;  %v629_v26 = vmul.f32 %v10027_v31, %v590_v45  ;;  %v630_v34 = vmul.f32 %v10027_v31, %v591_v35 }
 0x385   : > { %v3076_v53 = vadd.f32 %v3075_v57, %v10590_v11  ;;  %v2990_v44 = vmul.f32 %v10593_v30, %v2894_v25  ;;  %v724_v25 = vsub.f32 %v589_v47, %v692_v59  ;;  %v10639_v59 = vadd.f32 %v10469_v13, %v10350_v46  ;;  %v15390_v30 = vld [vmem:[#allocation33_spill] sm:$0xff] }
 0x386   : > { %v2620_v22 = vpop.f32.mrf.mxu3 }
 0x387   : > { %v2660_v3 = vadd.f32 %v2620_v22, %v1846_v40  ;;  %v15384_v40 = vld [vmem:[#allocation30_spill] sm:$0xff]  ;;  %v2391_v22 = vpop.f32.mrf.mxu2  ;;  %v3077_v61 = vadd.f32 %v3076_v53, %v10599_v32  ;;  %vm756_vm11 = vcmp.ne.f32.partialorder %v724_v25, 0.0  ;;  %vm852_vm12 = vcmp.ne.f32.partialorder %v724_v25, 15.0 }
 0x388   : > { %v2857_v51 = vpop.f32.mrf.mxu0  ;;  %v2427_v12 = vadd.f32 %v2389_v6, %v15384_v40  ;;  %v15386_v6 = vld [vmem:[#allocation50_spill] sm:$0xff]  ;;  %v2428_v46 = vadd.f32 %v2391_v22, %v15390_v30  ;;  %v10663_v22 = vadd.f32 %v10469_v13, %v10403_v4 }
 0x389   : > { %v2958_v23 = vadd.f32 %v2926_v33, %v2660_v3  ;;  %v661_v33 = vfloor.f32 %v629_v26  ;;  %v15387_v3 = vld [vmem:[#allocation114_spill] sm:$0xff]  ;;  %v3078_v53 = vadd.f32 %v3077_v61, %v10608_v43 }
 0x38a   : > { %v1849_v0 = vadd.f32 %v15387_v3, %v15386_v6  ;;  %v2927_v40 = vmul.f32 %v10622_v54, %v2427_v12  ;;  %v15389_v3 = vld [vmem:[#allocation115_spill] sm:$0xff]  ;;  %v15392_v54 = vld [vmem:[#allocation53_spill] sm:$0xff] }
 0x38b   : > { %v10618_v57 = vadd.f32 %v2990_v44, %v2958_v23  ;;  %v2895_v44 = vadd.f32 %v2857_v51, %v2188_v36  ;;  %v10633_v23 = vsel %vm851_vm10, 1.0, %v10439_v60  ;;  %v3079_v47 = vadd.f32 %v3078_v53, %v10616_v17 }
 0x38c   : > { %15388 = vst [vmem:[#allocation88_spill] sm:$0xff] %v10633_v23  ;;  %v693_v61 = vmul.f32 16.0, %v661_v33  ;;  %v10645_v36 = vadd.f32 %v10469_v13, %v10369_v14  ;;  %v2190_v53 = vadd.f32 %v2189_v2, %v15389_v3  ;;  %v10653_v33 = vadd.f32 %v10469_v13, %v10384_v1 }
 0x38d   : > { %v3080_v51 = vadd.f32 %v3079_v47, %v10630_v21  ;;  %v2991_v12 = vmul.f32 %v10633_v23, %v2895_v44  ;;  %v662_v47 = vfloor.f32 %v630_v34  ;;  %v15393_v44 = vld [vmem:[#allocation116_spill] sm:$0xff]  ;;  %v15399_v23 = vld [vmem:[#allocation118_spill] sm:$0xff] }
 0x38e   : > { %v2623_v19 = vpop.f32.mrf.mxu3  ;;  %v725_v14 = vsub.f32 %v590_v45, %v693_v61 }
 0x38f   : > { %v2661_v26 = vadd.f32 %v2623_v19, %v1849_v0  ;;  %v3081_v0 = vadd.f32 %v3080_v51, %v10639_v59  ;;  %v10656_v19 = vsel %vm756_vm11, 1.0, %v10439_v60  ;;  %v2394_v2 = vpop.f32.mrf.mxu2  ;;  %v10666_v51 = vsel %vm852_vm12, 1.0, %v10439_v60 }
 0x390   : > { %v2859_v16 = vpop.f32.mrf.mxu0  ;;  %15391 = vst [vmem:[#allocation44_spill] sm:$0xff] %v10656_v19  ;;  %vm757_vm13 = vcmp.ne.f32.partialorder %v725_v14, 0.0  ;;  %v694_v34 = vmul.f32 16.0, %v662_v47  ;;  %vm853_vm14 = vcmp.ne.f32.partialorder %v725_v14, 15.0 }
 0x391   : > { %v2959_v6 = vadd.f32 %v2927_v40, %v2661_v26  ;;  %v1851_v40 = vadd.f32 %v15393_v44, %v15392_v54  ;;  %v2192_v26 = vpop.f32.mrf.mxu1  ;;  %v3082_v30 = vadd.f32 %v3081_v0, %v10645_v36  ;;  %v2896_v1 = vadd.f32 %v2859_v16, %v2190_v53  ;;  %15394 = vst [vmem:[#allocation87_spill] sm:$0xff] %v10666_v51  ;;  %v15396_v44 = vld [vmem:[#allocation35_spill] sm:$0xff] }
 0x392   : > { %v10672_v54 = vadd.f32 %v10469_v13, %v10419_v8  ;;  %v10677_v16 = vadd.f32 %v10469_v13, %v10437_v9  ;;  %v726_v9 = vsub.f32 %v591_v35, %v694_v34 }
 0x393   : > { %v3023_v31 = vadd.f32 %v2991_v12, %v2959_v6  ;;  %v2928_v12 = vmul.f32 %v10656_v19, %v2428_v46  ;;  %v3083_v45 = vadd.f32 %v3082_v30, %v10653_v33  ;;  %v2992_v3 = vmul.f32 %v10666_v51, %v2896_v1  ;;  %v15395_v46 = vld [vmem:[#allocation117_spill] sm:$0xff] }
 0x394   : > { %v2193_v0 = vadd.f32 %v2192_v26, %v15395_v46  ;;  %v2429_v30 = vadd.f32 %v2394_v2, %v15396_v44  ;;  %v10695_v26 = vadd.f32 %v10469_v13, %v10500_v55  ;;  %vm758_vm15 = vcmp.ne.f32.partialorder %v726_v9, 0.0 }
 0x395   : > { %v3084_v4 = vadd.f32 %v3083_v45, %v10663_v22  ;;  %v15398_v45 = vld [vmem:[#allocation56_spill] sm:$0xff]  ;;  %vm854_vm0 = vcmp.ne.f32.partialorder %v726_v9, 15.0 }
 0x396   : > { %v2625_v25 = vpop.f32.mrf.mxu3  ;;  %v1854_v1 = vadd.f32 %v15399_v23, %v15398_v45  ;;  %v10704_v23 = vadd.f32 %v10469_v13, %v10539_v18  ;;  %v10717_v18 = vadd.f32 %v10469_v13, %v10618_v57 }
 0x397   : > { %v2662_v61 = vadd.f32 %v2625_v25, %v1851_v40  ;;  %v3085_v8 = vadd.f32 %v3084_v4, %v10672_v54  ;;  %v10685_v40 = vadd.f32 %v10469_v13, %v10458_v62  ;;  %v10688_v25 = vsel %vm757_vm13, 1.0, %v10439_v60 }
 0x398   : > { %v2862_v6 = vpop.f32.mrf.mxu0  ;;  %15397 = vst [vmem:[#allocation89_spill] sm:$0xff] %v10688_v25  ;;  %v2929_v14 = vmul.f32 %v10688_v25, %v2429_v30  ;;  %v15402_v30 = vld [vmem:[#allocation38_spill] sm:$0xff] }
 0x399   : > { %v2960_v53 = vadd.f32 %v2928_v12, %v2662_v61  ;;  %v3086_v12 = vadd.f32 %v3085_v8, %v10677_v16  ;;  %v2897_v2 = vadd.f32 %v2862_v6, %v2193_v0  ;;  %v10698_v61 = vsel %vm853_vm14, 1.0, %v10439_v60  ;;  %v2194_v4 = vpop.f32.mrf.mxu1  ;;  %v15401_v0 = vld [vmem:[#allocation119_spill] sm:$0xff] }
 0x39a   : > { %15400 = vst [vmem:[#allocation46_spill] sm:$0xff] %v10698_v61  ;;  %v10709_v6 = vadd.f32 %v10469_v13, %v10578_v50  ;;  %v2195_v44 = vadd.f32 %v2194_v4, %v15401_v0  ;;  %v15404_v50 = vld [vmem:[#allocation59_spill] sm:$0xff]  ;;  %v10726_v4 = vadd.f32 %v10469_v13, %v3023_v31 }
 0x39b   : > { %v3024_v47 = vadd.f32 %v2992_v3, %v2960_v53  ;;  %v2396_v3 = vpop.f32.mrf.mxu2  ;;  %v3087_v35 = vadd.f32 %v3086_v12, %v10685_v40  ;;  %v2993_v53 = vmul.f32 %v10698_v61, %v2897_v2 }
 0x39c   : > { %v2430_v8 = vadd.f32 %v2396_v3, %v15402_v30 }
 0x39d   : > { %v3088_v55 = vadd.f32 %v3087_v35, %v10695_v26  ;;  %v15405_v35 = vld [vmem:[#allocation120_spill] sm:$0xff] }
 0x39e   : > { %v2628_v62 = vpop.f32.mrf.mxu3  ;;  %v1856_v2 = vadd.f32 %v15405_v35, %v15404_v50  ;;  %v15407_v35 = vlaneseq }
 0x39f   : > { %v2663_v34 = vadd.f32 %v2628_v62, %v1854_v1  ;;  %v3089_v12 = vadd.f32 %v3088_v55, %v10704_v23  ;;  %v10720_v62 = vsel %vm758_vm15, 1.0, %v10439_v60 }
 0x3a0   : > { %v2864_v45 = vpop.f32.mrf.mxu0  ;;  %15403 = vst [vmem:[#allocation90_spill] sm:$0xff] %v10720_v62  ;;  %v2930_v57 = vmul.f32 %v10720_v62, %v2430_v8 }
 0x3a1   : > { %v2961_v46 = vadd.f32 %v2929_v14, %v2663_v34  ;;  %v3090_v14 = vadd.f32 %v3089_v12, %v10709_v6  ;;  %v2898_v3 = vadd.f32 %v2864_v45, %v2195_v44  ;;  %v10729_v34 = vsel %vm854_vm0, 1.0, %v10439_v60 }
 0x3a2   : > { %15406 = vst [vmem:[#allocation91_spill] sm:$0xff] %v10729_v34 }
 0x3a3   : > { %v3025_v1 = vadd.f32 %v2993_v53, %v2961_v46  ;;  %v3091_v9 = vadd.f32 %v3090_v14, %v10717_v18  ;;  %v10734_v53 = vadd.f32 %v10469_v13, %v3024_v47  ;;  %v2994_v31 = vmul.f32 %v10729_v34, %v2898_v3 }
 0x3a4   : > { %v922_v14 = vadd.s32 1, %v10024_v49 }
 0x3a5   : > { %v3092_v0 = vadd.f32 %v3091_v9, %v10726_v4  ;;  %v10738_v30 = vadd.f32 %v10469_v13, %v3025_v1 }
 0x3a6   : > { %v2630_v55 = vpop.f32.mrf.mxu3 }
 0x3a7   : > { %v2664_v46 = vadd.f32 %v2630_v55, %v1856_v2  ;;  %v3093_v45 = vadd.f32 %v3092_v0, %v10734_v53  ;;  %v920_v2 = vand.u32 127, %v15407_v35 }
 0x3a9   : > { %v2962_v44 = vadd.f32 %v2930_v57, %v2664_v46  ;;  %v3094_v50 = vadd.f32 %v3093_v45, %v10738_v30  ;;  %vm921_vm1 = vcmp.ge.s32.totalorder %v920_v2, %v10024_v49  ;;  %vm923_vm2 = vcmp.lt.s32.totalorder %v920_v2, %v922_v14 }
 0x3aa   : > { %vm924_vm3 = vmand %vm921_vm1, %vm923_vm2 }
 0x3ab   : > { %v3026_v12 = vadd.f32 %v2994_v31, %v2962_v44  ;;  %v10751_v46 = vsel %vm924_vm3, 1.0, %v10439_v60 }
 0x3ac   : > { %15408 = vst [vmem:[#allocation92_spill] sm:$0xff] %v10751_v46 }
 0x3ad   : > { %v10744_v8 = vadd.f32 %v10469_v13, %v3026_v12 }
 0x3af   : > { %v3095_v47 = vadd.f32 %v3094_v50, %v10744_v8 }
 0x3b1   : > { %v3096_v55 = vrot.slane %v3095_v47, 4 }
 0x3b3   : > { %v3097_v1 = vadd.f32 %v3096_v55, %v3095_v47 }
 0x3b5   : > { %v3098_v3 = vrot.slane %v3097_v1, 2 }
 0x3b7   : > { %v3099_v57 = vadd.f32 %v3098_v3, %v3097_v1 }
 0x3b9   : > { %v3100_v9 = vrot.slane %v3099_v57, 1 }
 0x3bb   : > { %v3101_v13 = vadd.f32 %v3100_v9, %v3099_v57 }
 0x3bd   : > { %v3102_v0 = vmul.f32 %v10751_v46, %v3101_v13 }
 0x3bf   : > { %3103 = vadd.xlane.f32.xlu0 %v3102_v0 }
 0x432   : > { %v3104_v31 = vpop.xlane.xlu0 %3103 }
 0x433   : > { %v3105_v44 = vmul.f32 %v10751_v46, %v3104_v31 }
 0x435   : > { %v3106_v45 = vrot.slane %v3105_v44, 4 }
 0x437   : > { %v3107_v12 = vadd.f32 %v3106_v45, %v3105_v44 }
 0x439   : > { %v3108_v50 = vrot.slane %v3107_v12, 2 }
 0x43b   : > { %v3109_v47 = vadd.f32 %v3108_v50, %v3107_v12 }
 0x43d   : > { %v3110_v49 = vrot.slane %v3109_v47, 1 }
 0x43f   : > { %v3111_v35 = vadd.f32 %v3110_v49, %v3109_v47 }
 0x441   : > { %v10755_v2 = vmul.f32 0.00390625, %v3111_v35 }
 0x443   : > { %v10759_v14 = vsub.f32 %v10485_v7, %v10755_v2  ;;  %v10763_v60 = vsub.f32 %v10477_v39, %v10755_v2  ;;  %v10767_v55 = vsub.f32 %v10489_v10, %v10755_v2  ;;  %v10775_v57 = vsub.f32 %v10498_v20, %v10755_v2 }
 0x444   : > { %v10779_v7 = vsub.f32 %v10511_v41, %v10755_v2  ;;  %v10785_v10 = vsub.f32 %v10520_v28, %v10755_v2  ;;  %v10791_v20 = vsub.f32 %v10529_v63, %v10755_v2  ;;  %v10797_v44 = vsub.f32 %v10537_v52, %v10755_v2 }
 0x445   : > { %v3145_v1 = vmul.f32 %v10759_v14, %v10759_v14  ;;  %v3146_v3 = vmul.f32 %v10763_v60, %v10763_v60  ;;  %v3147_v39 = vmul.f32 %v10767_v55, %v10767_v55  ;;  %v3148_v13 = vmul.f32 %v10775_v57, %v10775_v57 }
 0x446   : > { %v3149_v41 = vmul.f32 %v10779_v7, %v10779_v7  ;;  %v3150_v28 = vmul.f32 %v10785_v10, %v10785_v10  ;;  %v10803_v12 = vsub.f32 %v10550_v38, %v10755_v2  ;;  %v3151_v63 = vmul.f32 %v10791_v20, %v10791_v20 }
 0x447   : > { %v3177_v9 = vadd.f32 %v3146_v3, %v3145_v1  ;;  %v10809_v47 = vsub.f32 %v10559_v56, %v10755_v2  ;;  %v3152_v52 = vmul.f32 %v10797_v44, %v10797_v44  ;;  %v10815_v35 = vsub.f32 %v10568_v58, %v10755_v2 }
 0x448   : > { %v3153_v38 = vmul.f32 %v10803_v12, %v10803_v12  ;;  %v10821_v3 = vsub.f32 %v10576_v5, %v10755_v2 }
 0x449   : > { %v3178_v0 = vadd.f32 %v3177_v9, %v3147_v39  ;;  %v3154_v56 = vmul.f32 %v10809_v47, %v10809_v47  ;;  %v10827_v9 = vsub.f32 %v10590_v11, %v10755_v2  ;;  %v3155_v58 = vmul.f32 %v10815_v35, %v10815_v35 }
 0x44a   : > { %v3156_v5 = vmul.f32 %v10821_v3, %v10821_v3 }
 0x44b   : > { %v3179_v31 = vadd.f32 %v3178_v0, %v3148_v13  ;;  %v10833_v0 = vsub.f32 %v10599_v32, %v10755_v2  ;;  %v3157_v11 = vmul.f32 %v10827_v9, %v10827_v9 }
 0x44d   : > { %v3180_v45 = vadd.f32 %v3179_v31, %v3149_v41  ;;  %v10839_v31 = vsub.f32 %v10608_v43, %v10755_v2  ;;  %v3158_v32 = vmul.f32 %v10833_v0, %v10833_v0 }
 0x44f   : > { %v3181_v50 = vadd.f32 %v3180_v45, %v3150_v28  ;;  %v10845_v45 = vsub.f32 %v10616_v17, %v10755_v2  ;;  %v3159_v43 = vmul.f32 %v10839_v31, %v10839_v31 }
 0x451   : > { %v3182_v49 = vadd.f32 %v3181_v50, %v3151_v63  ;;  %v8425_v50 = vld [vmem:[#allocation12 + $0xf8] sm:$0xff]  ;;  %v3160_v17 = vmul.f32 %v10845_v45, %v10845_v45 }
 0x452   : > { %4316 = vmatpush.bf16.msra.mxu1 %v8425_v50 }
 0x453   : > { %v3183_v1 = vadd.f32 %v3182_v49, %v3152_v52  ;;  %v10851_v52 = vsub.f32 %v10630_v21, %v10755_v2 }
 0x455   : > { %v3184_v39 = vadd.f32 %v3183_v1, %v3153_v38  ;;  %v8424_v38 = vld [vmem:[#allocation12 + $0xf0] sm:$0xff]  ;;  %v10857_v1 = vsub.f32 %v10639_v59, %v10755_v2  ;;  %v3161_v21 = vmul.f32 %v10851_v52, %v10851_v52 }
 0x456   : > { %4317 = vmatpush.bf16.msra.mxu1 %v8424_v38  ;;  %v10899_v38 = vsub.f32 %v10695_v26, %v10755_v2 }
 0x457   : > { %v3185_v13 = vadd.f32 %v3184_v39, %v3154_v56  ;;  %v10863_v39 = vsub.f32 %v10645_v36, %v10755_v2  ;;  %v3162_v59 = vmul.f32 %v10857_v1, %v10857_v1 }
 0x458   : > { %v3169_v26 = vmul.f32 %v10899_v38, %v10899_v38 }
 0x459   : > { %v3186_v41 = vadd.f32 %v3185_v13, %v3155_v58  ;;  %v10869_v13 = vsub.f32 %v10653_v33, %v10755_v2  ;;  %v3163_v36 = vmul.f32 %v10863_v39, %v10863_v39 }
 0x45b   : > { %v3187_v28 = vadd.f32 %v3186_v41, %v3156_v5  ;;  %v10875_v41 = vsub.f32 %v10663_v22, %v10755_v2  ;;  %v3164_v33 = vmul.f32 %v10869_v13, %v10869_v13 }
 0x45d   : > { %v3188_v63 = vadd.f32 %v3187_v28, %v3157_v11  ;;  %v10881_v28 = vsub.f32 %v10672_v54, %v10755_v2  ;;  %v3165_v22 = vmul.f32 %v10875_v41, %v10875_v41 }
 0x45f   : > { %v3189_v49 = vadd.f32 %v3188_v63, %v3158_v32  ;;  %v10887_v63 = vsub.f32 %v10677_v16, %v10755_v2  ;;  %v3166_v54 = vmul.f32 %v10881_v28, %v10881_v28 }
 0x461   : > { %v3190_v56 = vadd.f32 %v3189_v49, %v3159_v43  ;;  %v10893_v43 = vsub.f32 %v10685_v40, %v10755_v2  ;;  %v3167_v16 = vmul.f32 %v10887_v63, %v10887_v63 }
 0x463   : > { %v3191_v58 = vadd.f32 %v3190_v56, %v3160_v17  ;;  %v10905_v56 = vsub.f32 %v10704_v23, %v10755_v2  ;;  %v3168_v40 = vmul.f32 %v10893_v43, %v10893_v43 }
 0x465   : > { %v3192_v5 = vadd.f32 %v3191_v58, %v3161_v21  ;;  %v10911_v58 = vsub.f32 %v10709_v6, %v10755_v2  ;;  %v3170_v23 = vmul.f32 %v10905_v56, %v10905_v56 }
 0x467   : > { %v3193_v11 = vadd.f32 %v3192_v5, %v3162_v59  ;;  %v8423_v5 = vld [vmem:[#allocation12 + $0xe8] sm:$0xff]  ;;  %v3171_v6 = vmul.f32 %v10911_v58, %v10911_v58 }
 0x468   : > { %4318 = vmatpush.bf16.msra.mxu1 %v8423_v5 }
 0x469   : > { %v3194_v32 = vadd.f32 %v3193_v11, %v3163_v36  ;;  %v10917_v36 = vsub.f32 %v10717_v18, %v10755_v2 }
 0x46b   : > { %v3195_v50 = vadd.f32 %v3194_v32, %v3164_v33  ;;  %v8422_v33 = vld [vmem:[#allocation12 + $0xe0] sm:$0xff]  ;;  %v10923_v32 = vsub.f32 %v10726_v4, %v10755_v2  ;;  %v3172_v18 = vmul.f32 %v10917_v36, %v10917_v36 }
 0x46c   : > { %4319 = vmatpush.bf16.msra.mxu1 %v8422_v33 }
 0x46d   : > { %v3196_v49 = vadd.f32 %v3195_v50, %v3165_v22  ;;  %v10929_v50 = vsub.f32 %v10734_v53, %v10755_v2  ;;  %v3173_v4 = vmul.f32 %v10923_v32, %v10923_v32 }
 0x46f   : > { %v3197_v17 = vadd.f32 %v3196_v49, %v3166_v54  ;;  %v8421_v49 = vld [vmem:[#allocation12 + $0xd8] sm:$0xff]  ;;  %v3174_v53 = vmul.f32 %v10929_v50, %v10929_v50 }
 0x470   : > { %4320 = vmatpush.bf16.msra.mxu1 %v8421_v49 }
 0x471   : > { %v3198_v21 = vadd.f32 %v3197_v17, %v3167_v16  ;;  %v10935_v16 = vsub.f32 %v10738_v30, %v10755_v2 }
 0x473   : > { %v3199_v59 = vadd.f32 %v3198_v21, %v3168_v40  ;;  %v10941_v40 = vsub.f32 %v10744_v8, %v10755_v2 }
 0x475   : > { %v3200_v11 = vadd.f32 %v3199_v59, %v3169_v26  ;;  %v8420_v26 = vld [vmem:[#allocation12 + $0xd0] sm:$0xff]  ;;  %v3175_v59 = vmul.f32 %v10935_v16, %v10935_v16  ;;  %v3176_v30 = vmul.f32 %v10941_v40, %v10941_v40 }
 0x476   : > { %4321 = vmatpush.bf16.msra.mxu1 %v8420_v26 }
 0x477   : > { %v3201_v22 = vadd.f32 %v3200_v11, %v3170_v23 }
 0x479   : > { %v3202_v54 = vadd.f32 %v3201_v22, %v3171_v6 }
 0x47b   : > { %v3203_v17 = vadd.f32 %v3202_v54, %v3172_v18 }
 0x47d   : > { %v3204_v21 = vadd.f32 %v3203_v17, %v3173_v4 }
 0x47f   : > { %v3205_v5 = vadd.f32 %v3204_v21, %v3174_v53 }
 0x481   : > { %v3206_v23 = vadd.f32 %v3205_v5, %v3175_v59 }
 0x483   : > { %v3207_v11 = vadd.f32 %v3206_v23, %v3176_v30 }
 0x485   : > { %v3208_v33 = vrot.slane %v3207_v11, 4 }
 0x487   : > { %v3209_v6 = vadd.f32 %v3208_v33, %v3207_v11 }
 0x489   : > { %v3210_v8 = vrot.slane %v3209_v6, 2 }
 0x48b   : > { %v3211_v2 = vadd.f32 %v3210_v8, %v3209_v6 }
 0x48d   : > { %v3212_v22 = vrot.slane %v3211_v2, 1 }
 0x48f   : > { %v3213_v18 = vadd.f32 %v3212_v22, %v3211_v2  ;;  %v10951_v22 = vld [vmem:[#allocation9] ss:$0 sm:$0xff] }
 0x491   : > { %v3214_v54 = vmul.f32 %v10751_v46, %v3213_v18 }
 0x493   : > { %3215 = vadd.xlane.f32.xlu0 %v3214_v54 }
 0x506   : > { %v3216_v49 = vpop.xlane.xlu0 %3215 }
 0x507   : > { %v3217_v4 = vmul.f32 %v10751_v46, %v3216_v49 }
 0x509   : > { %v3218_v17 = vrot.slane %v3217_v4, 4 }
 0x50b   : > { %v3219_v53 = vadd.f32 %v3218_v17, %v3217_v4 }
 0x50d   : > { %v3220_v21 = vrot.slane %v3219_v53, 2 }
 0x50f   : > { %v3221_v34 = vadd.f32 %v3220_v21, %v3219_v53 }
 0x511   : > { %v3222_v61 = vrot.slane %v3221_v34, 1 }
 0x513   : > { %v3223_v59 = vadd.f32 %v3222_v61, %v3221_v34 }
 0x515   : > { %v3224_v26 = vmul.f32 0.00390625, %v3223_v59 }
 0x517   : > { %v3225_v5 = vadd.f32 1e-05, %v3224_v26  ;;  %v10963_v26 = vld [vmem:[#allocation10] ss:$0 sm:$0xff] }
 0x519   : > { %8723 = vrsqrt.f32 %v3225_v5  ;;  %vm3232_vm5 = vweird.f32 %v3225_v5 }
 0x51f   : > { %v8724_v30 = vpop.eup %8723 }
 0x520   : > { %v3227_v23 = vmul.f32 %v8724_v30, %v3225_v5  ;;  %vm3233_vm4 = vweird.f32 %v8724_v30 }
 0x521   : > { %vm3234_vm6 = vmor %vm3232_vm5, %vm3233_vm4 }
 0x522   : > { %v3228_v11 = vmul.f32 %v8724_v30, %v3227_v23 }
 0x524   : > { %v3229_v33 = vmul.f32 0.5, %v3228_v11 }
 0x526   : > { %v3230_v6 = vsub.f32 1.5, %v3229_v33 }
 0x528   : > { %v3231_v8 = vmul.f32 %v8724_v30, %v3230_v6 }
 0x52a   : > { %v3235_v2 = vsel %vm3234_vm6, %v8724_v30, %v3231_v8 }
 0x52b   : > { %v3236_v18 = vmul.f32 %v3235_v2, %v10759_v14  ;;  %v3237_v54 = vmul.f32 %v3235_v2, %v10763_v60  ;;  %v3238_v61 = vmul.f32 %v3235_v2, %v10767_v55  ;;  %v3239_v34 = vmul.f32 %v3235_v2, %v10775_v57 }
 0x52c   : > { %v3240_v49 = vmul.f32 %v3235_v2, %v10779_v7  ;;  %v3241_v4 = vmul.f32 %v3235_v2, %v10785_v10  ;;  %v3242_v17 = vmul.f32 %v3235_v2, %v10791_v20  ;;  %v3243_v53 = vmul.f32 %v3235_v2, %v10797_v44 }
 0x52d   : > { %v3244_v21 = vmul.f32 %v3235_v2, %v10803_v12  ;;  %v3245_v59 = vmul.f32 %v3235_v2, %v10809_v47  ;;  %v3246_v14 = vmul.f32 %v3235_v2, %v10815_v35  ;;  %v3247_v60 = vmul.f32 %v3235_v2, %v10821_v3 }
 0x52e   : > { %v3248_v55 = vmul.f32 %v3235_v2, %v10827_v9  ;;  %v3271_v57 = vmul.f32 %v10951_v22, %v3236_v18  ;;  %v3249_v7 = vmul.f32 %v3235_v2, %v10833_v0  ;;  %v3250_v10 = vmul.f32 %v3235_v2, %v10839_v31 }
 0x52f   : > { %v3251_v20 = vmul.f32 %v3235_v2, %v10845_v45  ;;  %v3272_v44 = vmul.f32 %v10951_v22, %v3237_v54  ;;  %v3252_v12 = vmul.f32 %v3235_v2, %v10851_v52  ;;  %v3253_v47 = vmul.f32 %v3235_v2, %v10857_v1 }
 0x530   : > { %v3254_v35 = vmul.f32 %v3235_v2, %v10863_v39  ;;  %v3273_v3 = vmul.f32 %v10951_v22, %v3238_v61  ;;  %v3255_v9 = vmul.f32 %v3235_v2, %v10869_v13  ;;  %v3256_v5 = vmul.f32 %v3235_v2, %v10875_v41 }
 0x531   : > { %v10980_v0 = vmul.f32 %v3235_v2, %v10881_v28  ;;  %v3274_v31 = vmul.f32 %v10951_v22, %v3239_v34  ;;  %v10984_v45 = vmul.f32 %v3235_v2, %v10887_v63  ;;  %v10987_v52 = vmul.f32 %v3235_v2, %v10893_v43 }
 0x532   : > { %v3275_v1 = vmul.f32 %v10951_v22, %v3240_v49  ;;  %v10991_v39 = vadd.f32 %v10963_v26, %v3271_v57  ;;  %v10994_v13 = vmul.f32 %v3235_v2, %v10899_v38  ;;  %v10997_v41 = vmul.f32 %v3235_v2, %v10905_v56 }
 0x533   : > { %v3276_v28 = vmul.f32 %v10951_v22, %v3241_v4  ;;  %v11001_v30 = vadd.f32 %v10963_v26, %v3272_v44  ;;  %v11004_v63 = vmul.f32 %v3235_v2, %v10911_v58  ;;  %v11007_v43 = vmul.f32 %v3235_v2, %v10917_v36 }
 0x534   : > { %15409 = vst [vmem:[#allocation93_spill] sm:$0xff] %v10991_v39  ;;  %v3277_v23 = vmul.f32 %v10951_v22, %v3242_v17  ;;  %v11011_v11 = vadd.f32 %v10963_v26, %v3273_v3  ;;  %v11014_v38 = vmul.f32 %v3235_v2, %v10923_v32  ;;  %v11017_v56 = vmul.f32 %v3235_v2, %v10929_v50 }
 0x535   : > { %15410 = vst [vmem:[#allocation47_spill] sm:$0xff] %v11001_v30  ;;  %v3278_v33 = vmul.f32 %v10951_v22, %v3243_v53  ;;  %v11021_v6 = vadd.f32 %v10963_v26, %v3274_v31  ;;  %v11024_v58 = vmul.f32 %v3235_v2, %v10935_v16  ;;  %v3279_v36 = vmul.f32 %v10951_v22, %v3244_v21 }
 0x536   : > { %15411 = vst [vmem:[#allocation95_spill] sm:$0xff] %v11011_v11  ;;  %v11028_v8 = vadd.f32 %v10963_v26, %v3275_v1  ;;  %v7868_v18 = vmul.f32 -1.442695, %v10991_v39  ;;  %v11032_v32 = vmul.f32 %v3235_v2, %v10941_v40  ;;  %v3280_v50 = vmul.f32 %v10951_v22, %v3245_v59 }
 0x537   : > { %15412 = vst [vmem:[#allocation49_spill] sm:$0xff] %v11021_v6  ;;  %v11036_v54 = vadd.f32 %v10963_v26, %v3276_v28  ;;  %v7869_v61 = vmul.f32 -1.442695, %v11001_v30  ;;  %v3281_v16 = vmul.f32 %v10951_v22, %v3246_v14  ;;  %v3282_v34 = vmul.f32 %v10951_v22, %v3247_v60 }
 0x538   : > { %15413 = vst [vmem:[#allocation94_spill] sm:$0xff] %v11028_v8  ;;  %v11042_v49 = vadd.f32 %v10963_v26, %v3277_v23  ;;  %v7870_v4 = vmul.f32 -1.442695, %v11011_v11  ;;  %v3283_v17 = vmul.f32 %v10951_v22, %v3248_v55  ;;  %v3284_v40 = vmul.f32 %v10951_v22, %v3249_v7 }
 0x539   : > { %15414 = vst [vmem:[#allocation96_spill] sm:$0xff] %v11036_v54  ;;  %v11048_v2 = vadd.f32 %v10963_v26, %v3278_v33  ;;  %v7871_v53 = vmul.f32 -1.442695, %v11021_v6  ;;  %v3285_v21 = vmul.f32 %v10951_v22, %v3250_v10  ;;  %v11053_v59 = vadd.f32 %v10963_v26, %v3279_v36 }
 0x53a   : > { %15415 = vst [vmem:[#allocation51_spill] sm:$0xff] %v11042_v49  ;;  %8725 = vpow2.f32 %v7868_v18  ;;  %v7872_v14 = vmul.f32 -1.442695, %v11028_v8  ;;  %v3286_v60 = vmul.f32 %v10951_v22, %v3251_v20  ;;  %v11058_v57 = vadd.f32 %v10963_v26, %v3280_v50 }
 0x53b   : > { %15416 = vst [vmem:[#allocation97_spill] sm:$0xff] %v11048_v2  ;;  %8727 = vpow2.f32 %v7869_v61  ;;  %v7873_v55 = vmul.f32 -1.442695, %v11036_v54  ;;  %v3287_v7 = vmul.f32 %v10951_v22, %v3252_v12  ;;  %v11063_v44 = vadd.f32 %v10963_v26, %v3281_v16 }
 0x53c   : > { %15417 = vst [vmem:[#allocation98_spill] sm:$0xff] %v11053_v59  ;;  %8729 = vpow2.f32 %v7870_v4  ;;  %v7874_v10 = vmul.f32 -1.442695, %v11042_v49  ;;  %v3288_v3 = vmul.f32 %v10951_v22, %v3253_v47  ;;  %v11068_v31 = vadd.f32 %v10963_v26, %v3282_v34 }
 0x53d   : > { %15418 = vst [vmem:[#allocation99_spill] sm:$0xff] %v11058_v57  ;;  %8731 = vpow2.f32 %v7871_v53  ;;  %v7875_v20 = vmul.f32 -1.442695, %v11048_v2  ;;  %v3289_v1 = vmul.f32 %v10951_v22, %v3254_v35  ;;  %v11073_v28 = vadd.f32 %v10963_v26, %v3283_v17 }
 0x53e   : > { %15419 = vst [vmem:[#allocation52_spill] sm:$0xff] %v11063_v44  ;;  %8733 = vpow2.f32 %v7872_v14  ;;  %v7876_v12 = vmul.f32 -1.442695, %v11053_v59  ;;  %v3290_v23 = vmul.f32 %v10951_v22, %v3255_v9  ;;  %v11078_v33 = vadd.f32 %v10963_v26, %v3284_v40 }
 0x53f   : > { %15420 = vst [vmem:[#allocation54_spill] sm:$0xff] %v11068_v31  ;;  %8735 = vpow2.f32 %v7873_v55  ;;  %v7877_v47 = vmul.f32 -1.442695, %v11058_v57  ;;  %v3291_v18 = vmul.f32 %v10951_v22, %v3256_v5  ;;  %v11085_v35 = vadd.f32 %v10963_v26, %v3285_v21 }
 0x540   : > { %15421 = vst [vmem:[#allocation100_spill] sm:$0xff] %v11073_v28  ;;  %v11081_v36 = vpop.eup %8725  ;;  %8737 = vpow2.f32 %v7874_v10  ;;  %v7878_v50 = vmul.f32 -1.442695, %v11063_v44  ;;  %v3292_v9 = vmul.f32 %v10951_v22, %v10980_v0  ;;  %v11093_v16 = vadd.f32 %v10963_v26, %v3286_v60 }
 0x541   : > { %15422 = vst [vmem:[#allocation101_spill] sm:$0xff] %v11078_v33  ;;  %v11088_v61 = vpop.eup %8727  ;;  %8739 = vpow2.f32 %v7875_v20  ;;  %v7879_v34 = vmul.f32 -1.442695, %v11068_v31  ;;  %v3293_v5 = vmul.f32 %v10951_v22, %v10984_v45  ;;  %v11101_v17 = vadd.f32 %v10963_v26, %v3287_v7 }
 0x542   : > { %15423 = vst [vmem:[#allocation55_spill] sm:$0xff] %v11085_v35  ;;  %v11096_v4 = vpop.eup %8729  ;;  %8741 = vpow2.f32 %v7876_v12  ;;  %v7880_v40 = vmul.f32 -1.442695, %v11073_v28  ;;  %v3294_v0 = vmul.f32 %v10951_v22, %v10987_v52  ;;  %v11109_v21 = vadd.f32 %v10963_v26, %v3288_v3 }
 0x543   : > { %15424 = vst [vmem:[#allocation57_spill] sm:$0xff] %v11093_v16  ;;  %v11104_v53 = vpop.eup %8731  ;;  %8743 = vpow2.f32 %v7877_v47  ;;  %v7881_v14 = vmul.f32 -1.442695, %v11078_v33  ;;  %v3295_v45 = vmul.f32 %v10951_v22, %v10994_v13  ;;  %v11117_v55 = vadd.f32 %v10963_v26, %v3289_v1 }
 0x544   : > { %15425 = vst [vmem:[#allocation102_spill] sm:$0xff] %v11101_v17  ;;  %v11112_v60 = vpop.eup %8733  ;;  %8745 = vpow2.f32 %v7878_v50  ;;  %v7882_v7 = vmul.f32 -1.442695, %v11085_v35  ;;  %v3296_v52 = vmul.f32 %v10951_v22, %v10997_v41  ;;  %v11125_v3 = vadd.f32 %v10963_v26, %v3290_v23 }
 0x545   : > { %15426 = vst [vmem:[#allocation103_spill] sm:$0xff] %v11109_v21  ;;  %v11120_v10 = vpop.eup %8735  ;;  %8747 = vpow2.f32 %v7879_v34  ;;  %v7883_v20 = vmul.f32 -1.442695, %v11093_v16  ;;  %v3297_v13 = vmul.f32 %v10951_v22, %v11004_v63  ;;  %v11133_v1 = vadd.f32 %v10963_v26, %v3291_v18 }
 0x546   : > { %15427 = vst [vmem:[#allocation58_spill] sm:$0xff] %v11117_v55  ;;  %v11128_v12 = vpop.eup %8737  ;;  %8749 = vpow2.f32 %v7880_v40  ;;  %v7884_v47 = vmul.f32 -1.442695, %v11101_v17  ;;  %v3298_v41 = vmul.f32 %v10951_v22, %v11007_v43  ;;  %v11141_v23 = vadd.f32 %v10963_v26, %v3292_v9 }
 0x547   : > { %15428 = vst [vmem:[#allocation60_spill] sm:$0xff] %v11125_v3  ;;  %v11136_v50 = vpop.eup %8739  ;;  %8751 = vpow2.f32 %v7881_v14  ;;  %v7885_v34 = vmul.f32 -1.442695, %v11109_v21  ;;  %v3299_v63 = vmul.f32 %v10951_v22, %v11014_v38  ;;  %v11149_v18 = vadd.f32 %v10963_v26, %v3293_v5 }
 0x548   : > { %15429 = vst [vmem:[#allocation104_spill] sm:$0xff] %v11133_v1  ;;  %v11144_v46 = vpop.eup %8741  ;;  %8753 = vpow2.f32 %v7882_v7  ;;  %v7886_v40 = vmul.f32 -1.442695, %v11117_v55  ;;  %v3300_v43 = vmul.f32 %v10951_v22, %v11017_v56  ;;  %v11157_v9 = vadd.f32 %v10963_v26, %v3294_v0 }
 0x549   : > { %15430 = vst [vmem:[#allocation105_spill] sm:$0xff] %v11141_v23  ;;  %v11152_v51 = vpop.eup %8743  ;;  %8755 = vpow2.f32 %v7883_v20  ;;  %v7887_v14 = vmul.f32 -1.442695, %v11125_v3  ;;  %v3301_v38 = vmul.f32 %v10951_v22, %v11024_v58  ;;  %v11165_v5 = vadd.f32 %v10963_v26, %v3295_v45 }
 0x54a   : > { %15431 = vst [vmem:[#allocation22_spill] sm:$0xff] %v11149_v18  ;;  %v11160_v62 = vpop.eup %8745  ;;  %8757 = vpow2.f32 %v7884_v47  ;;  %v7888_v7 = vmul.f32 -1.442695, %v11133_v1  ;;  %v3302_v56 = vmul.f32 %v10951_v22, %v11032_v32  ;;  %v11173_v0 = vadd.f32 %v10963_v26, %v3296_v52 }
 0x54b   : > { %15432 = vst [vmem:[#allocation40_spill] sm:$0xff] %v11157_v9  ;;  %v11168_v25 = vpop.eup %8747  ;;  %8759 = vpow2.f32 %v7885_v34  ;;  %v7889_v20 = vmul.f32 -1.442695, %v11141_v23  ;;  %v11179_v58 = vadd.f32 %v10963_v26, %v3297_v13  ;;  %v11182_v45 = vadd.f32 %v10963_v26, %v3298_v41 }
 0x54c   : > { %15433 = vst [vmem:[#allocation106_spill] sm:$0xff] %v11165_v5  ;;  %v11176_v19 = vpop.eup %8749  ;;  %8761 = vpow2.f32 %v7886_v40  ;;  %v7890_v47 = vmul.f32 -1.442695, %v11149_v18  ;;  %v11188_v22 = vadd.f32 %v10963_v26, %v3299_v63  ;;  %v11191_v32 = vadd.f32 %v10963_v26, %v3300_v43 }
 0x54d   : > { %15434 = vst [vmem:[#allocation107_spill] sm:$0xff] %v11173_v0  ;;  %v11185_v48 = vpop.eup %8751  ;;  %8763 = vpow2.f32 %v7887_v14  ;;  %v7891_v52 = vmul.f32 -1.442695, %v11157_v9  ;;  %v11197_v13 = vadd.f32 %v10963_v26, %v3301_v38  ;;  %v7892_v41 = vmul.f32 -1.442695, %v11165_v5 }
 0x54e   : > { %15435 = vst [vmem:[#allocation23_spill] sm:$0xff] %v11179_v58  ;;  %v11194_v34 = vpop.eup %8753  ;;  %8765 = vpow2.f32 %v7888_v7  ;;  %v11201_v40 = vadd.f32 1.0, %v11081_v36  ;;  %v11206_v63 = vadd.f32 %v10963_v26, %v3302_v56  ;;  %v7893_v43 = vmul.f32 -1.442695, %v11173_v0 }
 0x54f   : > { %15436 = vst [vmem:[#allocation43_spill] sm:$0xff] %v11182_v45  ;;  %v11203_v29 = vpop.eup %8755  ;;  %8767 = vpow2.f32 %v7889_v20  ;;  %v11210_v14 = vadd.f32 1.0, %v11088_v61  ;;  %v7894_v38 = vmul.f32 -1.442695, %v11179_v58  ;;  %v7895_v36 = vmul.f32 -1.442695, %v11182_v45 }
 0x550   : > { %15437 = vst [vmem:[#allocation108_spill] sm:$0xff] %v11188_v22  ;;  %v11212_v27 = vpop.eup %8757  ;;  %8769 = vpow2.f32 %v7890_v47  ;;  %v7896_v37 = vmul.f32 -1.442695, %v11188_v22  ;;  %v11218_v26 = vadd.f32 1.0, %v11096_v4  ;;  %v7897_v20 = vmul.f32 -1.442695, %v11191_v32 }
 0x551   : > { %15438 = vst [vmem:[#allocation109_spill] sm:$0xff] %v11191_v32  ;;  %v8760_v7 = vpop.eup %8759  ;;  %8771 = vpow2.f32 %v7891_v52  ;;  %v7898_v61 = vmul.f32 -1.442695, %v11197_v13  ;;  %v3477_v42 = vand.u32 2147483648, %v11201_v40  ;;  %v11224_v15 = vmul.f32 -1.442695, %v11206_v63 }
 0x552   : > { %15439 = vst [vmem:[#allocation25_spill] sm:$0xff] %v11197_v13  ;;  %v8762_v56 = vpop.eup %8761  ;;  %8773 = vpow2.f32 %v7892_v41  ;;  %v11227_v52 = vadd.f32 1.0, %v11104_v53  ;;  %v3492_v24 = vand.u32 2147483648, %v11210_v14  ;;  %v11231_v41 = vadd.f32 1.0, %v11112_v60 }
 0x553   : > { %15440 = vst [vmem:[#allocation45_spill] sm:$0xff] %v11206_v63  ;;  %v8764_v47 = vpop.eup %8763  ;;  %8775 = vpow2.f32 %v7893_v43  ;;  %v11234_v32 = vadd.f32 1.0, %v11120_v10  ;;  %v11238_v43 = vadd.f32 1.0, %v11128_v12  ;;  %v3507_v63 = vand.u32 2147483648, %v11218_v26 }
 0x554   : > { %v8766_v4 = vpop.eup %8765  ;;  %8777 = vpow2.f32 %v7894_v38  ;;  %v11243_v38 = vadd.f32 1.0, %v11136_v50  ;;  %v11246_v60 = vadd.f32 1.0, %v11144_v46  ;;  %v11248_v10 = vor.u32 1.1754944e-38, %v3477_v42 }
 0x555   : > { %v8768_v22 = vpop.eup %8767  ;;  %8779 = vpow2.f32 %v7895_v36  ;;  %v11251_v36 = vor.u32 1.1754944e-38, %v3492_v24  ;;  %v3522_v53 = vand.u32 2147483648, %v11227_v52  ;;  %v11259_v50 = vadd.f32 1.0, %v11160_v62 }
 0x556   : > { %v8770_v45 = vpop.eup %8769  ;;  %8781 = vpow2.f32 %v7896_v37  ;;  %v11256_v37 = vadd.f32 1.0, %v11152_v51  ;;  %v11264_v0 = vadd.f32 1.0, %v11168_v25  ;;  %v11267_v24 = vor.u32 1.1754944e-38, %v3507_v63 }
 0x557   : > { %v8772_v13 = vpop.eup %8771  ;;  %8783 = vrcp.f32 %v11201_v40  ;;  %v3537_v12 = vand.u32 2147483648, %v11231_v41  ;;  %v11271_v51 = vadd.f32 1.0, %v11176_v19  ;;  %v11274_v62 = vadd.f32 1.0, %v11185_v48 }
 0x558   : > { %v8774_v58 = vpop.eup %8773  ;;  %8785 = vrcp.f32 %v11210_v14  ;;  %v3552_v42 = vand.u32 2147483648, %v11234_v32  ;;  %v11279_v25 = vadd.f32 1.0, %v11194_v34  ;;  %v11281_v18 = vor.u32 1.1754944e-38, %v3522_v53 }
 0x559   : > { %v8776_v46 = vpop.eup %8775  ;;  %8787 = vrcp.f32 %v11218_v26  ;;  %v11286_v19 = vadd.f32 1.0, %v11203_v29  ;;  %v3567_v1 = vand.u32 2147483648, %v11238_v43  ;;  %v11293_v34 = vadd.f32 1.0, %v11212_v27 }
 0x55a   : > { %v8778_v5 = vpop.eup %8777  ;;  %8789 = vrcp.f32 %v11227_v52  ;;  %v11295_v53 = vadd.f32 1.0, %v8760_v7  ;;  %v11297_v55 = vor.u32 1.1754944e-38, %v3537_v12  ;;  %v11304_v29 = vor.u32 1.1754944e-38, %v3552_v42 }
 0x55b   : > { %v8780_v9 = vpop.eup %8779  ;;  %8791 = vrcp.f32 %v11231_v41  ;;  %v3582_v48 = vand.u32 2147483648, %v11243_v38  ;;  %v11311_v27 = vadd.f32 1.0, %v8766_v4  ;;  %v11319_v17 = vor.u32 1.1754944e-38, %v3567_v1 }
 0x55c   : > { %v8782_v23 = vpop.eup %8781  ;;  %8793 = vpow2.f32 %v7897_v20  ;;  %v11301_v20 = vadd.f32 1.0, %v8762_v56  ;;  %v11317_v56 = vadd.f32 1.0, %v8768_v22  ;;  %v11328_v4 = vadd.f32 1.0, %v8772_v13 }
 0x55d   : > { %v11290_v3 = vpop.eup %8783  ;;  %8795 = vpow2.f32 %v7898_v61  ;;  %v11309_v61 = vadd.f32 1.0, %v8764_v47  ;;  %15442 = vst [vmem:[#allocation111_spill] sm:$0xff] %v11311_v27  ;;  %v11326_v47 = vadd.f32 1.0, %v8770_v45  ;;  %v3597_v7 = vand.u32 2147483648, %v11246_v60 }
 0x55e   : > { %v11299_v63 = vpop.eup %8785  ;;  %8797 = vrcp.f32 %v11234_v32  ;;  %15443 = vst [vmem:[#allocation28_spill] sm:$0xff] %v11317_v56  ;;  %v3467_v22 = vmul.f32 %v11290_v3, %v11201_v40  ;;  %v11333_v1 = vor.u32 1.1754944e-38, %v3582_v48  ;;  %v3612_v42 = vand.u32 2147483648, %v11256_v37 }
 0x55f   : > { %v11307_v21 = vpop.eup %8787  ;;  %15441 = vst [vmem:[#allocation110_spill] sm:$0xff] %v11309_v61  ;;  %8799 = vrcp.f32 %v11238_v43  ;;  %v11337_v31 = vadd.f32 1.0, %v8774_v58  ;;  %v11347_v48 = vadd.f32 1.0, %v8776_v46  ;;  %v11355_v59 = vadd.f32 1.0, %v8778_v5 }
 0x560   : > { %v11315_v12 = vpop.eup %8789  ;;  %8801 = vrcp.f32 %v11243_v38  ;;  %15444 = vst [vmem:[#allocation48_spill] sm:$0xff] %v11326_v47  ;;  %v3497_v45 = vmul.f32 %v11307_v21, %v11218_v26  ;;  %v11357_v2 = vadd.f32 1.0, %v8780_v9  ;;  %v11359_v49 = vor.u32 1.1754944e-38, %v3597_v7 }
 0x561   : > { %v11323_v16 = vpop.eup %8791  ;;  %8803 = vpow2.f32 %v11224_v15  ;;  %15445 = vst [vmem:[#allocation112_spill] sm:$0xff] %v11328_v4  ;;  %v3482_v15 = vmul.f32 %v11299_v63, %v11210_v14  ;;  %v3512_v13 = vmul.f32 %v11315_v12, %v11227_v52  ;;  %v11364_v46 = vadd.f32 1.0, %v8782_v23 }
 0x562   : > { %v8794_v35 = vpop.eup %8793  ;;  %15446 = vst [vmem:[#allocation113_spill] sm:$0xff] %v11337_v31  ;;  %v3527_v33 = vmul.f32 %v11323_v16, %v11231_v41  ;;  %8805 = vrcp.f32 %v11246_v60  ;;  %v3468_v8 = vsub.f32 1.0, %v3467_v22  ;;  %vm3471_vm7 = vweird.f32 %v11201_v40 }
 0x563   : > { %v8796_v28 = vpop.eup %8795  ;;  %15447 = vst [vmem:[#allocation30_spill] sm:$0xff] %v11347_v48  ;;  %8807 = vrcp.f32 %v11256_v37  ;;  %v11367_v6 = vor.u32 1.1754944e-38, %v3612_v42  ;;  %v3483_v5 = vsub.f32 1.0, %v3482_v15  ;;  %vm3486_vm8 = vweird.f32 %v11210_v14 }
 0x564   : > { %v11345_v44 = vpop.eup %8797  ;;  %15448 = vst [vmem:[#allocation50_spill] sm:$0xff] %v11355_v59  ;;  %v3498_v9 = vsub.f32 1.0, %v3497_v45  ;;  %v3513_v7 = vsub.f32 1.0, %v3512_v13  ;;  %8809 = vrcp.f32 %v11259_v50  ;;  %v11372_v30 = vadd.f32 1.0, %v8794_v35 }
 0x565   : > { %v11353_v57 = vpop.eup %8799  ;;  %15449 = vst [vmem:[#allocation114_spill] sm:$0xff] %v11357_v2  ;;  %vm3501_vm9 = vweird.f32 %v11218_v26  ;;  %v3528_v23 = vsub.f32 1.0, %v3527_v33  ;;  %v3542_v22 = vmul.f32 %v11345_v44, %v11234_v32  ;;  %v11379_v58 = vadd.f32 1.0, %v8796_v28 }
 0x566   : > { %v11362_v54 = vpop.eup %8801  ;;  %15450 = vst [vmem:[#allocation115_spill] sm:$0xff] %v11364_v46  ;;  %v3557_v42 = vmul.f32 %v11353_v57, %v11238_v43  ;;  %vm3516_vm10 = vweird.f32 %v11227_v52  ;;  %v3627_v45 = vand.u32 2147483648, %v11259_v50  ;;  %v3469_v39 = vmul.f32 %v11290_v3, %v3468_v8 }
 0x567   : > { %15451 = vst [vmem:[#allocation33_spill] sm:$0xff] %v11367_v6  ;;  %v8804_v11 = vpop.eup %8803  ;;  %v3572_v15 = vmul.f32 %v11362_v54, %v11243_v38  ;;  %vm3472_vm11 = vweird.f32 %v11290_v3  ;;  %v3642_v28 = vand.u32 2147483648, %v11264_v0  ;;  %vm3487_vm13 = vweird.f32 %v11299_v63 }
 0x568   : > { %15452 = vst [vmem:[#allocation53_spill] sm:$0xff] %v11372_v30  ;;  %v11386_v13 = vpop.eup %8805  ;;  %v11388_v33 = vadd.f32 1.0, %v8804_v11  ;;  %v3484_v30 = vmul.f32 %v11299_v63, %v3483_v5  ;;  %v3499_v35 = vmul.f32 %v11307_v21, %v3498_v9  ;;  %v3514_v46 = vmul.f32 %v11315_v12, %v3513_v7  ;;  %vm11449_vm12 = vmor %vm3471_vm7, %vm3472_vm11 }
 0x569   : > { %15453 = vst [vmem:[#allocation116_spill] sm:$0xff] %v11379_v58  ;;  %v11394_v58 = vpop.eup %8807  ;;  %v15455_v11 = vand.u32 2147483647, %v11201_v40  ;;  %v3543_v2 = vsub.f32 1.0, %v3542_v22  ;;  %v3558_v59 = vsub.f32 1.0, %v3557_v42  ;;  %8811 = vrcp.f32 %v11264_v0  ;;  %vm11461_vm0 = vmor %vm3486_vm8, %vm3487_vm13 }
 0x56a   : > { %15454 = vst [vmem:[#allocation117_spill] sm:$0xff] %v11388_v33  ;;  %v3529_v33 = vmul.f32 %v11323_v16, %v3528_v23  ;;  %v11408_v48 = vpop.eup %8809  ;;  %vm3502_vm15 = vweird.f32 %v11307_v21  ;;  %v3573_v5 = vsub.f32 1.0, %v3572_v15  ;;  %v3587_v9 = vmul.f32 %v11386_v13, %v11246_v60 }
 0x56b   : > { %vm11402_vm14 = vcmp.eq.f32.partialorder %v15455_v11, 8.507059e+37  ;;  %8813 = vrcp.f32 %v11271_v51  ;;  %v3470_v7 = vadd.f32 %v11290_v3, %v3469_v39  ;;  %v15458_v23 = vand.u32 2147483647, %v11210_v14  ;;  %vm11475_vm11 = vmor %vm3501_vm9, %vm3502_vm15 }
 0x56c   : > { %v15461_v42 = vand.u32 2147483647, %v11218_v26  ;;  %vm3517_vm3 = vweird.f32 %v11315_v12  ;;  %v15464_v15 = vand.u32 2147483647, %v11227_v52  ;;  %vm3532_vm5 = vweird.f32 %v11323_v16 }
 0x56d   : > { %vm11418_vm1 = vcmp.eq.f32.partialorder %v15458_v23, 8.507059e+37  ;;  %v15467_v39 = vand.u32 2147483647, %v11231_v41  ;;  %v3485_v4 = vadd.f32 %v11299_v63, %v3484_v30  ;;  %v3515_v47 = vadd.f32 %v11315_v12, %v3514_v46  ;;  %vm11493_vm8 = vmor %vm3516_vm10, %vm3517_vm3 }
 0x56e   : > { %vm11424_vm2 = vcmp.eq.f32.partialorder %v15461_v42, 8.507059e+37  ;;  %vm11431_vm4 = vcmp.eq.f32.partialorder %v15464_v15, 8.507059e+37  ;;  %v3602_v42 = vmul.f32 %v11394_v58, %v11256_v37  ;;  %8815 = vrcp.f32 %v11274_v62  ;;  %v15519_v22 = vld [vmem:[#allocation33_spill] sm:$0xff] }
 0x56f   : > { %vm11438_vm6 = vcmp.eq.f32.partialorder %v15467_v39, 8.507059e+37  ;;  %v3500_v39 = vadd.f32 %v11307_v21, %v3499_v35  ;;  %v3530_v40 = vadd.f32 %v11323_v16, %v3529_v33  ;;  %v3544_v27 = vmul.f32 %v11345_v44, %v3543_v2 }
 0x570   : > { %v3559_v30 = vmul.f32 %v11353_v57, %v3558_v59  ;;  %v3617_v46 = vmul.f32 %v11408_v48, %v11259_v50  ;;  %v3574_v35 = vmul.f32 %v11362_v54, %v3573_v5  ;;  %v3588_v33 = vsub.f32 1.0, %v3587_v9  ;;  %v11484_v59 = vpop.eup %8811 }
 0x571   : > { %v11480_v61 = vor.u32 1.1754944e-38, %v3627_v45  ;;  %v11482_v2 = vor.u32 1.1754944e-38, %v3642_v28  ;;  %v3474_v6 = vsel %vm11449_vm12, %v11290_v3, %v3470_v7  ;;  %vm3547_vm9 = vweird.f32 %v11345_v44  ;;  %v11511_v9 = vpop.eup %8813 }
 0x572   : > { %v15478_v45 = vand.u32 2147483647, %v11234_v32  ;;  %vm3562_vm15 = vweird.f32 %v11353_v57  ;;  %v15481_v3 = vand.u32 2147483647, %v11238_v43  ;;  %v3603_v52 = vsub.f32 1.0, %v3602_v42 }
 0x573   : > { %v3489_v7 = vsel %vm11461_vm0, %v11299_v63, %v3485_v4  ;;  %v3504_v15 = vsel %vm11475_vm11, %v11307_v21, %v3500_v39  ;;  %vm15484_vm10 = vweird.f32 %v11231_v41  ;;  %vm3591_vm7 = vweird.f32 %v11246_v60 }
 0x574   : > { %vm11500_vm13 = vcmp.eq.f32.partialorder %v15478_v45, 8.507059e+37  ;;  %vm11507_vm12 = vcmp.eq.f32.partialorder %v15481_v3, 8.507059e+37  ;;  %v3519_v45 = vsel %vm11493_vm8, %v11315_v12, %v3515_v47  ;;  %vm11526_vm3 = vmor %vm15484_vm10, %vm3532_vm5  ;;  %8817 = vrcp.f32 %v11279_v25  ;;  %v11544_v4 = vpop.eup %8815 }
 0x575   : > { %v3534_v21 = vsel %vm11526_vm3, %v11323_v16, %v3530_v40  ;;  %v3545_v63 = vadd.f32 %v11345_v44, %v3544_v27  ;;  %v3560_v12 = vadd.f32 %v11353_v57, %v3559_v30  ;;  %v15487_v56 = vand.u32 2147483647, %v11243_v38 }
 0x576   : > { %vm3606_vm5 = vweird.f32 %v11256_v37  ;;  %v3618_v47 = vsub.f32 1.0, %v3617_v46  ;;  %v11549_v39 = vsel %vm11402_vm14, %v11248_v10, %v3474_v6  ;;  %v3575_v16 = vadd.f32 %v11362_v54, %v3574_v35 }
 0x577   : > { %vm11539_vm0 = vcmp.eq.f32.partialorder %v15487_v56, 8.507059e+37  ;;  %vm3577_vm11 = vweird.f32 %v11362_v54  ;;  %v3589_v27 = vmul.f32 %v11386_v13, %v3588_v33  ;;  %vm15490_vm8 = vweird.f32 %v11234_v32 }
 0x578   : > { %vm11558_vm10 = vmor %vm15490_vm8, %vm3547_vm9  ;;  %v3604_v30 = vmul.f32 %v11394_v58, %v3603_v52  ;;  %vm3621_vm3 = vweird.f32 %v11259_v50  ;;  %v3632_v6 = vmul.f32 %v11484_v59, %v11264_v0  ;;  %v3647_v10 = vmul.f32 %v11511_v9, %v11271_v51 }
 0x579   : > { %8819 = vrcp.f32 %v11286_v19  ;;  %v11572_v32 = vsel %vm11418_vm1, %v11251_v36, %v3489_v7  ;;  %v11577_v8 = vsel %vm11424_vm2, %v11267_v24, %v3504_v15  ;;  %v11582_v46 = vsel %vm11431_vm4, %v11281_v18, %v3519_v45 }
 0x57a   : > { %v11587_v14 = vsel %vm11438_vm6, %v11297_v55, %v3534_v21  ;;  %vm15493_vm14 = vweird.f32 %v11238_v43  ;;  %v15496_v24 = vand.u32 2147483647, %v11246_v60  ;;  %v3549_v31 = vsel %vm11558_vm10, %v11345_v44, %v3545_v63  ;;  %v11618_v35 = vpop.eup %8817  ;;  %v15522_v43 = vld [vmem:[#allocation110_spill] sm:$0xff]  ;;  %v15527_v21 = vld [vmem:[#allocation111_spill] sm:$0xff] }
 0x57b   : > { %vm11593_vm1 = vmor %vm15493_vm14, %vm3562_vm15  ;;  %v15499_v18 = vand.u32 2147483647, %v11256_v37  ;;  %v3619_v11 = vmul.f32 %v11408_v48, %v3618_v47  ;;  %v3662_v23 = vmul.f32 %v11544_v4, %v11274_v62  ;;  %vm15502_vm6 = vweird.f32 %v11243_v38 }
 0x57c   : > { %vm11599_vm2 = vcmp.eq.f32.partialorder %v15496_v24, 8.507059e+37  ;;  %v3564_v55 = vsel %vm11593_vm1, %v11353_v57, %v3560_v12  ;;  %vm11624_vm9 = vmor %vm15502_vm6, %vm3577_vm11  ;;  %v3590_v57 = vadd.f32 %v11386_v13, %v3589_v27  ;;  %vm3592_vm15 = vweird.f32 %v11386_v13 }
 0x57d   : > { %vm11611_vm4 = vcmp.eq.f32.partialorder %v15499_v18, 8.507059e+37  ;;  %vm3607_vm8 = vweird.f32 %v11394_v58  ;;  %8821 = vrcp.f32 %v11293_v34  ;;  %v3579_v33 = vsel %vm11624_vm9, %v11362_v54, %v3575_v16  ;;  %vm11659_vm1 = vmor %vm3591_vm7, %vm3592_vm15 }
 0x57e   : > { %v3605_v26 = vadd.f32 %v11394_v58, %v3604_v30  ;;  %v15505_v38 = vand.u32 2147483647, %v11259_v50  ;;  %v3633_v52 = vsub.f32 1.0, %v3632_v6  ;;  %v3648_v7 = vsub.f32 1.0, %v3647_v10  ;;  %vm11679_vm7 = vmor %vm3606_vm5, %vm3607_vm8  ;;  %v15549_v6 = vld [vmem:[#allocation113_spill] sm:$0xff] }
 0x57f   : > { %v11645_v15 = vsel %vm11500_vm13, %v11304_v29, %v3549_v31  ;;  %v11650_v45 = vsel %vm11507_vm12, %v11319_v17, %v3564_v55  ;;  %vm3622_vm10 = vweird.f32 %v11408_v48  ;;  %vm3636_vm14 = vweird.f32 %v11264_v0  ;;  %v11655_v42 = vpop.eup %8819 }
 0x580   : > { %vm11638_vm11 = vcmp.eq.f32.partialorder %v15505_v38, 8.507059e+37  ;;  %v3657_v54 = vand.u32 2147483648, %v11271_v51  ;;  %v3620_v29 = vadd.f32 %v11408_v48, %v3619_v11  ;;  %v3655_v28 = vand.u32 2147483647, %v11271_v51 }
 0x581   : > { %v3663_v17 = vsub.f32 1.0, %v3662_v23  ;;  %v3677_v5 = vmul.f32 %v11618_v35, %v11279_v25  ;;  %v11670_v63 = vsel %vm11539_vm0, %v11333_v1, %v3579_v33  ;;  %v3594_v60 = vsel %vm11659_vm1, %v11386_v13, %v3590_v57  ;;  %vm11698_vm0 = vmor %vm3621_vm3, %vm3622_vm10 }
 0x582   : > { %vm3651_vm13 = vweird.f32 %v11271_v51  ;;  %8823 = vrcp.f32 %v11295_v53  ;;  %v3609_v1 = vsel %vm11679_vm7, %v11394_v58, %v3605_v26  ;;  %v3634_v56 = vmul.f32 %v11484_v59, %v3633_v52 }
 0x583   : > { %v3649_v13 = vmul.f32 %v11511_v9, %v3648_v7  ;;  %vm3666_vm12 = vweird.f32 %v11274_v62  ;;  %v3670_v37 = vand.u32 2147483647, %v11274_v62  ;;  %v11692_v41 = vpop.eup %8821  ;;  %v3658_v16 = vor.u32 1.1754944e-38, %v3657_v54 }
 0x584   : > { %v3672_v58 = vand.u32 2147483648, %v11274_v62  ;;  %v3692_v27 = vmul.f32 %v11655_v42, %v11286_v19  ;;  %8825 = vrcp.f32 %v11301_v20  ;;  %v11709_v40 = vsel %vm11599_vm2, %v11359_v49, %v3594_v60 }
 0x585   : > { %v3624_v50 = vsel %vm11698_vm0, %v11408_v48, %v3620_v29  ;;  %v15514_v30 = vand.u32 2147483647, %v11264_v0  ;;  %vm11720_vm3 = vcmp.eq.f32.partialorder %v3655_v28, 8.507059e+37  ;;  %v3664_v36 = vmul.f32 %v11544_v4, %v3663_v17 }
 0x586   : > { %v3678_v24 = vsub.f32 1.0, %v3677_v5  ;;  %v11728_v49 = vsel %vm11611_vm4, %v15519_v22, %v3609_v1  ;;  %vm3637_vm2 = vweird.f32 %v11484_v59  ;;  %vm3652_vm6 = vweird.f32 %v11511_v9 }
 0x587   : > { %vm11716_vm5 = vcmp.eq.f32.partialorder %v15514_v30, 8.507059e+37  ;;  %v3685_v48 = vand.u32 2147483647, %v11279_v25  ;;  %v3635_v31 = vadd.f32 %v11484_v59, %v3634_v56  ;;  %v3650_v55 = vadd.f32 %v11511_v9, %v3649_v13  ;;  %vm11752_vm4 = vmor %vm3636_vm14, %vm3637_vm2 }
 0x588   : > { %vm11735_vm9 = vcmp.eq.f32.partialorder %v3670_v37, 8.507059e+37  ;;  %v3707_v11 = vmul.f32 %v11692_v41, %v11293_v34  ;;  %8827 = vrcp.f32 %v15522_v43  ;;  %v11742_v23 = vpop.eup %8823  ;;  %v11747_v44 = vsel %vm11638_vm11, %v11480_v61, %v3624_v50  ;;  %vm11766_vm11 = vmor %vm3651_vm13, %vm3652_vm6 }
 0x589   : > { %v3673_v57 = vor.u32 1.1754944e-38, %v3672_v58  ;;  %v3687_v33 = vand.u32 2147483648, %v11279_v25  ;;  %v3693_v26 = vsub.f32 1.0, %v3692_v27  ;;  %v3665_v52 = vadd.f32 %v11544_v4, %v3664_v36  ;;  %v15534_v36 = vld [vmem:[#allocation28_spill] sm:$0xff] }
 0x58a   : > { %vm3667_vm15 = vweird.f32 %v11544_v4  ;;  %v3679_v7 = vmul.f32 %v11618_v35, %v3678_v24  ;;  %vm3681_vm8 = vweird.f32 %v11279_v25  ;;  %v11760_v61 = vpop.eup %8825  ;;  %vm3696_vm10 = vweird.f32 %v11286_v19 }
 0x58b   : > { %v3700_v3 = vand.u32 2147483647, %v11286_v19  ;;  %v3702_v54 = vand.u32 2147483648, %v11286_v19  ;;  %8829 = vrcp.f32 %v15527_v21  ;;  %v3639_v29 = vsel %vm11752_vm4, %v11484_v59, %v3635_v31  ;;  %vm11788_vm1 = vmor %vm3666_vm12, %vm3667_vm15 }
 0x58c   : > { %v3654_v51 = vsel %vm11766_vm11, %v11511_v9, %v3650_v55  ;;  %vm11780_vm14 = vcmp.eq.f32.partialorder %v3685_v48, 8.507059e+37  ;;  %v3708_v17 = vsub.f32 1.0, %v3707_v11  ;;  %v3722_v5 = vmul.f32 %v11742_v23, %v11295_v53  ;;  %v8409_v11 = vld [vmem:[#allocation12 + $0x78] sm:$0xff] }
 0x58d   : > { %vm3682_vm7 = vweird.f32 %v11618_v35  ;;  %v3688_v59 = vor.u32 1.1754944e-38, %v3687_v33  ;;  %v3694_v12 = vmul.f32 %v11655_v42, %v3693_v26  ;;  %v3717_v9 = vand.u32 2147483648, %v11293_v34  ;;  %v15539_v33 = vld [vmem:[#allocation48_spill] sm:$0xff]  ;;  %4792 = vmatpush.bf16.msrb.mxu0 %v8409_v11 }
 0x58e   : > { %v11795_v1 = vpop.eup %8827  ;;  %v3669_v56 = vsel %vm11788_vm1, %v11544_v4, %v3665_v52  ;;  %v3680_v13 = vadd.f32 %v11618_v35, %v3679_v7  ;;  %v3715_v62 = vand.u32 2147483647, %v11293_v34  ;;  %v3737_v37 = vmul.f32 %v11760_v61, %v11301_v20 }
 0x58f   : > { %v11807_v47 = vsel %vm11716_vm5, %v11482_v2, %v3639_v29  ;;  %v11811_v58 = vsel %vm11720_vm3, %v3658_v16, %v3654_v51  ;;  %vm11813_vm13 = vcmp.eq.f32.partialorder %v3700_v3, 8.507059e+37  ;;  %v3703_v4 = vor.u32 1.1754944e-38, %v3702_v54  ;;  %vm11831_vm5 = vmor %vm3681_vm8, %vm3682_vm7 }
 0x590   : > { %vm3711_vm12 = vweird.f32 %v11293_v34  ;;  %vm3697_vm0 = vweird.f32 %v11655_v42  ;;  %v3709_v50 = vmul.f32 %v11692_v41, %v3708_v17  ;;  %v3723_v30 = vsub.f32 1.0, %v3722_v5  ;;  %v15544_v17 = vld [vmem:[#allocation112_spill] sm:$0xff] }
 0x591   : > { %8831 = vrcp.f32 %v15534_v36  ;;  %v11821_v2 = vpop.eup %8829  ;;  %v11825_v16 = vsel %vm11735_vm9, %v3673_v57, %v3669_v56  ;;  %v3695_v10 = vadd.f32 %v11655_v42, %v3694_v12  ;;  %v3718_v24 = vor.u32 1.1754944e-38, %v3717_v9  ;;  %vm11856_vm9 = vmor %vm3696_vm10, %vm3697_vm0  ;;  %v8408_v5 = vld [vmem:[#allocation12 + $0x70] sm:$0xff] }
 0x592   : > { %v3752_v22 = vmul.f32 %v11795_v1, %v15522_v43  ;;  %v3684_v48 = vsel %vm11831_vm5, %v11618_v35, %v3680_v13  ;;  %vm11841_vm3 = vcmp.eq.f32.partialorder %v3715_v62, 8.507059e+37  ;;  %v3730_v25 = vand.u32 2147483647, %v11295_v53  ;;  %4793 = vmatpush.bf16.msrb.mxu0 %v8408_v5  ;;  %v15559_v5 = vld [vmem:[#allocation50_spill] sm:$0xff] }
 0x593   : > { %v3732_v55 = vand.u32 2147483648, %v11295_v53  ;;  %v3738_v18 = vsub.f32 1.0, %v3737_v37  ;;  %vm3712_vm2 = vweird.f32 %v11692_v41  ;;  %vm3726_vm6 = vweird.f32 %v11295_v53 }
 0x594   : > { %v3767_v57 = vmul.f32 %v11821_v2, %v15527_v21  ;;  %8833 = vrcp.f32 %v15539_v33  ;;  %v3710_v26 = vadd.f32 %v11692_v41, %v3709_v50  ;;  %v3724_v38 = vmul.f32 %v11742_v23, %v3723_v30  ;;  %vm11885_vm11 = vmor %vm3711_vm12, %vm3712_vm2 }
 0x595   : > { %v3745_v52 = vand.u32 2147483647, %v11301_v20  ;;  %v3747_v7 = vand.u32 2147483648, %v11301_v20  ;;  %v11866_v0 = vsel %vm11780_vm14, %v3688_v59, %v3684_v48  ;;  %v3699_v19 = vsel %vm11856_vm9, %v11655_v42, %v3695_v10  ;;  %v8401_v48 = vld [vmem:[#allocation12 + $0x38] sm:$0xff]  ;;  %v8400_v42 = vld [vmem:[#allocation12 + $0x30] sm:$0xff] }
 0x596   : > { %vm3741_vm4 = vweird.f32 %v11301_v20  ;;  %v3753_v3 = vsub.f32 1.0, %v3752_v22  ;;  %vm3727_vm15 = vweird.f32 %v11742_v23  ;;  %vm11875_vm8 = vcmp.eq.f32.partialorder %v3730_v25, 8.507059e+37  ;;  %v8407_v25 = vld [vmem:[#allocation12 + $0x68] sm:$0xff]  ;;  %4453 = vmatpush.bf16.msra.mxu2 %v8401_v48  ;;  %v8433_v48 = vld [vmem:[#allocation12 + $0x138] sm:$0xff] }
 0x597   : > { %v11872_v54 = vpop.eup %8831  ;;  %v3733_v51 = vor.u32 1.1754944e-38, %v3732_v55  ;;  %v3739_v28 = vmul.f32 %v11760_v61, %v3738_v18  ;;  %8835 = vrcp.f32 %v15544_v17  ;;  %vm3756_vm10 = vweird.f32 %v15522_v43  ;;  %vm11924_vm7 = vmor %vm3726_vm6, %vm3727_vm15  ;;  %4794 = vmatpush.bf16.msrb.mxu0 %v8407_v25  ;;  %v8405_v25 = vld [vmem:[#allocation12 + $0x58] sm:$0xff]  ;;  %4655 = vmatpush.bf16.msrb.mxu3 %v8433_v48 }
 0x598   : > { %v3760_v60 = vand.u32 2147483647, %v15522_v43  ;;  %v3762_v59 = vand.u32 2147483648, %v15522_v43  ;;  %v3768_v12 = vsub.f32 1.0, %v3767_v57  ;;  %v3782_v9 = vmul.f32 %v11872_v54, %v15534_v36 }
 0x599   : > { %v11896_v56 = vsel %vm11813_vm13, %v3703_v4, %v3699_v19  ;;  %v3714_v34 = vsel %vm11885_vm11, %v11692_v41, %v3710_v26  ;;  %v3725_v13 = vadd.f32 %v11742_v23, %v3724_v38  ;;  %vm11902_vm14 = vcmp.eq.f32.partialorder %v3745_v52, 8.507059e+37  ;;  %v15554_v26 = vld [vmem:[#allocation30_spill] sm:$0xff] }
 0x59a   : > { %v3748_v37 = vor.u32 1.1754944e-38, %v3747_v7  ;;  %v11906_v50 = vpop.eup %8833  ;;  %v3754_v30 = vmul.f32 %v11795_v1, %v3753_v3  ;;  %v3775_v27 = vand.u32 2147483647, %v15527_v21  ;;  %v3777_v4 = vand.u32 2147483648, %v15527_v21  ;;  %4454 = vmatpush.bf16.msra.mxu2 %v8400_v42 }
 0x59b   : > { %8837 = vrcp.f32 %v15549_v6  ;;  %v3740_v41 = vadd.f32 %v11760_v61, %v3739_v28  ;;  %vm3742_vm1 = vweird.f32 %v11760_v61  ;;  %v3783_v10 = vsub.f32 1.0, %v3782_v9 }
 0x59c   : > { %v3797_v22 = vmul.f32 %v11906_v50, %v15539_v33  ;;  %v11918_v55 = vsel %vm11841_vm3, %v3718_v24, %v3714_v34  ;;  %vm11928_vm13 = vcmp.eq.f32.partialorder %v3760_v60, 8.507059e+37  ;;  %v3763_v57 = vor.u32 1.1754944e-38, %v3762_v59  ;;  %vm11946_vm5 = vmor %vm3741_vm4, %vm3742_vm1  ;;  %v8406_v60 = vld [vmem:[#allocation12 + $0x60] sm:$0xff] }
 0x59d   : > { %v3769_v35 = vmul.f32 %v11821_v2, %v3768_v12  ;;  %vm3771_vm12 = vweird.f32 %v15527_v21  ;;  %v11934_v31 = vpop.eup %8835  ;;  %v3729_v24 = vsel %vm11924_vm7, %v11742_v23, %v3725_v13  ;;  %vm3757_vm0 = vweird.f32 %v11795_v1  ;;  %4795 = vmatpush.bf16.msrb.mxu0 %v8406_v60  ;;  %v8399_v21 = vld [vmem:[#allocation12 + $0x28] sm:$0xff] }
 0x59e   : > { %v3790_v53 = vand.u32 2147483647, %v15534_v36  ;;  %8839 = vrcp.f32 %v15554_v26  ;;  %v3755_v52 = vadd.f32 %v11795_v1, %v3754_v30  ;;  %vm3772_vm3 = vweird.f32 %v11821_v2  ;;  %vm11976_vm9 = vmor %vm3756_vm10, %vm3757_vm0  ;;  %4455 = vmatpush.bf16.msra.mxu2 %v8399_v21  ;;  %v15573_v23 = vld [vmem:[#allocation115_spill] sm:$0xff] }
 0x59f   : > { %vm11952_vm2 = vcmp.eq.f32.partialorder %v3775_v27, 8.507059e+37  ;;  %v3778_v7 = vor.u32 1.1754944e-38, %v3777_v4  ;;  %v3812_v19 = vmul.f32 %v11934_v31, %v15544_v17  ;;  %v3744_v20 = vsel %vm11946_vm5, %v11760_v61, %v3740_v41  ;;  %v8398_v61 = vld [vmem:[#allocation12 + $0x20] sm:$0xff] }
 0x5a0   : > { %v3784_v3 = vmul.f32 %v11872_v54, %v3783_v10  ;;  %v3798_v28 = vsub.f32 1.0, %v3797_v22  ;;  %8841 = vrcp.f32 %v15559_v5  ;;  %v11967_v12 = vsel %vm11875_vm8, %v3733_v51, %v3729_v24  ;;  %vm11998_vm8 = vmor %vm3771_vm12, %vm3772_vm3  ;;  %v15566_v22 = vld [vmem:[#allocation114_spill] sm:$0xff] }
 0x5a1   : > { %v11963_v59 = vpop.eup %8837  ;;  %v3770_v9 = vadd.f32 %v11821_v2, %v3769_v35  ;;  %vm3786_vm6 = vweird.f32 %v15534_v36  ;;  %v3792_v34 = vand.u32 2147483648, %v15534_v36  ;;  %vm11980_vm4 = vcmp.eq.f32.partialorder %v3790_v53, 8.507059e+37  ;;  %4796 = vmatpush.bf16.msrb.mxu0 %v8405_v25 }
 0x5a2   : > { %vm3801_vm15 = vweird.f32 %v15539_v33  ;;  %v3805_v29 = vand.u32 2147483647, %v15539_v33  ;;  %v3807_v51 = vand.u32 2147483648, %v15539_v33  ;;  %v3813_v30 = vsub.f32 1.0, %v3812_v19  ;;  %4456 = vmatpush.bf16.msra.mxu2 %v8398_v61  ;;  %v15581_v61 = vld [vmem:[#allocation116_spill] sm:$0xff] }
 0x5a3   : > { %v11989_v43 = vsel %vm11902_vm14, %v3748_v37, %v3744_v20  ;;  %v3759_v27 = vsel %vm11976_vm9, %v11795_v1, %v3755_v52  ;;  %vm3787_vm11 = vweird.f32 %v11872_v54  ;;  %v3820_v41 = vand.u32 2147483647, %v15544_v17 }
 0x5a4   : > { %v12004_v10 = vpop.eup %8839  ;;  %v3785_v62 = vadd.f32 %v11872_v54, %v3784_v3  ;;  %v3799_v37 = vmul.f32 %v11906_v50, %v3798_v28  ;;  %v3827_v1 = vmul.f32 %v11963_v59, %v15549_v6  ;;  %8843 = vrcp.f32 %v15566_v22  ;;  %vm12033_vm1 = vmor %vm3786_vm6, %vm3787_vm11 }
 0x5a5   : > { %v3774_v18 = vsel %vm11998_vm8, %v11821_v2, %v3770_v9  ;;  %v3793_v35 = vor.u32 1.1754944e-38, %v3792_v34  ;;  %v3822_v24 = vand.u32 2147483648, %v15544_v17  ;;  %v3842_v53 = vmul.f32 %v12004_v10, %v15554_v26 }
 0x5a6   : > { %v12017_v38 = vpop.eup %8841  ;;  %v12021_v52 = vsel %vm11928_vm13, %v3763_v57, %v3759_v27  ;;  %vm12023_vm10 = vcmp.eq.f32.partialorder %v3805_v29, 8.507059e+37  ;;  %v3808_v20 = vor.u32 1.1754944e-38, %v3807_v51  ;;  %v3814_v3 = vmul.f32 %v11934_v31, %v3813_v30  ;;  %v8432_v29 = vld [vmem:[#allocation12 + $0x130] sm:$0xff] }
 0x5a7   : > { %vm3816_vm14 = vweird.f32 %v15544_v17  ;;  %vm3802_vm7 = vweird.f32 %v11906_v50  ;;  %v3835_v11 = vand.u32 2147483647, %v15549_v6  ;;  %v3837_v57 = vand.u32 2147483648, %v15549_v6  ;;  %4656 = vmatpush.bf16.msrb.mxu3 %v8432_v29 }
 0x5a8   : > { %v3857_v28 = vmul.f32 %v12017_v38, %v15559_v5  ;;  %v12044_v42 = vsel %vm11952_vm2, %v3778_v7, %v3774_v18  ;;  %v3789_v36 = vsel %vm12033_vm1, %v11872_v54, %v3785_v62  ;;  %v3800_v60 = vadd.f32 %v11906_v50, %v3799_v37  ;;  %v8404_v7 = vld [vmem:[#allocation12 + $0x50] sm:$0xff]  ;;  %vm12070_vm5 = vmor %vm3801_vm15, %vm3802_vm7 }
 0x5a9   : > { %vm12050_vm13 = vcmp.eq.f32.partialorder %v3820_v41, 8.507059e+37  ;;  %v3828_v34 = vsub.f32 1.0, %v3827_v1  ;;  %vm3817_vm12 = vweird.f32 %v11934_v31  ;;  %v3823_v51 = vor.u32 1.1754944e-38, %v3822_v24  ;;  %4797 = vmatpush.bf16.msrb.mxu0 %v8404_v7  ;;  %v8397_v24 = vld [vmem:[#allocation12 + $0x18] sm:$0xff]  ;;  %v8402_v1 = vld [vmem:[#allocation12 + $0x40] sm:$0xff] }
 0x5aa   : > { %v3843_v30 = vsub.f32 1.0, %v3842_v53  ;;  %8845 = vrcp.f32 %v15573_v23  ;;  %v12056_v27 = vpop.eup %8843  ;;  %v3815_v54 = vadd.f32 %v11934_v31, %v3814_v3  ;;  %vm3831_vm0 = vweird.f32 %v15549_v6  ;;  %v8431_v53 = vld [vmem:[#allocation12 + $0x128] sm:$0xff]  ;;  %vm12091_vm6 = vmor %vm3816_vm14, %vm3817_vm12  ;;  %4457 = vmatpush.bf16.msra.mxu2 %v8397_v24 }
 0x5ab   : > { %v3850_v4 = vand.u32 2147483647, %v15554_v26  ;;  %v3852_v41 = vand.u32 2147483648, %v15554_v26  ;;  %v3858_v62 = vsub.f32 1.0, %v3857_v28  ;;  %v12064_v37 = vsel %vm11980_vm4, %v3793_v35, %v3789_v36  ;;  %v15576_v35 = vld [vmem:[#allocation53_spill] sm:$0xff]  ;;  %v8403_v3 = vld [vmem:[#allocation12 + $0x48] sm:$0xff]  ;;  %4657 = vmatpush.bf16.msrb.mxu3 %v8431_v53 }
 0x5ac   : > { %v12074_v21 = vor.u32 1.1754944e-38, %v3837_v57  ;;  %vm3846_vm3 = vweird.f32 %v15554_v26  ;;  %v3865_v48 = vand.u32 2147483647, %v15559_v5  ;;  %v3872_v25 = vmul.f32 %v12056_v27, %v15566_v22  ;;  %v15588_v53 = vld [vmem:[#allocation117_spill] sm:$0xff] }
 0x5ad   : > { %v3804_v13 = vsel %vm12070_vm5, %v11906_v50, %v3800_v60  ;;  %v3829_v33 = vmul.f32 %v11963_v59, %v3828_v34  ;;  %vm3861_vm2 = vweird.f32 %v15559_v5  ;;  %v3867_v18 = vand.u32 2147483648, %v15559_v5  ;;  %4798 = vmatpush.bf16.msrb.mxu0 %v8403_v3  ;;  %v8428_v60 = vld [vmem:[#allocation12 + $0x110] sm:$0xff]  ;;  %v15611_v5 = vld [vmem:[#allocation51_spill] sm:$0xff] }
 0x5ae   : > { %8847 = vrcp.f32 %v15576_v35  ;;  %vm3832_vm9 = vweird.f32 %v11963_v59  ;;  %v3844_v50 = vmul.f32 %v12004_v10, %v3843_v30  ;;  %v3873_v57 = vsub.f32 1.0, %v3872_v25 }
 0x5af   : > { %v3880_v28 = vand.u32 2147483647, %v15566_v22  ;;  %v3819_v36 = vsel %vm12091_vm6, %v11934_v31, %v3815_v54  ;;  %vm12101_vm4 = vcmp.eq.f32.partialorder %v3835_v11, 8.507059e+37  ;;  %v12105_v17 = vor.u32 1.1754944e-38, %v3852_v41  ;;  %v8396_v41 = vld [vmem:[#allocation12 + $0x10] sm:$0xff] }
 0x5b0   : > { %v3859_v34 = vmul.f32 %v12017_v38, %v3858_v62  ;;  %8849 = vrcp.f32 %v15581_v61  ;;  %v12109_v29 = vpop.eup %8845  ;;  %v12113_v30 = vsel %vm12023_vm10, %v3808_v20, %v3804_v13  ;;  %vm3847_vm15 = vweird.f32 %v12004_v10  ;;  %v8430_v62 = vld [vmem:[#allocation12 + $0x120] sm:$0xff]  ;;  %4458 = vmatpush.bf16.msra.mxu2 %v8396_v41 }
 0x5b1   : > { %vm12116_vm8 = vcmp.eq.f32.partialorder %v3850_v4, 8.507059e+37  ;;  %v3874_v11 = vmul.f32 %v12056_v27, %v3873_v57  ;;  %vm3876_vm11 = vweird.f32 %v15566_v22  ;;  %v3830_v7 = vadd.f32 %v11963_v59, %v3829_v33  ;;  %4658 = vmatpush.bf16.msrb.mxu3 %v8430_v62  ;;  %4799 = vmatpush.bf16.msrb.mxu0 %v8402_v1 }
 0x5b2   : > { %vm12123_vm14 = vcmp.eq.f32.partialorder %v3865_v48, 8.507059e+37  ;;  %v3868_v19 = vor.u32 1.1754944e-38, %v3867_v18  ;;  %v3882_v20 = vand.u32 2147483648, %v15566_v22  ;;  %v3887_v4 = vmul.f32 %v12109_v29, %v15573_v23  ;;  %v15605_v48 = vld [vmem:[#allocation93_spill] sm:$0xff] }
 0x5b3   : > { %v12132_v25 = vsel %vm12050_vm13, %v3823_v51, %v3819_v36  ;;  %v3845_v13 = vadd.f32 %v12004_v10, %v3844_v50  ;;  %vm3862_vm10 = vweird.f32 %v12017_v38  ;;  %vm12136_vm1 = vcmp.eq.f32.partialorder %v3880_v28, 8.507059e+37  ;;  %vm12149_vm13 = vmor %vm3831_vm0, %vm3832_vm9 }
 0x5b4   : > { %v12140_v33 = vpop.eup %8847  ;;  %v3860_v18 = vadd.f32 %v12017_v38, %v3859_v34  ;;  %v3888_v24 = vsub.f32 1.0, %v3887_v4  ;;  %vm3891_vm7 = vweird.f32 %v15573_v23  ;;  %8851 = vrcp.f32 %v15588_v53  ;;  %vm12167_vm0 = vmor %vm3846_vm3, %vm3847_vm15  ;;  %v8429_v4 = vld [vmem:[#allocation12 + $0x118] sm:$0xff] }
 0x5b5   : > { %v3875_v51 = vadd.f32 %v12056_v27, %v3874_v11  ;;  %vm3877_vm12 = vweird.f32 %v12056_v27  ;;  %v3895_v3 = vand.u32 2147483647, %v15573_v23  ;;  %v3902_v2 = vmul.f32 %v12140_v33, %v15576_v35  ;;  %v8395_v11 = vld [vmem:[#allocation12 + $0x8] sm:$0xff]  ;;  %vm12180_vm5 = vmor %vm3861_vm2, %vm3862_vm10  ;;  %4659 = vmatpush.bf16.msrb.mxu3 %v8429_v4  ;;  %v15608_v4 = vld [vmem:[#allocation49_spill] sm:$0xff] }
 0x5b6   : > { %v12158_v50 = vpop.eup %8849  ;;  %v3834_v6 = vsel %vm12149_vm13, %v11963_v59, %v3830_v7  ;;  %v3883_v28 = vor.u32 1.1754944e-38, %v3882_v20  ;;  %v3889_v36 = vmul.f32 %v12109_v29, %v3888_v24  ;;  %v3897_v34 = vand.u32 2147483648, %v15573_v23  ;;  %vm12194_vm3 = vmor %vm3876_vm11, %vm3877_vm12  ;;  %4459 = vmatpush.bf16.msra.mxu2 %v8395_v11 }
 0x5b7   : > { %v3849_v41 = vsel %vm12167_vm0, %v12004_v10, %v3845_v13  ;;  %v3903_v59 = vsub.f32 1.0, %v3902_v2  ;;  %v3910_v7 = vand.u32 2147483647, %v15576_v35  ;;  %v3917_v20 = vmul.f32 %v12158_v50, %v15581_v61 }
 0x5b8   : > { %v3864_v62 = vsel %vm12180_vm5, %v12017_v38, %v3860_v18  ;;  %v3890_v10 = vadd.f32 %v12109_v29, %v3889_v36  ;;  %vm3892_vm2 = vweird.f32 %v12109_v29  ;;  %v3912_v1 = vand.u32 2147483648, %v15576_v35  ;;  %v15606_v36 = vld [vmem:[#allocation47_spill] sm:$0xff] }
 0x5b9   : > { %v3839_v38 = vsel %vm12101_vm4, %v12074_v21, %v3834_v6  ;;  %v3879_v22 = vsel %vm12194_vm3, %v12056_v27, %v3875_v51  ;;  %vm12207_vm6 = vcmp.eq.f32.partialorder %v3895_v3, 8.507059e+37  ;;  %v3904_v18 = vmul.f32 %v12140_v33, %v3903_v59  ;;  %v8394_v21 = vld [vmem:[#allocation12] sm:$0xff]  ;;  %vm12225_vm15 = vmor %vm3891_vm7, %vm3892_vm2  ;;  %4660 = vmatpush.bf16.msrb.mxu3 %v8428_v60  ;;  %v15617_v60 = vld [vmem:[#allocation100_spill] sm:$0xff] }
 0x5ba   : > { %v12212_v24 = vpop.eup %8851  ;;  %v3854_v9 = vsel %vm12116_vm8, %v12105_v17, %v3849_v41  ;;  %v3898_v2 = vor.u32 1.1754944e-38, %v3897_v34  ;;  %vm3906_vm9 = vweird.f32 %v15576_v35  ;;  %vm3907_vm4 = vweird.f32 %v12140_v33  ;;  %4460 = vmatpush.bf16.msra.mxu2 %v8394_v21  ;;  %v15607_v34 = vld [vmem:[#allocation95_spill] sm:$0xff]  ;;  %v15609_v59 = vld [vmem:[#allocation94_spill] sm:$0xff] }
 0x5bb   : > { %v3869_v27 = vsel %vm12123_vm14, %v3868_v19, %v3864_v62  ;;  %v3905_v17 = vadd.f32 %v12140_v33, %v3904_v18  ;;  %v3918_v31 = vsub.f32 1.0, %v3917_v20  ;;  %v3932_v3 = vmul.f32 %v12212_v24, %v15588_v53  ;;  %vm12243_vm11 = vmor %vm3906_vm9, %vm3907_vm4  ;;  %v15610_v20 = vld [vmem:[#allocation96_spill] sm:$0xff]  ;;  %v8427_v62 = vld [vmem:[#allocation12 + $0x108] sm:$0xff] }
 0x5bc   : > { %v3884_v6 = vsel %vm12136_vm1, %v3883_v28, %v3879_v22  ;;  %v3894_v54 = vsel %vm12225_vm15, %v12109_v29, %v3890_v10  ;;  %vm12237_vm8 = vcmp.eq.f32.partialorder %v3910_v7, 8.507059e+37  ;;  %v3913_v23 = vor.u32 1.1754944e-38, %v3912_v1  ;;  %v15612_v10 = vld [vmem:[#allocation97_spill] sm:$0xff]  ;;  %v15614_v22 = vld [vmem:[#allocation99_spill] sm:$0xff]  ;;  %v15615_v18 = vld [vmem:[#allocation52_spill] sm:$0xff] }
 0x5bd   : > { %v3946_v28 = vmul.f32 %v11549_v39, %v15605_v48  ;;  %v3947_v29 = vmul.f32 %v11572_v32, %v15606_v36  ;;  %v3948_v11 = vmul.f32 %v11577_v8, %v15607_v34  ;;  %v3949_v41 = vmul.f32 %v11582_v46, %v15608_v4  ;;  %v15616_v21 = vld [vmem:[#allocation54_spill] sm:$0xff]  ;;  %4661 = vmatpush.bf16.msrb.mxu3 %v8427_v62  ;;  %v15622_v19 = vld [vmem:[#allocation103_spill] sm:$0xff] }
 0x5be   : > { %v3909_v35 = vsel %vm12243_vm11, %v12140_v33, %v3905_v17  ;;  %v3933_v26 = vsub.f32 1.0, %v3932_v3  ;;  %v3950_v7 = vmul.f32 %v11587_v14, %v15609_v59  ;;  %v3951_v39 = vmul.f32 %v11645_v15, %v15610_v20  ;;  %v12276_v14 = vld [vmem:[%s526_s29] ss:$0 sm:$0xff]  ;;  %v15613_v15 = vld [vmem:[#allocation98_spill] sm:$0xff] }
 0x5bf   : > { %v3899_v32 = vsel %vm12207_vm6, %v3898_v2, %v3894_v54  ;;  %v12265_v8 = vmul.f32 %v12158_v50, %v3918_v31  ;;  %v3952_v46 = vmul.f32 %v11650_v45, %v15611_v5  ;;  %v3953_v33 = vmul.f32 %v11670_v63, %v15612_v10  ;;  %v15618_v17 = vld [vmem:[#allocation101_spill] sm:$0xff]  ;;  %v8426_v48 = vld [vmem:[#allocation12 + $0x100] sm:$0xff] }
 0x5c0   : > { %v3954_v1 = vmul.f32 %v11709_v40, %v15613_v15  ;;  %v3955_v13 = vmul.f32 %v11728_v49, %v15614_v22  ;;  %v3956_v2 = vmul.f32 %v11747_v44, %v15615_v18  ;;  %v3957_v45 = vmul.f32 %v11807_v47, %v15616_v21  ;;  %v15619_v40 = vld [vmem:[#allocation55_spill] sm:$0xff]  ;;  %v15620_v44 = vld [vmem:[#allocation57_spill] sm:$0xff]  ;;  %v15621_v47 = vld [vmem:[#allocation102_spill] sm:$0xff] }
 0x5c1   : > { %v3914_v63 = vsel %vm12237_vm8, %v3913_v23, %v3909_v35  ;;  %v3958_v51 = vmul.f32 %v11811_v58, %v15617_v60  ;;  %v3959_v31 = vmul.f32 %v11825_v16, %v15618_v17  ;;  %v3960_v3 = vmul.f32 %v11866_v0, %v15619_v40  ;;  %v15623_v58 = vld [vmem:[#allocation58_spill] sm:$0xff]  ;;  %v15624_v16 = vld [vmem:[#allocation60_spill] sm:$0xff]  ;;  %v15626_v35 = vld [vmem:[#allocation105_spill] sm:$0xff]  ;;  %4662 = vmatpush.bf16.msrb.mxu3 %v8426_v48 }
 0x5c2   : > { %v12295_v49 = vmul.f32 %v12212_v24, %v3933_v26  ;;  %v3961_v54 = vmul.f32 %v11896_v56, %v15620_v44  ;;  %v3962_v57 = vmul.f32 %v11918_v55, %v15621_v47  ;;  %v3963_v23 = vmul.f32 %v11967_v12, %v15622_v19  ;;  %v15625_v0 = vld [vmem:[#allocation104_spill] sm:$0xff]  ;;  %v15627_v56 = vld [vmem:[#allocation22_spill] sm:$0xff]  ;;  %v15631_v15 = vld [vmem:[#allocation23_spill] sm:$0xff] }
 0x5c3   : > { %v3964_v36 = vmul.f32 %v11989_v43, %v15623_v58  ;;  %v3965_v34 = vmul.f32 %v12021_v52, %v15624_v16  ;;  %v3966_v4 = vmul.f32 %v12044_v42, %v15625_v0  ;;  %v3967_v26 = vmul.f32 %v12064_v37, %v15626_v35  ;;  %v15628_v55 = vld [vmem:[#allocation40_spill] sm:$0xff]  ;;  %v15629_v43 = vld [vmem:[#allocation106_spill] sm:$0xff]  ;;  %v15630_v52 = vld [vmem:[#allocation107_spill] sm:$0xff] }
 0x5c4   : > { %v3968_v59 = vmul.f32 %v12113_v30, %v15627_v56  ;;  %v3969_v20 = vmul.f32 %v12132_v25, %v15628_v55  ;;  %v3982_v12 = vadd.f32 %v12276_v14, %v3946_v28  ;;  %v3983_v62 = vadd.f32 %v12276_v14, %v3947_v29  ;;  %v15632_v22 = vld [vmem:[#allocation43_spill] sm:$0xff]  ;;  %v15633_v25 = vld [vmem:[#allocation108_spill] sm:$0xff]  ;;  %v15634_v29 = vld [vmem:[#allocation109_spill] sm:$0xff] }
 0x5c5   : > { %v3970_v5 = vmul.f32 %v3839_v38, %v15629_v43  ;;  %v3971_v10 = vmul.f32 %v3854_v9, %v15630_v52  ;;  %v12320_v42 = vadd.f32 %v12276_v14, %v3948_v11  ;;  %v12323_v37 = vadd.f32 %v12276_v14, %v3949_v41  ;;  %v4055_v17 = vld [vmem:[#allocation3 + $0x17] sm:$0xff]  ;;  %v8418_v19 = vld [vmem:[#allocation12 + $0xc0] sm:$0xff] }
 0x5c6   : > { %v3972_v30 = vmul.f32 %v3869_v27, %v15631_v15  ;;  %v3973_v18 = vmul.f32 %v3884_v6, %v15632_v22  ;;  %v3974_v21 = vmul.f32 %v3899_v32, %v15633_v25  ;;  %v12329_v28 = vadd.f32 %v12276_v14, %v3950_v7  ;;  %4022 = vst [vmem:[#allocation3 + $0x20] sm:$0xff] %v3982_v12  ;;  %v8985_v58 = vld [vmem:[#allocation2] sm:$0xff] }
 0x5c7   : > { %v3975_v38 = vmul.f32 %v3914_v63, %v15634_v29  ;;  %v12333_v9 = vadd.f32 %v12276_v14, %v3951_v39  ;;  %v12336_v11 = vadd.f32 %v12276_v14, %v3952_v46  ;;  %v12339_v41 = vadd.f32 %v12276_v14, %v3953_v33  ;;  %4023 = vst [vmem:[#allocation3 + $0x28] sm:$0xff] %v3983_v62  ;;  %v8419_v63 = vld [vmem:[#allocation12 + $0xc8] sm:$0xff]  ;;  %v8441_v0 = vld [vmem:[#allocation12 + $0x178] sm:$0xff] }
 0x5c8   : > { %v3990_v27 = vadd.f32 %v12276_v14, %v3954_v1  ;;  %v3991_v6 = vadd.f32 %v12276_v14, %v3955_v13  ;;  %v3992_v7 = vadd.f32 %v12276_v14, %v3956_v2  ;;  %v3993_v32 = vadd.f32 %v12276_v14, %v3957_v45  ;;  %4024 = vst [vmem:[#allocation3 + $0x30] sm:$0xff] %v12320_v42 }
 0x5c9   : > { %v3994_v39 = vadd.f32 %v12276_v14, %v3958_v51  ;;  %v3995_v46 = vadd.f32 %v12276_v14, %v3959_v31  ;;  %v12349_v60 = vadd.f32 %v12276_v14, %v3960_v3  ;;  %v12352_v33 = vadd.f32 %v12276_v14, %v3961_v54  ;;  %4025 = vst [vmem:[#allocation3 + $0x38] sm:$0xff] %v12323_v37  ;;  %v4054_v51 = vld [vmem:[#allocation3 + $0xf] sm:$0xff] }
 0x5ca   : > { %v12356_v1 = vadd.f32 %v12276_v14, %v3962_v57  ;;  %v12359_v13 = vadd.f32 %v12276_v14, %v3963_v23  ;;  %v12362_v2 = vadd.f32 %v12276_v14, %v3964_v36  ;;  %v12365_v45 = vadd.f32 %v12276_v14, %v3965_v34  ;;  %4026 = vst [vmem:[#allocation3 + $0x40] sm:$0xff] %v12329_v28 }
 0x5cb   : > { %v12369_v31 = vadd.f32 %v12276_v14, %v3966_v4  ;;  %v12372_v40 = vadd.f32 %v12276_v14, %v3967_v26  ;;  %v12375_v3 = vadd.f32 %v12276_v14, %v3968_v59  ;;  %v12378_v44 = vadd.f32 %v12276_v14, %v3969_v20  ;;  %4027 = vst [vmem:[#allocation3 + $0x48] sm:$0xff] %v12333_v9 }
 0x5cc   : > { %v12382_v54 = vadd.f32 %v12276_v14, %v3970_v5  ;;  %v12385_v47 = vadd.f32 %v12276_v14, %v3971_v10  ;;  %v12388_v57 = vadd.f32 %v12276_v14, %v3972_v30  ;;  %4028 = vst [vmem:[#allocation3 + $0x50] sm:$0xff] %v12336_v11  ;;  %4322 = vmatpush.bf16.msra.mxu1 %v8419_v63  ;;  %vm3922_vm14 = vweird.f32 %v12158_v50 }
 0x5cd   : > { %v12392_v23 = vadd.f32 %v12276_v14, %v3973_v18  ;;  %4029 = vst [vmem:[#allocation3 + $0x58] sm:$0xff] %v12339_v41  ;;  %v4086_v48 = vpack.c.bf16 %v4055_v17, %v4054_v51  ;;  %v4150_v36 = vpack.c.bf16 %v8985_v58, %v8985_v58  ;;  %v4056_v16 = vld [vmem:[#allocation3 + $0x1f] sm:$0xff]  ;;  %v12395_v34 = vpack.c.bf16 %v3983_v62, %v3982_v12 }
 0x5ce   : > { %v12398_v4 = vadd.f32 %v12276_v14, %v3974_v21  ;;  %v12401_v35 = vadd.f32 %v12276_v14, %v3975_v38  ;;  %4030 = vst [vmem:[#allocation3 + $0x60] sm:$0xff] %v3990_v27  ;;  %v4057_v26 = vld [vmem:[#allocation3 + $0x27] sm:$0xff]  ;;  %v12403_v56 = vpack.c.bf16 %v3991_v6, %v3990_v27  ;;  %v12405_v59 = vpack.c.bf16 %v3993_v32, %v3992_v7  ;;  %v8437_v58 = vld [vmem:[#allocation12 + $0x158] sm:$0xff] }
 0x5cf   : > { %4031 = vst [vmem:[#allocation3 + $0x68] sm:$0xff] %v3991_v6  ;;  %4461 = vmatmul.bf16.vlgmr.msra.gmra.mxu2 %v4086_v48  ;;  %4800 = vmatmul.bf16.vlgmr.msrb.gmra.mxu0 %v4150_v36  ;;  %v4087_v55 = vpack.c.bf16 %v4057_v26, %v4056_v16  ;;  %v12407_v20 = vpack.c.bf16 %v3995_v46, %v3994_v39  ;;  %v3927_v18 = vand.u32 2147483648, %v15581_v61  ;;  %vm3937_vm10 = vweird.f32 %v12212_v24  ;;  %v4058_v63 = vld [vmem:[#allocation3 + $0x2f] sm:$0xff] }
 0x5d0   : > { %v12411_v12 = vpack.c.bf16 %v12352_v33, %v12349_v60  ;;  %4032 = vst [vmem:[#allocation3 + $0x70] sm:$0xff] %v3992_v7  ;;  %4323 = vmatpush.bf16.msra.mxu1 %v8418_v19  ;;  %4663 = vmatmul.bf16.vlgmr.msrb.gmra.mxu3 %v12395_v34  ;;  %v12416_v62 = vpack.c.bf16 %v12359_v13, %v12356_v1  ;;  %vm3921_vm1 = vweird.f32 %v15581_v61  ;;  %v3942_v21 = vand.u32 2147483648, %v15588_v53 }
 0x5d1   : > { %v12420_v43 = vpack.c.bf16 %v12365_v45, %v12362_v2  ;;  %v12424_v5 = vpack.c.bf16 %v12372_v40, %v12369_v31  ;;  %4033 = vst [vmem:[#allocation3 + $0x78] sm:$0xff] %v3993_v32  ;;  %v12428_v52 = vpack.c.bf16 %v12378_v44, %v12375_v3  ;;  %v12432_v10 = vpack.c.bf16 %v12385_v47, %v12382_v54  ;;  %vm3923_vm7 = vmor %vm3921_vm1, %vm3922_vm14 }
 0x5d2   : > { %v3920_v15 = vadd.f32 %v12158_v50, %v12265_v8  ;;  %4034 = vst [vmem:[#allocation3 + $0x80] sm:$0xff] %v3994_v39  ;;  %v12439_v30 = vpack.c.bf16 %v12392_v23, %v12388_v57  ;;  %v12443_v22 = vpack.c.bf16 %v12401_v35, %v12398_v4  ;;  %v3935_v25 = vadd.f32 %v12212_v24, %v12295_v49  ;;  %v4059_v39 = vld [vmem:[#allocation3 + $0x37] sm:$0xff] }
 0x5d3   : > { %4035 = vst [vmem:[#allocation3 + $0x88] sm:$0xff] %v3995_v46  ;;  %4324 = vmatmul.bf16.vlgmr.msra.gmra.mxu1 %v4087_v55  ;;  %v3925_v8 = vand.u32 2147483647, %v15581_v61  ;;  %vm3936_vm13 = vweird.f32 %v15588_v53  ;;  %v3940_v29 = vand.u32 2147483647, %v15588_v53  ;;  %v3928_v38 = vor.u32 1.1754944e-38, %v3927_v18 }
 0x5d4   : > { %4994 = vmatpush.bf16.msrb.mxu1 %v8441_v0  ;;  %4036 = vst [vmem:[#allocation3 + $0x90] sm:$0xff] %v12349_v60  ;;  %v3924_v49 = vsel %vm3923_vm7, %v12158_v50, %v3920_v15  ;;  %vm3938_vm12 = vmor %vm3936_vm13, %vm3937_vm10  ;;  %v3943_v61 = vor.u32 1.1754944e-38, %v3942_v21  ;;  %v15635_v50 = vld [vmem:[#allocation25_spill] sm:$0xff]  ;;  %v4575_v46 = vpack.c.bf16 %v12323_v37, %v12320_v42  ;;  %v8440_v60 = vld [vmem:[#allocation12 + $0x170] sm:$0xff]  ;;  %v4577_v17 = vpack.c.bf16 %v12339_v41, %v12336_v11 }
 0x5d5   : > { %4037 = vst [vmem:[#allocation3 + $0x98] sm:$0xff] %v12352_v33  ;;  %v3939_v27 = vsel %vm3938_vm12, %v12212_v24, %v3935_v25  ;;  %vm3926_vm0 = vcmp.eq.f32.partialorder %v3925_v8, 8.507059e+37  ;;  %vm3941_vm5 = vcmp.eq.f32.partialorder %v3940_v29, 8.507059e+37  ;;  %v15636_v24 = vld [vmem:[#allocation45_spill] sm:$0xff]  ;;  %v4061_v37 = vld [vmem:[#allocation3 + $0x47] sm:$0xff] }
 0x5d6   : > { %4038 = vst [vmem:[#allocation3 + $0xa0] sm:$0xff] %v12356_v1  ;;  %v3929_v6 = vsel %vm3926_vm0, %v3928_v38, %v3924_v49  ;;  %v3944_v53 = vsel %vm3941_vm5, %v3943_v61, %v3939_v27  ;;  %v4060_v42 = vld [vmem:[#allocation3 + $0x3f] sm:$0xff]  ;;  %v4063_v51 = vld [vmem:[#allocation3 + $0x57] sm:$0xff] }
 0x5d7   : > { %4039 = vst [vmem:[#allocation3 + $0xa8] sm:$0xff] %v12359_v13  ;;  %v3976_v7 = vmul.f32 %v3929_v6, %v15635_v50  ;;  %v3977_v32 = vmul.f32 %v3944_v53, %v15636_v24  ;;  %v12477_v13 = vpack.c.bf16 %v4059_v39, %v4058_v63  ;;  %v4066_v11 = vld [vmem:[#allocation3 + $0x6f] sm:$0xff] }
 0x5d8   : > { %4040 = vst [vmem:[#allocation3 + $0xb0] sm:$0xff] %v12362_v2  ;;  %4995 = vmatpush.bf16.msrb.mxu1 %v8440_v60  ;;  %v4576_v2 = vpack.c.bf16 %v12333_v9, %v12329_v28  ;;  %v4064_v28 = vld [vmem:[#allocation3 + $0x5f] sm:$0xff]  ;;  %v4065_v9 = vld [vmem:[#allocation3 + $0x67] sm:$0xff]  ;;  %v4067_v41 = vld [vmem:[#allocation3 + $0x77] sm:$0xff] }
 0x5d9   : > { %4041 = vst [vmem:[#allocation3 + $0xb8] sm:$0xff] %v12365_v45  ;;  %v4012_v33 = vadd.f32 %v12276_v14, %v3976_v7  ;;  %v4013_v1 = vadd.f32 %v12276_v14, %v3977_v32  ;;  %v12485_v14 = vpack.c.bf16 %v4061_v37, %v4060_v42  ;;  %v4062_v45 = vld [vmem:[#allocation3 + $0x4f] sm:$0xff] }
 0x5da   : > { %4042 = vst [vmem:[#allocation3 + $0xc0] sm:$0xff] %v12369_v31  ;;  %v8439_v31 = vld [vmem:[#allocation12 + $0x168] sm:$0xff]  ;;  %v8436_v38 = vld [vmem:[#allocation12 + $0x150] sm:$0xff] }
 0x5db   : > { %4043 = vst [vmem:[#allocation3 + $0xc8] sm:$0xff] %v12372_v40  ;;  %v12491_v40 = vpack.c.bf16 %v4063_v51, %v4062_v45 }
 0x5dc   : > { %4044 = vst [vmem:[#allocation3 + $0xd0] sm:$0xff] %v12375_v3  ;;  %4996 = vmatpush.bf16.msrb.mxu1 %v8439_v31  ;;  %v12496_v3 = vpack.c.bf16 %v4065_v9, %v4064_v28  ;;  %v4071_v48 = vld [vmem:[#allocation3 + $0x97] sm:$0xff] }
 0x5dd   : > { %4045 = vst [vmem:[#allocation3 + $0xd8] sm:$0xff] %v12378_v44  ;;  %v8438_v44 = vld [vmem:[#allocation12 + $0x160] sm:$0xff] }
 0x5de   : > { %4046 = vst [vmem:[#allocation3 + $0xe0] sm:$0xff] %v12382_v54  ;;  %v12502_v54 = vpack.c.bf16 %v4067_v41, %v4066_v11  ;;  %v4073_v0 = vld [vmem:[#allocation3 + $0xa7] sm:$0xff] }
 0x5df   : > { %4047 = vst [vmem:[#allocation3 + $0xe8] sm:$0xff] %v12385_v47  ;;  %4466 = vmatmul.bf16.gmra.mxu2 %v4087_v55  ;;  %4805 = vmatmul.bf16.gmra.mxu0 %v12395_v34  ;;  %v4068_v47 = vld [vmem:[#allocation3 + $0x7f] sm:$0xff] }
 0x5e0   : > { %4048 = vst [vmem:[#allocation3 + $0xf0] sm:$0xff] %v12388_v57  ;;  %4668 = vmatmul.bf16.gmra.mxu3 %v4575_v46  ;;  %4997 = vmatpush.bf16.msrb.mxu1 %v8438_v44  ;;  %v4069_v57 = vld [vmem:[#allocation3 + $0x87] sm:$0xff]  ;;  %v4072_v34 = vld [vmem:[#allocation3 + $0x9f] sm:$0xff]  ;;  %v4075_v49 = vld [vmem:[#allocation3 + $0xb7] sm:$0xff] }
 0x5e1   : > { %4049 = vst [vmem:[#allocation3 + $0xf8] sm:$0xff] %v12392_v23  ;;  %v12508_v19 = vpack.c.bf16 %v4069_v57, %v4068_v47  ;;  %v4070_v23 = vld [vmem:[#allocation3 + $0x8f] sm:$0xff] }
 0x5e2   : > { %4050 = vst [vmem:[#allocation3 + $0x100] sm:$0xff] %v12398_v4  ;;  %v4094_v36 = vpack.c.bf16 %v4071_v48, %v4070_v23  ;;  %v8435_v23 = vld [vmem:[#allocation12 + $0x148] sm:$0xff] }
 0x5e3   : > { %4051 = vst [vmem:[#allocation3 + $0x108] sm:$0xff] %v12401_v35  ;;  %4329 = vmatmul.bf16.gmra.mxu1 %v12477_v13  ;;  %v4095_v35 = vpack.c.bf16 %v4073_v0, %v4072_v34 }
 0x5e4   : > { %4052 = vst [vmem:[#allocation3 + $0x110] sm:$0xff] %v4012_v33  ;;  %4998 = vmatpush.bf16.msrb.mxu1 %v8437_v58  ;;  %v4076_v33 = vld [vmem:[#allocation3 + $0xbf] sm:$0xff]  ;;  %v4079_v57 = vld [vmem:[#allocation3 + $0xd7] sm:$0xff] }
 0x5e5   : > { %4053 = vst [vmem:[#allocation3 + $0x118] sm:$0xff] %v4013_v1  ;;  %v4077_v1 = vld [vmem:[#allocation3 + $0xc7] sm:$0xff] }
 0x5e6   : > { %v4097_v37 = vpack.c.bf16 %v4077_v1, %v4076_v33 }
 0x5e8   : > { %4999 = vmatpush.bf16.msrb.mxu1 %v8436_v38 }
 0x5ec   : > { %5000 = vmatpush.bf16.msrb.mxu1 %v8435_v23  ;;  %v8453_v23 = vld [vmem:[#allocation12 + $0x1d8] sm:$0xff] }
 0x5ef   : > { %4471 = vmatmul.bf16.gmra.mxu2 %v12477_v13  ;;  %4810 = vmatmul.bf16.gmra.mxu0 %v4575_v46 }
 0x5f0   : > { %4673 = vmatmul.bf16.gmra.mxu3 %v4576_v2 }
 0x5f3   : > { %4334 = vmatmul.bf16.gmra.mxu1 %v12485_v14 }
 0x5ff   : > { %4476 = vmatmul.bf16.gmra.mxu2 %v12485_v14  ;;  %4815 = vmatmul.bf16.gmra.mxu0 %v4576_v2 }
 0x600   : > { %4678 = vmatmul.bf16.gmra.mxu3 %v4577_v17 }
 0x603   : > { %4339 = vmatmul.bf16.gmra.mxu1 %v12491_v40 }
 0x60f   : > { %4481 = vmatmul.bf16.gmra.mxu2 %v12491_v40  ;;  %4820 = vmatmul.bf16.gmra.mxu0 %v4577_v17 }
 0x610   : > { %4683 = vmatmul.bf16.gmra.mxu3 %v12403_v56 }
 0x613   : > { %4344 = vmatmul.bf16.gmra.mxu1 %v12496_v3 }
 0x61f   : > { %4486 = vmatmul.bf16.gmra.mxu2 %v12496_v3  ;;  %4825 = vmatmul.bf16.gmra.mxu0 %v12403_v56 }
 0x620   : > { %4688 = vmatmul.bf16.gmra.mxu3 %v12405_v59 }
 0x623   : > { %4349 = vmatmul.bf16.gmra.mxu1 %v12502_v54 }
 0x62f   : > { %4491 = vmatmul.bf16.gmra.mxu2 %v12502_v54  ;;  %4830 = vmatmul.bf16.gmra.mxu0 %v12405_v59 }
 0x630   : > { %4693 = vmatmul.bf16.gmra.mxu3 %v12407_v20 }
 0x633   : > { %4354 = vmatmul.bf16.gmra.mxu1 %v12508_v19 }
 0x63f   : > { %4496 = vmatmul.bf16.gmra.mxu2 %v12508_v19  ;;  %4835 = vmatmul.bf16.gmra.mxu0 %v12407_v20 }
 0x640   : > { %4698 = vmatmul.bf16.gmra.mxu3 %v12411_v12 }
 0x643   : > { %4359 = vmatmul.bf16.gmra.mxu1 %v4094_v36 }
 0x64c   : > { %v4801_v16 = vpop.f32.mrf.mxu0 }
 0x64f   : > { %4501 = vmatmul.bf16.gmra.mxu2 %v4094_v36  ;;  %4840 = vmatmul.bf16.gmra.mxu0 %v12411_v12  ;;  %v4074_v12 = vld [vmem:[#allocation3 + $0xaf] sm:$0xff] }
 0x650   : > { %v4325_v4 = vpop.f32.mrf.mxu1  ;;  %4703 = vmatmul.bf16.gmra.mxu3 %v12416_v62  ;;  %v4096_v61 = vpack.c.bf16 %v4075_v49, %v4074_v12  ;;  %v8457_v12 = vld [vmem:[#allocation12 + $0x1f8] sm:$0xff] }
 0x651   : > { %5567 = vmatpush.bf16.msra.mxu0 %v8457_v12 }
 0x652   : > { %v4462_v26 = vpop.f32.mrf.mxu2 }
 0x653   : > { %v12516_v56 = vadd.f32 %v4462_v26, %v4325_v4  ;;  %4364 = vmatmul.bf16.gmra.mxu1 %v4095_v35  ;;  %v4664_v59 = vpop.f32.mrf.mxu3 }
 0x654   : > { %v4803_v55 = vpop.f32.mrf.mxu0  ;;  %v12518_v20 = vadd.f32 %v4801_v16, %v4664_v59 }
 0x658   : > { %v4327_v15 = vpop.f32.mrf.mxu1 }
 0x65a   : > { %v4464_v18 = vpop.f32.mrf.mxu2 }
 0x65b   : > { %v12520_v25 = vadd.f32 %v4464_v18, %v4327_v15  ;;  %v4666_v8 = vpop.f32.mrf.mxu3  ;;  %v4080_v18 = vld [vmem:[#allocation3 + $0xdf] sm:$0xff] }
 0x65c   : > { %v4806_v21 = vpop.f32.mrf.mxu0  ;;  %v12522_v29 = vadd.f32 %v4803_v55, %v4666_v8  ;;  %v4081_v8 = vld [vmem:[#allocation3 + $0xe7] sm:$0xff] }
 0x65d   : > { %v4099_v38 = vpack.c.bf16 %v4081_v8, %v4080_v18  ;;  %v8447_v18 = vld [vmem:[#allocation12 + $0x1a8] sm:$0xff] }
 0x65e   : > { %v8451_v8 = vld [vmem:[#allocation12 + $0x1c8] sm:$0xff] }
 0x65f   : > { %4506 = vmatmul.bf16.gmra.mxu2 %v4095_v35  ;;  %4845 = vmatmul.bf16.gmra.mxu0 %v12416_v62 }
 0x660   : > { %v4330_v27 = vpop.f32.mrf.mxu1  ;;  %4708 = vmatmul.bf16.gmra.mxu3 %v12420_v43 }
 0x662   : > { %v4467_v6 = vpop.f32.mrf.mxu2 }
 0x663   : > { %v12526_v53 = vadd.f32 %v4467_v6, %v4330_v27  ;;  %4369 = vmatmul.bf16.gmra.mxu1 %v4096_v61  ;;  %v4669_v50 = vpop.f32.mrf.mxu3 }
 0x664   : > { %v4808_v7 = vpop.f32.mrf.mxu0  ;;  %v12528_v24 = vadd.f32 %v4806_v21, %v4669_v50  ;;  %v8417_v21 = vld [vmem:[#allocation12 + $0xb8] sm:$0xff] }
 0x665   : > { %5131 = vmatpush.bf16.msrb.mxu2 %v8417_v21 }
 0x668   : > { %v4332_v32 = vpop.f32.mrf.mxu1 }
 0x66a   : > { %v4469_v63 = vpop.f32.mrf.mxu2 }
 0x66b   : > { %v12530_v39 = vadd.f32 %v4469_v63, %v4332_v32  ;;  %v4671_v46 = vpop.f32.mrf.mxu3  ;;  %v8416_v32 = vld [vmem:[#allocation12 + $0xb0] sm:$0xff] }
 0x66c   : > { %v4811_v62 = vpop.f32.mrf.mxu0  ;;  %v12532_v60 = vadd.f32 %v4808_v7, %v4671_v46  ;;  %v8456_v63 = vld [vmem:[#allocation12 + $0x1f0] sm:$0xff]  ;;  %5132 = vmatpush.bf16.msrb.mxu2 %v8416_v32  ;;  %v8455_v46 = vld [vmem:[#allocation12 + $0x1e8] sm:$0xff]  ;;  %v8446_v32 = vld [vmem:[#allocation12 + $0x1a0] sm:$0xff] }
 0x66d   : > { %5568 = vmatpush.bf16.msra.mxu0 %v8456_v63  ;;  %v8450_v63 = vld [vmem:[#allocation12 + $0x1c0] sm:$0xff] }
 0x66f   : > { %4511 = vmatmul.bf16.gmra.mxu2 %v4096_v61  ;;  %4850 = vmatmul.bf16.gmra.mxu0 %v12420_v43  ;;  %v4078_v43 = vld [vmem:[#allocation3 + $0xcf] sm:$0xff] }
 0x670   : > { %v4335_v42 = vpop.f32.mrf.mxu1  ;;  %4713 = vmatmul.bf16.gmra.mxu3 %v12424_v5  ;;  %v4098_v58 = vpack.c.bf16 %v4079_v57, %v4078_v43  ;;  %v8449_v43 = vld [vmem:[#allocation12 + $0x1b8] sm:$0xff] }
 0x671   : > { %5569 = vmatpush.bf16.msra.mxu0 %v8455_v46  ;;  %5333 = vmatpush.bf16.msra.mxu3 %v8449_v43  ;;  %v4085_v46 = vld [vmem:[#allocation3 + $0x107] sm:$0xff] }
 0x672   : > { %v4472_v2 = vpop.f32.mrf.mxu2 }
 0x673   : > { %v12536_v45 = vadd.f32 %v4472_v2, %v4335_v42  ;;  %4374 = vmatmul.bf16.gmra.mxu1 %v4097_v37  ;;  %v4674_v51 = vpop.f32.mrf.mxu3 }
 0x674   : > { %v4813_v17 = vpop.f32.mrf.mxu0  ;;  %v12538_v31 = vadd.f32 %v4811_v62, %v4674_v51  ;;  %v8414_v51 = vld [vmem:[#allocation12 + $0xa0] sm:$0xff] }
 0x678   : > { %v4337_v28 = vpop.f32.mrf.mxu1 }
 0x67a   : > { %v4474_v9 = vpop.f32.mrf.mxu2 }
 0x67b   : > { %v12540_v11 = vadd.f32 %v4474_v9, %v4337_v28  ;;  %v4676_v41 = vpop.f32.mrf.mxu3  ;;  %v4082_v28 = vld [vmem:[#allocation3 + $0xef] sm:$0xff]  ;;  %v4083_v9 = vld [vmem:[#allocation3 + $0xf7] sm:$0xff] }
 0x67c   : > { %v4816_v44 = vpop.f32.mrf.mxu0  ;;  %v12542_v47 = vadd.f32 %v4813_v17, %v4676_v41  ;;  %v8454_v17 = vld [vmem:[#allocation12 + $0x1e0] sm:$0xff] }
 0x67d   : > { %5570 = vmatpush.bf16.msra.mxu0 %v8454_v17  ;;  %v8434_v41 = vld [vmem:[#allocation12 + $0x140] sm:$0xff] }
 0x67e   : > { %5001 = vmatpush.bf16.msrb.mxu1 %v8434_v41  ;;  %v8444_v41 = vld [vmem:[#allocation12 + $0x190] sm:$0xff] }
 0x67f   : > { %4516 = vmatmul.bf16.gmra.mxu2 %v4097_v37  ;;  %4855 = vmatmul.bf16.gmra.mxu0 %v12424_v5 }
 0x680   : > { %v4340_v48 = vpop.f32.mrf.mxu1  ;;  %4718 = vmatmul.bf16.gmra.mxu3 %v12428_v52 }
 0x681   : > { %5571 = vmatpush.bf16.msra.mxu0 %v8453_v23 }
 0x682   : > { %v4477_v36 = vpop.f32.mrf.mxu2 }
 0x683   : > { %v12546_v16 = vadd.f32 %v4477_v36, %v4340_v48  ;;  %4379 = vmatmul.bf16.gmra.mxu1 %v4098_v58  ;;  %v4679_v34 = vpop.f32.mrf.mxu3  ;;  %v4100_v48 = vpack.c.bf16 %v4083_v9, %v4082_v28 }
 0x684   : > { %v4818_v0 = vpop.f32.mrf.mxu0  ;;  %v12548_v4 = vadd.f32 %v4816_v44, %v4679_v34  ;;  %v8413_v44 = vld [vmem:[#allocation12 + $0x98] sm:$0xff] }
 0x688   : > { %v4342_v35 = vpop.f32.mrf.mxu1 }
 0x68a   : > { %v4479_v26 = vpop.f32.mrf.mxu2 }
 0x68b   : > { %v12550_v59 = vadd.f32 %v4479_v26, %v4342_v35  ;;  %v4681_v55 = vpop.f32.mrf.mxu3  ;;  %v8448_v26 = vld [vmem:[#allocation12 + $0x1b0] sm:$0xff] }
 0x68c   : > { %v4821_v5 = vpop.f32.mrf.mxu0  ;;  %v12552_v15 = vadd.f32 %v4818_v0, %v4681_v55  ;;  %v8452_v55 = vld [vmem:[#allocation12 + $0x1d0] sm:$0xff]  ;;  %5334 = vmatpush.bf16.msra.mxu3 %v8448_v26 }
 0x68d   : > { %5572 = vmatpush.bf16.msra.mxu0 %v8452_v55  ;;  %v4248_v26 = vld [vmem:[#allocation3 + $0x10f] sm:$0xff]  ;;  %v4249_v55 = vld [vmem:[#allocation3 + $0x117] sm:$0xff] }
 0x68f   : > { %4521 = vmatmul.bf16.gmra.mxu2 %v4098_v58  ;;  %4860 = vmatmul.bf16.gmra.mxu0 %v12428_v52  ;;  %v8415_v52 = vld [vmem:[#allocation12 + $0xa8] sm:$0xff] }
 0x690   : > { %v4345_v49 = vpop.f32.mrf.mxu1  ;;  %4723 = vmatmul.bf16.gmra.mxu3 %v12432_v10  ;;  %5133 = vmatpush.bf16.msrb.mxu2 %v8415_v52  ;;  %v4084_v52 = vld [vmem:[#allocation3 + $0xff] sm:$0xff] }
 0x691   : > { %5335 = vmatpush.bf16.msra.mxu3 %v8447_v18  ;;  %5573 = vmatpush.bf16.msra.mxu0 %v8451_v8  ;;  %v8465_v18 = vld [vmem:[#allocation12 + $0x238] sm:$0xff] }
 0x692   : > { %v4482_v27 = vpop.f32.mrf.mxu2  ;;  %5801 = vmatpush.bf16.msra.mxu1 %v8465_v18 }
 0x693   : > { %v12556_v61 = vadd.f32 %v4482_v27, %v4345_v49  ;;  %4384 = vmatmul.bf16.gmra.mxu1 %v4099_v38  ;;  %v4684_v6 = vpop.f32.mrf.mxu3 }
 0x694   : > { %v4823_v50 = vpop.f32.mrf.mxu0  ;;  %v12558_v7 = vadd.f32 %v4821_v5, %v4684_v6  ;;  %5134 = vmatpush.bf16.msrb.mxu2 %v8414_v51  ;;  %v8411_v5 = vld [vmem:[#allocation12 + $0x88] sm:$0xff] }
 0x695   : > { %5336 = vmatpush.bf16.msra.mxu3 %v8446_v32  ;;  %5574 = vmatpush.bf16.msra.mxu0 %v8450_v63 }
 0x698   : > { %v4347_v62 = vpop.f32.mrf.mxu1  ;;  %5135 = vmatpush.bf16.msrb.mxu2 %v8413_v44  ;;  %v8443_v44 = vld [vmem:[#allocation12 + $0x188] sm:$0xff] }
 0x69a   : > { %v4484_v33 = vpop.f32.mrf.mxu2 }
 0x69b   : > { %v12560_v1 = vadd.f32 %v4484_v33, %v4347_v62  ;;  %v4686_v42 = vpop.f32.mrf.mxu3  ;;  %v8445_v62 = vld [vmem:[#allocation12 + $0x198] sm:$0xff] }
 0x69c   : > { %v4826_v37 = vpop.f32.mrf.mxu0  ;;  %v12562_v2 = vadd.f32 %v4823_v50, %v4686_v42  ;;  %v8410_v50 = vld [vmem:[#allocation12 + $0x80] sm:$0xff]  ;;  %v4101_v42 = vpack.c.bf16 %v4085_v46, %v4084_v52  ;;  %5337 = vmatpush.bf16.msra.mxu3 %v8445_v62  ;;  %v4183_v52 = vld [vmem:[#allocation3 + $0x11] sm:$0xff] }
 0x69d   : > { %v5454_v62 = vld [vmem:[#allocation3 + $0x30] sm:$0xff] }
 0x69f   : > { %4526 = vmatmul.bf16.gmra.mxu2 %v4099_v38  ;;  %4865 = vmatmul.bf16.gmra.mxu0 %v12432_v10  ;;  %v8412_v10 = vld [vmem:[#allocation12 + $0x90] sm:$0xff] }
 0x6a0   : > { %v4350_v57 = vpop.f32.mrf.mxu1  ;;  %4728 = vmatmul.bf16.gmra.mxu3 %v12439_v30  ;;  %5136 = vmatpush.bf16.msrb.mxu2 %v8412_v10  ;;  %v8442_v10 = vld [vmem:[#allocation12 + $0x180] sm:$0xff] }
 0x6a1   : > { %5338 = vmatpush.bf16.msra.mxu3 %v8444_v41 }
 0x6a2   : > { %v4487_v58 = vpop.f32.mrf.mxu2 }
 0x6a3   : > { %v12566_v36 = vadd.f32 %v4487_v58, %v4350_v57  ;;  %4389 = vmatmul.bf16.gmra.mxu1 %v4100_v48  ;;  %v4689_v34 = vpop.f32.mrf.mxu3  ;;  %v4573_v58 = vld [vmem:[#allocation3 + $0x118] sm:$0xff] }
 0x6a4   : > { %v4828_v0 = vpop.f32.mrf.mxu0  ;;  %v12568_v35 = vadd.f32 %v4826_v37, %v4689_v34  ;;  %5137 = vmatpush.bf16.msrb.mxu2 %v8411_v5 }
 0x6a5   : > { %5339 = vmatpush.bf16.msra.mxu3 %v8443_v44 }
 0x6a8   : > { %v4352_v21 = vpop.f32.mrf.mxu1  ;;  %5138 = vmatpush.bf16.msrb.mxu2 %v8410_v50 }
 0x6a9   : > { %5340 = vmatpush.bf16.msra.mxu3 %v8442_v10 }
 0x6aa   : > { %v4489_v12 = vpop.f32.mrf.mxu2 }
 0x6ab   : > { %v12570_v49 = vadd.f32 %v4489_v12, %v4352_v21  ;;  %v4691_v38 = vpop.f32.mrf.mxu3  ;;  %v12588_v21 = vpack.c.bf16 %v4249_v55, %v4248_v26 }
 0x6ac   : > { %v4831_v27 = vpop.f32.mrf.mxu0  ;;  %v12572_v6 = vadd.f32 %v4828_v0, %v4691_v38 }
 0x6af   : > { %4531 = vmatmul.bf16.gmra.mxu2 %v4100_v48  ;;  %4870 = vmatmul.bf16.gmra.mxu0 %v12439_v30  ;;  %v4572_v48 = vld [vmem:[#allocation3 + $0x110] sm:$0xff] }
 0x6b0   : > { %v4355_v33 = vpop.f32.mrf.mxu1  ;;  %4733 = vmatmul.bf16.gmra.mxu3 %v12443_v22  ;;  %v12584_v5 = vpack.c.bf16 %v4573_v58, %v4572_v48 }
 0x6b2   : > { %v4492_v37 = vpop.f32.mrf.mxu2 }
 0x6b3   : > { %v12576_v51 = vadd.f32 %v4492_v37, %v4355_v33  ;;  %4394 = vmatmul.bf16.gmra.mxu1 %v4101_v42  ;;  %v4694_v17 = vpop.f32.mrf.mxu3  ;;  %v5455_v33 = vld [vmem:[#allocation3 + $0x38] sm:$0xff] }
 0x6b4   : > { %v4833_v28 = vpop.f32.mrf.mxu0  ;;  %v12578_v9 = vadd.f32 %v4831_v27, %v4694_v17  ;;  %v5486_v44 = vpack.c.bf16 %v5455_v33, %v5454_v62  ;;  %v4884_v62 = vld [vmem:[#allocation3 + $0x39] sm:$0xff] }
 0x6b5   : > { %v8464_v33 = vld [vmem:[#allocation12 + $0x230] sm:$0xff] }
 0x6b6   : > { %5802 = vmatpush.bf16.msra.mxu1 %v8464_v33 }
 0x6b8   : > { %v4357_v43 = vpop.f32.mrf.mxu1 }
 0x6ba   : > { %v4494_v30 = vpop.f32.mrf.mxu2 }
 0x6bb   : > { %v12580_v57 = vadd.f32 %v4494_v30, %v4357_v43  ;;  %v4696_v23 = vpop.f32.mrf.mxu3  ;;  %v4881_v43 = vld [vmem:[#allocation3 + $0x21] sm:$0xff]  ;;  %v4882_v30 = vld [vmem:[#allocation3 + $0x29] sm:$0xff] }
 0x6bc   : > { %v4836_v34 = vpop.f32.mrf.mxu0  ;;  %v12582_v0 = vadd.f32 %v4833_v28, %v4696_v23  ;;  %v4913_v48 = vpack.c.bf16 %v4882_v30, %v4881_v43 }
 0x6bf   : > { %4536 = vmatmul.bf16.gmra.mxu2 %v4101_v42  ;;  %4875 = vmatmul.bf16.gmra.mxu0 %v12443_v22  ;;  %v4184_v22 = vld [vmem:[#allocation3 + $0x19] sm:$0xff] }
 0x6c0   : > { %v4360_v8 = vpop.f32.mrf.mxu1  ;;  %4738 = vmatmul.bf16.gmra.mxu3 %v12584_v5  ;;  %v4215_v41 = vpack.c.bf16 %v4184_v22, %v4183_v52  ;;  %v4883_v22 = vld [vmem:[#allocation3 + $0x31] sm:$0xff] }
 0x6c2   : > { %v4497_v12 = vpop.f32.mrf.mxu2 }
 0x6c3   : > { %v12590_v38 = vadd.f32 %v4497_v12, %v4360_v8  ;;  %4399 = vmatmul.bf16.gmra.mxu1 %v12588_v21  ;;  %v4699_v27 = vpop.f32.mrf.mxu3  ;;  %v5456_v12 = vld [vmem:[#allocation3 + $0x40] sm:$0xff] }
 0x6c4   : > { %v4838_v50 = vpop.f32.mrf.mxu0  ;;  %v12593_v32 = vadd.f32 %v4836_v34, %v4699_v27  ;;  %v5457_v27 = vld [vmem:[#allocation3 + $0x48] sm:$0xff] }
 0x6c8   : > { %v4362_v63 = vpop.f32.mrf.mxu1 }
 0x6ca   : > { %v4499_v46 = vpop.f32.mrf.mxu2 }
 0x6cb   : > { %v12595_v42 = vadd.f32 %v4499_v46, %v4362_v63  ;;  %v4701_v37 = vpop.f32.mrf.mxu3 }
 0x6cc   : > { %v4841_v17 = vpop.f32.mrf.mxu0  ;;  %v12597_v28 = vadd.f32 %v4838_v50, %v4701_v37 }
 0x6cf   : > { %5139 = vmatmul.bf16.vlgmr.msrb.gmra.mxu2 %v4215_v41  ;;  %5575 = vmatmul.bf16.vlgmr.msra.gmra.mxu0 %v5486_v44 }
 0x6d0   : > { %v4365_v23 = vpop.f32.mrf.mxu1  ;;  %5341 = vmatmul.bf16.vlgmr.msra.gmra.mxu3 %v12477_v13  ;;  %v5487_v13 = vpack.c.bf16 %v5457_v27, %v5456_v12 }
 0x6d2   : > { %v4502_v58 = vpop.f32.mrf.mxu2 }
 0x6d3   : > { %v12600_v34 = vadd.f32 %v4502_v58, %v4365_v23  ;;  %5002 = vmatmul.bf16.vlgmr.msrb.gmra.mxu1 %v4913_v48  ;;  %v4704_v10 = vpop.f32.mrf.mxu3 }
 0x6d4   : > { %v4843_v26 = vpop.f32.mrf.mxu0  ;;  %v12602_v55 = vadd.f32 %v4841_v17, %v4704_v10  ;;  %v12609_v17 = vpack.c.bf16 %v4884_v62, %v4883_v22 }
 0x6d8   : > { %v4367_v18 = vpop.f32.mrf.mxu1 }
 0x6da   : > { %v4504_v8 = vpop.f32.mrf.mxu2 }
 0x6db   : > { %v12604_v50 = vadd.f32 %v4504_v8, %v4367_v18  ;;  %v4706_v63 = vpop.f32.mrf.mxu3 }
 0x6dc   : > { %v4846_v52 = vpop.f32.mrf.mxu0  ;;  %v12606_v46 = vadd.f32 %v4843_v26, %v4706_v63  ;;  %v5459_v26 = vld [vmem:[#allocation3 + $0x58] sm:$0xff]  ;;  %v4885_v63 = vld [vmem:[#allocation3 + $0x41] sm:$0xff] }
 0x6df   : > { %5144 = vmatmul.bf16.gmra.mxu2 %v4913_v48  ;;  %5580 = vmatmul.bf16.gmra.mxu0 %v5487_v13  ;;  %v5458_v48 = vld [vmem:[#allocation3 + $0x50] sm:$0xff] }
 0x6e0   : > { %v4370_v37 = vpop.f32.mrf.mxu1  ;;  %5346 = vmatmul.bf16.gmra.mxu3 %v12485_v14  ;;  %v5488_v27 = vpack.c.bf16 %v5459_v26, %v5458_v48  ;;  %v4886_v13 = vld [vmem:[#allocation3 + $0x49] sm:$0xff] }
 0x6e1   : > { %v5461_v48 = vld [vmem:[#allocation3 + $0x68] sm:$0xff] }
 0x6e2   : > { %v4507_v41 = vpop.f32.mrf.mxu2 }
 0x6e3   : > { %v12611_v44 = vadd.f32 %v4507_v41, %v4370_v37  ;;  %5007 = vmatmul.bf16.gmra.mxu1 %v12609_v17  ;;  %v4709_v43 = vpop.f32.mrf.mxu3 }
 0x6e4   : > { %v4848_v30 = vpop.f32.mrf.mxu0  ;;  %v12614_v23 = vadd.f32 %v4846_v52, %v4709_v43  ;;  %v12622_v52 = vpack.c.bf16 %v4886_v13, %v4885_v63  ;;  %v4887_v13 = vld [vmem:[#allocation3 + $0x51] sm:$0xff] }
 0x6e8   : > { %v4372_v58 = vpop.f32.mrf.mxu1 }
 0x6ea   : > { %v4509_v10 = vpop.f32.mrf.mxu2 }
 0x6eb   : > { %v12616_v18 = vadd.f32 %v4509_v10, %v4372_v58  ;;  %v4711_v8 = vpop.f32.mrf.mxu3  ;;  %v5460_v10 = vld [vmem:[#allocation3 + $0x60] sm:$0xff] }
 0x6ec   : > { %v4851_v14 = vpop.f32.mrf.mxu0  ;;  %v12618_v12 = vadd.f32 %v4848_v30, %v4711_v8  ;;  %v5489_v63 = vpack.c.bf16 %v5461_v48, %v5460_v10 }
 0x6ef   : > { %5149 = vmatmul.bf16.gmra.mxu2 %v12609_v17  ;;  %5585 = vmatmul.bf16.gmra.mxu0 %v5488_v27 }
 0x6f0   : > { %v4375_v22 = vpop.f32.mrf.mxu1  ;;  %5351 = vmatmul.bf16.gmra.mxu3 %v12491_v40 }
 0x6f2   : > { %v4512_v62 = vpop.f32.mrf.mxu2 }
 0x6f3   : > { %v12624_v33 = vadd.f32 %v4512_v62, %v4375_v22  ;;  %5012 = vmatmul.bf16.gmra.mxu1 %v12622_v52  ;;  %v4714_v37 = vpop.f32.mrf.mxu3  ;;  %v4888_v22 = vld [vmem:[#allocation3 + $0x59] sm:$0xff]  ;;  %v8463_v62 = vld [vmem:[#allocation12 + $0x228] sm:$0xff] }
 0x6f4   : > { %v4853_v41 = vpop.f32.mrf.mxu0  ;;  %v12627_v43 = vadd.f32 %v4851_v14, %v4714_v37  ;;  %v12635_v14 = vpack.c.bf16 %v4888_v22, %v4887_v13  ;;  %5803 = vmatpush.bf16.msra.mxu1 %v8463_v62  ;;  %v4889_v62 = vld [vmem:[#allocation3 + $0x61] sm:$0xff] }
 0x6f5   : > { %15637 = vst [vmem:[#allocation35_spill] sm:$0xff] %v12624_v33 }
 0x6f6   : > { %15638 = vst [vmem:[#allocation56_spill] sm:$0xff] %v12627_v43 }
 0x6f7   : > { %15641 = vst [vmem:[#allocation38_spill] sm:$0xff] %v12635_v14 }
 0x6f8   : > { %v4377_v30 = vpop.f32.mrf.mxu1 }
 0x6fa   : > { %v4514_v58 = vpop.f32.mrf.mxu2 }
 0x6fb   : > { %v12629_v26 = vadd.f32 %v4514_v58, %v4377_v30  ;;  %v4716_v8 = vpop.f32.mrf.mxu3 }
 0x6fc   : > { %v4856_v27 = vpop.f32.mrf.mxu0  ;;  %v12631_v40 = vadd.f32 %v4853_v41, %v4716_v8 }
 0x6fd   : > { %15639 = vst [vmem:[#allocation118_spill] sm:$0xff] %v12629_v26 }
 0x6fe   : > { %15640 = vst [vmem:[#allocation119_spill] sm:$0xff] %v12631_v40  ;;  %v5462_v40 = vld [vmem:[#allocation3 + $0x70] sm:$0xff] }
 0x6ff   : > { %5154 = vmatmul.bf16.gmra.mxu2 %v12622_v52  ;;  %5590 = vmatmul.bf16.gmra.mxu0 %v5489_v63  ;;  %v5463_v63 = vld [vmem:[#allocation3 + $0x78] sm:$0xff] }
 0x700   : > { %v4380_v33 = vpop.f32.mrf.mxu1  ;;  %5356 = vmatmul.bf16.gmra.mxu3 %v12496_v3  ;;  %v5490_v22 = vpack.c.bf16 %v5463_v63, %v5462_v40  ;;  %v5464_v63 = vld [vmem:[#allocation3 + $0x80] sm:$0xff] }
 0x702   : > { %v4517_v37 = vpop.f32.mrf.mxu2 }
 0x703   : > { %v12637_v30 = vadd.f32 %v4517_v37, %v4380_v33  ;;  %5017 = vmatmul.bf16.gmra.mxu1 %v12635_v14  ;;  %v4719_v41 = vpop.f32.mrf.mxu3  ;;  %v4890_v33 = vld [vmem:[#allocation3 + $0x69] sm:$0xff] }
 0x704   : > { %v4858_v58 = vpop.f32.mrf.mxu0  ;;  %v12640_v10 = vadd.f32 %v4856_v27, %v4719_v41  ;;  %v12648_v27 = vpack.c.bf16 %v4890_v33, %v4889_v62  ;;  %v4891_v33 = vld [vmem:[#allocation3 + $0x71] sm:$0xff] }
 0x705   : > { %15642 = vst [vmem:[#allocation59_spill] sm:$0xff] %v12637_v30 }
 0x706   : > { %15643 = vst [vmem:[#allocation120_spill] sm:$0xff] %v12640_v10 }
 0x707   : > { %15646 = vst [vmem:[#allocation111_spill] sm:$0xff] %v12648_v27 }
 0x708   : > { %v4382_v48 = vpop.f32.mrf.mxu1 }
 0x70a   : > { %v4519_v8 = vpop.f32.mrf.mxu2 }
 0x70b   : > { %v12642_v26 = vadd.f32 %v4519_v8, %v4382_v48  ;;  %v4721_v43 = vpop.f32.mrf.mxu3 }
 0x70c   : > { %v4861_v3 = vpop.f32.mrf.mxu0  ;;  %v12644_v13 = vadd.f32 %v4858_v58, %v4721_v43 }
 0x70d   : > { %15644 = vst [vmem:[#allocation33_spill] sm:$0xff] %v12642_v26 }
 0x70e   : > { %15645 = vst [vmem:[#allocation110_spill] sm:$0xff] %v12644_v13  ;;  %v5465_v13 = vld [vmem:[#allocation3 + $0x88] sm:$0xff] }
 0x70f   : > { %5159 = vmatmul.bf16.gmra.mxu2 %v12635_v14  ;;  %5595 = vmatmul.bf16.gmra.mxu0 %v5490_v22  ;;  %v5491_v62 = vpack.c.bf16 %v5465_v13, %v5464_v63 }
 0x710   : > { %v4385_v37 = vpop.f32.mrf.mxu1  ;;  %5361 = vmatmul.bf16.gmra.mxu3 %v12502_v54 }
 0x712   : > { %v4522_v41 = vpop.f32.mrf.mxu2 }
 0x713   : > { %v12650_v10 = vadd.f32 %v4522_v41, %v4385_v37  ;;  %5022 = vmatmul.bf16.gmra.mxu1 %v12648_v27  ;;  %v4724_v48 = vpop.f32.mrf.mxu3  ;;  %v4892_v37 = vld [vmem:[#allocation3 + $0x79] sm:$0xff]  ;;  %v8462_v41 = vld [vmem:[#allocation12 + $0x220] sm:$0xff] }
 0x714   : > { %v4863_v8 = vpop.f32.mrf.mxu0  ;;  %v12653_v43 = vadd.f32 %v4861_v3, %v4724_v48  ;;  %v12661_v3 = vpack.c.bf16 %v4892_v37, %v4891_v33  ;;  %5804 = vmatpush.bf16.msra.mxu1 %v8462_v41  ;;  %v5233_v33 = vld [vmem:[#allocation3 + $0x97] sm:$0xff] }
 0x715   : > { %15647 = vst [vmem:[#allocation28_spill] sm:$0xff] %v12650_v10 }
 0x716   : > { %15648 = vst [vmem:[#allocation48_spill] sm:$0xff] %v12653_v43 }
 0x717   : > { %15651 = vst [vmem:[#allocation30_spill] sm:$0xff] %v12661_v3 }
 0x718   : > { %v4387_v40 = vpop.f32.mrf.mxu1 }
 0x71a   : > { %v4524_v58 = vpop.f32.mrf.mxu2 }
 0x71b   : > { %v12655_v26 = vadd.f32 %v4524_v58, %v4387_v40  ;;  %v4726_v22 = vpop.f32.mrf.mxu3 }
 0x71c   : > { %v4866_v30 = vpop.f32.mrf.mxu0  ;;  %v12657_v54 = vadd.f32 %v4863_v8, %v4726_v22 }
 0x71d   : > { %15649 = vst [vmem:[#allocation112_spill] sm:$0xff] %v12655_v26 }
 0x71e   : > { %15650 = vst [vmem:[#allocation113_spill] sm:$0xff] %v12657_v54  ;;  %v5466_v54 = vld [vmem:[#allocation3 + $0x90] sm:$0xff] }
 0x71f   : > { %5164 = vmatmul.bf16.gmra.mxu2 %v12648_v27  ;;  %5600 = vmatmul.bf16.gmra.mxu0 %v5491_v62  ;;  %v5467_v62 = vld [vmem:[#allocation3 + $0x98] sm:$0xff] }
 0x720   : > { %v4390_v10 = vpop.f32.mrf.mxu1  ;;  %5366 = vmatmul.bf16.gmra.mxu3 %v12508_v19  ;;  %v5232_v19 = vld [vmem:[#allocation3 + $0x8f] sm:$0xff] }
 0x721   : > { %v5258_v27 = vpack.c.bf16 %v5233_v33, %v5232_v19  ;;  %v5469_v19 = vld [vmem:[#allocation3 + $0xa8] sm:$0xff] }
 0x722   : > { %v4527_v48 = vpop.f32.mrf.mxu2 }
 0x723   : > { %v12663_v40 = vadd.f32 %v4527_v48, %v4390_v10  ;;  %5027 = vmatmul.bf16.gmra.mxu1 %v12661_v3  ;;  %v4729_v8 = vpop.f32.mrf.mxu3  ;;  %v5492_v10 = vpack.c.bf16 %v5467_v62, %v5466_v54  ;;  %v4893_v48 = vld [vmem:[#allocation3 + $0x81] sm:$0xff] }
 0x724   : > { %v4868_v58 = vpop.f32.mrf.mxu0  ;;  %v12666_v13 = vadd.f32 %v4866_v30, %v4729_v8  ;;  %v5468_v62 = vld [vmem:[#allocation3 + $0xa0] sm:$0xff] }
 0x725   : > { %15652 = vst [vmem:[#allocation50_spill] sm:$0xff] %v12663_v40  ;;  %v4894_v40 = vld [vmem:[#allocation3 + $0x89] sm:$0xff] }
 0x726   : > { %15653 = vst [vmem:[#allocation114_spill] sm:$0xff] %v12666_v13  ;;  %v12673_v8 = vpack.c.bf16 %v4894_v40, %v4893_v48 }
 0x728   : > { %v4392_v63 = vpop.f32.mrf.mxu1  ;;  %15656 = vst [vmem:[#allocation116_spill] sm:$0xff] %v12673_v8 }
 0x72a   : > { %v4529_v22 = vpop.f32.mrf.mxu2 }
 0x72b   : > { %v12668_v26 = vadd.f32 %v4529_v22, %v4392_v63  ;;  %v4731_v43 = vpop.f32.mrf.mxu3 }
 0x72c   : > { %v4871_v37 = vpop.f32.mrf.mxu0  ;;  %v12670_v41 = vadd.f32 %v4868_v58, %v4731_v43 }
 0x72d   : > { %15654 = vst [vmem:[#allocation115_spill] sm:$0xff] %v12668_v26 }
 0x72e   : > { %15655 = vst [vmem:[#allocation53_spill] sm:$0xff] %v12670_v41  ;;  %v5234_v41 = vld [vmem:[#allocation3 + $0x9f] sm:$0xff] }
 0x72f   : > { %5169 = vmatmul.bf16.gmra.mxu2 %v12661_v3  ;;  %5605 = vmatmul.bf16.gmra.mxu0 %v5492_v10 }
 0x730   : > { %v4395_v30 = vpop.f32.mrf.mxu1  ;;  %5371 = vmatmul.bf16.gmra.mxu3 %v5258_v27  ;;  %v5235_v27 = vld [vmem:[#allocation3 + $0xa7] sm:$0xff] }
 0x731   : > { %v5259_v3 = vpack.c.bf16 %v5235_v27, %v5234_v41  ;;  %v5470_v27 = vld [vmem:[#allocation3 + $0xb0] sm:$0xff] }
 0x732   : > { %v4532_v13 = vpop.f32.mrf.mxu2 }
 0x733   : > { %v12675_v63 = vadd.f32 %v4532_v13, %v4395_v30  ;;  %5032 = vmatmul.bf16.gmra.mxu1 %v12673_v8  ;;  %v4734_v22 = vpop.f32.mrf.mxu3  ;;  %v5493_v13 = vpack.c.bf16 %v5469_v19, %v5468_v62  ;;  %v4895_v30 = vld [vmem:[#allocation3 + $0x91] sm:$0xff] }
 0x734   : > { %v4873_v26 = vpop.f32.mrf.mxu0  ;;  %v12678_v43 = vadd.f32 %v4871_v37, %v4734_v22  ;;  %v8461_v37 = vld [vmem:[#allocation12 + $0x218] sm:$0xff] }
 0x735   : > { %15657 = vst [vmem:[#allocation117_spill] sm:$0xff] %v12675_v63  ;;  %v4896_v63 = vld [vmem:[#allocation3 + $0x99] sm:$0xff]  ;;  %5805 = vmatpush.bf16.msra.mxu1 %v8461_v37 }
 0x736   : > { %15658 = vst [vmem:[#allocation93_spill] sm:$0xff] %v12678_v43  ;;  %v12685_v43 = vpack.c.bf16 %v4896_v63, %v4895_v30  ;;  %v5237_v63 = vld [vmem:[#allocation3 + $0xb7] sm:$0xff] }
 0x738   : > { %v4397_v54 = vpop.f32.mrf.mxu1 }
 0x73a   : > { %v4534_v58 = vpop.f32.mrf.mxu2 }
 0x73b   : > { %v12680_v33 = vadd.f32 %v4534_v58, %v4397_v54  ;;  %v4736_v10 = vpop.f32.mrf.mxu3 }
 0x73c   : > { %v4876_v40 = vpop.f32.mrf.mxu0  ;;  %v12682_v48 = vadd.f32 %v4873_v26, %v4736_v10 }
 0x73d   : > { %15659 = vst [vmem:[#allocation47_spill] sm:$0xff] %v12680_v33 }
 0x73e   : > { %15660 = vst [vmem:[#allocation95_spill] sm:$0xff] %v12682_v48  ;;  %v5471_v48 = vld [vmem:[#allocation3 + $0xb8] sm:$0xff] }
 0x73f   : > { %5174 = vmatmul.bf16.gmra.mxu2 %v12673_v8  ;;  %5610 = vmatmul.bf16.gmra.mxu0 %v5493_v13  ;;  %v4898_v8 = vld [vmem:[#allocation3 + $0xa9] sm:$0xff] }
 0x740   : > { %v4400_v22 = vpop.f32.mrf.mxu1  ;;  %5376 = vmatmul.bf16.gmra.mxu3 %v5259_v3  ;;  %v5236_v3 = vld [vmem:[#allocation3 + $0xaf] sm:$0xff] }
 0x741   : > { %v5260_v14 = vpack.c.bf16 %v5237_v63, %v5236_v3 }
 0x742   : > { %v4537_v54 = vpop.f32.mrf.mxu2 }
 0x743   : > { %v12687_v58 = vadd.f32 %v4537_v54, %v4400_v22  ;;  %5037 = vmatmul.bf16.gmra.mxu1 %v12685_v43  ;;  %v4739_v26 = vpop.f32.mrf.mxu3  ;;  %v5494_v54 = vpack.c.bf16 %v5471_v48, %v5470_v27  ;;  %v15665_v27 = vld [vmem:[#allocation121_spill] sm:$0xff] }
 0x744   : > { %v4878_v10 = vpop.f32.mrf.mxu0  ;;  %v12690_v62 = vadd.f32 %v4876_v40, %v4739_v26 }
 0x745   : > { %15661 = vst [vmem:[#allocation49_spill] sm:$0xff] %v12687_v58  ;;  %v4897_v58 = vld [vmem:[#allocation3 + $0xa1] sm:$0xff] }
 0x746   : > { %v12698_v26 = vpack.c.bf16 %v4898_v8, %v4897_v58  ;;  %v5473_v8 = vld [vmem:[#allocation3 + $0xc8] sm:$0xff] }
 0x748   : > { %v4402_v19 = vpop.f32.mrf.mxu1 }
 0x74a   : > { %v4539_v41 = vpop.f32.mrf.mxu2 }
 0x74b   : > { %v12692_v13 = vadd.f32 %v4539_v41, %v4402_v19  ;;  %v4741_v33 = vpop.f32.mrf.mxu3 }
 0x74c   : > { %v5576_v30 = vpop.f32.mrf.mxu0  ;;  %v12694_v37 = vadd.f32 %v4878_v10, %v4741_v33 }
 0x74d   : > { %15662 = vst [vmem:[#allocation94_spill] sm:$0xff] %v12692_v13  ;;  %v5656_v22 = vadd.f32 %v5576_v30, %v12518_v20 }
 0x74e   : > { %15663 = vst [vmem:[#allocation96_spill] sm:$0xff] %v12694_v37 }
 0x74f   : > { %5179 = vmatmul.bf16.gmra.mxu2 %v12685_v43  ;;  %5615 = vmatmul.bf16.gmra.mxu0 %v5494_v54 }
 0x750   : > { %v5003_v40 = vpop.f32.mrf.mxu1  ;;  %5381 = vmatmul.bf16.gmra.mxu3 %v5260_v14  ;;  %v5472_v14 = vld [vmem:[#allocation3 + $0xc0] sm:$0xff] }
 0x752   : > { %v5140_v19 = vpop.f32.mrf.mxu2 }
 0x753   : > { %v12700_v41 = vadd.f32 %v5140_v19, %v5003_v40  ;;  %5042 = vmatmul.bf16.gmra.mxu1 %v12698_v26  ;;  %v5342_v33 = vpop.f32.mrf.mxu3  ;;  %v5238_v19 = vld [vmem:[#allocation3 + $0xbf] sm:$0xff] }
 0x754   : > { %v5578_v10 = vpop.f32.mrf.mxu0  ;;  %v5422_v20 = vadd.f32 %v5342_v33, %v12516_v56  ;;  %v5495_v33 = vpack.c.bf16 %v5473_v8, %v5472_v14  ;;  %v15668_v14 = vld [vmem:[#allocation125_spill] sm:$0xff] }
 0x755   : > { %15664 = vst [vmem:[#allocation51_spill] sm:$0xff] %v12700_v41  ;;  %v5657_v48 = vadd.f32 %v5578_v10, %v12522_v29  ;;  %v5239_v41 = vld [vmem:[#allocation3 + $0xc7] sm:$0xff] }
 0x756   : > { %v5922_v3 = vmul.f32 %v15665_v27, %v5422_v20  ;;  %v15667_v29 = vld [vmem:[#allocation123_spill] sm:$0xff]  ;;  %v5261_v27 = vpack.c.bf16 %v5239_v41, %v5238_v19 }
 0x757   : > { %v4899_v20 = vld [vmem:[#allocation3 + $0xb1] sm:$0xff] }
 0x758   : > { %v12706_v63 = vadd.f32 %v5922_v3, %v5656_v22  ;;  %v5005_v30 = vpop.f32.mrf.mxu1  ;;  %v4900_v22 = vld [vmem:[#allocation3 + $0xb9] sm:$0xff] }
 0x759   : > { %v8460_v3 = vld [vmem:[#allocation12 + $0x210] sm:$0xff] }
 0x75a   : > { %v5142_v54 = vpop.f32.mrf.mxu2  ;;  %5806 = vmatpush.bf16.msra.mxu1 %v8460_v3  ;;  %v5241_v3 = vld [vmem:[#allocation3 + $0xd7] sm:$0xff] }
 0x75b   : > { %v12708_v58 = vadd.f32 %v5142_v54, %v5005_v30  ;;  %v5344_v40 = vpop.f32.mrf.mxu3 }
 0x75c   : > { %v5581_v37 = vpop.f32.mrf.mxu0  ;;  %v5423_v13 = vadd.f32 %v5344_v40, %v12520_v25 }
 0x75d   : > { %15666 = vst [vmem:[#allocation97_spill] sm:$0xff] %v12708_v58  ;;  %v5658_v56 = vadd.f32 %v5581_v37, %v12528_v24  ;;  %v12716_v58 = vpack.c.bf16 %v4900_v22, %v4899_v20 }
 0x75e   : > { %v5923_v10 = vmul.f32 %v15667_v29, %v5423_v13  ;;  %v5474_v29 = vld [vmem:[#allocation3 + $0xd0] sm:$0xff] }
 0x75f   : > { %5184 = vmatmul.bf16.gmra.mxu2 %v12698_v26  ;;  %5620 = vmatmul.bf16.gmra.mxu0 %v5495_v33 }
 0x760   : > { %v12714_v30 = vadd.f32 %v5923_v10, %v5657_v48  ;;  %v5008_v54 = vpop.f32.mrf.mxu1  ;;  %5386 = vmatmul.bf16.gmra.mxu3 %v5261_v27  ;;  %v5475_v10 = vld [vmem:[#allocation3 + $0xd8] sm:$0xff]  ;;  %v5240_v27 = vld [vmem:[#allocation3 + $0xcf] sm:$0xff] }
 0x762   : > { %v5145_v25 = vpop.f32.mrf.mxu2 }
 0x763   : > { %v12718_v40 = vadd.f32 %v5145_v25, %v5008_v54  ;;  %5047 = vmatmul.bf16.gmra.mxu1 %v12716_v58  ;;  %v5347_v24 = vpop.f32.mrf.mxu3 }
 0x764   : > { %v5583_v13 = vpop.f32.mrf.mxu0  ;;  %v5424_v37 = vadd.f32 %v5347_v24, %v12526_v53  ;;  %v5496_v24 = vpack.c.bf16 %v5475_v10, %v5474_v29 }
 0x765   : > { %v5659_v41 = vadd.f32 %v5583_v13, %v12532_v60  ;;  %v15671_v60 = vld [vmem:[#allocation127_spill] sm:$0xff] }
 0x766   : > { %v5924_v8 = vmul.f32 %v15668_v14, %v5424_v37  ;;  %v4901_v37 = vld [vmem:[#allocation3 + $0xc1] sm:$0xff]  ;;  %v5262_v14 = vpack.c.bf16 %v5241_v3, %v5240_v27 }
 0x768   : > { %v12724_v48 = vadd.f32 %v5924_v8, %v5658_v56  ;;  %v5010_v19 = vpop.f32.mrf.mxu1  ;;  %v4902_v56 = vld [vmem:[#allocation3 + $0xc9] sm:$0xff] }
 0x76a   : > { %15669 = vst [vmem:[#allocation98_spill] sm:$0xff] %v12724_v48  ;;  %v5147_v33 = vpop.f32.mrf.mxu2 }
 0x76b   : > { %v12726_v20 = vadd.f32 %v5147_v33, %v5010_v19  ;;  %v5349_v22 = vpop.f32.mrf.mxu3  ;;  %v12734_v33 = vpack.c.bf16 %v4902_v56, %v4901_v37  ;;  %v5243_v37 = vld [vmem:[#allocation3 + $0xe7] sm:$0xff] }
 0x76c   : > { %v5586_v54 = vpop.f32.mrf.mxu0  ;;  %v5425_v25 = vadd.f32 %v5349_v22, %v12530_v39  ;;  %v15672_v22 = vld [vmem:[#allocation129_spill] sm:$0xff] }
 0x76d   : > { %15670 = vst [vmem:[#allocation99_spill] sm:$0xff] %v12726_v20  ;;  %v5660_v53 = vadd.f32 %v5586_v54, %v12538_v31 }
 0x76e   : > { %v5925_v13 = vmul.f32 %v15671_v60, %v5425_v25  ;;  %v5476_v25 = vld [vmem:[#allocation3 + $0xe0] sm:$0xff] }
 0x76f   : > { %5189 = vmatmul.bf16.gmra.mxu2 %v12716_v58  ;;  %5625 = vmatmul.bf16.gmra.mxu0 %v5496_v24  ;;  %v5477_v24 = vld [vmem:[#allocation3 + $0xe8] sm:$0xff] }
 0x770   : > { %v12732_v8 = vadd.f32 %v5925_v13, %v5659_v41  ;;  %v5013_v19 = vpop.f32.mrf.mxu1  ;;  %5391 = vmatmul.bf16.gmra.mxu3 %v5262_v14  ;;  %v5242_v13 = vld [vmem:[#allocation3 + $0xdf] sm:$0xff] }
 0x772   : > { %v5150_v20 = vpop.f32.mrf.mxu2 }
 0x773   : > { %v12736_v48 = vadd.f32 %v5150_v20, %v5013_v19  ;;  %5052 = vmatmul.bf16.gmra.mxu1 %v12734_v33  ;;  %v5352_v39 = vpop.f32.mrf.mxu3  ;;  %v5497_v19 = vpack.c.bf16 %v5477_v24, %v5476_v25 }
 0x774   : > { %v5588_v31 = vpop.f32.mrf.mxu0  ;;  %v5426_v29 = vadd.f32 %v5352_v39, %v12536_v45 }
 0x775   : > { %v5661_v10 = vadd.f32 %v5588_v31, %v12542_v47  ;;  %v15673_v47 = vld [vmem:[#allocation131_spill] sm:$0xff] }
 0x776   : > { %v5926_v27 = vmul.f32 %v15672_v22, %v5426_v29  ;;  %v4903_v31 = vld [vmem:[#allocation3 + $0xd1] sm:$0xff]  ;;  %v5263_v29 = vpack.c.bf16 %v5243_v37, %v5242_v13  ;;  %v15674_v37 = vld [vmem:[#allocation133_spill] sm:$0xff] }
 0x777   : > { %v8459_v22 = vld [vmem:[#allocation12 + $0x208] sm:$0xff] }
 0x778   : > { %v12742_v3 = vadd.f32 %v5926_v27, %v5660_v53  ;;  %v5015_v41 = vpop.f32.mrf.mxu1  ;;  %v4904_v53 = vld [vmem:[#allocation3 + $0xd9] sm:$0xff]  ;;  %5807 = vmatpush.bf16.msra.mxu1 %v8459_v22 }
 0x779   : > { %v5245_v22 = vld [vmem:[#allocation3 + $0xf7] sm:$0xff] }
 0x77a   : > { %v5152_v54 = vpop.f32.mrf.mxu2 }
 0x77b   : > { %v12744_v60 = vadd.f32 %v5152_v54, %v5015_v41  ;;  %v5354_v20 = vpop.f32.mrf.mxu3  ;;  %v12752_v54 = vpack.c.bf16 %v4904_v53, %v4903_v31 }
 0x77c   : > { %v5591_v56 = vpop.f32.mrf.mxu0  ;;  %v5427_v14 = vadd.f32 %v5354_v20, %v12540_v11 }
 0x77d   : > { %v5662_v45 = vadd.f32 %v5591_v56, %v12548_v4 }
 0x77e   : > { %v5927_v39 = vmul.f32 %v15673_v47, %v5427_v14  ;;  %v5478_v47 = vld [vmem:[#allocation3 + $0xf0] sm:$0xff] }
 0x77f   : > { %5194 = vmatmul.bf16.gmra.mxu2 %v12734_v33  ;;  %5630 = vmatmul.bf16.gmra.mxu0 %v5497_v19 }
 0x780   : > { %v12750_v27 = vadd.f32 %v5927_v39, %v5661_v10  ;;  %v5018_v41 = vpop.f32.mrf.mxu1  ;;  %5396 = vmatmul.bf16.gmra.mxu3 %v5263_v29  ;;  %v5479_v39 = vld [vmem:[#allocation3 + $0xf8] sm:$0xff]  ;;  %v5244_v29 = vld [vmem:[#allocation3 + $0xef] sm:$0xff] }
 0x782   : > { %v5155_v11 = vpop.f32.mrf.mxu2 }
 0x783   : > { %v12754_v20 = vadd.f32 %v5155_v11, %v5018_v41  ;;  %5057 = vmatmul.bf16.gmra.mxu1 %v12752_v54  ;;  %v5357_v4 = vpop.f32.mrf.mxu3 }
 0x784   : > { %v5593_v25 = vpop.f32.mrf.mxu0  ;;  %v5428_v24 = vadd.f32 %v5357_v4, %v12546_v16  ;;  %v5498_v4 = vpack.c.bf16 %v5479_v39, %v5478_v47 }
 0x785   : > { %v5663_v13 = vadd.f32 %v5593_v25, %v12552_v15  ;;  %v15677_v15 = vld [vmem:[#allocation135_spill] sm:$0xff] }
 0x786   : > { %v5928_v56 = vmul.f32 %v15674_v37, %v5428_v24  ;;  %v4905_v24 = vld [vmem:[#allocation3 + $0xe1] sm:$0xff]  ;;  %v5264_v37 = vpack.c.bf16 %v5245_v22, %v5244_v29 }
 0x788   : > { %v12760_v10 = vadd.f32 %v5928_v56, %v5662_v45  ;;  %v5020_v14 = vpop.f32.mrf.mxu1  ;;  %v4906_v45 = vld [vmem:[#allocation3 + $0xe9] sm:$0xff] }
 0x78a   : > { %15675 = vst [vmem:[#allocation52_spill] sm:$0xff] %v12760_v10  ;;  %v5157_v19 = vpop.f32.mrf.mxu2 }
 0x78b   : > { %v12762_v31 = vadd.f32 %v5157_v19, %v5020_v14  ;;  %v5359_v53 = vpop.f32.mrf.mxu3  ;;  %v12770_v19 = vpack.c.bf16 %v4906_v45, %v4905_v24 }
 0x78c   : > { %v5596_v41 = vpop.f32.mrf.mxu0  ;;  %v5429_v11 = vadd.f32 %v5359_v53, %v12550_v59  ;;  %v15678_v53 = vld [vmem:[#allocation137_spill] sm:$0xff] }
 0x78d   : > { %15676 = vst [vmem:[#allocation54_spill] sm:$0xff] %v12762_v31  ;;  %v5664_v16 = vadd.f32 %v5596_v41, %v12558_v7 }
 0x78e   : > { %v5929_v25 = vmul.f32 %v15677_v15, %v5429_v11  ;;  %v5480_v11 = vld [vmem:[#allocation3 + $0x100] sm:$0xff] }
 0x78f   : > { %5199 = vmatmul.bf16.gmra.mxu2 %v12752_v54  ;;  %5635 = vmatmul.bf16.gmra.mxu0 %v5498_v4  ;;  %v5481_v4 = vld [vmem:[#allocation3 + $0x108] sm:$0xff]  ;;  %v5246_v15 = vld [vmem:[#allocation3 + $0xff] sm:$0xff] }
 0x790   : > { %v12768_v56 = vadd.f32 %v5929_v25, %v5663_v13  ;;  %v5023_v14 = vpop.f32.mrf.mxu1  ;;  %5401 = vmatmul.bf16.gmra.mxu3 %v5264_v37  ;;  %v5247_v25 = vld [vmem:[#allocation3 + $0x107] sm:$0xff]  ;;  %v5499_v37 = vpack.c.bf16 %v5481_v4, %v5480_v11 }
 0x792   : > { %v5160_v31 = vpop.f32.mrf.mxu2 }
 0x793   : > { %v12772_v10 = vadd.f32 %v5160_v31, %v5023_v14  ;;  %5062 = vmatmul.bf16.gmra.mxu1 %v12770_v19  ;;  %v5362_v59 = vpop.f32.mrf.mxu3 }
 0x794   : > { %v5598_v7 = vpop.f32.mrf.mxu0  ;;  %v5430_v47 = vadd.f32 %v5362_v59, %v12556_v61  ;;  %v4907_v59 = vld [vmem:[#allocation3 + $0xf1] sm:$0xff] }
 0x795   : > { %v5665_v39 = vadd.f32 %v5598_v7, %v12562_v2  ;;  %v15680_v2 = vld [vmem:[#allocation139_spill] sm:$0xff]  ;;  %v5265_v7 = vpack.c.bf16 %v5247_v25, %v5246_v15  ;;  %v15681_v25 = vld [vmem:[#allocation61_spill] sm:$0xff] }
 0x796   : > { %v5930_v29 = vmul.f32 %v15678_v53, %v5430_v47  ;;  %v8458_v47 = vld [vmem:[#allocation12 + $0x200] sm:$0xff] }
 0x797   : > { %5808 = vmatpush.bf16.msra.mxu1 %v8458_v47 }
 0x798   : > { %v12778_v22 = vadd.f32 %v5930_v29, %v5664_v16  ;;  %v12780_v13 = vpop.f32.mrf.mxu1  ;;  %v4908_v16 = vld [vmem:[#allocation3 + $0xf9] sm:$0xff] }
 0x79a   : > { %v12782_v41 = vpop.f32.mrf.mxu2 }
 0x79b   : > { %15679 = vst [vmem:[#allocation100_spill] sm:$0xff] %v12782_v41  ;;  %v5364_v31 = vpop.f32.mrf.mxu3  ;;  %v12790_v41 = vpack.c.bf16 %v4908_v16, %v4907_v59 }
 0x79c   : > { %v5601_v24 = vpop.f32.mrf.mxu0  ;;  %v5431_v45 = vadd.f32 %v5364_v31, %v12560_v1 }
 0x79d   : > { %v5666_v61 = vadd.f32 %v5601_v24, %v12568_v35 }
 0x79e   : > { %v5931_v14 = vmul.f32 %v15680_v2, %v5431_v45 }
 0x79f   : > { %5204 = vmatmul.bf16.gmra.mxu2 %v12770_v19  ;;  %5640 = vmatmul.bf16.gmra.mxu0 %v5499_v37 }
 0x7a0   : > { %v12788_v53 = vadd.f32 %v5931_v14, %v5665_v39  ;;  %v5028_v29 = vpop.f32.mrf.mxu1  ;;  %5406 = vmatmul.bf16.gmra.mxu3 %v5265_v7  ;;  %v15682_v7 = vld [vmem:[#allocation62_spill] sm:$0xff] }
 0x7a2   : > { %v5165_v1 = vpop.f32.mrf.mxu2 }
 0x7a3   : > { %v12792_v31 = vadd.f32 %v5165_v1, %v5028_v29  ;;  %5067 = vmatmul.bf16.gmra.mxu1 %v12790_v41  ;;  %v5367_v35 = vpop.f32.mrf.mxu3  ;;  %v4909_v29 = vld [vmem:[#allocation3 + $0x101] sm:$0xff] }
 0x7a4   : > { %v5603_v11 = vpop.f32.mrf.mxu0  ;;  %v5432_v4 = vadd.f32 %v5367_v35, %v12566_v36  ;;  %v4910_v36 = vld [vmem:[#allocation3 + $0x109] sm:$0xff] }
 0x7a5   : > { %v5667_v15 = vadd.f32 %v5603_v11, %v12572_v6  ;;  %v12812_v1 = vpack.c.bf16 %v4910_v36, %v4909_v29  ;;  %v5251_v29 = vld [vmem:[#allocation3 + $0x127] sm:$0xff] }
 0x7a6   : > { %v5932_v24 = vmul.f32 %v15681_v25, %v5432_v4 }
 0x7a8   : > { %v12798_v39 = vadd.f32 %v5932_v24, %v5666_v61  ;;  %v12800_v45 = vpop.f32.mrf.mxu1  ;;  %v15683_v24 = vld [vmem:[#allocation64_spill] sm:$0xff] }
 0x7aa   : > { %v12802_v37 = vpop.f32.mrf.mxu2 }
 0x7ab   : > { %v5369_v2 = vpop.f32.mrf.mxu3 }
 0x7ac   : > { %v5606_v14 = vpop.f32.mrf.mxu0  ;;  %v5433_v59 = vadd.f32 %v5369_v2, %v12570_v49 }
 0x7ad   : > { %v5668_v16 = vadd.f32 %v5606_v14, %v12578_v9  ;;  %v8986_v14 = vld [vmem:[#allocation2] sm:$0xff] }
 0x7ae   : > { %v5933_v47 = vmul.f32 %v15682_v7, %v5433_v59  ;;  %v5501_v59 = vpack.c.bf16 %v8986_v14, %v8986_v14 }
 0x7af   : > { %5209 = vmatmul.bf16.gmra.mxu2 %v12790_v41  ;;  %5645 = vmatmul.bf16.gmra.mxu0 %v12584_v5 }
 0x7b0   : > { %v12809_v6 = vadd.f32 %v5933_v47, %v5667_v15  ;;  %v5033_v61 = vpop.f32.mrf.mxu1  ;;  %5411 = vmatmul.bf16.gmra.mxu3 %v12588_v21  ;;  %v5250_v47 = vld [vmem:[#allocation3 + $0x11f] sm:$0xff] }
 0x7b2   : > { %v5170_v35 = vpop.f32.mrf.mxu2 }
 0x7b3   : > { %v12814_v11 = vadd.f32 %v5170_v35, %v5033_v61  ;;  %5072 = vmatmul.bf16.gmra.mxu1 %v12812_v1  ;;  %v5372_v49 = vpop.f32.mrf.mxu3  ;;  %v15685_v35 = vld [vmem:[#allocation27_spill] sm:$0xff] }
 0x7b4   : > { %v5608_v9 = vpop.f32.mrf.mxu0  ;;  %v5434_v4 = vadd.f32 %v5372_v49, %v12576_v51  ;;  %v4911_v49 = vld [vmem:[#allocation3 + $0x111] sm:$0xff] }
 0x7b5   : > { %v5669_v25 = vadd.f32 %v5608_v9, %v12582_v0  ;;  %v4912_v9 = vld [vmem:[#allocation3 + $0x119] sm:$0xff] }
 0x7b6   : > { %v5934_v5 = vmul.f32 %v15683_v24, %v5434_v4 }
 0x7b8   : > { %v12820_v15 = vadd.f32 %v5934_v5, %v5668_v16  ;;  %v12822_v2 = vpop.f32.mrf.mxu1  ;;  %v5267_v16 = vpack.c.bf16 %v5251_v29, %v5250_v47  ;;  %v12832_v5 = vpack.c.bf16 %v4912_v9, %v4911_v49  ;;  %v15686_v29 = vld [vmem:[#allocation29_spill] sm:$0xff] }
 0x7ba   : > { %v12824_v21 = vpop.f32.mrf.mxu2 }
 0x7bb   : > { %15684 = vst [vmem:[#allocation101_spill] sm:$0xff] %v12824_v21  ;;  %v5374_v7 = vpop.f32.mrf.mxu3 }
 0x7bc   : > { %v5611_v36 = vpop.f32.mrf.mxu0  ;;  %v5435_v61 = vadd.f32 %v5374_v7, %v12580_v57 }
 0x7bd   : > { %v5670_v51 = vadd.f32 %v5611_v36, %v12593_v32 }
 0x7be   : > { %v5935_v0 = vmul.f32 %v15685_v35, %v5435_v61 }
 0x7bf   : > { %5214 = vmatmul.bf16.gmra.mxu2 %v12812_v1  ;;  %5650 = vmatmul.bf16.gmra.mxu0 %v5501_v59 }
 0x7c0   : > { %v12830_v4 = vadd.f32 %v5935_v0, %v5669_v25  ;;  %v5038_v24 = vpop.f32.mrf.mxu1  ;;  %5416 = vmatmul.bf16.gmra.mxu3 %v5267_v16  ;;  %v15687_v16 = vld [vmem:[#allocation68_spill] sm:$0xff] }
 0x7c2   : > { %v5175_v14 = vpop.f32.mrf.mxu2 }
 0x7c3   : > { %v12834_v21 = vadd.f32 %v5175_v14, %v5038_v24  ;;  %5077 = vmatmul.bf16.gmra.mxu1 %v12832_v5  ;;  %v5377_v57 = vpop.f32.mrf.mxu3 }
 0x7c4   : > { %v5613_v32 = vpop.f32.mrf.mxu0  ;;  %v5436_v7 = vadd.f32 %v5377_v57, %v12590_v38 }
 0x7c5   : > { %v5671_v47 = vadd.f32 %v5613_v32, %v12597_v28 }
 0x7c6   : > { %v5936_v36 = vmul.f32 %v15686_v29, %v5436_v7 }
 0x7c8   : > { %v12840_v59 = vadd.f32 %v5936_v36, %v5670_v51  ;;  %v12842_v25 = vpop.f32.mrf.mxu1  ;;  %v15688_v36 = vld [vmem:[#allocation69_spill] sm:$0xff] }
 0x7ca   : > { %v12844_v61 = vpop.f32.mrf.mxu2 }
 0x7cb   : > { %v5379_v35 = vpop.f32.mrf.mxu3 }
 0x7cc   : > { %v5616_v0 = vpop.f32.mrf.mxu0  ;;  %v5437_v49 = vadd.f32 %v5379_v35, %v12595_v42 }
 0x7cd   : > { %v5672_v9 = vadd.f32 %v5616_v0, %v12602_v55 }
 0x7ce   : > { %v5937_v24 = vmul.f32 %v15687_v16, %v5437_v49 }
 0x7d0   : > { %v12849_v14 = vadd.f32 %v5937_v24, %v5671_v47  ;;  %v5043_v38 = vpop.f32.mrf.mxu1  ;;  %v15689_v24 = vld [vmem:[#allocation71_spill] sm:$0xff] }
 0x7d2   : > { %v5180_v28 = vpop.f32.mrf.mxu2 }
 0x7d3   : > { %v12851_v57 = vadd.f32 %v5180_v28, %v5043_v38  ;;  %5809 = vmatmul.bf16.vlgmr.msra.gmra.mxu1 %v12609_v17  ;;  %v5382_v51 = vpop.f32.mrf.mxu3 }
 0x7d4   : > { %v5618_v32 = vpop.f32.mrf.mxu0  ;;  %v5438_v7 = vadd.f32 %v5382_v51, %v12600_v34 }
 0x7d5   : > { %v5673_v29 = vadd.f32 %v5618_v32, %v12606_v46 }
 0x7d6   : > { %v5938_v42 = vmul.f32 %v15688_v36, %v5438_v7 }
 0x7d8   : > { %v12857_v35 = vadd.f32 %v5938_v42, %v5672_v9  ;;  %v12859_v55 = vpop.f32.mrf.mxu1  ;;  %v15691_v42 = vld [vmem:[#allocation32_spill] sm:$0xff] }
 0x7da   : > { %v12861_v47 = vpop.f32.mrf.mxu2 }
 0x7db   : > { %v5384_v0 = vpop.f32.mrf.mxu3 }
 0x7dc   : > { %v5621_v49 = vpop.f32.mrf.mxu0  ;;  %v5439_v16 = vadd.f32 %v5384_v0, %v12604_v50 }
 0x7dd   : > { %v5674_v17 = vadd.f32 %v5621_v49, %v12614_v23 }
 0x7de   : > { %v5939_v38 = vmul.f32 %v15689_v24, %v5439_v16 }
 0x7e0   : > { %v12866_v28 = vadd.f32 %v5939_v38, %v5673_v29  ;;  %v5048_v34 = vpop.f32.mrf.mxu1  ;;  %v15695_v38 = vld [vmem:[#allocation56_spill] sm:$0xff] }
 0x7e2   : > { %v5185_v46 = vpop.f32.mrf.mxu2 }
 0x7e3   : > { %v12868_v51 = vadd.f32 %v5185_v46, %v5048_v34  ;;  %5814 = vmatmul.bf16.gmra.mxu1 %v12622_v52  ;;  %v5387_v9 = vpop.f32.mrf.mxu3  ;;  %v15696_v34 = vld [vmem:[#allocation34_spill] sm:$0xff] }
 0x7e4   : > { %v5623_v32 = vpop.f32.mrf.mxu0  ;;  %v5440_v7 = vadd.f32 %v5387_v9, %v12611_v44 }
 0x7e5   : > { %15690 = vst [vmem:[#allocation55_spill] sm:$0xff] %v12868_v51  ;;  %v5675_v36 = vadd.f32 %v5623_v32, %v12618_v12 }
 0x7e6   : > { %v5940_v50 = vmul.f32 %v15691_v42, %v5440_v7  ;;  %v15700_v42 = vld [vmem:[#allocation35_spill] sm:$0xff] }
 0x7e8   : > { %v12874_v0 = vadd.f32 %v5940_v50, %v5674_v17  ;;  %v12876_v23 = vpop.f32.mrf.mxu1  ;;  %v15699_v17 = vld [vmem:[#allocation38_spill] sm:$0xff] }
 0x7e9   : > { %15693 = vst [vmem:[#allocation102_spill] sm:$0xff] %v12876_v23 }
 0x7ea   : > { %15692 = vst [vmem:[#allocation57_spill] sm:$0xff] %v12874_v0  ;;  %v12878_v29 = vpop.f32.mrf.mxu2 }
 0x7eb   : > { %15694 = vst [vmem:[#allocation103_spill] sm:$0xff] %v12878_v29  ;;  %v5389_v49 = vpop.f32.mrf.mxu3  ;;  %v15701_v29 = vld [vmem:[#allocation75_spill] sm:$0xff] }
 0x7ec   : > { %v5626_v16 = vpop.f32.mrf.mxu0  ;;  %v5441_v24 = vadd.f32 %v5389_v49, %v12616_v18 }
 0x7ed   : > { %v5676_v52 = vadd.f32 %v5626_v16, %v15695_v38  ;;  %v15705_v38 = vld [vmem:[#allocation119_spill] sm:$0xff] }
 0x7ee   : > { %v5941_v46 = vmul.f32 %v15696_v34, %v5441_v24 }
 0x7f0   : > { %v12883_v51 = vadd.f32 %v5941_v46, %v5675_v36  ;;  %v5053_v44 = vpop.f32.mrf.mxu1  ;;  %v15704_v36 = vld [vmem:[#allocation118_spill] sm:$0xff]  ;;  %v15706_v46 = vld [vmem:[#allocation76_spill] sm:$0xff] }
 0x7f2   : > { %15697 = vst [vmem:[#allocation58_spill] sm:$0xff] %v12883_v51  ;;  %v5190_v12 = vpop.f32.mrf.mxu2 }
 0x7f3   : > { %v12885_v9 = vadd.f32 %v5190_v12, %v5053_v44  ;;  %5819 = vmatmul.bf16.gmra.mxu1 %v15699_v17  ;;  %v5392_v32 = vpop.f32.mrf.mxu3 }
 0x7f4   : > { %v5628_v7 = vpop.f32.mrf.mxu0  ;;  %v5442_v50 = vadd.f32 %v5392_v32, %v15700_v42  ;;  %v15711_v42 = vld [vmem:[#allocation120_spill] sm:$0xff] }
 0x7f5   : > { %15698 = vst [vmem:[#allocation60_spill] sm:$0xff] %v12885_v9  ;;  %v5677_v34 = vadd.f32 %v5628_v7, %v15705_v38  ;;  %v15709_v9 = vld [vmem:[#allocation111_spill] sm:$0xff] }
 0x7f6   : > { %v5942_v23 = vmul.f32 %v15701_v29, %v5442_v50 }
 0x7f8   : > { %v12890_v0 = vadd.f32 %v5942_v23, %v5676_v52  ;;  %v12892_v18 = vpop.f32.mrf.mxu1  ;;  %v15710_v23 = vld [vmem:[#allocation59_spill] sm:$0xff] }
 0x7f9   : > { %15703 = vst [vmem:[#allocation105_spill] sm:$0xff] %v12892_v18  ;;  %v15712_v18 = vld [vmem:[#allocation78_spill] sm:$0xff] }
 0x7fa   : > { %15702 = vst [vmem:[#allocation104_spill] sm:$0xff] %v12890_v0 }
 0x7fb   : > { %v5394_v49 = vpop.f32.mrf.mxu3 }
 0x7fc   : > { %v5631_v16 = vpop.f32.mrf.mxu0  ;;  %v5443_v24 = vadd.f32 %v5394_v49, %v15704_v36 }
 0x7fd   : > { %v5678_v50 = vadd.f32 %v5631_v16, %v15711_v42 }
 0x7fe   : > { %v5943_v44 = vmul.f32 %v15706_v46, %v5443_v24  ;;  %v15715_v24 = vld [vmem:[#allocation33_spill] sm:$0xff] }
 0x800   : > { %v12897_v12 = vadd.f32 %v5943_v44, %v5677_v34  ;;  %v12899_v17 = vpop.f32.mrf.mxu1  ;;  %v15716_v34 = vld [vmem:[#allocation110_spill] sm:$0xff]  ;;  %v15717_v44 = vld [vmem:[#allocation37_spill] sm:$0xff] }
 0x801   : > { %15708 = vst [vmem:[#allocation40_spill] sm:$0xff] %v12899_v17 }
 0x802   : > { %15707 = vst [vmem:[#allocation22_spill] sm:$0xff] %v12897_v12 }
 0x803   : > { %5824 = vmatmul.bf16.gmra.mxu1 %v15709_v9  ;;  %v5397_v32 = vpop.f32.mrf.mxu3 }
 0x804   : > { %v5633_v29 = vpop.f32.mrf.mxu0  ;;  %v5444_v52 = vadd.f32 %v5397_v32, %v15710_v23  ;;  %v15720_v32 = vld [vmem:[#allocation30_spill] sm:$0xff] }
 0x805   : > { %v5679_v46 = vadd.f32 %v5633_v29, %v15716_v34 }
 0x806   : > { %v5944_v0 = vmul.f32 %v15712_v18, %v5444_v52  ;;  %v15722_v52 = vld [vmem:[#allocation48_spill] sm:$0xff] }
 0x808   : > { %v12905_v51 = vadd.f32 %v5944_v0, %v5678_v50  ;;  %v12907_v49 = vpop.f32.mrf.mxu1  ;;  %v15721_v0 = vld [vmem:[#allocation28_spill] sm:$0xff]  ;;  %v15723_v50 = vld [vmem:[#allocation39_spill] sm:$0xff] }
 0x809   : > { %15714 = vst [vmem:[#allocation107_spill] sm:$0xff] %v12907_v49 }
 0x80a   : > { %15713 = vst [vmem:[#allocation106_spill] sm:$0xff] %v12905_v51 }
 0x80b   : > { %v5399_v7 = vpop.f32.mrf.mxu3 }
 0x80c   : > { %v5636_v36 = vpop.f32.mrf.mxu0  ;;  %v5445_v38 = vadd.f32 %v5399_v7, %v15715_v24 }
 0x80d   : > { %v5680_v42 = vadd.f32 %v5636_v36, %v15722_v52  ;;  %v15733_v52 = vld [vmem:[#allocation114_spill] sm:$0xff] }
 0x80e   : > { %v5945_v9 = vmul.f32 %v15717_v44, %v5445_v38  ;;  %v15726_v38 = vld [vmem:[#allocation112_spill] sm:$0xff] }
 0x810   : > { %v12912_v17 = vadd.f32 %v5945_v9, %v5679_v46  ;;  %v12914_v12 = vpop.f32.mrf.mxu1  ;;  %v15727_v46 = vld [vmem:[#allocation113_spill] sm:$0xff]  ;;  %v15728_v9 = vld [vmem:[#allocation82_spill] sm:$0xff] }
 0x811   : > { %15719 = vst [vmem:[#allocation43_spill] sm:$0xff] %v12914_v12 }
 0x812   : > { %15718 = vst [vmem:[#allocation23_spill] sm:$0xff] %v12912_v17 }
 0x813   : > { %5829 = vmatmul.bf16.gmra.mxu1 %v15720_v32  ;;  %v5402_v16 = vpop.f32.mrf.mxu3 }
 0x814   : > { %v5638_v18 = vpop.f32.mrf.mxu0  ;;  %v5446_v23 = vadd.f32 %v5402_v16, %v15721_v0  ;;  %v15731_v16 = vld [vmem:[#allocation116_spill] sm:$0xff] }
 0x815   : > { %v5681_v44 = vadd.f32 %v5638_v18, %v15727_v46 }
 0x816   : > { %v5946_v49 = vmul.f32 %v15723_v50, %v5446_v23  ;;  %v15734_v50 = vld [vmem:[#allocation83_spill] sm:$0xff] }
 0x818   : > { %v12920_v51 = vadd.f32 %v5946_v49, %v5680_v42  ;;  %v12922_v7 = vpop.f32.mrf.mxu1  ;;  %v15732_v49 = vld [vmem:[#allocation50_spill] sm:$0xff] }
 0x819   : > { %15725 = vst [vmem:[#allocation109_spill] sm:$0xff] %v12922_v7 }
 0x81a   : > { %15724 = vst [vmem:[#allocation108_spill] sm:$0xff] %v12920_v51 }
 0x81b   : > { %v5404_v29 = vpop.f32.mrf.mxu3 }
 0x81c   : > { %v5641_v24 = vpop.f32.mrf.mxu0  ;;  %v5447_v34 = vadd.f32 %v5404_v29, %v15726_v38  ;;  %v15735_v38 = vld [vmem:[#allocation115_spill] sm:$0xff] }
 0x81d   : > { %v5682_v42 = vadd.f32 %v5641_v24, %v15733_v52  ;;  %v15742_v52 = vld [vmem:[#allocation42_spill] sm:$0xff] }
 0x81e   : > { %v5947_v32 = vmul.f32 %v15728_v9, %v5447_v34 }
 0x820   : > { %v12927_v12 = vadd.f32 %v5947_v32, %v5681_v44  ;;  %v12929_v17 = vpop.f32.mrf.mxu1  ;;  %v15736_v44 = vld [vmem:[#allocation53_spill] sm:$0xff] }
 0x821   : > { %15730 = vst [vmem:[#allocation45_spill] sm:$0xff] %v12929_v17  ;;  %v15737_v32 = vld [vmem:[#allocation85_spill] sm:$0xff] }
 0x822   : > { %15729 = vst [vmem:[#allocation25_spill] sm:$0xff] %v12927_v12 }
 0x823   : > { %5834 = vmatmul.bf16.gmra.mxu1 %v15731_v16  ;;  %v5407_v36 = vpop.f32.mrf.mxu3 }
 0x824   : > { %v5643_v0 = vpop.f32.mrf.mxu0  ;;  %v5448_v23 = vadd.f32 %v5407_v36, %v15732_v49  ;;  %v15740_v36 = vld [vmem:[#allocation117_spill] sm:$0xff] }
 0x825   : > { %v5683_v9 = vadd.f32 %v5643_v0, %v15736_v44  ;;  %v15741_v49 = vld [vmem:[#allocation93_spill] sm:$0xff] }
 0x826   : > { %v5948_v7 = vmul.f32 %v15734_v50, %v5448_v23 }
 0x828   : > { %v12935_v51 = vadd.f32 %v5948_v7, %v5682_v42  ;;  %v12937_v29 = vpop.f32.mrf.mxu1 }
 0x82b   : > { %v5409_v18 = vpop.f32.mrf.mxu3 }
 0x82c   : > { %v5449_v34 = vadd.f32 %v5409_v18, %v15735_v38  ;;  %v5646_v46 = vpop.f32.mrf.mxu0 }
 0x82d   : > { %v5684_v23 = vadd.f32 %v5646_v46, %v15741_v49 }
 0x82e   : > { %v5949_v16 = vmul.f32 %v15737_v32, %v5449_v34  ;;  %v15743_v34 = vld [vmem:[#allocation47_spill] sm:$0xff] }
 0x830   : > { %v12942_v17 = vadd.f32 %v5949_v16, %v5683_v9  ;;  %v12944_v12 = vpop.f32.mrf.mxu1  ;;  %v15744_v9 = vld [vmem:[#allocation95_spill] sm:$0xff]  ;;  %v15745_v16 = vld [vmem:[#allocation44_spill] sm:$0xff] }
 0x831   : > { %15739 = vst [vmem:[#allocation123_spill] sm:$0xff] %v12944_v12 }
 0x832   : > { %15738 = vst [vmem:[#allocation121_spill] sm:$0xff] %v12942_v17 }
 0x833   : > { %5839 = vmatmul.bf16.gmra.mxu1 %v12685_v43  ;;  %v5412_v24 = vpop.f32.mrf.mxu3 }
 0x834   : > { %v5450_v7 = vadd.f32 %v5412_v24, %v15740_v36  ;;  %v5648_v50 = vpop.f32.mrf.mxu0  ;;  %v15748_v36 = vld [vmem:[#allocation49_spill] sm:$0xff] }
 0x835   : > { %v5685_v32 = vadd.f32 %v5648_v50, %v15744_v9  ;;  %v15751_v9 = vld [vmem:[#allocation96_spill] sm:$0xff] }
 0x836   : > { %v5950_v42 = vmul.f32 %v15742_v52, %v5450_v7 }
 0x838   : > { %v12950_v18 = vadd.f32 %v5950_v42, %v5684_v23  ;;  %v12952_v38 = vpop.f32.mrf.mxu1  ;;  %v15749_v23 = vld [vmem:[#allocation89_spill] sm:$0xff] }
 0x83b   : > { %v5414_v0 = vpop.f32.mrf.mxu3 }
 0x83c   : > { %v5451_v44 = vadd.f32 %v5414_v0, %v15743_v34  ;;  %v5651_v24 = vpop.f32.mrf.mxu0 }
 0x83d   : > { %v5686_v49 = vadd.f32 %v5651_v24, %v12690_v62  ;;  %v15754_v62 = vld [vmem:[#allocation122_spill] sm:$0xff] }
 0x83e   : > { %v5951_v12 = vmul.f32 %v15745_v16, %v5451_v44  ;;  %v15752_v16 = vld [vmem:[#allocation90_spill] sm:$0xff] }
 0x840   : > { %v12957_v43 = vadd.f32 %v5951_v12, %v5685_v32  ;;  %v12959_v17 = vpop.f32.mrf.mxu1  ;;  %v15750_v12 = vld [vmem:[#allocation94_spill] sm:$0xff] }
 0x841   : > { %15747 = vst [vmem:[#allocation127_spill] sm:$0xff] %v12959_v17 }
 0x842   : > { %15746 = vst [vmem:[#allocation125_spill] sm:$0xff] %v12957_v43 }
 0x843   : > { %5844 = vmatmul.bf16.gmra.mxu1 %v12698_v26  ;;  %v5417_v46 = vpop.f32.mrf.mxu3 }
 0x844   : > { %v5452_v7 = vadd.f32 %v5417_v46, %v15748_v36  ;;  %v5653_v50 = vpop.f32.mrf.mxu0  ;;  %v15753_v46 = vld [vmem:[#allocation51_spill] sm:$0xff] }
 0x845   : > { %v5687_v32 = vadd.f32 %v5653_v50, %v15751_v9  ;;  %v15757_v9 = vld [vmem:[#allocation126_spill] sm:$0xff] }
 0x846   : > { %v5952_v52 = vmul.f32 %v15749_v23, %v5452_v7  ;;  %v15755_v23 = vld [vmem:[#allocation97_spill] sm:$0xff] }
 0x848   : > { %v12965_v42 = vadd.f32 %v5952_v52, %v5686_v49  ;;  %v12967_v0 = vpop.f32.mrf.mxu1 }
 0x84b   : > { %v5419_v34 = vpop.f32.mrf.mxu3 }
 0x84c   : > { %v5453_v44 = vadd.f32 %v5419_v34, %v15750_v12  ;;  %v8489_v34 = vld [vmem:[#allocation13 + $0x38] sm:$0xff]  ;;  %v15756_v12 = vld [vmem:[#allocation124_spill] sm:$0xff] }
 0x84d   : > { %7197 = vmatpush.bf16.msra.mxu2 %v8489_v34 }
 0x84e   : > { %v5953_v17 = vmul.f32 %v15752_v16, %v5453_v44 }
 0x850   : > { %v12972_v26 = vadd.f32 %v5953_v17, %v5687_v32  ;;  %v5810_v43 = vpop.f32.mrf.mxu1 }
 0x851   : > { %v5890_v36 = vadd.f32 %v5810_v43, %v15753_v46  ;;  %v15759_v46 = vld [vmem:[#allocation99_spill] sm:$0xff] }
 0x853   : > { %v5986_v24 = vmul.f32 %v15754_v62, %v5890_v36  ;;  %5849 = vmatmul.bf16.gmra.mxu1 %v12716_v58  ;;  %v15758_v58 = vld [vmem:[#allocation98_spill] sm:$0xff]  ;;  %v15760_v62 = vld [vmem:[#allocation128_spill] sm:$0xff] }
 0x855   : > { %v12978_v7 = vadd.f32 %v5986_v24, %v12706_v63 }
 0x858   : > { %v5812_v49 = vpop.f32.mrf.mxu1 }
 0x859   : > { %v5891_v52 = vadd.f32 %v5812_v49, %v15755_v23 }
 0x85b   : > { %v5987_v50 = vmul.f32 %v15756_v12, %v5891_v52  ;;  %v15761_v52 = vld [vmem:[#allocation130_spill] sm:$0xff] }
 0x85d   : > { %v12983_v17 = vadd.f32 %v5987_v50, %v12714_v30  ;;  %v8488_v50 = vld [vmem:[#allocation13 + $0x30] sm:$0xff] }
 0x85e   : > { %7198 = vmatpush.bf16.msra.mxu2 %v8488_v50  ;;  %v8487_v50 = vld [vmem:[#allocation13 + $0x28] sm:$0xff] }
 0x860   : > { %v5815_v44 = vpop.f32.mrf.mxu1 }
 0x861   : > { %v5892_v43 = vadd.f32 %v5815_v44, %v12718_v40  ;;  %v15762_v44 = vld [vmem:[#allocation132_spill] sm:$0xff] }
 0x862   : > { %7199 = vmatpush.bf16.msra.mxu2 %v8487_v50 }
 0x863   : > { %v5988_v32 = vmul.f32 %v15757_v9, %v5892_v43  ;;  %5854 = vmatmul.bf16.gmra.mxu1 %v12734_v33 }
 0x865   : > { %v12989_v63 = vadd.f32 %v5988_v32, %v15758_v58  ;;  %v15763_v32 = vld [vmem:[#allocation134_spill] sm:$0xff] }
 0x868   : > { %v5817_v16 = vpop.f32.mrf.mxu1 }
 0x869   : > { %v5893_v36 = vadd.f32 %v5817_v16, %v15759_v46  ;;  %v15765_v46 = vld [vmem:[#allocation54_spill] sm:$0xff] }
 0x86b   : > { %v5989_v24 = vmul.f32 %v15760_v62, %v5893_v36  ;;  %v15766_v36 = vld [vmem:[#allocation136_spill] sm:$0xff] }
 0x86d   : > { %v12994_v49 = vadd.f32 %v5989_v24, %v12732_v8 }
 0x870   : > { %v5820_v30 = vpop.f32.mrf.mxu1 }
 0x871   : > { %v5894_v23 = vadd.f32 %v5820_v30, %v12736_v48 }
 0x873   : > { %v5990_v40 = vmul.f32 %v15761_v52, %v5894_v23  ;;  %5859 = vmatmul.bf16.gmra.mxu1 %v12752_v54  ;;  %v15764_v54 = vld [vmem:[#allocation52_spill] sm:$0xff]  ;;  %v15767_v23 = vld [vmem:[#allocation138_spill] sm:$0xff] }
 0x874   : > { %v15768_v52 = vld [vmem:[#allocation100_spill] sm:$0xff] }
 0x875   : > { %v13000_v33 = vadd.f32 %v5990_v40, %v12742_v3  ;;  %v5163_v40 = vadd.f32 %v15768_v52, %v12780_v13  ;;  %v5168_v13 = vadd.f32 %v12802_v37, %v12800_v45 }
 0x878   : > { %v5822_v34 = vpop.f32.mrf.mxu1 }
 0x879   : > { %v5895_v12 = vadd.f32 %v5822_v34, %v12744_v60 }
 0x87b   : > { %v5991_v43 = vmul.f32 %v15762_v44, %v5895_v12  ;;  %v15769_v44 = vld [vmem:[#allocation24_spill] sm:$0xff] }
 0x87d   : > { %v13005_v8 = vadd.f32 %v5991_v43, %v12750_v27 }
 0x880   : > { %v5825_v9 = vpop.f32.mrf.mxu1 }
 0x881   : > { %v5896_v48 = vadd.f32 %v5825_v9, %v12754_v20 }
 0x883   : > { %v5992_v58 = vmul.f32 %v15763_v32, %v5896_v48  ;;  %5864 = vmatmul.bf16.gmra.mxu1 %v12770_v19  ;;  %v15770_v48 = vld [vmem:[#allocation26_spill] sm:$0xff] }
 0x885   : > { %v13011_v3 = vadd.f32 %v5992_v58, %v15764_v54  ;;  %v15771_v54 = vld [vmem:[#allocation63_spill] sm:$0xff] }
 0x888   : > { %v5827_v16 = vpop.f32.mrf.mxu1 }
 0x889   : > { %v5897_v60 = vadd.f32 %v5827_v16, %v15765_v46 }
 0x88b   : > { %v5993_v62 = vmul.f32 %v15766_v36, %v5897_v60  ;;  %v15772_v60 = vld [vmem:[#allocation65_spill] sm:$0xff] }
 0x88d   : > { %v13016_v24 = vadd.f32 %v5993_v62, %v12768_v56 }
 0x890   : > { %v5830_v27 = vpop.f32.mrf.mxu1 }
 0x891   : > { %v5898_v30 = vadd.f32 %v5830_v27, %v12772_v10  ;;  %v8486_v27 = vld [vmem:[#allocation13 + $0x20] sm:$0xff] }
 0x892   : > { %7200 = vmatpush.bf16.msra.mxu2 %v8486_v27  ;;  %v15784_v27 = vld [vmem:[#allocation73_spill] sm:$0xff] }
 0x893   : > { %v5994_v20 = vmul.f32 %v15767_v23, %v5898_v30  ;;  %5869 = vmatmul.bf16.gmra.mxu1 %v12790_v41  ;;  %v15774_v30 = vld [vmem:[#allocation67_spill] sm:$0xff] }
 0x895   : > { %v13022_v19 = vadd.f32 %v5994_v20, %v12778_v22  ;;  %v5719_v20 = vld [vmem:[#allocation3 + $0x129] sm:$0xff] }
 0x898   : > { %v5832_v34 = vpop.f32.mrf.mxu1 }
 0x899   : > { %v5899_v12 = vadd.f32 %v5832_v34, %v5163_v40 }
 0x89b   : > { %v5995_v43 = vmul.f32 %v15769_v44, %v5899_v12  ;;  %v5178_v12 = vadd.f32 %v12844_v61, %v12842_v25  ;;  %v8485_v61 = vld [vmem:[#allocation13 + $0x18] sm:$0xff] }
 0x89c   : > { %7201 = vmatpush.bf16.msra.mxu2 %v8485_v61 }
 0x89d   : > { %v13028_v56 = vadd.f32 %v5995_v43, %v12788_v53  ;;  %v15776_v43 = vld [vmem:[#allocation31_spill] sm:$0xff] }
 0x8a0   : > { %v5835_v10 = vpop.f32.mrf.mxu1 }
 0x8a1   : > { %v5900_v9 = vadd.f32 %v5835_v10, %v12792_v31 }
 0x8a3   : > { %v5996_v41 = vmul.f32 %v15770_v48, %v5900_v9  ;;  %5874 = vmatmul.bf16.gmra.mxu1 %v12812_v1  ;;  %v15773_v1 = vld [vmem:[#allocation101_spill] sm:$0xff] }
 0x8a4   : > { %v5173_v45 = vadd.f32 %v15773_v1, %v12822_v2 }
 0x8a5   : > { %v13034_v22 = vadd.f32 %v5996_v41, %v12798_v39 }
 0x8a8   : > { %v5837_v32 = vpop.f32.mrf.mxu1 }
 0x8a9   : > { %v5901_v58 = vadd.f32 %v5837_v32, %v5168_v13 }
 0x8ab   : > { %v5997_v16 = vmul.f32 %v15771_v54, %v5901_v58  ;;  %v15778_v58 = vld [vmem:[#allocation72_spill] sm:$0xff] }
 0x8ad   : > { %v13040_v53 = vadd.f32 %v5997_v16, %v12809_v6  ;;  %v5718_v6 = vld [vmem:[#allocation3 + $0x121] sm:$0xff] }
 0x8ae   : > { %v5735_v52 = vpack.c.bf16 %v5719_v20, %v5718_v6  ;;  %v15785_v6 = vld [vmem:[#allocation58_spill] sm:$0xff] }
 0x8b0   : > { %v5840_v46 = vpop.f32.mrf.mxu1 }
 0x8b1   : > { %v5902_v31 = vadd.f32 %v5840_v46, %v12814_v11  ;;  %v15779_v46 = vld [vmem:[#allocation55_spill] sm:$0xff] }
 0x8b3   : > { %v5998_v36 = vmul.f32 %v15772_v60, %v5902_v31  ;;  %5879 = vmatmul.bf16.gmra.mxu1 %v12832_v5  ;;  %v5192_v31 = vpop.f32.mrf.mxu2  ;;  %v15780_v60 = vld [vmem:[#allocation74_spill] sm:$0xff] }
 0x8b5   : > { %v13046_v39 = vadd.f32 %v5998_v36, %v12820_v15  ;;  %v15775_v15 = vld [vmem:[#allocation66_spill] sm:$0xff] }
 0x8b8   : > { %v5842_v37 = vpop.f32.mrf.mxu1 }
 0x8b9   : > { %v5903_v62 = vadd.f32 %v5842_v37, %v5173_v45  ;;  %v15782_v45 = vld [vmem:[#allocation102_spill] sm:$0xff] }
 0x8bb   : > { %v5999_v23 = vmul.f32 %v15774_v30, %v5903_v62 }
 0x8bd   : > { %v13052_v11 = vadd.f32 %v5999_v23, %v12830_v4  ;;  %v5195_v23 = vpop.f32.mrf.mxu2 }
 0x8c0   : > { %v5845_v40 = vpop.f32.mrf.mxu1 }
 0x8c1   : > { %v5904_v5 = vadd.f32 %v5845_v40, %v12834_v21  ;;  %v15777_v21 = vld [vmem:[#allocation70_spill] sm:$0xff] }
 0x8c3   : > { %v6000_v34 = vmul.f32 %v15775_v15, %v5904_v5  ;;  %5884 = vmatmul.bf16.gmra.mxu1 %v5735_v52  ;;  %v15786_v52 = vld [vmem:[#allocation60_spill] sm:$0xff] }
 0x8c4   : > { %v15787_v5 = vld [vmem:[#allocation36_spill] sm:$0xff] }
 0x8c5   : > { %v13057_v2 = vadd.f32 %v6000_v34, %v12840_v59  ;;  %v5183_v59 = vadd.f32 %v12861_v47, %v12859_v55  ;;  %v15783_v55 = vld [vmem:[#allocation103_spill] sm:$0xff]  ;;  %v15788_v34 = vld [vmem:[#allocation104_spill] sm:$0xff] }
 0x8c6   : > { %v5188_v47 = vadd.f32 %v15783_v55, %v15782_v45 }
 0x8c8   : > { %v5847_v50 = vpop.f32.mrf.mxu1 }
 0x8c9   : > { %v5905_v44 = vadd.f32 %v5847_v50, %v5178_v12  ;;  %v5197_v50 = vpop.f32.mrf.mxu2 }
 0x8cb   : > { %v6001_v10 = vmul.f32 %v15776_v43, %v5905_v44  ;;  %v15789_v44 = vld [vmem:[#allocation105_spill] sm:$0xff] }
 0x8cc   : > { %v5193_v43 = vadd.f32 %v5192_v31, %v15789_v44  ;;  %v15795_v31 = vld [vmem:[#allocation107_spill] sm:$0xff] }
 0x8cd   : > { %v13063_v4 = vadd.f32 %v6001_v10, %v12849_v14 }
 0x8d0   : > { %v5850_v9 = vpop.f32.mrf.mxu1 }
 0x8d1   : > { %v5906_v48 = vadd.f32 %v5850_v9, %v12851_v57 }
 0x8d3   : > { %v6002_v41 = vmul.f32 %v15777_v21, %v5906_v48  ;;  %v8484_v48 = vld [vmem:[#allocation13 + $0x10] sm:$0xff]  ;;  %v15790_v21 = vld [vmem:[#allocation77_spill] sm:$0xff] }
 0x8d4   : > { %7202 = vmatpush.bf16.msra.mxu2 %v8484_v48 }
 0x8d5   : > { %v13068_v13 = vadd.f32 %v6002_v41, %v12857_v35  ;;  %v15781_v35 = vld [vmem:[#allocation57_spill] sm:$0xff] }
 0x8d8   : > { %v5852_v32 = vpop.f32.mrf.mxu1 }
 0x8d9   : > { %v5907_v25 = vadd.f32 %v5852_v32, %v5183_v59  ;;  %v15791_v59 = vld [vmem:[#allocation22_spill] sm:$0xff] }
 0x8db   : > { %v6003_v54 = vmul.f32 %v15778_v58, %v5907_v25  ;;  %v15792_v25 = vld [vmem:[#allocation40_spill] sm:$0xff]  ;;  %v5200_v58 = vpop.f32.mrf.mxu2 }
 0x8dc   : > { %v5196_v61 = vadd.f32 %v5195_v23, %v15792_v25 }
 0x8dd   : > { %v13074_v14 = vadd.f32 %v6003_v54, %v12866_v28 }
 0x8e0   : > { %v5855_v16 = vpop.f32.mrf.mxu1 }
 0x8e1   : > { %v5908_v57 = vadd.f32 %v5855_v16, %v15779_v46  ;;  %v15793_v46 = vld [vmem:[#allocation79_spill] sm:$0xff] }
 0x8e3   : > { %v6004_v36 = vmul.f32 %v15780_v60, %v5908_v57  ;;  %v15794_v60 = vld [vmem:[#allocation106_spill] sm:$0xff] }
 0x8e5   : > { %v13079_v1 = vadd.f32 %v6004_v36, %v15781_v35  ;;  %v5198_v35 = vadd.f32 %v5197_v50, %v15795_v31  ;;  %v15799_v50 = vld [vmem:[#allocation80_spill] sm:$0xff]  ;;  %v15803_v31 = vld [vmem:[#allocation25_spill] sm:$0xff] }
 0x8e8   : > { %v5857_v37 = vpop.f32.mrf.mxu1 }
 0x8e9   : > { %v5909_v62 = vadd.f32 %v5857_v37, %v5188_v47  ;;  %v5202_v47 = vpop.f32.mrf.mxu2  ;;  %v15796_v37 = vld [vmem:[#allocation81_spill] sm:$0xff] }
 0x8eb   : > { %v6005_v30 = vmul.f32 %v15784_v27, %v5909_v62  ;;  %v15797_v27 = vld [vmem:[#allocation23_spill] sm:$0xff] }
 0x8ed   : > { %v13085_v28 = vadd.f32 %v6005_v30, %v15785_v6  ;;  %v15798_v6 = vld [vmem:[#allocation43_spill] sm:$0xff] }
 0x8ee   : > { %v5201_v23 = vadd.f32 %v5200_v58, %v15798_v6  ;;  %v8483_v58 = vld [vmem:[#allocation13 + $0x8] sm:$0xff] }
 0x8ef   : > { %7203 = vmatpush.bf16.msra.mxu2 %v8483_v58 }
 0x8f0   : > { %v5860_v20 = vpop.f32.mrf.mxu1 }
 0x8f1   : > { %v5910_v40 = vadd.f32 %v5860_v20, %v15786_v52  ;;  %v13111_v20 = vld [vmem:[%s14966_s7] ss:$0 sm:$0xff] }
 0x8f3   : > { %v6006_v15 = vmul.f32 %v15787_v5, %v5910_v40  ;;  %v13115_v40 = vadd.f32 %v13111_v20, %v12983_v17  ;;  %v15800_v17 = vld [vmem:[#allocation108_spill] sm:$0xff] }
 0x8f5   : > { %v13090_v12 = vadd.f32 %v6006_v15, %v15788_v34  ;;  %v13119_v15 = vadd.f32 %v13111_v20, %v12978_v7  ;;  %v13123_v34 = vadd.f32 %v13111_v20, %v12989_v63  ;;  %v13139_v63 = vadd.f32 %v13111_v20, %v13000_v33 }
 0x8f8   : > { %v5862_v10 = vpop.f32.mrf.mxu1 }
 0x8f9   : > { %v5911_v9 = vadd.f32 %v5862_v10, %v5193_v43  ;;  %v5205_v43 = vpop.f32.mrf.mxu2  ;;  %v6088_v10 = vadd.f32 %v13115_v40, %v13119_v15 }
 0x8fb   : > { %v6007_v41 = vmul.f32 %v15790_v21, %v5911_v9  ;;  %v13130_v9 = vadd.f32 %v13111_v20, %v12994_v49  ;;  %v15801_v21 = vld [vmem:[#allocation109_spill] sm:$0xff] }
 0x8fc   : > { %v5203_v7 = vadd.f32 %v5202_v47, %v15801_v21 }
 0x8fd   : > { %v13095_v32 = vadd.f32 %v6007_v41, %v15791_v59  ;;  %v6089_v41 = vadd.f32 %v6088_v10, %v13123_v34  ;;  %v13187_v10 = vadd.f32 %v13111_v20, %v13046_v39 }
 0x8ff   : > { %v6090_v25 = vadd.f32 %v6089_v41, %v13130_v9 }
 0x900   : > { %v5865_v54 = vpop.f32.mrf.mxu1 }
 0x901   : > { %v5912_v16 = vadd.f32 %v5865_v54, %v5196_v61  ;;  %v13144_v61 = vadd.f32 %v13111_v20, %v13005_v8  ;;  %v6091_v54 = vadd.f32 %v6090_v25, %v13139_v63  ;;  %v13203_v25 = vadd.f32 %v13111_v20, %v13063_v4 }
 0x903   : > { %v6008_v57 = vmul.f32 %v15793_v46, %v5912_v16  ;;  %v13149_v16 = vadd.f32 %v13111_v20, %v13011_v3  ;;  %v15802_v46 = vld [vmem:[#allocation41_spill] sm:$0xff]  ;;  %v6092_v33 = vadd.f32 %v6091_v54, %v13144_v61  ;;  %v13164_v3 = vadd.f32 %v13111_v20, %v13022_v19  ;;  %v15808_v54 = vld [vmem:[#allocation123_spill] sm:$0xff] }
 0x904   : > { %v13180_v19 = vadd.f32 %v13111_v20, %v13040_v53 }
 0x905   : > { %v13100_v36 = vadd.f32 %v6008_v57, %v15794_v60  ;;  %v13155_v60 = vadd.f32 %v13111_v20, %v13016_v24  ;;  %v6093_v47 = vadd.f32 %v6092_v33, %v13149_v16 }
 0x908   : > { %v5867_v45 = vpop.f32.mrf.mxu1 }
 0x909   : > { %v5913_v55 = vadd.f32 %v5867_v45, %v5198_v35  ;;  %v5207_v35 = vpop.f32.mrf.mxu2  ;;  %v15804_v45 = vld [vmem:[#allocation45_spill] sm:$0xff] }
 0x90b   : > { %v6009_v62 = vmul.f32 %v15796_v37, %v5913_v55  ;;  %v5206_v55 = vadd.f32 %v5205_v43, %v15804_v45 }
 0x90d   : > { %v13105_v30 = vadd.f32 %v6009_v62, %v15797_v27  ;;  %v6094_v62 = vadd.f32 %v6093_v47, %v13155_v60  ;;  %v13169_v27 = vadd.f32 %v13111_v20, %v13028_v56  ;;  %v5208_v56 = vadd.f32 %v5207_v35, %v12937_v29  ;;  %v15806_v29 = vld [vmem:[#allocation86_spill] sm:$0xff] }
 0x90e   : > { %v13215_v35 = vadd.f32 %v13111_v20, %v13074_v14  ;;  %v13220_v47 = vadd.f32 %v13111_v20, %v13079_v1 }
 0x90f   : > { %v6095_v6 = vadd.f32 %v6094_v62, %v13164_v3 }
 0x910   : > { %v5870_v52 = vpop.f32.mrf.mxu1 }
 0x911   : > { %v5914_v5 = vadd.f32 %v5870_v52, %v5201_v23  ;;  %v13174_v23 = vadd.f32 %v13111_v20, %v13034_v22  ;;  %v15805_v52 = vld [vmem:[#allocation84_spill] sm:$0xff]  ;;  %v5210_v22 = vpop.f32.mrf.mxu2 }
 0x913   : > { %v6010_v44 = vmul.f32 %v15799_v50, %v5914_v5  ;;  %v6096_v50 = vadd.f32 %v6095_v6, %v13169_v27 }
 0x915   : > { %v13133_v48 = vadd.f32 %v6010_v44, %v15800_v17  ;;  %v6097_v43 = vadd.f32 %v6096_v50, %v13174_v23 }
 0x917   : > { %v6098_v21 = vadd.f32 %v6097_v43, %v13180_v19 }
 0x918   : > { %v5872_v59 = vpop.f32.mrf.mxu1 }
 0x919   : > { %v5915_v49 = vadd.f32 %v5872_v59, %v5203_v7  ;;  %v13192_v7 = vadd.f32 %v13111_v20, %v13052_v11  ;;  %v6099_v41 = vadd.f32 %v6098_v21, %v13187_v10  ;;  %v5211_v11 = vadd.f32 %v5210_v22, %v15808_v54  ;;  %v5212_v45 = vpop.f32.mrf.mxu2 }
 0x91a   : > { %v5213_v6 = vadd.f32 %v5212_v45, %v12952_v38  ;;  %v15810_v38 = vld [vmem:[#allocation87_spill] sm:$0xff]  ;;  %v13249_v21 = vadd.f32 %v13111_v20, %v13105_v30  ;;  %v8466_v30 = vld [vmem:[%s9460_s30] sm:$0xff] }
 0x91b   : > { %v6011_v57 = vmul.f32 %v15802_v46, %v5915_v49  ;;  %v6100_v39 = vadd.f32 %v6099_v41, %v13192_v7  ;;  %v15807_v49 = vld [vmem:[#allocation121_spill] sm:$0xff]  ;;  %v15812_v41 = vld [vmem:[#allocation127_spill] sm:$0xff] }
 0x91d   : > { %v13158_v8 = vadd.f32 %v6011_v57, %v15803_v31  ;;  %v13210_v57 = vadd.f32 %v13111_v20, %v13068_v13 }
 0x91f   : > { %v13261_v54 = vadd.f32 %v13111_v20, %v13158_v8 }
 0x920   : > { %v5875_v37 = vpop.f32.mrf.mxu1 }
 0x921   : > { %v5916_v24 = vadd.f32 %v5875_v37, %v5206_v55  ;;  %v15809_v37 = vld [vmem:[#allocation88_spill] sm:$0xff] }
 0x923   : > { %v6012_v5 = vmul.f32 %v15805_v52, %v5916_v24  ;;  %v13226_v24 = vadd.f32 %v13111_v20, %v13085_v28 }
 0x925   : > { %v6044_v44 = vadd.f32 %v6012_v5, %v12935_v51  ;;  %v13197_v51 = vadd.f32 %v13111_v20, %v13057_v2  ;;  %v8482_v2 = vld [vmem:[#allocation13] sm:$0xff]  ;;  %v13233_v5 = vadd.f32 %v13111_v20, %v13090_v12 }
 0x926   : > { %7204 = vmatpush.bf16.msra.mxu2 %v8482_v2 }
 0x927   : > { %v6101_v46 = vadd.f32 %v6100_v39, %v13197_v51  ;;  %v13256_v39 = vadd.f32 %v13111_v20, %v13133_v48  ;;  %v13266_v2 = vadd.f32 %v13111_v20, %v6044_v44 }
 0x928   : > { %v5877_v17 = vpop.f32.mrf.mxu1 }
 0x929   : > { %v5917_v53 = vadd.f32 %v5877_v17, %v5208_v56  ;;  %v6102_v31 = vadd.f32 %v6101_v46, %v13203_v25  ;;  %v13238_v56 = vadd.f32 %v13111_v20, %v13095_v32  ;;  %v5215_v17 = vpop.f32.mrf.mxu2  ;;  %7205 = vmatmul.bf16.vlgmr.msra.gmra.mxu2 %v8466_v30  ;;  %v8472_v30 = vld [vmem:[%s9460_s30 + $0x30] sm:$0xff] }
 0x92b   : > { %v6013_v59 = vmul.f32 %v15806_v29, %v5917_v53  ;;  %v6103_v55 = vadd.f32 %v6102_v31, %v13210_v57  ;;  %v15811_v53 = vld [vmem:[#allocation125_spill] sm:$0xff]  ;;  %v5216_v29 = vadd.f32 %v5215_v17, %v15812_v41 }
 0x92d   : > { %v6045_v58 = vadd.f32 %v6013_v59, %v15807_v49  ;;  %v6104_v62 = vadd.f32 %v6103_v55, %v13215_v35 }
 0x92f   : > { %v6105_v52 = vadd.f32 %v6104_v62, %v13220_v47 }
 0x930   : > { %v5880_v33 = vpop.f32.mrf.mxu1 }
 0x931   : > { %v5918_v4 = vadd.f32 %v5880_v33, %v5211_v11  ;;  %v6106_v50 = vadd.f32 %v6105_v52, %v13226_v24  ;;  %v15813_v33 = vld [vmem:[#allocation46_spill] sm:$0xff]  ;;  %v5217_v8 = vpop.f32.mrf.mxu2 }
 0x932   : > { %v5218_v55 = vadd.f32 %v5217_v8, %v12967_v0  ;;  %v8474_v8 = vld [vmem:[%s9460_s30 + $0x40] sm:$0xff] }
 0x933   : > { %v6014_v13 = vmul.f32 %v15809_v37, %v5918_v4  ;;  %v6107_v43 = vadd.f32 %v6106_v50, %v13233_v5  ;;  %v13271_v4 = vadd.f32 %v13111_v20, %v6045_v58 }
 0x935   : > { %v6046_v14 = vadd.f32 %v6014_v13, %v12950_v18  ;;  %v13243_v18 = vadd.f32 %v13111_v20, %v13100_v36  ;;  %v6108_v12 = vadd.f32 %v6107_v43, %v13238_v56 }
 0x937   : > { %v6109_v59 = vadd.f32 %v6108_v12, %v13243_v18  ;;  %v13277_v13 = vadd.f32 %v13111_v20, %v6046_v14 }
 0x938   : > { %v5882_v1 = vpop.f32.mrf.mxu1 }
 0x939   : > { %v5919_v28 = vadd.f32 %v5882_v1, %v5213_v6  ;;  %v6110_v49 = vadd.f32 %v6109_v59, %v13249_v21  ;;  %v15814_v1 = vld [vmem:[#allocation91_spill] sm:$0xff] }
 0x93b   : > { %v6015_v22 = vmul.f32 %v15810_v38, %v5919_v28  ;;  %v6111_v46 = vadd.f32 %v6110_v49, %v13256_v39  ;;  %v8467_v38 = vld [vmem:[%s9460_s30 + $0x8] sm:$0xff]  ;;  %v8470_v49 = vld [vmem:[%s9460_s30 + $0x20] sm:$0xff] }
 0x93c   : > { %7210 = vmatmul.bf16.gmra.mxu2 %v8467_v38 }
 0x93d   : > { %v6047_v32 = vadd.f32 %v6015_v22, %v15811_v53  ;;  %v6112_v48 = vadd.f32 %v6111_v46, %v13261_v54  ;;  %v8473_v46 = vld [vmem:[%s9460_s30 + $0x38] sm:$0xff] }
 0x93f   : > { %v6113_v37 = vadd.f32 %v6112_v48, %v13266_v2  ;;  %v13281_v6 = vadd.f32 %v13111_v20, %v6047_v32 }
 0x940   : > { %v5885_v36 = vpop.f32.mrf.mxu1 }
 0x941   : > { %v5920_v11 = vadd.f32 %v5885_v36, %v5216_v29  ;;  %v6114_v62 = vadd.f32 %v6113_v37, %v13271_v4  ;;  %v15815_v29 = vld [vmem:[#allocation92_spill] sm:$0xff] }
 0x942   : > { %v8468_v36 = vld [vmem:[%s9460_s30 + $0x10] sm:$0xff] }
 0x943   : > { %v6016_v31 = vmul.f32 %v15813_v33, %v5920_v11  ;;  %v6115_v58 = vadd.f32 %v6114_v62, %v13277_v13  ;;  %v8471_v11 = vld [vmem:[%s9460_s30 + $0x28] sm:$0xff] }
 0x945   : > { %v6048_v45 = vadd.f32 %v6016_v31, %v12965_v42  ;;  %v6116_v50 = vadd.f32 %v6115_v58, %v13281_v6 }
 0x947   : > { %v13285_v42 = vadd.f32 %v13111_v20, %v6048_v45 }
 0x948   : > { %v5887_v44 = vpop.f32.mrf.mxu1 }
 0x949   : > { %v5921_v52 = vadd.f32 %v5887_v44, %v5218_v55  ;;  %v6117_v28 = vadd.f32 %v6116_v50, %v13285_v42 }
 0x94b   : > { %v6017_v0 = vmul.f32 %v15814_v1, %v5921_v52 }
 0x94c   : > { %7215 = vmatmul.bf16.gmra.mxu2 %v8468_v36 }
 0x94d   : > { %v6049_v14 = vadd.f32 %v6017_v0, %v12972_v26 }
 0x94f   : > { %v13292_v43 = vadd.f32 %v13111_v20, %v6049_v14  ;;  %v8469_v20 = vld [vmem:[%s9460_s30 + $0x18] sm:$0xff] }
 0x951   : > { %v6118_v22 = vadd.f32 %v6117_v28, %v13292_v43 }
 0x953   : > { %v6119_v17 = vrot.slane %v6118_v22, 4 }
 0x955   : > { %v6120_v12 = vadd.f32 %v6119_v17, %v6118_v22 }
 0x957   : > { %v6121_v53 = vrot.slane %v6120_v12, 2 }
 0x959   : > { %v6122_v32 = vadd.f32 %v6121_v53, %v6120_v12 }
 0x95b   : > { %v6123_v41 = vrot.slane %v6122_v32, 1 }
 0x95c   : > { %7220 = vmatmul.bf16.gmra.mxu2 %v8469_v20 }
 0x95d   : > { %v6124_v26 = vadd.f32 %v6123_v41, %v6122_v32  ;;  %v8475_v41 = vld [vmem:[%s9460_s30 + $0x48] sm:$0xff] }
 0x95f   : > { %v6125_v59 = vmul.f32 %v15815_v29, %v6124_v26 }
 0x961   : > { %6126 = vadd.xlane.f32.xlu1 %v6125_v59 }
 0x96c   : > { %7225 = vmatmul.bf16.gmra.mxu2 %v8470_v49 }
 0x97c   : > { %7230 = vmatmul.bf16.gmra.mxu2 %v8471_v11 }
 0x98c   : > { %7235 = vmatmul.bf16.gmra.mxu2 %v8472_v30 }
 0x99c   : > { %7240 = vmatmul.bf16.gmra.mxu2 %v8473_v46 }
 0x9ac   : > { %7245 = vmatmul.bf16.gmra.mxu2 %v8474_v8 }
 0x9bc   : > { %7250 = vmatmul.bf16.gmra.mxu2 %v8475_v41 }
 0x9d4   : > { %v6127_v33 = vpop.xlane.xlu1 %6126 }
 0x9d5   : > { %v6128_v31 = vmul.f32 %v15815_v29, %v6127_v33 }
 0x9d7   : > { %v6129_v48 = vrot.slane %v6128_v31, 4 }
 0x9d9   : > { %v6130_v45 = vadd.f32 %v6129_v48, %v6128_v31 }
 0x9db   : > { %v6131_v55 = vrot.slane %v6130_v45, 2 }
 0x9dd   : > { %v6132_v37 = vadd.f32 %v6131_v55, %v6130_v45 }
 0x9df   : > { %v6133_v44 = vrot.slane %v6132_v37, 1 }
 0x9e1   : > { %v6134_v62 = vadd.f32 %v6133_v44, %v6132_v37 }
 0x9e3   : > { %v13305_v52 = vmul.f32 0.00390625, %v6134_v62  ;;  %v8476_v62 = vld [vmem:[%s9460_s30 + $0x50] sm:$0xff] }
 0x9e4   : > { %7255 = vmatmul.bf16.gmra.mxu2 %v8476_v62 }
 0x9e5   : > { %v13309_v58 = vsub.f32 %v13119_v15, %v13305_v52  ;;  %v13313_v1 = vsub.f32 %v13115_v40, %v13305_v52  ;;  %v13317_v0 = vsub.f32 %v13123_v34, %v13305_v52  ;;  %v13325_v28 = vsub.f32 %v13130_v9, %v13305_v52 }
 0x9e6   : > { %v13329_v15 = vsub.f32 %v13139_v63, %v13305_v52  ;;  %v13335_v38 = vsub.f32 %v13144_v61, %v13305_v52  ;;  %v13341_v9 = vsub.f32 %v13149_v16, %v13305_v52  ;;  %v13347_v53 = vsub.f32 %v13155_v60, %v13305_v52 }
 0x9e7   : > { %v6168_v50 = vmul.f32 %v13309_v58, %v13309_v58  ;;  %v6169_v14 = vmul.f32 %v13313_v1, %v13313_v1  ;;  %v6170_v40 = vmul.f32 %v13317_v0, %v13317_v0  ;;  %v6171_v22 = vmul.f32 %v13325_v28, %v13325_v28 }
 0x9e8   : > { %v6172_v63 = vmul.f32 %v13329_v15, %v13329_v15  ;;  %v6173_v61 = vmul.f32 %v13335_v38, %v13335_v38  ;;  %v13354_v26 = vsub.f32 %v13164_v3, %v13305_v52  ;;  %v6174_v16 = vmul.f32 %v13341_v9, %v13341_v9 }
 0x9e9   : > { %v6200_v34 = vadd.f32 %v6169_v14, %v6168_v50  ;;  %v13360_v36 = vsub.f32 %v13169_v27, %v13305_v52  ;;  %v6175_v60 = vmul.f32 %v13347_v53, %v13347_v53  ;;  %v13366_v49 = vsub.f32 %v13174_v23, %v13305_v52 }
 0x9ea   : > { %v6176_v3 = vmul.f32 %v13354_v26, %v13354_v26  ;;  %v13372_v30 = vsub.f32 %v13180_v19, %v13305_v52  ;;  %v13378_v33 = vsub.f32 %v13187_v10, %v13305_v52  ;;  %v13384_v48 = vsub.f32 %v13192_v7, %v13305_v52 }
 0x9eb   : > { %v6201_v17 = vadd.f32 %v6200_v34, %v6170_v40  ;;  %v6177_v27 = vmul.f32 %v13360_v36, %v13360_v36  ;;  %v6178_v23 = vmul.f32 %v13366_v49, %v13366_v49  ;;  %v13390_v8 = vsub.f32 %v13197_v51, %v13305_v52 }
 0x9ec   : > { %v6179_v19 = vmul.f32 %v13372_v30, %v13372_v30  ;;  %v6180_v10 = vmul.f32 %v13378_v33, %v13378_v33  ;;  %v13396_v37 = vsub.f32 %v13203_v25, %v13305_v52  ;;  %v6181_v7 = vmul.f32 %v13384_v48, %v13384_v48 }
 0x9ed   : > { %v6202_v12 = vadd.f32 %v6201_v17, %v6171_v22  ;;  %v13403_v50 = vsub.f32 %v13210_v57, %v13305_v52  ;;  %v6182_v51 = vmul.f32 %v13390_v8, %v13390_v8  ;;  %v13409_v40 = vsub.f32 %v13215_v35, %v13305_v52 }
 0x9ee   : > { %v6183_v25 = vmul.f32 %v13396_v37, %v13396_v37  ;;  %v13415_v22 = vsub.f32 %v13220_v47, %v13305_v52  ;;  %v13433_v41 = vsub.f32 %v13238_v56, %v13305_v52  ;;  %v13480_v62 = vsub.f32 %v13277_v13, %v13305_v52 }
 0x9ef   : > { %v6203_v32 = vadd.f32 %v6202_v12, %v6172_v63  ;;  %v6184_v57 = vmul.f32 %v13403_v50, %v13403_v50  ;;  %v13421_v63 = vsub.f32 %v13226_v24, %v13305_v52  ;;  %v6185_v35 = vmul.f32 %v13409_v40, %v13409_v40 }
 0x9f0   : > { %v6186_v47 = vmul.f32 %v13415_v22, %v13415_v22  ;;  %v6189_v56 = vmul.f32 %v13433_v41, %v13433_v41  ;;  %15819 = vst [vmem:[#allocation135_spill] sm:$0xff] %v13480_v62  ;;  %v6196_v13 = vmul.f32 %v13480_v62, %v13480_v62 }
 0x9f1   : > { %v6204_v59 = vadd.f32 %v6203_v32, %v6173_v61  ;;  %v13427_v61 = vsub.f32 %v13233_v5, %v13305_v52  ;;  %v6187_v24 = vmul.f32 %v13421_v63, %v13421_v63 }
 0x9f3   : > { %v6205_v20 = vadd.f32 %v6204_v59, %v6174_v16  ;;  %v13437_v59 = vpop.f32.mrf.mxu2  ;;  %v6188_v5 = vmul.f32 %v13427_v61, %v13427_v61 }
 0x9f5   : > { %v6206_v11 = vadd.f32 %v6205_v20, %v6175_v60  ;;  %v13441_v60 = vsub.f32 %v13243_v18, %v13305_v52 }
 0x9f7   : > { %v6207_v46 = vadd.f32 %v6206_v11, %v6176_v3  ;;  %v8477_v3 = vld [vmem:[%s9460_s30 + $0x58] sm:$0xff]  ;;  %v13448_v11 = vsub.f32 %v13249_v21, %v13305_v52  ;;  %v6190_v18 = vmul.f32 %v13441_v60, %v13441_v60 }
 0x9f8   : > { %7260 = vmatmul.bf16.gmra.mxu2 %v8477_v3 }
 0x9f9   : > { %v6208_v31 = vadd.f32 %v6207_v46, %v6177_v27  ;;  %v13454_v46 = vsub.f32 %v13256_v39, %v13305_v52  ;;  %v6191_v21 = vmul.f32 %v13448_v11, %v13448_v11 }
 0x9fb   : > { %v6209_v45 = vadd.f32 %v6208_v31, %v6178_v23  ;;  %v13460_v31 = vsub.f32 %v13261_v54, %v13305_v52  ;;  %v6192_v39 = vmul.f32 %v13454_v46, %v13454_v46 }
 0x9fd   : > { %v6210_v55 = vadd.f32 %v6209_v45, %v6179_v19  ;;  %15816 = vst [vmem:[#allocation129_spill] sm:$0xff] %v13460_v31  ;;  %v13466_v45 = vsub.f32 %v13266_v2, %v13305_v52  ;;  %v6193_v54 = vmul.f32 %v13460_v31, %v13460_v31 }
 0x9ff   : > { %v6211_v44 = vadd.f32 %v6210_v55, %v6180_v10  ;;  %15817 = vst [vmem:[#allocation131_spill] sm:$0xff] %v13466_v45  ;;  %v13470_v55 = vpop.f32.mrf.mxu2  ;;  %v6194_v2 = vmul.f32 %v13466_v45, %v13466_v45 }
 0xa01   : > { %v6212_v14 = vadd.f32 %v6211_v44, %v6181_v7  ;;  %v13474_v7 = vsub.f32 %v13271_v4, %v13305_v52 }
 0xa03   : > { %v6213_v34 = vadd.f32 %v6212_v14, %v6182_v51  ;;  %15818 = vst [vmem:[#allocation133_spill] sm:$0xff] %v13474_v7  ;;  %v13486_v14 = vsub.f32 %v13281_v6, %v13305_v52  ;;  %v6195_v4 = vmul.f32 %v13474_v7, %v13474_v7 }
 0xa05   : > { %v6214_v17 = vadd.f32 %v6213_v34, %v6183_v25  ;;  %15820 = vst [vmem:[#allocation137_spill] sm:$0xff] %v13486_v14  ;;  %v13492_v34 = vsub.f32 %v13285_v42, %v13305_v52  ;;  %v6197_v6 = vmul.f32 %v13486_v14, %v13486_v14 }
 0xa07   : > { %v6215_v12 = vadd.f32 %v6214_v17, %v6184_v57  ;;  %15821 = vst [vmem:[#allocation139_spill] sm:$0xff] %v13492_v34  ;;  %v8478_v17 = vld [vmem:[%s9460_s30 + $0x60] sm:$0xff]  ;;  %v6198_v42 = vmul.f32 %v13492_v34, %v13492_v34 }
 0xa08   : > { %7265 = vmatmul.bf16.gmra.mxu2 %v8478_v17 }
 0xa09   : > { %v6216_v32 = vadd.f32 %v6215_v12, %v6185_v35  ;;  %v13499_v35 = vsub.f32 %v13292_v43, %v13305_v52 }
 0xa0b   : > { %v6217_v16 = vadd.f32 %v6216_v32, %v6186_v47  ;;  %15822 = vst [vmem:[#allocation61_spill] sm:$0xff] %v13499_v35  ;;  %v13503_v47 = vpop.f32.mrf.mxu2 }
 0xa0d   : > { %v6218_v20 = vadd.f32 %v6217_v16, %v6187_v24  ;;  %v6199_v24 = vmul.f32 %v13499_v35, %v13499_v35 }
 0xa0f   : > { %v6219_v27 = vadd.f32 %v6218_v20, %v6188_v5 }
 0xa11   : > { %v6220_v23 = vadd.f32 %v6219_v27, %v6189_v56  ;;  %v8479_v27 = vld [vmem:[%s9460_s30 + $0x68] sm:$0xff] }
 0xa13   : > { %v6221_v19 = vadd.f32 %v6220_v23, %v6190_v18  ;;  %v7213_v52 = vpop.f32.mrf.mxu2 }
 0xa15   : > { %v6222_v10 = vadd.f32 %v6221_v19, %v6191_v21 }
 0xa17   : > { %v6223_v44 = vadd.f32 %v6222_v10, %v6192_v39  ;;  %v8480_v10 = vld [vmem:[%s9460_s30 + $0x70] sm:$0xff] }
 0xa18   : > { %7270 = vmatmul.bf16.gmra.mxu2 %v8479_v27 }
 0xa19   : > { %v6224_v51 = vadd.f32 %v6223_v44, %v6193_v54  ;;  %v8481_v44 = vld [vmem:[%s9460_s30 + $0x78] sm:$0xff]  ;;  %s7362_s30 = scalar_lea.hbm %s14971_s12, %s8490_s16 }
 0xa1a   : > { %s7365_s1 = sshll.u32 %s7362_s30, 4  ;;  %s7366_s1 = int_to_ptr.hbm [resolvable:$true] %s7365_s1 }
 0xa1b   : > { %v6225_v25 = vadd.f32 %v6224_v51, %v6194_v2  ;;  %v7216_v19 = vpop.f32.mrf.mxu2  ;;  %s9184_s6 = sshra.s32 %s7366_s1, 4  ;;  %s9185_s6 = int_to_ptr.hbm [resolvable:$true] %s9184_s6 }
 0xa1c   : > { %s9186_s29 = scalar_lea.hbm %s9185_s6, 256  ;;  %p9191_p8 = scmp.lt.s32.totalorder %s9185_s6, %s14971_s12 }
 0xa1d   : > { %v6226_v57 = vadd.f32 %v6225_v25, %v6195_v4  ;;  %p9187_p3 = scmp.ne.s32.totalorder %s9185_s6, %s9186_s29  ;;  %p9192_p7 = scmp.lt.s32.totalorder %s9190_s20, %s9186_s29 }
 0xa1f   : > { %v6227_v12 = vadd.f32 %v6226_v57, %v6196_v13  ;;  %p9188_p5 = pnand %p9187_p3, %p9422_p13  ;;  %p9193_p9 = por %p9192_p7, %p9191_p8 }
 0xa21   : > { %v6228_v32 = vadd.f32 %v6227_v12, %v6197_v6  ;;  %p9189_p12 = pneg %p9188_p5 }
 0xa23   : > { %v6229_v16 = vadd.f32 %v6228_v32, %v6198_v42  ;;  %v7218_v39 = vpop.f32.mrf.mxu2  ;;  %p9194_p10 = pnand %p9193_p9, %p9189_p12 }
 0xa25   : > { %v6230_v5 = vadd.f32 %v6229_v16, %v6199_v24 }
 0xa27   : > { %v6231_v20 = vrot.slane %v6230_v5, 4 }
 0xa28   : > { %7275 = vmatmul.bf16.gmra.mxu2 %v8480_v10 }
 0xa29   : > { %v6232_v43 = vadd.f32 %v6231_v20, %v6230_v5 }
 0xa2b   : > { %v6233_v3 = vrot.slane %v6232_v43, 2  ;;  %v7221_v54 = vpop.f32.mrf.mxu2 }
 0xa2d   : > { %v6234_v56 = vadd.f32 %v6233_v3, %v6232_v43 }
 0xa2f   : > { %v6235_v18 = vrot.slane %v6234_v56, 1 }
 0xa31   : > { %v6236_v23 = vadd.f32 %v6235_v18, %v6234_v56 }
 0xa33   : > { %v6237_v21 = vmul.f32 %v15815_v29, %v6236_v23  ;;  %v7223_v2 = vpop.f32.mrf.mxu2 }
 0xa35   : > { %6238 = vadd.xlane.f32.xlu1 %v6237_v21 }
 0xa38   : > { %7280 = vmatmul.bf16.gmra.mxu2 %v8481_v44 }
 0xa3b   : > { %v7226_v51 = vpop.f32.mrf.mxu2 }
 0xa43   : > { %v7228_v4 = vpop.f32.mrf.mxu2 }
 0xa4b   : > { %v13513_v25 = vpop.f32.mrf.mxu2 }
 0xa53   : > { %v13515_v13 = vpop.f32.mrf.mxu2 }
 0xa5b   : > { %v13518_v6 = vpop.f32.mrf.mxu2 }
 0xa63   : > { %v13520_v5 = vpop.f32.mrf.mxu2 }
 0xa6b   : > { %v13522_v56 = vpop.f32.mrf.mxu2 }
 0xaa8   : > { %v6239_v57 = vpop.xlane.xlu1 %6238 }
 0xaa9   : > { %v6240_v17 = vmul.f32 %v15815_v29, %v6239_v57  ;;  %v13524_v29 = vpop.f32.mrf.mxu2 }
 0xaab   : > { %v6241_v12 = vrot.slane %v6240_v17, 4 }
 0xaad   : > { %v6242_v42 = vadd.f32 %v6241_v12, %v6240_v17  ;;  %v13533_v12 = vld [vmem:[%s14970_s11] ss:$0 sm:$0xff] }
 0xaaf   : > { %v6243_v32 = vrot.slane %v6242_v42, 2 }
 0xab1   : > { %v6244_v24 = vadd.f32 %v6243_v32, %v6242_v42  ;;  %v13526_v57 = vpop.f32.mrf.mxu2  ;;  %v13538_v42 = vld [vmem:[%s14967_s8] ss:$0 sm:$0xff] }
 0xab3   : > { %v6245_v16 = vrot.slane %v6244_v24, 1 }
 0xab5   : > { %v6246_v20 = vadd.f32 %v6245_v16, %v6244_v24  ;;  %v13546_v16 = vadd.f32 %v13533_v12, %v13437_v59  ;;  %v13566_v59 = vld [vmem:[%s14968_s9] ss:$0 sm:$0xff] }
 0xab7   : > { %v6247_v43 = vmul.f32 0.00390625, %v6246_v20  ;;  %15824 = vst [vmem:[#allocation64_spill] sm:$0xff] %v13546_v16 }
 0xab9   : > { %v6248_v3 = vadd.f32 1e-05, %v6247_v43  ;;  %v13552_v43 = vadd.f32 %v13533_v12, %v13470_v55  ;;  %v13572_v55 = vadd.f32 %v13533_v12, %v7218_v39  ;;  %v13590_v39 = vadd.f32 %v13533_v12, %v7228_v4 }
 0xabb   : > { %8853 = vrsqrt.f32 %v6248_v3  ;;  %vm6255_vm2 = vweird.f32 %v6248_v3  ;;  %15825 = vst [vmem:[#allocation27_spill] sm:$0xff] %v13552_v43 }
 0xabc   : > { %15829 = vst [vmem:[#allocation71_spill] sm:$0xff] %v13572_v55 }
 0xabd   : > { %15833 = vst [vmem:[#allocation38_spill] sm:$0xff] %v13590_v39 }
 0xac1   : > { %v8854_v27 = vpop.eup %8853 }
 0xac2   : > { %v6250_v18 = vmul.f32 %v8854_v27, %v6248_v3  ;;  %vm6256_vm3 = vweird.f32 %v8854_v27  ;;  %v13556_v3 = vadd.f32 %v13533_v12, %v13503_v47 }
 0xac3   : > { %vm6257_vm6 = vmor %vm6255_vm2, %vm6256_vm3 }
 0xac4   : > { %v6251_v23 = vmul.f32 %v8854_v27, %v6250_v18  ;;  %15826 = vst [vmem:[#allocation29_spill] sm:$0xff] %v13556_v3 }
 0xac6   : > { %v6252_v21 = vmul.f32 0.5, %v6251_v23  ;;  %v13587_v23 = vadd.f32 %v13533_v12, %v7226_v51 }
 0xac8   : > { %v6253_v10 = vsub.f32 1.5, %v6252_v21  ;;  %15832 = vst [vmem:[#allocation34_spill] sm:$0xff] %v13587_v23  ;;  %v13595_v21 = vpop.f32.mrf.mxu2 }
 0xaca   : > { %v6254_v44 = vmul.f32 %v8854_v27, %v6253_v10 }
 0xacc   : > { %v13528_v17 = vsel %vm6257_vm6, %v8854_v27, %v6254_v44  ;;  %v13578_v27 = vadd.f32 %v13533_v12, %v7221_v54 }
 0xacd   : > { %15823 = vst [vmem:[#allocation62_spill] sm:$0xff] %v13528_v17  ;;  %v6259_v32 = vmul.f32 %v13528_v17, %v13309_v58  ;;  %v6260_v24 = vmul.f32 %v13528_v17, %v13313_v1  ;;  %v6261_v20 = vmul.f32 %v13528_v17, %v13317_v0  ;;  %v13559_v58 = vadd.f32 %v13533_v12, %v7213_v52 }
 0xace   : > { %v6262_v1 = vmul.f32 %v13528_v17, %v13325_v28  ;;  %v13569_v0 = vadd.f32 %v13533_v12, %v7216_v19  ;;  %v6263_v47 = vmul.f32 %v13528_v17, %v13329_v15  ;;  %15830 = vst [vmem:[#allocation32_spill] sm:$0xff] %v13578_v27  ;;  %v13581_v28 = vadd.f32 %v13533_v12, %v7223_v2 }
 0xacf   : > { %15827 = vst [vmem:[#allocation68_spill] sm:$0xff] %v13559_v58  ;;  %v6294_v52 = vmul.f32 %v13538_v42, %v6259_v32  ;;  %v6264_v18 = vmul.f32 %v13528_v17, %v13335_v38  ;;  %v6295_v19 = vmul.f32 %v13538_v42, %v6260_v24  ;;  %v6265_v15 = vmul.f32 %v13528_v17, %v13341_v9 }
 0xad0   : > { %15828 = vst [vmem:[#allocation69_spill] sm:$0xff] %v13569_v0  ;;  %v6296_v54 = vmul.f32 %v13538_v42, %v6261_v20  ;;  %v6266_v2 = vmul.f32 %v13528_v17, %v13347_v53  ;;  %v6267_v38 = vmul.f32 %v13528_v17, %v13354_v26  ;;  %v6268_v51 = vmul.f32 %v13528_v17, %v13360_v36 }
 0xad1   : > { %15831 = vst [vmem:[#allocation56_spill] sm:$0xff] %v13581_v28  ;;  %v6297_v10 = vmul.f32 %v13538_v42, %v6262_v1  ;;  %v6269_v4 = vmul.f32 %v13528_v17, %v13366_v49  ;;  %v6270_v9 = vmul.f32 %v13528_v17, %v13372_v30  ;;  %v6298_v44 = vmul.f32 %v13538_v42, %v6263_v47 }
 0xad2   : > { %v13610_v32 = vadd.f32 %v13566_v59, %v6294_v52  ;;  %v6271_v53 = vmul.f32 %v13528_v17, %v13378_v33  ;;  %v6272_v26 = vmul.f32 %v13528_v17, %v13384_v48  ;;  %v6299_v36 = vmul.f32 %v13538_v42, %v6264_v18 }
 0xad3   : > { %v13618_v24 = vadd.f32 %v13566_v59, %v6295_v19  ;;  %v6273_v49 = vmul.f32 %v13528_v17, %v13390_v8  ;;  %v6274_v30 = vmul.f32 %v13528_v17, %v13396_v37  ;;  %v6300_v20 = vmul.f32 %v13538_v42, %v6265_v15 }
 0xad4   : > { %15834 = vst [vmem:[#allocation35_spill] sm:$0xff] %v13610_v32  ;;  %v13626_v1 = vadd.f32 %v13566_v59, %v6296_v54  ;;  %v6275_v33 = vmul.f32 %v13528_v17, %v13403_v50  ;;  %v6276_v48 = vmul.f32 %v13528_v17, %v13409_v40  ;;  %v6301_v47 = vmul.f32 %v13538_v42, %v6266_v2 }
 0xad5   : > { %15835 = vst [vmem:[#allocation75_spill] sm:$0xff] %v13618_v24  ;;  %v13634_v52 = vadd.f32 %v13566_v59, %v6297_v10  ;;  %v6277_v8 = vmul.f32 %v13528_v17, %v13415_v22  ;;  %v6302_v37 = vmul.f32 %v13538_v42, %v6267_v38  ;;  %v13640_v18 = vadd.f32 %v13566_v59, %v6298_v44 }
 0xad6   : > { %15836 = vst [vmem:[#allocation118_spill] sm:$0xff] %v13626_v1  ;;  %v8188_v19 = vmul.f32 -1.442695, %v13610_v32  ;;  %v6278_v50 = vmul.f32 %v13528_v17, %v13421_v63  ;;  %v6303_v40 = vmul.f32 %v13538_v42, %v6268_v51  ;;  %v13647_v15 = vadd.f32 %v13566_v59, %v6299_v36 }
 0xad7   : > { %15837 = vst [vmem:[#allocation119_spill] sm:$0xff] %v13634_v52  ;;  %v8189_v54 = vmul.f32 -1.442695, %v13618_v24  ;;  %v6279_v22 = vmul.f32 %v13528_v17, %v13427_v61  ;;  %v6304_v2 = vmul.f32 %v13538_v42, %v6269_v4  ;;  %v13654_v38 = vadd.f32 %v13566_v59, %v6300_v20  ;;  %v13669_v20 = vpop.f32.mrf.mxu2 }
 0xad8   : > { %15838 = vst [vmem:[#allocation76_spill] sm:$0xff] %v13640_v18  ;;  %v8190_v10 = vmul.f32 -1.442695, %v13626_v1  ;;  %v6280_v63 = vmul.f32 %v13528_v17, %v13433_v41  ;;  %v6305_v51 = vmul.f32 %v13538_v42, %v6270_v9  ;;  %v13661_v44 = vadd.f32 %v13566_v59, %v6301_v47 }
 0xad9   : > { %15839 = vst [vmem:[#allocation111_spill] sm:$0xff] %v13647_v15  ;;  %v8191_v36 = vmul.f32 -1.442695, %v13634_v52  ;;  %v6306_v35 = vmul.f32 %v13538_v42, %v6271_v53  ;;  %v13666_v61 = vadd.f32 %v13566_v59, %v6302_v37  ;;  %8855 = vpow2.f32 %v8188_v19 }
 0xada   : > { %15840 = vst [vmem:[#allocation59_spill] sm:$0xff] %v13654_v38  ;;  %v8192_v4 = vmul.f32 -1.442695, %v13640_v18  ;;  %v6307_v34 = vmul.f32 %v13538_v42, %v6272_v26  ;;  %v13673_v41 = vadd.f32 %v13566_v59, %v6303_v40  ;;  %8857 = vpow2.f32 %v8189_v54 }
 0xadb   : > { %15841 = vst [vmem:[#allocation120_spill] sm:$0xff] %v13661_v44  ;;  %v8193_v9 = vmul.f32 -1.442695, %v13647_v15  ;;  %v6308_v47 = vmul.f32 %v13538_v42, %v6273_v49  ;;  %v13678_v53 = vadd.f32 %v13566_v59, %v6304_v2  ;;  %8859 = vpow2.f32 %v8190_v10 }
 0xadc   : > { %15842 = vst [vmem:[#allocation78_spill] sm:$0xff] %v13666_v61  ;;  %v8194_v37 = vmul.f32 -1.442695, %v13654_v38  ;;  %v6309_v19 = vmul.f32 %v13538_v42, %v6274_v30  ;;  %v13683_v14 = vadd.f32 %v13566_v59, %v6305_v51  ;;  %8861 = vpow2.f32 %v8191_v36 }
 0xadd   : > { %15843 = vst [vmem:[#allocation33_spill] sm:$0xff] %v13673_v41  ;;  %v8195_v26 = vmul.f32 -1.442695, %v13661_v44  ;;  %v6310_v40 = vmul.f32 %v13538_v42, %v6275_v33  ;;  %v13688_v54 = vadd.f32 %v13566_v59, %v6306_v35  ;;  %8863 = vpow2.f32 %v8192_v4 }
 0xade   : > { %15844 = vst [vmem:[#allocation110_spill] sm:$0xff] %v13678_v53  ;;  %v8196_v49 = vmul.f32 -1.442695, %v13666_v61  ;;  %v6311_v2 = vmul.f32 %v13538_v42, %v6276_v48  ;;  %v13693_v10 = vadd.f32 %v13566_v59, %v6307_v34  ;;  %8865 = vpow2.f32 %v8193_v9 }
 0xadf   : > { %15845 = vst [vmem:[#allocation37_spill] sm:$0xff] %v13683_v14  ;;  %v8197_v30 = vmul.f32 -1.442695, %v13673_v41  ;;  %v8856_v51 = vpop.eup %8855  ;;  %v6312_v36 = vmul.f32 %v13538_v42, %v6277_v8  ;;  %v13698_v62 = vadd.f32 %v13566_v59, %v6308_v47  ;;  %8867 = vpow2.f32 %v8194_v37 }
 0xae0   : > { %15846 = vst [vmem:[#allocation30_spill] sm:$0xff] %v13688_v54  ;;  %v8198_v35 = vmul.f32 -1.442695, %v13678_v53  ;;  %v8858_v33 = vpop.eup %8857  ;;  %v6313_v4 = vmul.f32 %v13538_v42, %v6278_v50  ;;  %v13703_v48 = vadd.f32 %v13566_v59, %v6309_v19  ;;  %8869 = vpow2.f32 %v8195_v26 }
 0xae1   : > { %15847 = vst [vmem:[#allocation28_spill] sm:$0xff] %v13693_v10  ;;  %v8199_v34 = vmul.f32 -1.442695, %v13683_v14  ;;  %v8860_v9 = vpop.eup %8859  ;;  %v6314_v7 = vmul.f32 %v13538_v42, %v6279_v22  ;;  %v13708_v8 = vadd.f32 %v13566_v59, %v6310_v40  ;;  %8871 = vpow2.f32 %v8196_v49 }
 0xae2   : > { %15848 = vst [vmem:[#allocation48_spill] sm:$0xff] %v13698_v62  ;;  %v8200_v47 = vmul.f32 -1.442695, %v13688_v54  ;;  %v13711_v37 = vpop.eup %8861  ;;  %v6281_v50 = vmul.f32 %v13528_v17, %v13441_v60  ;;  %v13716_v19 = vadd.f32 %v13566_v59, %v6311_v2  ;;  %8873 = vpow2.f32 %v8197_v30  ;;  %v7253_v60 = vpop.f32.mrf.mxu2 }
 0xae3   : > { %15849 = vst [vmem:[#allocation39_spill] sm:$0xff] %v13703_v48  ;;  %v8201_v26 = vmul.f32 -1.442695, %v13693_v10  ;;  %v13719_v45 = vpop.eup %8863  ;;  %v6282_v22 = vmul.f32 %v13528_v17, %v13448_v11  ;;  %v13724_v40 = vadd.f32 %v13566_v59, %v6312_v36  ;;  %8875 = vpow2.f32 %v8198_v35 }
 0xae4   : > { %15850 = vst [vmem:[#allocation112_spill] sm:$0xff] %v13708_v8  ;;  %v8202_v49 = vmul.f32 -1.442695, %v13698_v62  ;;  %v13727_v39 = vpop.eup %8865  ;;  %v6283_v2 = vmul.f32 %v13528_v17, %v13454_v46  ;;  %v13732_v30 = vadd.f32 %v13566_v59, %v6313_v4  ;;  %8877 = vpow2.f32 %v8199_v34 }
 0xae5   : > { %15851 = vst [vmem:[#allocation113_spill] sm:$0xff] %v13716_v19  ;;  %v8203_v23 = vmul.f32 -1.442695, %v13703_v48  ;;  %v13735_v31 = vpop.eup %8867  ;;  %v6315_v11 = vmul.f32 %v13538_v42, %v6280_v63  ;;  %v13739_v36 = vadd.f32 %v13566_v59, %v6314_v7  ;;  %8879 = vpow2.f32 %v8200_v47 }
 0xae6   : > { %15852 = vst [vmem:[#allocation82_spill] sm:$0xff] %v13724_v40  ;;  %v8204_v35 = vmul.f32 -1.442695, %v13708_v8  ;;  %v13742_v28 = vpop.eup %8869  ;;  %v13746_v46 = vadd.f32 %v13533_v12, %v13513_v25  ;;  %v13750_v4 = vadd.f32 %v13533_v12, %v13515_v13  ;;  %8881 = vpow2.f32 %v8201_v26 }
 0xae7   : > { %15853 = vst [vmem:[#allocation116_spill] sm:$0xff] %v13732_v30  ;;  %v8205_v34 = vmul.f32 -1.442695, %v13716_v19  ;;  %v13753_v63 = vpop.eup %8871  ;;  %v13757_v7 = vadd.f32 %v13533_v12, %v13518_v6  ;;  %v13761_v47 = vadd.f32 %v13533_v12, %v13520_v5  ;;  %8883 = vpow2.f32 %v8202_v49 }
 0xae8   : > { %15854 = vst [vmem:[#allocation50_spill] sm:$0xff] %v13739_v36  ;;  %v8206_v25 = vmul.f32 -1.442695, %v13724_v40  ;;  %v6316_v13 = vmul.f32 %v13538_v42, %v6281_v50  ;;  %v6317_v26 = vmul.f32 %v13538_v42, %v6282_v22  ;;  %8885 = vpow2.f32 %v8203_v23 }
 0xae9   : > { %15855 = vst [vmem:[#allocation114_spill] sm:$0xff] %v13746_v46  ;;  %v8874_v46 = vpop.eup %8873  ;;  %v6318_v27 = vmul.f32 %v13538_v42, %v6283_v2  ;;  %v13769_v6 = vadd.f32 %v13566_v59, %v6315_v11  ;;  %8887 = vpow2.f32 %v8204_v35  ;;  %v8208_v5 = vmul.f32 -1.442695, %v13739_v36 }
 0xaea   : > { %15856 = vst [vmem:[#allocation83_spill] sm:$0xff] %v13750_v4  ;;  %v8207_v4 = vmul.f32 -1.442695, %v13732_v30  ;;  %v8876_v17 = vpop.eup %8875  ;;  %v13778_v50 = vadd.f32 %v13533_v12, %v13524_v29  ;;  %8889 = vpow2.f32 %v8205_v34  ;;  %v13780_v23 = vadd.f32 1.0, %v8856_v51 }
 0xaeb   : > { %15857 = vst [vmem:[#allocation115_spill] sm:$0xff] %v13757_v7  ;;  %v8878_v49 = vpop.eup %8877  ;;  %v13784_v42 = vadd.f32 %v13533_v12, %v13526_v57  ;;  %v13788_v2 = vadd.f32 %v13533_v12, %v13595_v21  ;;  %8891 = vpow2.f32 %v8206_v25  ;;  %v13790_v11 = vadd.f32 1.0, %v8858_v33 }
 0xaec   : > { %15858 = vst [vmem:[#allocation53_spill] sm:$0xff] %v13761_v47  ;;  %v13774_v47 = vadd.f32 %v13533_v12, %v13522_v56  ;;  %v8880_v22 = vpop.eup %8879  ;;  %v13793_v35 = vadd.f32 %v13566_v59, %v6316_v13  ;;  %v13796_v29 = vadd.f32 %v13566_v59, %v6317_v26  ;;  %8893 = vpow2.f32 %v8207_v4  ;;  %v7256_v26 = vpop.f32.mrf.mxu2 }
 0xaed   : > { %15859 = vst [vmem:[#allocation85_spill] sm:$0xff] %v13769_v6  ;;  %v8882_v56 = vpop.eup %8881  ;;  %v13798_v51 = vadd.f32 1.0, %v8860_v9  ;;  %v13802_v57 = vadd.f32 %v13533_v12, %v13669_v20  ;;  %v13805_v21 = vadd.f32 %v13566_v59, %v6318_v27  ;;  %8895 = vpow2.f32 %v8208_v5 }
 0xaee   : > { %15860 = vst [vmem:[#allocation117_spill] sm:$0xff] %v13774_v47  ;;  %v8884_v34 = vpop.eup %8883  ;;  %v8209_v33 = vmul.f32 -1.442695, %v13769_v6  ;;  %v13809_v13 = vadd.f32 %v13533_v12, %v7253_v60  ;;  %v13812_v4 = vadd.f32 1.0, %v13711_v37  ;;  %8897 = vrcp.f32 %v13780_v23 }
 0xaef   : > { %15861 = vst [vmem:[#allocation93_spill] sm:$0xff] %v13778_v50  ;;  %v8886_v25 = vpop.eup %8885  ;;  %v6500_v9 = vand.u32 2147483648, %v13780_v23  ;;  %v13820_v59 = vadd.f32 1.0, %v13719_v45  ;;  %8899 = vrcp.f32 %v13790_v11  ;;  %v6515_v27 = vand.u32 2147483648, %v13790_v11 }
 0xaf0   : > { %15862 = vst [vmem:[#allocation42_spill] sm:$0xff] %v13784_v42  ;;  %v8888_v20 = vpop.eup %8887  ;;  %v8210_v5 = vmul.f32 -1.442695, %v13793_v35  ;;  %v8211_v37 = vmul.f32 -1.442695, %v13796_v29  ;;  %8901 = vrcp.f32 %v13798_v51  ;;  %v13843_v42 = vadd.f32 1.0, %v13742_v28 }
 0xaf1   : > { %15863 = vst [vmem:[#allocation47_spill] sm:$0xff] %v13788_v2  ;;  %v8890_v60 = vpop.eup %8889  ;;  %8903 = vpow2.f32 %v8209_v33  ;;  %v8212_v45 = vmul.f32 -1.442695, %v13805_v21  ;;  %v13838_v6 = vor.u32 1.1754944e-38, %v6500_v9  ;;  %v13845_v33 = vor.u32 1.1754944e-38, %v6515_v27 }
 0xaf2   : > { %15864 = vst [vmem:[#allocation95_spill] sm:$0xff] %v13793_v35  ;;  %v13830_v2 = vpop.eup %8891  ;;  %8905 = vrcp.f32 %v13812_v4  ;;  %v13852_v35 = vadd.f32 1.0, %v13753_v63  ;;  %v13854_v9 = vadd.f32 1.0, %v8874_v46  ;;  %v13860_v28 = vadd.f32 1.0, %v8876_v17 }
 0xaf3   : > { %15865 = vst [vmem:[#allocation44_spill] sm:$0xff] %v13796_v29  ;;  %8907 = vrcp.f32 %v13820_v59  ;;  %v13868_v63 = vadd.f32 1.0, %v8878_v49  ;;  %v13870_v46 = vadd.f32 1.0, %v8880_v22  ;;  %v13873_v40 = vadd.f32 1.0, %v8882_v56 }
 0xaf4   : > { %15866 = vst [vmem:[#allocation49_spill] sm:$0xff] %v13802_v57  ;;  %v13817_v57 = vadd.f32 %v13533_v12, %v7256_v26  ;;  %v13834_v12 = vadd.f32 1.0, %v13735_v31  ;;  %v6530_v26 = vand.u32 2147483648, %v13798_v51  ;;  %v6545_v31 = vand.u32 2147483648, %v13812_v4 }
 0xaf5   : > { %15867 = vst [vmem:[#allocation89_spill] sm:$0xff] %v13805_v21  ;;  %v13897_v8 = vadd.f32 1.0, %v8888_v20  ;;  %vm6494_vm9 = vweird.f32 %v13780_v23  ;;  %vm6509_vm4 = vweird.f32 %v13790_v11  ;;  %vm6524_vm15 = vweird.f32 %v13798_v51 }
 0xaf6   : > { %15868 = vst [vmem:[#allocation94_spill] sm:$0xff] %v13809_v13  ;;  %v13827_v13 = vadd.f32 1.0, %v13727_v39  ;;  %v13862_v27 = vor.u32 1.1754944e-38, %v6530_v26  ;;  %v6560_v39 = vand.u32 2147483648, %v13820_v59  ;;  %v13875_v17 = vor.u32 1.1754944e-38, %v6545_v31 }
 0xaf7   : > { %15869 = vst [vmem:[#allocation96_spill] sm:$0xff] %v13817_v57  ;;  %v8894_v57 = vpop.eup %8893  ;;  %v13895_v26 = vadd.f32 1.0, %v8886_v25  ;;  %v6590_v31 = vand.u32 2147483648, %v13834_v12  ;;  %vm6539_vm8 = vweird.f32 %v13812_v4  ;;  %vm6599_vm11 = vweird.f32 %v13843_v42 }
 0xaf8   : > { %v8896_v29 = vpop.eup %8895  ;;  %8909 = vrcp.f32 %v13827_v13  ;;  %v6575_v22 = vand.u32 2147483648, %v13827_v13  ;;  %v13899_v48 = vor.u32 1.1754944e-38, %v6560_v39  ;;  %v6605_v39 = vand.u32 2147483648, %v13843_v42 }
 0xaf9   : > { %v13849_v36 = vpop.eup %8897  ;;  %8911 = vrcp.f32 %v13834_v12  ;;  %v13930_v21 = vadd.f32 1.0, %v8896_v29 }
 0xafa   : > { %v13858_v50 = vpop.eup %8899  ;;  %8913 = vpow2.f32 %v8210_v5  ;;  %v6490_v5 = vmul.f32 %v13849_v36, %v13780_v23  ;;  %v13910_v20 = vor.u32 1.1754944e-38, %v6575_v22  ;;  %vm6495_vm14 = vweird.f32 %v13849_v36 }
 0xafb   : > { %v13866_v7 = vpop.eup %8901  ;;  %8915 = vpow2.f32 %v8211_v37  ;;  %v6505_v49 = vmul.f32 %v13858_v50, %v13790_v11  ;;  %v13887_v37 = vadd.f32 1.0, %v8884_v34  ;;  %v13904_v34 = vadd.f32 1.0, %v8890_v60  ;;  %vm14002_vm2 = vmor %vm6494_vm9, %vm6495_vm14 }
 0xafc   : > { %v8904_v30 = vpop.eup %8903  ;;  %8917 = vpow2.f32 %v8212_v45  ;;  %v6520_v56 = vmul.f32 %v13866_v7, %v13798_v51  ;;  %v6491_v25 = vsub.f32 1.0, %v6490_v5  ;;  %v13920_v5 = vadd.f32 1.0, %v13830_v2 }
 0xafd   : > { %v13878_v47 = vpop.eup %8905  ;;  %8919 = vrcp.f32 %v13843_v42  ;;  %v6506_v54 = vsub.f32 1.0, %v6505_v49  ;;  %v13922_v49 = vadd.f32 1.0, %v8894_v57  ;;  %v13932_v44 = vadd.f32 1.0, %v8904_v30 }
 0xafe   : > { %v13885_v19 = vpop.eup %8907  ;;  %8921 = vrcp.f32 %v13852_v35  ;;  %v6535_v62 = vmul.f32 %v13878_v47, %v13812_v4  ;;  %v6521_v14 = vsub.f32 1.0, %v6520_v56  ;;  %v13935_v2 = vor.u32 1.1754944e-38, %v6590_v31 }
 0xaff   : > { %v13893_v45 = vpop.eup %8909  ;;  %8923 = vrcp.f32 %v13854_v9  ;;  %v6550_v60 = vmul.f32 %v13885_v19, %v13820_v59  ;;  %v6492_v43 = vmul.f32 %v13849_v36, %v6491_v25  ;;  %v6507_v16 = vmul.f32 %v13858_v50, %v6506_v54 }
 0xb00   : > { %v13902_v55 = vpop.eup %8911  ;;  %v6565_v58 = vmul.f32 %v13893_v45, %v13827_v13  ;;  %v6536_v53 = vsub.f32 1.0, %v6535_v62  ;;  %v13943_v56 = vor.u32 1.1754944e-38, %v6605_v39  ;;  %v6522_v30 = vmul.f32 %v13866_v7, %v6521_v14 }
 0xb01   : > { %v8914_v10 = vpop.eup %8913  ;;  %v6580_v22 = vmul.f32 %v13902_v55, %v13834_v12  ;;  %v6551_v29 = vsub.f32 1.0, %v6550_v60  ;;  %v6620_v25 = vand.u32 2147483648, %v13852_v35  ;;  %v15871_v14 = vand.u32 2147483647, %v13780_v23 }
 0xb02   : > { %v8916_v0 = vpop.eup %8915  ;;  %v13939_v3 = vadd.f32 1.0, %v8914_v10  ;;  %v6566_v62 = vsub.f32 1.0, %v6565_v58  ;;  %vm6510_vm1 = vweird.f32 %v13858_v50  ;;  %v15874_v58 = vand.u32 2147483647, %v13790_v11 }
 0xb03   : > { %v8918_v41 = vpop.eup %8917  ;;  %v13950_v15 = vadd.f32 1.0, %v8916_v0  ;;  %v6581_v10 = vsub.f32 1.0, %v6580_v22  ;;  %vm13959_vm10 = vcmp.eq.f32.partialorder %v15871_v14, 8.507059e+37  ;;  %v15877_v60 = vand.u32 2147483647, %v13798_v51  ;;  %vm14012_vm6 = vmor %vm6509_vm4, %vm6510_vm1 }
 0xb04   : > { %v13928_v61 = vpop.eup %8919  ;;  %vm13966_vm7 = vcmp.eq.f32.partialorder %v15874_v58, 8.507059e+37  ;;  %v6537_v31 = vmul.f32 %v13878_v47, %v6536_v53  ;;  %v6493_v18 = vadd.f32 %v13849_v36, %v6492_v43  ;;  %v6508_v58 = vadd.f32 %v13858_v50, %v6507_v16 }
 0xb05   : > { %v13937_v57 = vpop.eup %8921  ;;  %15870 = vst [vmem:[#allocation90_spill] sm:$0xff] %v13950_v15  ;;  %v6595_v54 = vmul.f32 %v13928_v61, %v13843_v42  ;;  %vm13972_vm13 = vcmp.eq.f32.partialorder %v15877_v60, 8.507059e+37  ;;  %vm6525_vm0 = vweird.f32 %v13866_v7  ;;  %v6523_v52 = vadd.f32 %v13866_v7, %v6522_v30 }
 0xb06   : > { %v13945_v38 = vpop.eup %8923  ;;  %v6610_v14 = vmul.f32 %v13937_v57, %v13852_v35  ;;  %v15880_v53 = vand.u32 2147483647, %v13812_v4  ;;  %v6552_v24 = vmul.f32 %v13885_v19, %v6551_v29  ;;  %v6567_v43 = vmul.f32 %v13893_v45, %v6566_v62  ;;  %vm14038_vm4 = vmor %vm6524_vm15, %vm6525_vm0 }
 0xb07   : > { %v6625_v60 = vmul.f32 %v13945_v38, %v13854_v9  ;;  %8925 = vrcp.f32 %v13860_v28  ;;  %v13996_v16 = vadd.f32 1.0, %v8918_v41  ;;  %v6596_v32 = vsub.f32 1.0, %v6595_v54 }
 0xb08   : > { %vm13989_vm3 = vcmp.eq.f32.partialorder %v15880_v53, 8.507059e+37  ;;  %v6582_v53 = vmul.f32 %v13902_v55, %v6581_v10  ;;  %v6633_v15 = vand.u32 2147483647, %v13854_v9  ;;  %v6538_v29 = vadd.f32 %v13878_v47, %v6537_v31 }
 0xb09   : > { %15883 = vst [vmem:[#allocation51_spill] sm:$0xff] %v13996_v16  ;;  %vm6540_vm9 = vweird.f32 %v13878_v47  ;;  %v15888_v23 = vand.u32 2147483647, %v13820_v59  ;;  %v15891_v10 = vand.u32 2147483647, %v13827_v13  ;;  %v6611_v11 = vsub.f32 1.0, %v6610_v14  ;;  %v14205_v16 = vpop.f32.mrf.mxu2 }
 0xb0a   : > { %8927 = vrcp.f32 %v13868_v63  ;;  %v6497_v31 = vsel %vm14002_vm2, %v13849_v36, %v6493_v18  ;;  %vm6555_vm1 = vweird.f32 %v13885_v19  ;;  %vm6570_vm12 = vweird.f32 %v13893_v45  ;;  %vm14064_vm2 = vmor %vm6539_vm8, %vm6540_vm9 }
 0xb0b   : > { %vm14020_vm14 = vcmp.eq.f32.partialorder %v15888_v23, 8.507059e+37  ;;  %vm14026_vm5 = vcmp.eq.f32.partialorder %v15891_v10, 8.507059e+37  ;;  %v6626_v14 = vsub.f32 1.0, %v6625_v60  ;;  %v6512_v30 = vsel %vm14012_vm6, %v13858_v50, %v6508_v58 }
 0xb0c   : > { %v6527_v18 = vsel %vm14038_vm4, %v13866_v7, %v6523_v52  ;;  %v6553_v36 = vadd.f32 %v13885_v19, %v6552_v24  ;;  %v6568_v51 = vadd.f32 %v13893_v45, %v6567_v43  ;;  %v15896_v10 = vand.u32 2147483647, %v13834_v12 }
 0xb0d   : > { %vm6614_vm0 = vweird.f32 %v13852_v35  ;;  %v6583_v24 = vadd.f32 %v13902_v55, %v6582_v53  ;;  %vm6585_vm6 = vweird.f32 %v13902_v55  ;;  %v6597_v52 = vmul.f32 %v13928_v61, %v6596_v32  ;;  %v14073_v7 = vpop.eup %8925 }
 0xb0e   : > { %vm14055_vm15 = vcmp.eq.f32.partialorder %v15896_v10, 8.507059e+37  ;;  %vm6629_vm4 = vweird.f32 %v13854_v9  ;;  %8929 = vrcp.f32 %v13870_v46  ;;  %v6542_v4 = vsel %vm14064_vm2, %v13878_v47, %v6538_v29 }
 0xb0f   : > { %vm15901_vm8 = vweird.f32 %v13820_v59  ;;  %v6612_v32 = vmul.f32 %v13937_v57, %v6611_v11  ;;  %v6621_v60 = vor.u32 1.1754944e-38, %v6620_v25  ;;  %v6635_v43 = vand.u32 2147483648, %v13854_v9 }
 0xb10   : > { %vm14082_vm9 = vmor %vm15901_vm8, %vm6555_vm1  ;;  %v14091_v53 = vsel %vm13959_vm10, %v13838_v6, %v6497_v31  ;;  %v14096_v47 = vsel %vm13966_vm7, %v13845_v33, %v6512_v30  ;;  %v14101_v59 = vsel %vm13972_vm13, %v13862_v27, %v6527_v18  ;;  %vm15904_vm1 = vweird.f32 %v13827_v13  ;;  %v14118_v0 = vpop.eup %8927 }
 0xb11   : > { %vm14107_vm2 = vmor %vm15904_vm1, %vm6570_vm12  ;;  %v15907_v6 = vand.u32 2147483647, %v13843_v42  ;;  %v6627_v33 = vmul.f32 %v13945_v38, %v6626_v14  ;;  %v6557_v27 = vsel %vm14082_vm9, %v13885_v19, %v6553_v36  ;;  %vm15910_vm7 = vweird.f32 %v13834_v12 }
 0xb12   : > { %v6572_v13 = vsel %vm14107_vm2, %v13893_v45, %v6568_v51  ;;  %vm14130_vm13 = vmor %vm15910_vm7, %vm6585_vm6  ;;  %v15913_v41 = vand.u32 2147483647, %v13852_v35  ;;  %v6640_v19 = vmul.f32 %v14073_v7, %v13860_v28  ;;  %8931 = vrcp.f32 %v13873_v40 }
 0xb13   : > { %vm14113_vm10 = vcmp.eq.f32.partialorder %v15907_v6, 8.507059e+37  ;;  %v14146_v45 = vsel %vm13989_vm3, %v13875_v17, %v6542_v4  ;;  %v6587_v12 = vsel %vm14130_vm13, %v13902_v55, %v6583_v24  ;;  %v6598_v11 = vadd.f32 %v13928_v61, %v6597_v52 }
 0xb14   : > { %vm14136_vm12 = vcmp.eq.f32.partialorder %v15913_v41, 8.507059e+37  ;;  %vm6600_vm6 = vweird.f32 %v13928_v61  ;;  %vm14153_vm8 = vcmp.eq.f32.partialorder %v6633_v15, 8.507059e+37  ;;  %v6613_v23 = vadd.f32 %v13937_v57, %v6612_v32  ;;  %v14162_v17 = vpop.eup %8929 }
 0xb15   : > { %vm6615_vm9 = vweird.f32 %v13937_v57  ;;  %v6655_v1 = vmul.f32 %v14118_v0, %v13868_v63  ;;  %8933 = vrcp.f32 %v13887_v37  ;;  %v14167_v55 = vsel %vm14020_vm14, %v13899_v48, %v6557_v27  ;;  %vm14178_vm1 = vmor %vm6599_vm11, %vm6600_vm6 }
 0xb16   : > { %v14172_v15 = vsel %vm14026_vm5, %v13910_v20, %v6572_v13  ;;  %v6628_v14 = vadd.f32 %v13945_v38, %v6627_v33  ;;  %vm6630_vm3 = vweird.f32 %v13945_v38  ;;  %v6641_v18 = vsub.f32 1.0, %v6640_v19  ;;  %vm14198_vm11 = vmor %vm6614_vm0, %vm6615_vm9 }
 0xb17   : > { %v6650_v62 = vand.u32 2147483648, %v13860_v28  ;;  %v6670_v48 = vmul.f32 %v14162_v17, %v13870_v46  ;;  %8935 = vrcp.f32 %v13895_v26  ;;  %v14189_v20 = vsel %vm14055_vm15, %v13935_v2, %v6587_v12  ;;  %vm14212_vm5 = vmor %vm6629_vm4, %vm6630_vm3 }
 0xb18   : > { %v6602_v42 = vsel %vm14178_vm1, %v13928_v61, %v6598_v11  ;;  %v6636_v36 = vor.u32 1.1754944e-38, %v6635_v43  ;;  %v6648_v51 = vand.u32 2147483647, %v13860_v28  ;;  %v14203_v10 = vpop.eup %8931  ;;  %v6617_v2 = vsel %vm14198_vm11, %v13937_v57, %v6613_v23 }
 0xb19   : > { %vm6644_vm14 = vweird.f32 %v13860_v28  ;;  %v6656_v35 = vsub.f32 1.0, %v6655_v1  ;;  %v6665_v50 = vand.u32 2147483648, %v13868_v63  ;;  %8937 = vrcp.f32 %v13897_v8 }
 0xb1a   : > { %v6632_v24 = vsel %vm14212_vm5, %v13945_v38, %v6628_v14  ;;  %v6663_v52 = vand.u32 2147483647, %v13868_v63  ;;  %v6680_v57 = vand.u32 2147483648, %v13870_v46  ;;  %v6685_v9 = vmul.f32 %v14203_v10, %v13873_v40 }
 0xb1b   : > { %v14226_v4 = vpop.eup %8933  ;;  %v14231_v58 = vsel %vm14113_vm10, %v13943_v56, %v6602_v42  ;;  %v6642_v32 = vmul.f32 %v14073_v7, %v6641_v18  ;;  %v6651_v43 = vor.u32 1.1754944e-38, %v6650_v62  ;;  %vm6659_vm15 = vweird.f32 %v13868_v63 }
 0xb1c   : > { %v6671_v38 = vsub.f32 1.0, %v6670_v48  ;;  %v14237_v25 = vsel %vm14136_vm12, %v6621_v60, %v6617_v2  ;;  %v6678_v6 = vand.u32 2147483647, %v13870_v46  ;;  %v6686_v33 = vsub.f32 1.0, %v6685_v9 }
 0xb1d   : > { %v6700_v27 = vmul.f32 %v14226_v4, %v13887_v37  ;;  %v14242_v13 = vpop.eup %8935  ;;  %v14246_v56 = vsel %vm14153_vm8, %v6636_v36, %v6632_v24  ;;  %vm6645_vm0 = vweird.f32 %v14073_v7  ;;  %vm14249_vm4 = vcmp.eq.f32.partialorder %v6648_v51, 8.507059e+37  ;;  %v15961_v51 = vld [vmem:[#allocation51_spill] sm:$0xff] }
 0xb1e   : > { %v6657_v60 = vmul.f32 %v14118_v0, %v6656_v35  ;;  %v6666_v22 = vor.u32 1.1754944e-38, %v6665_v50  ;;  %vm6674_vm2 = vweird.f32 %v13870_v46  ;;  %v6681_v41 = vor.u32 1.1754944e-38, %v6680_v57  ;;  %vm14284_vm6 = vmor %vm6644_vm14, %vm6645_vm0  ;;  %v14291_v35 = vpop.f32.mrf.mxu2 }
 0xb1f   : > { %v6693_v29 = vand.u32 2147483647, %v13873_v40  ;;  %v6695_v19 = vand.u32 2147483648, %v13873_v40  ;;  %v6715_v12 = vmul.f32 %v14242_v13, %v13895_v26  ;;  %v14259_v11 = vpop.eup %8937  ;;  %v6643_v31 = vadd.f32 %v14073_v7, %v6642_v32 }
 0xb20   : > { %vm14262_vm10 = vcmp.eq.f32.partialorder %v6663_v52, 8.507059e+37  ;;  %v6672_v1 = vmul.f32 %v14162_v17, %v6671_v38  ;;  %v6701_v14 = vsub.f32 1.0, %v6700_v27  ;;  %8939 = vrcp.f32 %v13904_v34 }
 0xb21   : > { %vm6660_vm7 = vweird.f32 %v14118_v0  ;;  %v6687_v30 = vmul.f32 %v14203_v10, %v6686_v33  ;;  %vm6689_vm13 = vweird.f32 %v13873_v40  ;;  %v6710_v18 = vand.u32 2147483648, %v13887_v37 }
 0xb22   : > { %v6658_v62 = vadd.f32 %v14118_v0, %v6657_v60  ;;  %vm14273_vm12 = vcmp.eq.f32.partialorder %v6678_v6, 8.507059e+37  ;;  %v6708_v42 = vand.u32 2147483647, %v13887_v37  ;;  %v6716_v54 = vsub.f32 1.0, %v6715_v12  ;;  %vm14307_vm1 = vmor %vm6659_vm15, %vm6660_vm7 }
 0xb23   : > { %v6730_v36 = vmul.f32 %v14259_v11, %v13897_v8  ;;  %vm6675_vm8 = vweird.f32 %v14162_v17  ;;  %v6696_v2 = vor.u32 1.1754944e-38, %v6695_v19  ;;  %vm6704_vm9 = vweird.f32 %v13887_v37 }
 0xb24   : > { %v6723_v61 = vand.u32 2147483647, %v13895_v26  ;;  %v6647_v50 = vsel %vm14284_vm6, %v14073_v7, %v6643_v31  ;;  %v6673_v24 = vadd.f32 %v14162_v17, %v6672_v1  ;;  %vm14297_vm3 = vcmp.eq.f32.partialorder %v6693_v29, 8.507059e+37  ;;  %vm14333_vm15 = vmor %vm6674_vm2, %vm6675_vm8 }
 0xb25   : > { %v6702_v52 = vmul.f32 %v14226_v4, %v6701_v14  ;;  %8941 = vrcp.f32 %v13920_v5  ;;  %v6688_v7 = vadd.f32 %v14203_v10, %v6687_v30  ;;  %vm6690_vm11 = vweird.f32 %v14203_v10 }
 0xb26   : > { %v6711_v9 = vor.u32 1.1754944e-38, %v6710_v18  ;;  %v6725_v32 = vand.u32 2147483648, %v13895_v26  ;;  %v14314_v38 = vpop.eup %8939  ;;  %v6662_v6 = vsel %vm14307_vm1, %v14118_v0, %v6658_v62  ;;  %vm14319_vm5 = vcmp.eq.f32.partialorder %v6708_v42, 8.507059e+37 }
 0xb27   : > { %v6717_v63 = vmul.f32 %v14242_v13, %v6716_v54  ;;  %vm6719_vm14 = vweird.f32 %v13895_v26  ;;  %v6731_v27 = vsub.f32 1.0, %v6730_v36  ;;  %v14327_v60 = vsel %vm14249_vm4, %v6651_v43, %v6647_v50  ;;  %vm14348_vm4 = vmor %vm6689_vm13, %vm6690_vm11  ;;  %v14413_v50 = vpop.f32.mrf.mxu2 }
 0xb28   : > { %vm6705_vm0 = vweird.f32 %v14226_v4  ;;  %v6738_v0 = vand.u32 2147483647, %v13897_v8  ;;  %v6745_v19 = vmul.f32 %v14314_v38, %v13904_v34  ;;  %v6677_v43 = vsel %vm14333_vm15, %v14162_v17, %v6673_v24 }
 0xb29   : > { %v6703_v39 = vadd.f32 %v14226_v4, %v6702_v52  ;;  %vm14353_vm2 = vcmp.eq.f32.partialorder %v6723_v61, 8.507059e+37  ;;  %v6740_v31 = vand.u32 2147483648, %v13897_v8  ;;  %8943 = vrcp.f32 %v13922_v49 }
 0xb2a   : > { %v14361_v17 = vsel %vm14262_vm10, %v6666_v22, %v6662_v6  ;;  %v6692_v40 = vsel %vm14348_vm4, %v14203_v10, %v6688_v7  ;;  %vm6720_vm7 = vweird.f32 %v14242_v13  ;;  %v6726_v1 = vor.u32 1.1754944e-38, %v6725_v32  ;;  %vm14380_vm10 = vmor %vm6704_vm9, %vm6705_vm0 }
 0xb2b   : > { %v14367_v14 = vpop.eup %8941  ;;  %v6718_v30 = vadd.f32 %v14242_v13, %v6717_v63  ;;  %v6732_v18 = vmul.f32 %v14259_v11, %v6731_v27  ;;  %v6746_v62 = vsub.f32 1.0, %v6745_v19  ;;  %8945 = vrcp.f32 %v13930_v21  ;;  %vm14405_vm8 = vmor %vm6719_vm14, %vm6720_vm7 }
 0xb2c   : > { %v14374_v22 = vsel %vm14273_vm12, %v6681_v41, %v6677_v43  ;;  %vm6734_vm13 = vweird.f32 %v13897_v8  ;;  %vm6735_vm6 = vweird.f32 %v14259_v11  ;;  %v6760_v23 = vmul.f32 %v14367_v14, %v13920_v5 }
 0xb2d   : > { %v6707_v41 = vsel %vm14380_vm10, %v14226_v4, %v6703_v39  ;;  %vm14391_vm12 = vcmp.eq.f32.partialorder %v6738_v0, 8.507059e+37  ;;  %v6741_v37 = vor.u32 1.1754944e-38, %v6740_v31  ;;  %v6753_v42 = vand.u32 2147483647, %v13904_v34  ;;  %v15954_v39 = vld [vmem:[#allocation90_spill] sm:$0xff] }
 0xb2e   : > { %v6755_v54 = vand.u32 2147483648, %v13904_v34  ;;  %v14399_v36 = vsel %vm14297_vm3, %v6696_v2, %v6692_v40  ;;  %vm6749_vm9 = vweird.f32 %v13904_v34  ;;  %v6761_v4 = vsub.f32 1.0, %v6760_v23 }
 0xb2f   : > { %8947 = vrcp.f32 %v13932_v44  ;;  %v14411_v61 = vpop.eup %8943  ;;  %v6722_v2 = vsel %vm14405_vm8, %v14242_v13, %v6718_v30  ;;  %v6733_v24 = vadd.f32 %v14259_v11, %v6732_v18  ;;  %v6747_v26 = vmul.f32 %v14314_v38, %v6746_v62 }
 0xb30   : > { %vm6764_vm3 = vweird.f32 %v13920_v5  ;;  %v14423_v28 = vsel %vm14319_vm5, %v6711_v9, %v6707_v41  ;;  %v6768_v52 = vand.u32 2147483647, %v13920_v5  ;;  %v6770_v57 = vand.u32 2147483648, %v13920_v5  ;;  %vm14446_vm5 = vmor %vm6734_vm13, %vm6735_vm6 }
 0xb31   : > { %v6775_v7 = vmul.f32 %v14411_v61, %v13922_v49  ;;  %v14429_v32 = vpop.eup %8945  ;;  %vm6750_vm1 = vweird.f32 %v14314_v38  ;;  %vm14432_vm11 = vcmp.eq.f32.partialorder %v6753_v42, 8.507059e+37  ;;  %v6756_v6 = vor.u32 1.1754944e-38, %v6755_v54 }
 0xb32   : > { %v6762_v33 = vmul.f32 %v14367_v14, %v6761_v4  ;;  %8949 = vrcp.f32 %v13939_v3  ;;  %v14440_v9 = vsel %vm14353_vm2, %v6726_v1, %v6722_v2  ;;  %v6785_v29 = vand.u32 2147483648, %v13922_v49  ;;  %vm14479_vm0 = vmor %vm6749_vm9, %vm6750_vm1 }
 0xb33   : > { %v6776_v27 = vsub.f32 1.0, %v6775_v7  ;;  %v6790_v0 = vmul.f32 %v14429_v32, %v13930_v21  ;;  %v6737_v19 = vsel %vm14446_vm5, %v14259_v11, %v6733_v24  ;;  %v6748_v43 = vadd.f32 %v14314_v38, %v6747_v26  ;;  %v14517_v7 = vpop.f32.mrf.mxu2 }
 0xb34   : > { %v6783_v46 = vand.u32 2147483647, %v13922_v49  ;;  %8951 = vrcp.f32 %v15954_v39  ;;  %vm6765_vm14 = vweird.f32 %v14367_v14  ;;  %vm14462_vm15 = vcmp.eq.f32.partialorder %v6768_v52, 8.507059e+37 }
 0xb35   : > { %v14459_v8 = vpop.eup %8947  ;;  %v6771_v31 = vor.u32 1.1754944e-38, %v6770_v57  ;;  %v6800_v40 = vand.u32 2147483648, %v13930_v21  ;;  %v6763_v1 = vadd.f32 %v14367_v14, %v6762_v33  ;;  %v6777_v11 = vmul.f32 %v14411_v61, %v6776_v27  ;;  %vm14501_vm10 = vmor %vm6764_vm3, %vm6765_vm14 }
 0xb36   : > { %v6791_v30 = vsub.f32 1.0, %v6790_v0  ;;  %v6805_v18 = vmul.f32 %v14459_v8, %v13932_v44  ;;  %v14473_v62 = vsel %vm14391_vm12, %v6741_v37, %v6737_v19  ;;  %vm6779_vm4 = vweird.f32 %v13922_v49  ;;  %v16003_v37 = vld [vmem:[#allocation71_spill] sm:$0xff] }
 0xb37   : > { %v6786_v23 = vor.u32 1.1754944e-38, %v6785_v29  ;;  %v6798_v41 = vand.u32 2147483647, %v13930_v21  ;;  %v6752_v48 = vsel %vm14479_vm0, %v14314_v38, %v6748_v43  ;;  %vm14490_vm2 = vcmp.eq.f32.partialorder %v6783_v46, 8.507059e+37 }
 0xb38   : > { %v14485_v42 = vpop.eup %8949  ;;  %vm6794_vm7 = vweird.f32 %v13930_v21  ;;  %v6806_v34 = vsub.f32 1.0, %v6805_v18  ;;  %v6815_v54 = vand.u32 2147483648, %v13932_v44  ;;  %8953 = vrcp.f32 %v15961_v51 }
 0xb39   : > { %v6801_v38 = vor.u32 1.1754944e-38, %v6800_v40  ;;  %vm6809_vm13 = vweird.f32 %v13932_v44  ;;  %v6813_v2 = vand.u32 2147483647, %v13932_v44  ;;  %v6820_v24 = vmul.f32 %v14485_v42, %v13939_v3 }
 0xb3a   : > { %v14509_v26 = vpop.eup %8951  ;;  %v6767_v52 = vsel %vm14501_vm10, %v14367_v14, %v6763_v1  ;;  %v6778_v5 = vadd.f32 %v14411_v61, %v6777_v11  ;;  %vm6780_vm6 = vweird.f32 %v14411_v61  ;;  %v6792_v57 = vmul.f32 %v14429_v32, %v6791_v30  ;;  %v15986_v14 = vld [vmem:[#allocation76_spill] sm:$0xff] }
 0xb3b   : > { %v14521_v33 = vsel %vm14432_vm11, %v6756_v6, %v6752_v48  ;;  %v6807_v63 = vmul.f32 %v14459_v8, %v6806_v34  ;;  %v6821_v27 = vsub.f32 1.0, %v6820_v24  ;;  %v6835_v29 = vmul.f32 %v14509_v26, %v15954_v39  ;;  %vm14539_vm9 = vmor %vm6779_vm4, %vm6780_vm6 }
 0xb3c   : > { %vm6795_vm12 = vweird.f32 %v14429_v32  ;;  %vm14527_vm8 = vcmp.eq.f32.partialorder %v6798_v41, 8.507059e+37  ;;  %v6816_v0 = vor.u32 1.1754944e-38, %v6815_v54  ;;  %v6828_v19 = vand.u32 2147483647, %v13939_v3  ;;  %v15990_v54 = vld [vmem:[#allocation27_spill] sm:$0xff] }
 0xb3d   : > { %v6830_v43 = vand.u32 2147483648, %v13939_v3  ;;  %v14535_v13 = vsel %vm14462_vm15, %v6771_v31, %v6767_v52  ;;  %vm14543_vm3 = vcmp.eq.f32.partialorder %v6813_v2, 8.507059e+37  ;;  %vm6824_vm1 = vweird.f32 %v13939_v3  ;;  %vm14574_vm4 = vmor %vm6794_vm7, %vm6795_vm12 }
 0xb3e   : > { %v6836_v40 = vsub.f32 1.0, %v6835_v29  ;;  %vm6839_vm11 = vweird.f32 %v15954_v39  ;;  %v8954_v1 = vpop.eup %8953  ;;  %v6782_v12 = vsel %vm14539_vm9, %v14411_v61, %v6778_v5  ;;  %v6793_v49 = vadd.f32 %v14429_v32, %v6792_v57 }
 0xb3f   : > { %v6822_v31 = vmul.f32 %v14485_v42, %v6821_v27  ;;  %v6843_v11 = vand.u32 2147483647, %v15954_v39  ;;  %v6808_v30 = vadd.f32 %v14459_v8, %v6807_v63  ;;  %vm6810_vm5 = vweird.f32 %v14459_v8  ;;  %v15980_v27 = vld [vmem:[#allocation35_spill] sm:$0xff] }
 0xb40   : > { %v6837_v18 = vmul.f32 %v14509_v26, %v6836_v40  ;;  %v6850_v10 = vmul.f32 %v8954_v1, %v15961_v51  ;;  %vm6825_vm14 = vweird.f32 %v14485_v42  ;;  %vm14560_vm15 = vcmp.eq.f32.partialorder %v6828_v19, 8.507059e+37  ;;  %v15981_v19 = vld [vmem:[#allocation75_spill] sm:$0xff]  ;;  %v14614_v40 = vpop.f32.mrf.mxu2 }
 0xb41   : > { %v6831_v61 = vor.u32 1.1754944e-38, %v6830_v43  ;;  %v6845_v48 = vand.u32 2147483648, %v15954_v39  ;;  %vm6854_vm0 = vweird.f32 %v15961_v51  ;;  %v14568_v34 = vsel %vm14490_vm2, %v6786_v23, %v6782_v12  ;;  %vm14585_vm2 = vmor %vm6809_vm13, %vm6810_vm5  ;;  %v15982_v43 = vld [vmem:[#allocation118_spill] sm:$0xff]  ;;  %v15985_v39 = vld [vmem:[#allocation119_spill] sm:$0xff] }
 0xb42   : > { %v6851_v4 = vsub.f32 1.0, %v6850_v10  ;;  %v6858_v2 = vand.u32 2147483647, %v15961_v51  ;;  %v6860_v24 = vand.u32 2147483648, %v15961_v51  ;;  %v6797_v52 = vsel %vm14574_vm4, %v14429_v32, %v6793_v49  ;;  %vm14604_vm13 = vmor %vm6824_vm1, %vm6825_vm14  ;;  %v15989_v10 = vld [vmem:[#allocation64_spill] sm:$0xff]  ;;  %v15994_v23 = vld [vmem:[#allocation78_spill] sm:$0xff] }
 0xb43   : > { %v6823_v21 = vadd.f32 %v14485_v42, %v6822_v31  ;;  %vm6840_vm7 = vweird.f32 %v14509_v26  ;;  %vm14591_vm10 = vcmp.eq.f32.partialorder %v6843_v11, 8.507059e+37  ;;  %v6812_v5 = vsel %vm14585_vm2, %v14459_v8, %v6808_v30  ;;  %v15987_v11 = vld [vmem:[#allocation111_spill] sm:$0xff] }
 0xb44   : > { %v6838_v32 = vadd.f32 %v14509_v26, %v6837_v18  ;;  %v6852_v57 = vmul.f32 %v8954_v1, %v6851_v4  ;;  %vm6855_vm6 = vweird.f32 %v8954_v1  ;;  %v6846_v63 = vor.u32 1.1754944e-38, %v6845_v48  ;;  %vm14622_vm12 = vmor %vm6839_vm11, %vm6840_vm7  ;;  %v15991_v4 = vld [vmem:[#allocation29_spill] sm:$0xff] }
 0xb45   : > { %v6969_v29 = vmul.f32 %v14091_v53, %v15980_v27  ;;  %v6970_v8 = vmul.f32 %v14096_v47, %v15981_v19  ;;  %v6971_v6 = vmul.f32 %v14101_v59, %v15982_v43  ;;  %v14618_v12 = vsel %vm14527_vm8, %v6801_v38, %v6797_v52  ;;  %vm6856_vm8 = vmor %vm6854_vm0, %vm6855_vm6  ;;  %v15999_v27 = vld [vmem:[#allocation69_spill] sm:$0xff] }
 0xb46   : > { %v6853_v49 = vadd.f32 %v8954_v1, %v6852_v57  ;;  %vm6859_vm9 = vcmp.eq.f32.partialorder %v6858_v2, 8.507059e+37  ;;  %v6861_v53 = vor.u32 1.1754944e-38, %v6860_v24  ;;  %v14628_v47 = vsel %vm14543_vm3, %v6816_v0, %v6812_v5  ;;  %v15993_v24 = vld [vmem:[#allocation89_spill] sm:$0xff] }
 0xb47   : > { %v6827_v59 = vsel %vm14604_vm13, %v14485_v42, %v6823_v21  ;;  %v6972_v38 = vmul.f32 %v14146_v45, %v15985_v39  ;;  %v6973_v31 = vmul.f32 %v14167_v55, %v15986_v14  ;;  %v6842_v46 = vsel %vm14622_vm12, %v14509_v26, %v6838_v32  ;;  %v15988_v42 = vld [vmem:[#allocation59_spill] sm:$0xff]  ;;  %v15992_v26 = vld [vmem:[#allocation120_spill] sm:$0xff]  ;;  %v15995_v5 = vld [vmem:[#allocation33_spill] sm:$0xff] }
 0xb48   : > { %v6857_v0 = vsel %vm6856_vm8, %v8954_v1, %v6853_v49  ;;  %v6974_v30 = vmul.f32 %v14172_v15, %v15987_v11  ;;  %v6975_v18 = vmul.f32 %v14189_v20, %v15988_v42  ;;  %v7286_v48 = vadd.f32 %v15989_v10, %v6969_v29  ;;  %v14660_v15 = vld [vmem:[%s14970_s11] ss:$0 sm:$0xff]  ;;  %v16000_v29 = vld [vmem:[#allocation30_spill] sm:$0xff]  ;;  %v16004_v49 = vld [vmem:[#allocation39_spill] sm:$0xff]  ;;  %v14710_v42 = vpop.f32.mrf.mxu2 }
 0xb49   : > { %v6862_v51 = vsel %vm6859_vm9, %v6861_v53, %v6857_v0  ;;  %v7287_v45 = vadd.f32 %v15990_v54, %v6970_v8  ;;  %v7288_v2 = vadd.f32 %v15991_v4, %v6971_v6  ;;  %v14652_v55 = vsel %vm14560_vm15, %v6831_v61, %v6827_v59  ;;  %v15996_v61 = vld [vmem:[#allocation110_spill] sm:$0xff]  ;;  %v16001_v8 = vld [vmem:[#allocation28_spill] sm:$0xff]  ;;  %v16006_v39 = vld [vmem:[#allocation113_spill] sm:$0xff] }
 0xb4a   : > { %v6976_v1 = vmul.f32 %v14231_v58, %v15992_v26  ;;  %v6993_v52 = vmul.f32 %v6862_v51, %v15993_v24  ;;  %v7267_v20 = vadd.f32 %v14660_v15, %v14517_v7  ;;  %v6977_v21 = vmul.f32 %v14237_v25, %v15994_v23  ;;  %v15997_v58 = vld [vmem:[#allocation68_spill] sm:$0xff]  ;;  %7318 = vst [vmem:[%s14673_s19] sm:$0xff] %v7286_v48  ;;  %v15998_v25 = vld [vmem:[#allocation37_spill] sm:$0xff]  ;;  %v16015_v48 = vld [vmem:[#allocation131_spill] sm:$0xff] }
 0xb4b   : > { %v6978_v41 = vmul.f32 %v14246_v56, %v15995_v5  ;;  %v6979_v32 = vmul.f32 %v14327_v60, %v15996_v61  ;;  %v7289_v57 = vadd.f32 %v15997_v58, %v6972_v38  ;;  %v14678_v7 = vsel %vm14591_vm10, %v6846_v63, %v6842_v46  ;;  %7319 = vst [vmem:[%s14673_s19 + $0x8] sm:$0xff] %v7287_v45  ;;  %v16002_v6 = vld [vmem:[#allocation48_spill] sm:$0xff]  ;;  %v16017_v45 = vld [vmem:[#allocation114_spill] sm:$0xff]  ;;  %v16020_v23 = vld [vmem:[#allocation115_spill] sm:$0xff] }
 0xb4c   : > { %v6980_v56 = vmul.f32 %v14361_v17, %v15998_v25  ;;  %v7310_v44 = vadd.f32 %v7267_v20, %v6993_v52  ;;  %v7290_v60 = vadd.f32 %v15999_v27, %v6973_v31  ;;  %v6981_v19 = vmul.f32 %v14374_v22, %v16000_v29  ;;  %7320 = vst [vmem:[%s14673_s19 + $0x10] sm:$0xff] %v7288_v2  ;;  %v16005_v53 = vld [vmem:[#allocation112_spill] sm:$0xff]  ;;  %v16018_v2 = vld [vmem:[#allocation83_spill] sm:$0xff]  ;;  %v16021_v61 = vld [vmem:[#allocation137_spill] sm:$0xff] }
 0xb4d   : > { %v6982_v43 = vmul.f32 %v14399_v36, %v16001_v8  ;;  %v6983_v3 = vmul.f32 %v14423_v28, %v16002_v6  ;;  %v7291_v63 = vadd.f32 %v16003_v37, %v6974_v30  ;;  %v6984_v17 = vmul.f32 %v14440_v9, %v16004_v49  ;;  %v16007_v22 = vld [vmem:[#allocation32_spill] sm:$0xff]  ;;  %v16008_v36 = vld [vmem:[#allocation82_spill] sm:$0xff]  ;;  %v16011_v9 = vld [vmem:[#allocation129_spill] sm:$0xff]  ;;  %7321 = vst [vmem:[%s14673_s19 + $0x18] sm:$0xff] %v7289_v57 }
 0xb4e   : > { %v6985_v59 = vmul.f32 %v14473_v62, %v16005_v53  ;;  %v6986_v38 = vmul.f32 %v14521_v33, %v16006_v39  ;;  %7342 = vst [vmem:[%s14673_s19 + $0xc0] sm:$0xff] %v7310_v44  ;;  %v7292_v14 = vadd.f32 %v16007_v22, %v6975_v18  ;;  %v6987_v28 = vmul.f32 %v14535_v13, %v16008_v36  ;;  %v16009_v31 = vld [vmem:[#allocation116_spill] sm:$0xff]  ;;  %v16012_v30 = vld [vmem:[#allocation62_spill] sm:$0xff]  ;;  %v16019_v52 = vld [vmem:[#allocation135_spill] sm:$0xff] }
 0xb4f   : > { %v14704_v46 = vmul.f32 %v14568_v34, %v16009_v31  ;;  %v16010_v0 = vld [vmem:[#allocation56_spill] sm:$0xff]  ;;  %v6284_v62 = vmul.f32 %v16012_v30, %v16011_v9  ;;  %v16013_v33 = vld [vmem:[#allocation34_spill] sm:$0xff]  ;;  %7322 = vst [vmem:[%s14673_s19 + $0x20] sm:$0xff] %v7290_v60  ;;  %v6285_v13 = vmul.f32 %v16012_v30, %v16015_v48  ;;  %v16016_v34 = vld [vmem:[#allocation133_spill] sm:$0xff]  ;;  %v7296_v4 = vadd.f32 %v16017_v45, %v6979_v32 }
 0xb50   : > { %v7293_v11 = vadd.f32 %v16010_v0, %v6976_v1  ;;  %v7294_v51 = vadd.f32 %v16013_v33, %v6977_v21  ;;  %v16014_v18 = vld [vmem:[#allocation38_spill] sm:$0xff]  ;;  %v6286_v54 = vmul.f32 %v16012_v30, %v16016_v34  ;;  %v7297_v26 = vadd.f32 %v16018_v2, %v6980_v56  ;;  %v8988_v1 = vld [vmem:[%s14967_s8] ss:$0 sm:$0xff]  ;;  %7323 = vst [vmem:[%s14673_s19 + $0x28] sm:$0xff] %v7291_v63  ;;  %v16022_v56 = vld [vmem:[#allocation139_spill] sm:$0xff]  ;;  %v7273_v34 = vpop.f32.mrf.mxu2 }
 0xb51   : > { %v7295_v10 = vadd.f32 %v16014_v18, %v6978_v41  ;;  %v6319_v24 = vmul.f32 %v8988_v1, %v6284_v62  ;;  %v6287_v20 = vmul.f32 %v16012_v30, %v16019_v52  ;;  %v7298_v21 = vadd.f32 %v16020_v23, %v6981_v19  ;;  %7324 = vst [vmem:[%s14673_s19 + $0x30] sm:$0xff] %v7292_v14  ;;  %v8989_v58 = vld [vmem:[%s14968_s9] ss:$0 sm:$0xff]  ;;  %v16030_v48 = vld [vmem:[#allocation47_spill] sm:$0xff] }
 0xb52   : > { %v6320_v5 = vmul.f32 %v8988_v1, %v6285_v13  ;;  %v6321_v41 = vmul.f32 %v8988_v1, %v6286_v54  ;;  %v6288_v32 = vmul.f32 %v16012_v30, %v16021_v61  ;;  %7325 = vst [vmem:[%s14673_s19 + $0x38] sm:$0xff] %v7293_v11  ;;  %v6289_v44 = vmul.f32 %v16012_v30, %v16022_v56  ;;  %v16023_v27 = vld [vmem:[#allocation61_spill] sm:$0xff] }
 0xb53   : > { %v14734_v57 = vadd.f32 %v8989_v58, %v6319_v24  ;;  %v6322_v25 = vmul.f32 %v8988_v1, %v6287_v20  ;;  %v6290_v60 = vmul.f32 %v16012_v30, %v16023_v27  ;;  %v16024_v29 = vld [vmem:[#allocation53_spill] sm:$0xff]  ;;  %7326 = vst [vmem:[%s14673_s19 + $0x40] sm:$0xff] %v7294_v51  ;;  %v16027_v30 = vld [vmem:[#allocation50_spill] sm:$0xff]  ;;  %v7303_v13 = vadd.f32 %v16030_v48, %v6986_v38 }
 0xb54   : > { %v7299_v19 = vadd.f32 %v16024_v29, %v6982_v43  ;;  %v14743_v8 = vadd.f32 %v8989_v58, %v6320_v5  ;;  %v14745_v6 = vadd.f32 %v8989_v58, %v6321_v41  ;;  %v6323_v37 = vmul.f32 %v8988_v1, %v6288_v32  ;;  %v16025_v63 = vld [vmem:[#allocation117_spill] sm:$0xff]  ;;  %7327 = vst [vmem:[%s14673_s19 + $0x48] sm:$0xff] %v7295_v10 }
 0xb55   : > { %v7300_v49 = vadd.f32 %v16025_v63, %v6983_v3  ;;  %v8213_v53 = vmul.f32 -1.442695, %v14734_v57  ;;  %v14750_v39 = vadd.f32 %v8989_v58, %v6322_v25  ;;  %v6324_v22 = vmul.f32 %v8988_v1, %v6289_v44  ;;  %v16026_v14 = vld [vmem:[#allocation93_spill] sm:$0xff]  ;;  %7328 = vst [vmem:[%s14673_s19 + $0x50] sm:$0xff] %v7296_v4 }
 0xb56   : > { %v7301_v36 = vadd.f32 %v16026_v14, %v6984_v17  ;;  %v8214_v43 = vmul.f32 -1.442695, %v14743_v8  ;;  %v8215_v31 = vmul.f32 -1.442695, %v14745_v6  ;;  %v14756_v0 = vadd.f32 %v8989_v58, %v6323_v37  ;;  %7329 = vst [vmem:[%s14673_s19 + $0x58] sm:$0xff] %v7297_v26  ;;  %v16028_v17 = vld [vmem:[#allocation42_spill] sm:$0xff] }
 0xb57   : > { %8955 = vpow2.f32 %v8213_v53  ;;  %v8216_v3 = vmul.f32 -1.442695, %v14750_v39  ;;  %v14760_v11 = vadd.f32 %v8989_v58, %v6324_v22  ;;  %v6325_v9 = vmul.f32 %v8988_v1, %v6290_v60  ;;  %7330 = vst [vmem:[%s14673_s19 + $0x60] sm:$0xff] %v7298_v21  ;;  %v16029_v18 = vld [vmem:[#allocation85_spill] sm:$0xff]  ;;  %v16034_v26 = vld [vmem:[#allocation94_spill] sm:$0xff] }
 0xb58   : > { %v6989_v62 = vmul.f32 %v14618_v12, %v16027_v30  ;;  %v7302_v33 = vadd.f32 %v16028_v17, %v6985_v59  ;;  %8957 = vpow2.f32 %v8214_v43  ;;  %v8217_v51 = vmul.f32 -1.442695, %v14756_v0  ;;  %7331 = vst [vmem:[%s14673_s19 + $0x68] sm:$0xff] %v7299_v19  ;;  %v16031_v59 = vld [vmem:[#allocation95_spill] sm:$0xff]  ;;  %v16032_v4 = vld [vmem:[#allocation49_spill] sm:$0xff]  ;;  %v7276_v19 = vpop.f32.mrf.mxu2 }
 0xb59   : > { %v6990_v10 = vmul.f32 %v14628_v47, %v16029_v18  ;;  %8959 = vpow2.f32 %v8215_v31  ;;  %v8218_v54 = vmul.f32 -1.442695, %v14760_v11  ;;  %v7259_v12 = vadd.f32 %v14660_v15, %v14205_v16  ;;  %7332 = vst [vmem:[%s14673_s19 + $0x70] sm:$0xff] %v7300_v49  ;;  %v16033_v47 = vld [vmem:[#allocation44_spill] sm:$0xff] }
 0xb5a   : > { %v6991_v45 = vmul.f32 %v14652_v55, %v16031_v59  ;;  %v7304_v2 = vadd.f32 %v16032_v4, %v6987_v28  ;;  %8961 = vpow2.f32 %v8216_v3  ;;  %v6992_v38 = vmul.f32 %v14678_v7, %v16033_v47  ;;  %7333 = vst [vmem:[%s14673_s19 + $0x78] sm:$0xff] %v7301_v36  ;;  %v16035_v55 = vld [vmem:[#allocation96_spill] sm:$0xff] }
 0xb5b   : > { %v7305_v1 = vadd.f32 %v16034_v26, %v14704_v46  ;;  %8963 = vpow2.f32 %v8217_v51  ;;  %v14783_v24 = vadd.f32 %v8989_v58, %v6325_v9  ;;  %v7262_v16 = vadd.f32 %v14660_v15, %v14291_v35  ;;  %7334 = vst [vmem:[%s14673_s19 + $0x80] sm:$0xff] %v7302_v33 }
 0xb5c   : > { %v7306_v52 = vadd.f32 %v16035_v55, %v6989_v62  ;;  %8965 = vpow2.f32 %v8218_v54  ;;  %v7264_v7 = vadd.f32 %v14660_v15, %v14413_v50  ;;  %v7307_v20 = vadd.f32 %v7259_v12, %v6990_v10  ;;  %7335 = vst [vmem:[%s14673_s19 + $0x88] sm:$0xff] %v7303_v13 }
 0xb5d   : > { %v8956_v28 = vpop.eup %8955  ;;  %v7308_v23 = vadd.f32 %v7262_v16, %v6991_v45  ;;  %7336 = vst [vmem:[%s14673_s19 + $0x90] sm:$0xff] %v7304_v2  ;;  %v8219_v61 = vmul.f32 -1.442695, %v14783_v24  ;;  %v14805_v25 = vadd.f32 %v14660_v15, %v14614_v40  ;;  %v14810_v56 = vadd.f32 %v14660_v15, %v14710_v42 }
 0xb5e   : > { %v8958_v46 = vpop.eup %8957  ;;  %v14792_v21 = vadd.f32 1.0, %v8956_v28  ;;  %v7309_v35 = vadd.f32 %v7264_v7, %v6992_v38  ;;  %7337 = vst [vmem:[%s14673_s19 + $0x98] sm:$0xff] %v7305_v1  ;;  %v14825_v42 = vadd.f32 %v14660_v15, %v7273_v34  ;;  %v14830_v53 = vadd.f32 %v14660_v15, %v7276_v19 }
 0xb5f   : > { %v8960_v5 = vpop.eup %8959  ;;  %v14796_v41 = vadd.f32 1.0, %v8958_v46  ;;  %7338 = vst [vmem:[%s14673_s19 + $0xa0] sm:$0xff] %v7306_v52 }
 0xb60   : > { %v8962_v32 = vpop.eup %8961  ;;  %8967 = vrcp.f32 %v14792_v21  ;;  %7339 = vst [vmem:[%s14673_s19 + $0xa8] sm:$0xff] %v7307_v20  ;;  %v14812_v44 = vadd.f32 1.0, %v8960_v5  ;;  %v6873_v60 = vand.u32 2147483647, %v14792_v21  ;;  %v6875_v29 = vand.u32 2147483648, %v14792_v21 }
 0xb61   : > { %v8964_v50 = vpop.eup %8963  ;;  %8969 = vrcp.f32 %v14796_v41  ;;  %7340 = vst [vmem:[%s14673_s19 + $0xb0] sm:$0xff] %v7308_v23  ;;  %v14814_v27 = vadd.f32 1.0, %v8962_v32  ;;  %v6888_v40 = vand.u32 2147483647, %v14796_v41  ;;  %v6890_v63 = vand.u32 2147483648, %v14796_v41  ;;  %v7278_v23 = vpop.f32.mrf.mxu2 }
 0xb62   : > { %v8966_v58 = vpop.eup %8965  ;;  %7341 = vst [vmem:[%s14673_s19 + $0xb8] sm:$0xff] %v7309_v35  ;;  %v14819_v37 = vadd.f32 1.0, %v8964_v50  ;;  %8971 = vpow2.f32 %v8219_v61  ;;  %v6905_v49 = vand.u32 2147483648, %v14812_v44  ;;  %vm6869_vm3 = vweird.f32 %v14792_v21 }
 0xb63   : > { %8973 = vrcp.f32 %v14812_v44  ;;  %v14832_v22 = vadd.f32 1.0, %v8966_v58  ;;  %vm6884_vm1 = vweird.f32 %v14796_v41  ;;  %v6920_v36 = vand.u32 2147483648, %v14814_v27 }
 0xb64   : > { %8975 = vrcp.f32 %v14814_v27  ;;  %vm14839_vm11 = vcmp.eq.f32.partialorder %v6873_v60, 8.507059e+37  ;;  %v6876_v9 = vor.u32 1.1754944e-38, %v6875_v29  ;;  %v6903_v30 = vand.u32 2147483647, %v14812_v44 }
 0xb65   : > { %8977 = vrcp.f32 %v14819_v37  ;;  %vm14845_vm5 = vcmp.eq.f32.partialorder %v6888_v40, 8.507059e+37  ;;  %v6891_v33 = vor.u32 1.1754944e-38, %v6890_v63  ;;  %v6918_v51 = vand.u32 2147483647, %v14814_v27 }
 0xb66   : > { %v8968_v14 = vpop.eup %8967  ;;  %v6935_v18 = vand.u32 2147483648, %v14819_v37  ;;  %vm6899_vm14 = vweird.f32 %v14812_v44  ;;  %v6906_v13 = vor.u32 1.1754944e-38, %v6905_v49  ;;  %8979 = vrcp.f32 %v14832_v22 }
 0xb67   : > { %v8970_v43 = vpop.eup %8969  ;;  %v6865_v31 = vmul.f32 %v8968_v14, %v14792_v21  ;;  %vm6870_vm15 = vweird.f32 %v8968_v14  ;;  %vm6914_vm4 = vweird.f32 %v14814_v27  ;;  %v6921_v12 = vor.u32 1.1754944e-38, %v6920_v36 }
 0xb68   : > { %v6880_v62 = vmul.f32 %v8970_v43, %v14796_v41  ;;  %v8972_v10 = vpop.eup %8971  ;;  %vm6885_vm0 = vweird.f32 %v8970_v43  ;;  %vm14855_vm2 = vcmp.eq.f32.partialorder %v6903_v30, 8.507059e+37  ;;  %vm6929_vm7 = vweird.f32 %v14819_v37  ;;  %vm6871_vm13 = vmor %vm6869_vm3, %vm6870_vm15 }
 0xb69   : > { %v6866_v48 = vsub.f32 1.0, %v6865_v31  ;;  %v8974_v34 = vpop.eup %8973  ;;  %v6933_v47 = vand.u32 2147483647, %v14819_v37  ;;  %v6948_v38 = vand.u32 2147483647, %v14832_v22  ;;  %vm14863_vm10 = vcmp.eq.f32.partialorder %v6918_v51, 8.507059e+37  ;;  %vm6886_vm8 = vmor %vm6884_vm1, %vm6885_vm0 }
 0xb6a   : > { %v6881_v54 = vsub.f32 1.0, %v6880_v62  ;;  %v8976_v59 = vpop.eup %8975  ;;  %v6895_v4 = vmul.f32 %v8974_v34, %v14812_v44  ;;  %v6936_v52 = vor.u32 1.1754944e-38, %v6935_v18  ;;  %v6950_v28 = vand.u32 2147483648, %v14832_v22 }
 0xb6b   : > { %v6867_v45 = vmul.f32 %v8968_v14, %v6866_v48  ;;  %v8978_v26 = vpop.eup %8977  ;;  %v6910_v16 = vmul.f32 %v8976_v59, %v14814_v27  ;;  %vm6900_vm6 = vweird.f32 %v8974_v34  ;;  %vm6915_vm12 = vweird.f32 %v8976_v59  ;;  %v7281_v48 = vpop.f32.mrf.mxu2 }
 0xb6c   : > { %v6882_v1 = vmul.f32 %v8970_v43, %v6881_v54  ;;  %v6896_v20 = vsub.f32 1.0, %v6895_v4  ;;  %v6925_v46 = vmul.f32 %v8978_v26, %v14819_v37  ;;  %vm6930_vm9 = vweird.f32 %v8978_v26  ;;  %v8980_v61 = vpop.eup %8979  ;;  %vm6901_vm3 = vmor %vm6899_vm14, %vm6900_vm6 }
 0xb6d   : > { %v6868_v7 = vadd.f32 %v8968_v14, %v6867_v45  ;;  %v6911_v35 = vsub.f32 1.0, %v6910_v16  ;;  %v14875_v60 = vadd.f32 1.0, %v8972_v10  ;;  %v6940_v40 = vmul.f32 %v8980_v61, %v14832_v22 }
 0xb6e   : > { %v6883_v5 = vadd.f32 %v8970_v43, %v6882_v1  ;;  %v6897_v50 = vmul.f32 %v8974_v34, %v6896_v20  ;;  %v6926_v58 = vsub.f32 1.0, %v6925_v46  ;;  %vm6945_vm1 = vweird.f32 %v8980_v61 }
 0xb6f   : > { %v6872_v32 = vsel %vm6871_vm13, %v8968_v14, %v6868_v7  ;;  %v6912_v21 = vmul.f32 %v8976_v59, %v6911_v35  ;;  %v6941_v3 = vsub.f32 1.0, %v6940_v40  ;;  %8981 = vrcp.f32 %v14875_v60 }
 0xb70   : > { %v6877_v29 = vsel %vm14839_vm11, %v6876_v9, %v6872_v32  ;;  %v6887_v19 = vsel %vm6886_vm8, %v8970_v43, %v6883_v5  ;;  %v6898_v14 = vadd.f32 %v8974_v34, %v6897_v50  ;;  %v6927_v36 = vmul.f32 %v8978_v26, %v6926_v58  ;;  %vm6916_vm11 = vmor %vm6914_vm4, %vm6915_vm12 }
 0xb71   : > { %v6994_v63 = vmul.f32 %v6877_v29, %v14734_v57  ;;  %v6892_v49 = vsel %vm14845_vm5, %v6891_v33, %v6887_v19  ;;  %v6913_v31 = vadd.f32 %v8976_v59, %v6912_v21  ;;  %vm6931_vm5 = vmor %vm6929_vm7, %vm6930_vm9  ;;  %v6942_v62 = vmul.f32 %v8980_v61, %v6941_v3 }
 0xb72   : > { %v6995_v41 = vmul.f32 %v6892_v49, %v14743_v8  ;;  %v6902_v9 = vsel %vm6901_vm3, %v8974_v34, %v6898_v14  ;;  %v6928_v57 = vadd.f32 %v8978_v26, %v6927_v36  ;;  %vm6934_vm14 = vcmp.eq.f32.partialorder %v6933_v47, 8.507059e+37 }
 0xb73   : > { %v7311_v43 = vadd.f32 %v14805_v25, %v6994_v63  ;;  %v6907_v44 = vsel %vm14855_vm2, %v6906_v13, %v6902_v9  ;;  %v6917_v30 = vsel %vm6916_vm11, %v8976_v59, %v6913_v31  ;;  %v6943_v51 = vadd.f32 %v8980_v61, %v6942_v62 }
 0xb74   : > { %v7312_v8 = vadd.f32 %v14810_v56, %v6995_v41  ;;  %v6996_v25 = vmul.f32 %v6907_v44, %v14745_v6  ;;  %v6922_v27 = vsel %vm14863_vm10, %v6921_v12, %v6917_v30  ;;  %v6932_v17 = vsel %vm6931_vm5, %v8978_v26, %v6928_v57 }
 0xb75   : > { %7343 = vst [vmem:[%s14673_s19 + $0xc8] sm:$0xff] %v7311_v43  ;;  %v6997_v56 = vmul.f32 %v6922_v27, %v14750_v39  ;;  %v6937_v33 = vsel %vm6934_vm14, %v6936_v52, %v6932_v17  ;;  %vm6944_vm15 = vweird.f32 %v14832_v22  ;;  %v7279_v6 = vadd.f32 %v14660_v15, %v7278_v23  ;;  %v8982_v34 = vpop.eup %8981 }
 0xb76   : > { %7344 = vst [vmem:[%s14673_s19 + $0xd0] sm:$0xff] %v7312_v8  ;;  %v7313_v37 = vadd.f32 %v14825_v42, %v6996_v25  ;;  %v6998_v18 = vmul.f32 %v6937_v33, %v14756_v0  ;;  %vm6946_vm0 = vmor %vm6944_vm15, %vm6945_vm1  ;;  %v6951_v10 = vor.u32 1.1754944e-38, %v6950_v28  ;;  %vm6949_vm4 = vcmp.eq.f32.partialorder %v6948_v38, 8.507059e+37  ;;  %v7283_v38 = vpop.f32.mrf.mxu2 }
 0xb77   : > { %v7314_v13 = vadd.f32 %v14830_v53, %v6997_v56  ;;  %v6947_v39 = vsel %vm6946_vm0, %v8980_v61, %v6943_v51  ;;  %v7282_v12 = vadd.f32 %v14660_v15, %v7281_v48  ;;  %v6955_v59 = vmul.f32 %v8982_v34, %v14875_v60 }
 0xb78   : > { %7345 = vst [vmem:[%s14673_s19 + $0xd8] sm:$0xff] %v7313_v37  ;;  %v7315_v42 = vadd.f32 %v7279_v6, %v6998_v18  ;;  %v6952_v54 = vsel %vm6949_vm4, %v6951_v10, %v6947_v39  ;;  %v6965_v4 = vand.u32 2147483648, %v14875_v60  ;;  %vm6960_vm2 = vweird.f32 %v8982_v34 }
 0xb79   : > { %7346 = vst [vmem:[%s14673_s19 + $0xe0] sm:$0xff] %v7314_v13  ;;  %v6999_v0 = vmul.f32 %v6952_v54, %v14760_v11  ;;  %v6956_v53 = vsub.f32 1.0, %v6955_v59  ;;  %v6963_v2 = vand.u32 2147483647, %v14875_v60  ;;  %vm6959_vm7 = vweird.f32 %v14875_v60 }
 0xb7a   : > { %7347 = vst [vmem:[%s14673_s19 + $0xe8] sm:$0xff] %v7315_v42  ;;  %vm6961_vm10 = vmor %vm6959_vm7, %vm6960_vm2  ;;  %v6966_v47 = vor.u32 1.1754944e-38, %v6965_v4  ;;  %v7284_v55 = vadd.f32 %v14660_v15, %v7283_v38 }
 0xb7b   : > { %v7316_v45 = vadd.f32 %v7282_v12, %v6999_v0  ;;  %v6957_v22 = vmul.f32 %v8982_v34, %v6956_v53  ;;  %vm6964_vm6 = vcmp.eq.f32.partialorder %v6963_v2, 8.507059e+37 }
 0xb7d   : > { %7348 = vst [vmem:[%s14673_s19 + $0xf0] sm:$0xff] %v7316_v45  ;;  %v6958_v11 = vadd.f32 %v8982_v34, %v6957_v22 }
 0xb7f   : > { %v6962_v26 = vsel %vm6961_vm10, %v8982_v34, %v6958_v11 }
 0xb80   : > { %v6967_v1 = vsel %vm6964_vm6, %v6966_v47, %v6962_v26 }
 0xb81   : > { %v7000_v16 = vmul.f32 %v6967_v1, %v14783_v24 }
 0xb83   : > { %v7317_v52 = vadd.f32 %v7284_v55, %v7000_v16 }
 0xb85   : > { %7349 = vst [vmem:[%s14673_s19 + $0xf8] sm:$0xff] %v7317_v52 }
 0xb86   : > { %9197 = shalt.err (!%p9194_p10)
}
 0xb87   : > { %s9260_s15 = smov 128   ;;  %s9261_s19 = smov 8  }
 0xb88   : > { %8616 = dma.vmem_to_hbm [thread:$0]  (%p9422_p13), %s7364_s28, 4096, %s7366_s1, %s7351_s4, %s9260_s15, %s9260_s15, %s9261_s19  }
 0xb89 PF: > { %s7380_s16 = sand.u32 1, %s9236_s21   ;;  %p16044_p11 = scmp.ge.s32.totalorder %s9248_s24, 2 }
 0xb8a   : > { %s7381_s10 = scalar_lea.sflag [#allocation6], %s7380_s16 }
 0xb8b   : > { %p8639_p0 = pnand %p16044_p11, %p9427_p4 }
 0xb8d   : > { %p8640_p2 = pneg %p8639_p0 }
 0xb8f   : > { %9231 = dma.done.wait (%p8640_p2), %s7381_s10, 4096  }
 0xb90   : > { %9233 = vsyncadd (%p8640_p2), %s7381_s10, 4294963200  ;;  %s16045_s18 = sld [smem:[#allocation21_spill]]  ;;  %p28_p6 = scmp.ge.s32.totalorder %s9402_s25, 4  }
 0xb91   : > { %s16046_s21 = smov %s9240_s22  ;;  %s16047_s22 = smov %s9244_s23 }
 0xb92   : > { %s16049_s24 = smov %s9402_s25  ;;  %30 = sbr.rel (!%p28_p6) target bundleno = 14 (0xe), region = 152 }
 0xb96   : > { %s16048_s23 = smov %s16045_s18 }
 0xb97   :  { %7387 = vsyncpa [#allocation5], 1 }
 0xb98   :  { %7389 = vsyncpa [#allocation5 + $0x1], 1 }
 0xb99   :  { %7390 = vsyncpa [#allocation8], 1 }
 0xb9a   :  { %7391 = vsyncpa [#allocation11], 1 }
 0xb9b   :  { %7392 = vsyncpa [#allocation14], 1 }
 0xb9c   :  { %7393 = vsyncpa [#allocation6], 1 }
 0xb9d   :  { %7395 = vsyncpa [#allocation6 + $0x1], 1 }

</bundles_post_ra>
